<compile_context>
chip_gen: v6e
topology: v6e:2x2x1
jax: 0.10.0
libtpu: 0.0.40
codegen_flags: <defaults>
</compile_context>

<pallas_src>
import functools

import jax
import jax.numpy as jnp
from jax import lax
from jax.experimental import pallas as pl
from jax.experimental.pallas import tpu as pltpu

BN_EPS = 1e-5


# ------------------------------ helpers ------------------------------------ #

def _vmem_limit_bytes():
    """Per-generation scoped-VMEM budget: ~3/4 of physical capacity
    (v7x: 64 MiB physical; v5e/v6e: 128 MiB), conservative fallback."""
    try:
        cap = int(pltpu.get_tpu_info().vmem_capacity_bytes)
    except Exception:  # hardware query unavailable on this jax build
        cap = 64 * 1024 * 1024
    return max(32 * 1024 * 1024, min(cap * 3 // 4, 100 * 1024 * 1024))


def _lane_tile(m, target=2048):
    """Largest multiple of 128 <= target that divides m (else full extent)."""
    if m <= 128 or m % 128 != 0:
        return m
    t = (min(target, m) // 128) * 128
    while t >= 128:
        if m % t == 0:
            return t
        t -= 128
    return m


# ----------------------------- Pallas kernels ------------------------------ #

def _sepconv_stage_kernel(x_ref, sc_ref, sh_ref, wc_ref, y_ref, st_ref,
                          xpad_ref, slab_ref, *, K, stride, pad,
                          channel_major_out):
    """One SepConv half, fully VMEM-resident per image.

    Per grid step (= one image):
      x_ref   : (1, H, W, Cin)   NHWC input block
      sc_ref  : (1, Cin)         folded BN scale of previous stage (ones for stage 1)
      sh_ref  : (1, Cin)         folded BN shift of previous stage (zeros for stage 1)
      wc_ref  : combined dw+pw weight, (Cout, K*K*Cin) if channel_major_out
                else (K*K*Cin, Cout)
      y_ref   : (1, Cout, Ho*Wo) if channel_major_out else (1, Ho*Wo, Cout)
      st_ref  : per-image [sum, sumsq] of the pre-BN output
      xpad_ref: (Hp, Wp, Cin)    scratch: zero-padded, activated conv input
      slab_ref: (Ho*Wo, K*K*Cin) scratch: im2col slab
    """
    H, W = x_ref.shape[1], x_ref.shape[2]
    Hp, Wp, Cin = xpad_ref.shape
    Ho = (Hp - K) // stride + 1
    Wo = (Wp - K) // stride + 1
    S = Ho * Wo

    # Zero only the padding ring; the (H, W) interior is fully overwritten
    # below.  Done every grid step so it is correct regardless of how the
    # batch grid is sharded across TensorCores.
    if pad > 0:
        xpad_ref[0:pad, :, :] = jnp.zeros((pad, Wp, Cin), jnp.float32)
        xpad_ref[Hp - pad:Hp, :, :] = jnp.zeros((pad, Wp, Cin), jnp.float32)
        xpad_ref[:, 0:pad, :] = jnp.zeros((Hp, pad, Cin), jnp.float32)
        xpad_ref[:, Wp - pad:Wp, :] = jnp.zeros((Hp, pad, Cin), jnp.float32)

    # Prologue: previous-stage folded BN affine + ReLU, written straight into
    # the padded conv input (stage 1 passes scale=1 / shift=0 -> plain ReLU).
    xpad_ref[pad:pad + H, pad:pad + W, :] = jnp.maximum(
        x_ref[0] * sc_ref[0, :] + sh_ref[0, :], 0.0)

    # im2col: one (S, Cin) column group per depthwise tap.  The reshape only
    # collapses leading dims (lane dim untouched -> no relayout).
    # NOTE: at Cin=4 each column group is only 4 lanes wide; realistic DARTS
    # channel counts make both the slab stores and the contraction lane-dense.
    # TODO(synk): for stride>1 a one-time space-to-depth of xpad would make
    # these unit-stride reads.
    for kh in range(K):
        for kw in range(K):
            if stride == 1:
                win = xpad_ref[kh:kh + Ho, kw:kw + Wo, :]
            else:
                win = xpad_ref[pl.ds(kh, Ho, stride), pl.ds(kw, Wo, stride), :]
            t = kh * K + kw
            slab_ref[:, t * Cin:(t + 1) * Cin] = win.reshape(S, Cin)

    # Depthwise + 1x1 conv folded into a single MXU matmul over the combined
    # K*K*Cin contraction.  HIGHEST precision keeps the 1e-3 check comfortable;
    # production channel counts should use bf16 operands + f32 accumulation.
    if channel_major_out:
        # (Cout, KKC) x (S, KKC)^T -> (Cout, S): lane-dense, already-NCHW rows.
        z = lax.dot_general(wc_ref[...], slab_ref[...],
                            (((1,), (1,)), ((), ())),
                            preferred_element_type=jnp.float32,
                            precision=lax.Precision.HIGHEST)
        y_ref[0, :, :] = z
        st_ref[0, :, 0:1] = jnp.sum(z, axis=1, keepdims=True)
        st_ref[0, :, 1:2] = jnp.sum(z * z, axis=1, keepdims=True)
    else:
        # (S, KKC) x (KKC, Cout) -> (S, Cout): spatial-major, keeps stage 2's
        # padded-input build a plain windowed copy.
        z = jnp.dot(slab_ref[...], wc_ref[...],
                    preferred_element_type=jnp.float32,
                    precision=lax.Precision.HIGHEST)
        y_ref[0, :, :] = z
        st_ref[0, 0:1, :] = jnp.sum(z, axis=0, keepdims=True)
        st_ref[0, 1:2, :] = jnp.sum(z * z, axis=0, keepdims=True)


def _bn_apply_kernel(y_ref, sc_ref, sh_ref, o_ref):
    """Elementwise y*scale + shift on channel-major, lane-dense tiles."""
    o_ref[0, :, :] = y_ref[0, :, :] * sc_ref[...] + sh_ref[...]


# ------------------------------ wrappers ----------------------------------- #

def _fused_stage(x_nhwc, scale, shift, w_dw, w_pw, *, stride, padding,
                 channel_major_out):
    """affine+ReLU -> depthwise conv -> 1x1 conv (one MXU matmul) + BN sums."""
    N, H, W, Cin = x_nhwc.shape
    K = w_dw.shape[-1]
    Cout = w_pw.shape[0]
    Hp, Wp = H + 2 * padding, W + 2 * padding
    Ho = (Hp - K) // stride + 1
    Wo = (Wp - K) // stride + 1
    S = Ho * Wo

    # Combined depthwise+pointwise weight (exact fold, no nonlinearity between
    # the two convs): comb[co, tap*Cin + c] = w_dw[c, 0, kh, kw] * w_pw[co, c].
    w_dw_t = jnp.transpose(w_dw[:, 0], (1, 2, 0)).reshape(K * K, Cin)   # (K*K, Cin)
    w_pw_m = w_pw[:, :, 0, 0]                                           # (Cout, Cin)
    w_comb = (w_dw_t[None, :, :] * w_pw_m[:, None, :]).reshape(Cout, K * K * Cin)
    if not channel_major_out:
        w_comb = jnp.transpose(w_comb)                                  # (K*K*Cin, Cout)

    if channel_major_out:
        y_shape = jax.ShapeDtypeStruct((N, Cout, S), jnp.float32)
        st_shape = jax.ShapeDtypeStruct((N, Cout, 2), jnp.float32)
        y_spec = pl.BlockSpec((1, Cout, S), lambda n: (n, 0, 0))
        st_spec = pl.BlockSpec((1, Cout, 2), lambda n: (n, 0, 0))
    else:
        y_shape = jax.ShapeDtypeStruct((N, S, Cout), jnp.float32)
        st_shape = jax.ShapeDtypeStruct((N, 2, Cout), jnp.float32)
        y_spec = pl.BlockSpec((1, S, Cout), lambda n: (n, 0, 0))
        st_spec = pl.BlockSpec((1, 2, Cout), lambda n: (n, 0, 0))

    kernel = functools.partial(_sepconv_stage_kernel, K=K, stride=stride,
                               pad=padding, channel_major_out=channel_major_out)

    # TODO(synk): with grid=(N,) and N=2, a v7x part runs one grid step per
    # TensorCore so the BlockSpec pipeline cannot double-buffer; production
    # sizes should add an H-tile grid axis (halo'd input) or keep >=2
    # images per core.
    y, stats = pl.pallas_call(
        kernel,
        out_shape=(y_shape, st_shape),
        grid=(N,),
        in_specs=[
            pl.BlockSpec((1, H, W, Cin), lambda n: (n, 0, 0, 0)),
            pl.BlockSpec((1, Cin), lambda n: (0, 0)),
            pl.BlockSpec((1, Cin), lambda n: (0, 0)),
            pl.BlockSpec(w_comb.shape, lambda n: (0, 0)),
        ],
        out_specs=(y_spec, st_spec),
        scratch_shapes=[
            pltpu.VMEM((Hp, Wp, Cin), jnp.float32),      # padded, activated input
            pltpu.VMEM((S, K * K * Cin), jnp.float32),   # im2col slab
        ],
        compiler_params=pltpu.CompilerParams(
            dimension_semantics=("parallel",),           # megacore-shardable
            vmem_limit_bytes=_vmem_limit_bytes()),
    )(x_nhwc, scale, shift, w_comb)
    return y, stats, (Ho, Wo)


def _bn_fold(sum_, sumsq, count, gamma, beta):
    """Fold batch-statistics BatchNorm into y*scale + shift (biased variance)."""
    mean = sum_ / count
    # TODO(synk): E[y^2]-E[y]^2 cancels badly for huge counts / large means;
    # use a centered second pass or Welford accumulation at production sizes.
    var = sumsq / count - mean * mean
    scale = gamma * lax.rsqrt(var + BN_EPS)
    shift = beta - mean * scale
    return scale, shift


def _bn_apply(y, scale, shift):
    """y: (N, C, M) channel-major; scale/shift: (C, 1).  Lane-dense tiles."""
    N, C, M = y.shape
    tm = _lane_tile(M)
    return pl.pallas_call(
        _bn_apply_kernel,
        out_shape=jax.ShapeDtypeStruct((N, C, M), jnp.float32),
        grid=(N, M // tm),
        in_specs=[
            pl.BlockSpec((1, C, tm), lambda n, m: (n, 0, m)),
            pl.BlockSpec((C, 1), lambda n, m: (0, 0)),
            pl.BlockSpec((C, 1), lambda n, m: (0, 0)),
        ],
        out_specs=pl.BlockSpec((1, C, tm), lambda n, m: (n, 0, m)),
        compiler_params=pltpu.CompilerParams(
            dimension_semantics=("parallel", "parallel")),
    )(y, scale, shift)


def sepconv_forward(x_nchw, p, *, stride, padding):
    x = x_nchw.astype(jnp.float32)
    N, Cin, H, W = x.shape
    Cout = p["w_pw2"].shape[0]

    # TODO(synk): remaining XLA transpose pass (input only); see header note.
    x_nhwc = jnp.transpose(x, (0, 2, 3, 1))

    ones = jnp.ones((1, Cin), jnp.float32)
    zeros = jnp.zeros((1, Cin), jnp.float32)

    # Stage 1: ReLU -> dw KxK (stride) -> 1x1 (Cin->Cin); spatial-major output
    # keeps stage 2's padded-input build a plain windowed copy.  BN1 partials.
    y1, st1, (H1, W1) = _fused_stage(x_nhwc, ones, zeros, p["w_dw1"], p["w_pw1"],
                                     stride=stride, padding=padding,
                                     channel_major_out=False)
    tot1 = jnp.sum(st1, axis=0)                                   # (2, Cin)
    sc1, sh1 = _bn_fold(tot1[0], tot1[1], N * H1 * W1, p["g1"], p["b1"])

    # Stage 2: BN1-apply + ReLU fused into the prologue -> dw KxK (stride 1)
    # -> 1x1 (Cin->Cout); channel-major lane-dense output == NCHW layout.
    y2, st2, (H2, W2) = _fused_stage(y1.reshape(N, H1, W1, Cin),
                                     sc1.reshape(1, Cin), sh1.reshape(1, Cin),
                                     p["w_dw2"], p["w_pw2"],
                                     stride=1, padding=padding,
                                     channel_major_out=True)
    tot2 = jnp.sum(st2, axis=0)                                   # (Cout, 2)
    sc2, sh2 = _bn_fold(tot2[:, 0], tot2[:, 1], N * H2 * W2, p["g2"], p["b2"])

    out = _bn_apply(y2, sc2.reshape(Cout, 1), sh2.reshape(Cout, 1))
    return out.reshape(N, Cout, H2, W2)          # already channel-major == NCHW


# --------------------------- pure-JAX reference ----------------------------- #

def sepconv_reference(x, p, *, stride, padding, C_in):
    hp = lax.Precision.HIGHEST

    def bn(y, g, b):
        mean = jnp.mean(y, axis=(0, 2, 3), keepdims=True)
        var = jnp.var(y, axis=(0, 2, 3), keepdims=True)   # biased, training-mode BN
        return ((y - mean) * lax.rsqrt(var + BN_EPS)
                * g.reshape(1, -1, 1, 1) + b.reshape(1, -1, 1, 1))

    y = jax.nn.relu(x)
    y = lax.conv_general_dilated(y, p["w_dw1"], (stride, stride),
                                 [(padding, padding)] * 2,
                                 feature_group_count=C_in, precision=hp)
    y = lax.conv_general_dilated(y, p["w_pw1"], (1, 1), "VALID", precision=hp)
    y = bn(y, p["g1"], p["b1"])
    y = jax.nn.relu(y)
    y = lax.conv_general_dilated(y, p["w_dw2"], (1, 1),
                                 [(padding, padding)] * 2,
                                 feature_group_count=C_in, precision=hp)
    y = lax.conv_general_dilated(y, p["w_pw2"], (1, 1), "VALID", precision=hp)
    y = bn(y, p["g2"], p["b2"])
    return y


# ---------------------------------- main ------------------------------------ #

if __name__ == "__main__":
    N, C_in, C_out, H, W = 2, 4, 8, 16, 16
    K, stride, padding = 3, 1, 1

    key = jax.random.PRNGKey(0)
    k = jax.random.split(key, 5)
    x = jax.random.normal(k[0], (N, C_in, H, W), jnp.float32)

    params = {
        # depthwise (C, 1, K, K) and pointwise (Cout, Cin, 1, 1) -- PyTorch OIHW
        "w_dw1": 0.2 * jax.random.normal(k[1], (C_in, 1, K, K), jnp.float32),
        "w_pw1": 0.2 * jax.random.normal(k[2], (C_in, C_in, 1, 1), jnp.float32),
        "g1": jnp.ones((C_in,), jnp.float32),    # BN affine init: gamma=1
        "b1": jnp.zeros((C_in,), jnp.float32),   #                 beta=0
        "w_dw2": 0.2 * jax.random.normal(k[3], (C_in, 1, K, K), jnp.float32),
        "w_pw2": 0.2 * jax.random.normal(k[4], (C_out, C_in, 1, 1), jnp.float32),
        "g2": jnp.ones((C_out,), jnp.float32),
        "b2": jnp.zeros((C_out,), jnp.float32),
    }

    fwd = jax.jit(functools.partial(sepconv_forward, stride=stride, padding=padding))
    out = jax.block_until_ready(fwd(x, params))
    ref = sepconv_reference(x, params, stride=stride, padding=padding, C_in=C_in)

    assert out.shape == (N, C_out, H // stride, W // stride), out.shape
    max_err = float(jnp.max(jnp.abs(out - ref)))
    assert jnp.allclose(out, ref, atol=1e-3, rtol=1e-3), f"max abs err = {max_err}"
    print("KERNEL_OK")
</pallas_src>

<mosaic_0001>
module attributes {stable_mosaic.version = 11 : i64} {
  func.func @_sepconv_stage_kernel(%arg0: i32, %arg1: memref<1x16x16x4xf32, #tpu.memory_space<vmem>>, %arg2: memref<1x4xf32, #tpu.memory_space<vmem>>, %arg3: memref<1x4xf32, #tpu.memory_space<vmem>>, %arg4: memref<36x4xf32, #tpu.memory_space<vmem>>, %arg5: memref<1x256x4xf32, #tpu.memory_space<vmem>>, %arg6: memref<1x2x4xf32, #tpu.memory_space<vmem>>, %arg7: memref<18x18x4xf32, #tpu.memory_space<vmem>>, %arg8: memref<256x36xf32, #tpu.memory_space<vmem>>) attributes {dimension_semantics = [#tpu.dimension_semantics<parallel>], iteration_bounds = array<i64: 2>, scalar_prefetch = 0 : i64, scratch_operands = 2 : i64, tpu.core_type = #tpu.core_type<tc>, window_params = [{transform_indices = @transform_0, window_bounds = array<i64: 1, 16, 16, 4>}, {pipeline_mode = #tpu.pipeline_mode<synchronous>, transform_indices = @transform_1, window_bounds = array<i64: 1, 4>}, {pipeline_mode = #tpu.pipeline_mode<synchronous>, transform_indices = @transform_2, window_bounds = array<i64: 1, 4>}, {pipeline_mode = #tpu.pipeline_mode<synchronous>, transform_indices = @transform_3, window_bounds = array<i64: 36, 4>}, {transform_indices = @transform_4, window_bounds = array<i64: 1, 256, 4>}, {transform_indices = @transform_5, window_bounds = array<i64: 1, 2, 4>}]} {
    %cst = arith.constant 0.000000e+00 : f32
    %0 = vector.broadcast %cst : f32 to vector<1x18x4xf32>
    %c0 = arith.constant 0 : index
    %c0_0 = arith.constant 0 : index
    %c0_1 = arith.constant 0 : index
    %1 = vector.load %arg7[%c0, %c0_0, %c0_1] : memref<18x18x4xf32, #tpu.memory_space<vmem>>, vector<1x18x4xf32>
    tpu.vector_store %arg7[%c0, %c0_0, %c0_1], %0 {strides = array<i32>} : memref<18x18x4xf32, #tpu.memory_space<vmem>>, vector<1x18x4xf32>,
    %cst_2 = arith.constant 0.000000e+00 : f32
    %2 = vector.broadcast %cst_2 : f32 to vector<1x18x4xf32>
    %c17 = arith.constant 17 : index
    %c0_3 = arith.constant 0 : index
    %c0_4 = arith.constant 0 : index
    %3 = vector.load %arg7[%c17, %c0_3, %c0_4] : memref<18x18x4xf32, #tpu.memory_space<vmem>>, vector<1x18x4xf32>
    tpu.vector_store %arg7[%c17, %c0_3, %c0_4], %2 {strides = array<i32>} : memref<18x18x4xf32, #tpu.memory_space<vmem>>, vector<1x18x4xf32>,
    %cst_5 = arith.constant 0.000000e+00 : f32
    %4 = vector.broadcast %cst_5 : f32 to vector<18x1x4xf32>
    %c0_6 = arith.constant 0 : index
    %c0_7 = arith.constant 0 : index
    %c0_8 = arith.constant 0 : index
    %5 = vector.load %arg7[%c0_6, %c0_7, %c0_8] : memref<18x18x4xf32, #tpu.memory_space<vmem>>, vector<18x1x4xf32>
    tpu.vector_store %arg7[%c0_6, %c0_7, %c0_8], %4 {strides = array<i32>} : memref<18x18x4xf32, #tpu.memory_space<vmem>>, vector<18x1x4xf32>,
    %cst_9 = arith.constant 0.000000e+00 : f32
    %6 = vector.broadcast %cst_9 : f32 to vector<18x1x4xf32>
    %c0_10 = arith.constant 0 : index
    %c17_11 = arith.constant 17 : index
    %c0_12 = arith.constant 0 : index
    %7 = vector.load %arg7[%c0_10, %c17_11, %c0_12] : memref<18x18x4xf32, #tpu.memory_space<vmem>>, vector<18x1x4xf32>
    tpu.vector_store %arg7[%c0_10, %c17_11, %c0_12], %6 {strides = array<i32>} : memref<18x18x4xf32, #tpu.memory_space<vmem>>, vector<18x1x4xf32>,
    %c0_13 = arith.constant 0 : index
    %c0_14 = arith.constant 0 : index
    %c0_15 = arith.constant 0 : index
    %c0_16 = arith.constant 0 : index
    %8 = vector.load %arg1[%c0_13, %c0_14, %c0_15, %c0_16] : memref<1x16x16x4xf32, #tpu.memory_space<vmem>>, vector<1x16x16x4xf32>
    %9 = vector.shape_cast %8 : vector<1x16x16x4xf32> to vector<16x16x4xf32>
    %c0_17 = arith.constant 0 : index
    %c0_18 = arith.constant 0 : index
    %10 = vector.load %arg2[%c0_17, %c0_18] : memref<1x4xf32, #tpu.memory_space<vmem>>, vector<1x4xf32>
    %11 = vector.shape_cast %10 : vector<1x4xf32> to vector<4xf32>
    %12 = vector.shape_cast %11 : vector<4xf32> to vector<1x1x4xf32>
    %13 = vector.broadcast %12 : vector<1x1x4xf32> to vector<16x16x4xf32>
    %14 = arith.mulf %9, %13 : vector<16x16x4xf32>
    %c0_19 = arith.constant 0 : index
    %c0_20 = arith.constant 0 : index
    %15 = vector.load %arg3[%c0_19, %c0_20] : memref<1x4xf32, #tpu.memory_space<vmem>>, vector<1x4xf32>
    %16 = vector.shape_cast %15 : vector<1x4xf32> to vector<4xf32>
    %17 = vector.shape_cast %16 : vector<4xf32> to vector<1x1x4xf32>
    %18 = vector.broadcast %17 : vector<1x1x4xf32> to vector<16x16x4xf32>
    %19 = arith.addf %14, %18 : vector<16x16x4xf32>
    %cst_21 = arith.constant 0.000000e+00 : f32
    %20 = vector.broadcast %cst_21 : f32 to vector<16x16x4xf32>
    %21 = arith.maximumf %19, %20 : vector<16x16x4xf32>
    %c1 = arith.constant 1 : index
    %c1_22 = arith.constant 1 : index
    %c0_23 = arith.constant 0 : index
    %22 = vector.load %arg7[%c1, %c1_22, %c0_23] : memref<18x18x4xf32, #tpu.memory_space<vmem>>, vector<16x16x4xf32>
    tpu.vector_store %arg7[%c1, %c1_22, %c0_23], %21 {strides = array<i32>} : memref<18x18x4xf32, #tpu.memory_space<vmem>>, vector<16x16x4xf32>,
    %c0_24 = arith.constant 0 : index
    %c0_25 = arith.constant 0 : index
    %c0_26 = arith.constant 0 : index
    %23 = vector.load %arg7[%c0_24, %c0_25, %c0_26] : memref<18x18x4xf32, #tpu.memory_space<vmem>>, vector<16x16x4xf32>
    %24 = vector.shape_cast %23 : vector<16x16x4xf32> to vector<256x4xf32>
    %c0_27 = arith.constant 0 : index
    %c0_28 = arith.constant 0 : index
    %25 = vector.load %arg8[%c0_27, %c0_28] : memref<256x36xf32, #tpu.memory_space<vmem>>, vector<256x4xf32>
    tpu.vector_store %arg8[%c0_27, %c0_28], %24 {strides = array<i32>} : memref<256x36xf32, #tpu.memory_space<vmem>>, vector<256x4xf32>,
    %c0_29 = arith.constant 0 : index
    %c1_30 = arith.constant 1 : index
    %c0_31 = arith.constant 0 : index
    %26 = vector.load %arg7[%c0_29, %c1_30, %c0_31] : memref<18x18x4xf32, #tpu.memory_space<vmem>>, vector<16x16x4xf32>
    %27 = vector.shape_cast %26 : vector<16x16x4xf32> to vector<256x4xf32>
    %c0_32 = arith.constant 0 : index
    %c4 = arith.constant 4 : index
    %28 = vector.load %arg8[%c0_32, %c4] : memref<256x36xf32, #tpu.memory_space<vmem>>, vector<256x4xf32>
    tpu.vector_store %arg8[%c0_32, %c4], %27 {strides = array<i32>} : memref<256x36xf32, #tpu.memory_space<vmem>>, vector<256x4xf32>,
    %c0_33 = arith.constant 0 : index
    %c2 = arith.constant 2 : index
    %c0_34 = arith.constant 0 : index
    %29 = vector.load %arg7[%c0_33, %c2, %c0_34] : memref<18x18x4xf32, #tpu.memory_space<vmem>>, vector<16x16x4xf32>
    %30 = vector.shape_cast %29 : vector<16x16x4xf32> to vector<256x4xf32>
    %c0_35 = arith.constant 0 : index
    %c8 = arith.constant 8 : index
    %31 = vector.load %arg8[%c0_35, %c8] : memref<256x36xf32, #tpu.memory_space<vmem>>, vector<256x4xf32>
    tpu.vector_store %arg8[%c0_35, %c8], %30 {strides = array<i32>} : memref<256x36xf32, #tpu.memory_space<vmem>>, vector<256x4xf32>,
    %c1_36 = arith.constant 1 : index
    %c0_37 = arith.constant 0 : index
    %c0_38 = arith.constant 0 : index
    %32 = vector.load %arg7[%c1_36, %c0_37, %c0_38] : memref<18x18x4xf32, #tpu.memory_space<vmem>>, vector<16x16x4xf32>
    %33 = vector.shape_cast %32 : vector<16x16x4xf32> to vector<256x4xf32>
    %c0_39 = arith.constant 0 : index
    %c12 = arith.constant 12 : index
    %34 = vector.load %arg8[%c0_39, %c12] : memref<256x36xf32, #tpu.memory_space<vmem>>, vector<256x4xf32>
    tpu.vector_store %arg8[%c0_39, %c12], %33 {strides = array<i32>} : memref<256x36xf32, #tpu.memory_space<vmem>>, vector<256x4xf32>,
    %c1_40 = arith.constant 1 : index
    %c1_41 = arith.constant 1 : index
    %c0_42 = arith.constant 0 : index
    %35 = vector.load %arg7[%c1_40, %c1_41, %c0_42] : memref<18x18x4xf32, #tpu.memory_space<vmem>>, vector<16x16x4xf32>
    %36 = vector.shape_cast %35 : vector<16x16x4xf32> to vector<256x4xf32>
    %c0_43 = arith.constant 0 : index
    %c16 = arith.constant 16 : index
    %37 = vector.load %arg8[%c0_43, %c16] : memref<256x36xf32, #tpu.memory_space<vmem>>, vector<256x4xf32>
    tpu.vector_store %arg8[%c0_43, %c16], %36 {strides = array<i32>} : memref<256x36xf32, #tpu.memory_space<vmem>>, vector<256x4xf32>,
    %c1_44 = arith.constant 1 : index
    %c2_45 = arith.constant 2 : index
    %c0_46 = arith.constant 0 : index
    %38 = vector.load %arg7[%c1_44, %c2_45, %c0_46] : memref<18x18x4xf32, #tpu.memory_space<vmem>>, vector<16x16x4xf32>
    %39 = vector.shape_cast %38 : vector<16x16x4xf32> to vector<256x4xf32>
    %c0_47 = arith.constant 0 : index
    %c20 = arith.constant 20 : index
    %40 = vector.load %arg8[%c0_47, %c20] : memref<256x36xf32, #tpu.memory_space<vmem>>, vector<256x4xf32>
    tpu.vector_store %arg8[%c0_47, %c20], %39 {strides = array<i32>} : memref<256x36xf32, #tpu.memory_space<vmem>>, vector<256x4xf32>,
    %c2_48 = arith.constant 2 : index
    %c0_49 = arith.constant 0 : index
    %c0_50 = arith.constant 0 : index
    %41 = vector.load %arg7[%c2_48, %c0_49, %c0_50] : memref<18x18x4xf32, #tpu.memory_space<vmem>>, vector<16x16x4xf32>
    %42 = vector.shape_cast %41 : vector<16x16x4xf32> to vector<256x4xf32>
    %c0_51 = arith.constant 0 : index
    %c24 = arith.constant 24 : index
    %43 = vector.load %arg8[%c0_51, %c24] : memref<256x36xf32, #tpu.memory_space<vmem>>, vector<256x4xf32>
    tpu.vector_store %arg8[%c0_51, %c24], %42 {strides = array<i32>} : memref<256x36xf32, #tpu.memory_space<vmem>>, vector<256x4xf32>,
    %c2_52 = arith.constant 2 : index
    %c1_53 = arith.constant 1 : index
    %c0_54 = arith.constant 0 : index
    %44 = vector.load %arg7[%c2_52, %c1_53, %c0_54] : memref<18x18x4xf32, #tpu.memory_space<vmem>>, vector<16x16x4xf32>
    %45 = vector.shape_cast %44 : vector<16x16x4xf32> to vector<256x4xf32>
    %c0_55 = arith.constant 0 : index
    %c28 = arith.constant 28 : index
    %46 = vector.load %arg8[%c0_55, %c28] : memref<256x36xf32, #tpu.memory_space<vmem>>, vector<256x4xf32>
    tpu.vector_store %arg8[%c0_55, %c28], %45 {strides = array<i32>} : memref<256x36xf32, #tpu.memory_space<vmem>>, vector<256x4xf32>,
    %c2_56 = arith.constant 2 : index
    %c2_57 = arith.constant 2 : index
    %c0_58 = arith.constant 0 : index
    %47 = vector.load %arg7[%c2_56, %c2_57, %c0_58] : memref<18x18x4xf32, #tpu.memory_space<vmem>>, vector<16x16x4xf32>
    %48 = vector.shape_cast %47 : vector<16x16x4xf32> to vector<256x4xf32>
    %c0_59 = arith.constant 0 : index
    %c32 = arith.constant 32 : index
    %49 = vector.load %arg8[%c0_59, %c32] : memref<256x36xf32, #tpu.memory_space<vmem>>, vector<256x4xf32>
    tpu.vector_store %arg8[%c0_59, %c32], %48 {strides = array<i32>} : memref<256x36xf32, #tpu.memory_space<vmem>>, vector<256x4xf32>,
    %c0_60 = arith.constant 0 : index
    %c0_61 = arith.constant 0 : index
    %50 = vector.load %arg8[%c0_60, %c0_61] : memref<256x36xf32, #tpu.memory_space<vmem>>, vector<256x36xf32>
    %c0_62 = arith.constant 0 : index
    %c0_63 = arith.constant 0 : index
    %51 = vector.load %arg4[%c0_62, %c0_63] : memref<36x4xf32, #tpu.memory_space<vmem>>, vector<36x4xf32>
    %cst_64 = arith.constant dense<0.000000e+00> : vector<256x4xf32>
    %52 = tpu.matmul %50, %51, %cst_64 {dimension_numbers = #tpu.dot_dimension_numbers<[1], [0], [0], [1], [0, 0, 1, 1], [], []>, precision = #tpu.contract_precision<fp32>} : vector<256x36xf32>, vector<36x4xf32>, vector<256x4xf32> -> vector<256x4xf32>
    %c0_65 = arith.constant 0 : index
    %c0_66 = arith.constant 0 : index
    %c0_67 = arith.constant 0 : index
    %53 = vector.load %arg5[%c0_65, %c0_66, %c0_67] : memref<1x256x4xf32, #tpu.memory_space<vmem>>, vector<1x256x4xf32>
    %54 = vector.shape_cast %53 : vector<1x256x4xf32> to vector<256x4xf32>
    %55 = vector.shape_cast %52 : vector<256x4xf32> to vector<1x256x4xf32>
    tpu.vector_store %arg5[%c0_65, %c0_66, %c0_67], %55 {strides = array<i32>} : memref<1x256x4xf32, #tpu.memory_space<vmem>>, vector<1x256x4xf32>,
    %cst_68 = arith.constant dense<0.000000e+00> : vector<4xf32>
    %56 = vector.multi_reduction <add>, %52, %cst_68 [0] : vector<256x4xf32> to vector<4xf32>
    %57 = vector.shape_cast %56 : vector<4xf32> to vector<1x4xf32>
    %c0_69 = arith.constant 0 : index
    %c0_70 = arith.constant 0 : index
    %c0_71 = arith.constant 0 : index
    %58 = vector.load %arg6[%c0_69, %c0_70, %c0_71] : memref<1x2x4xf32, #tpu.memory_space<vmem>>, vector<1x1x4xf32>
    %59 = vector.shape_cast %58 : vector<1x1x4xf32> to vector<1x4xf32>
    %60 = vector.shape_cast %57 : vector<1x4xf32> to vector<1x1x4xf32>
    tpu.vector_store %arg6[%c0_69, %c0_70, %c0_71], %60 {strides = array<i32>} : memref<1x2x4xf32, #tpu.memory_space<vmem>>, vector<1x1x4xf32>,
    %61 = arith.mulf %52, %52 : vector<256x4xf32>
    %cst_72 = arith.constant dense<0.000000e+00> : vector<4xf32>
    %62 = vector.multi_reduction <add>, %61, %cst_72 [0] : vector<256x4xf32> to vector<4xf32>
    %63 = vector.shape_cast %62 : vector<4xf32> to vector<1x4xf32>
    %c0_73 = arith.constant 0 : index
    %c1_74 = arith.constant 1 : index
    %c0_75 = arith.constant 0 : index
    %64 = vector.load %arg6[%c0_73, %c1_74, %c0_75] : memref<1x2x4xf32, #tpu.memory_space<vmem>>, vector<1x1x4xf32>
    %65 = vector.shape_cast %64 : vector<1x1x4xf32> to vector<1x4xf32>
    %66 = vector.shape_cast %63 : vector<1x4xf32> to vector<1x1x4xf32>
    tpu.vector_store %arg6[%c0_73, %c1_74, %c0_75], %66 {strides = array<i32>} : memref<1x2x4xf32, #tpu.memory_space<vmem>>, vector<1x1x4xf32>,
    return
  }
  func.func @transform_0(%arg0: i32) -> (i32, i32, i32, i32) {
    %c0_i32 = arith.constant 0 : i32
    %c0_i32_0 = arith.constant 0 : i32
    %c0_i32_1 = arith.constant 0 : i32
    %c0_i32_2 = arith.constant 0 : i32
    return %arg0, %c0_i32, %c0_i32_0, %c0_i32_1 : i32, i32, i32, i32
  }
  func.func @transform_1(%arg0: i32) -> (i32, i32) {
    %c0_i32 = arith.constant 0 : i32
    %c0_i32_0 = arith.constant 0 : i32
    %c0_i32_1 = arith.constant 0 : i32
    return %c0_i32, %c0_i32_0 : i32, i32
  }
  func.func @transform_2(%arg0: i32) -> (i32, i32) {
    %c0_i32 = arith.constant 0 : i32
    %c0_i32_0 = arith.constant 0 : i32
    %c0_i32_1 = arith.constant 0 : i32
    return %c0_i32, %c0_i32_0 : i32, i32
  }
  func.func @transform_3(%arg0: i32) -> (i32, i32) {
    %c0_i32 = arith.constant 0 : i32
    %c0_i32_0 = arith.constant 0 : i32
    %c0_i32_1 = arith.constant 0 : i32
    return %c0_i32, %c0_i32_0 : i32, i32
  }
  func.func @transform_4(%arg0: i32) -> (i32, i32, i32) {
    %c0_i32 = arith.constant 0 : i32
    %c0_i32_0 = arith.constant 0 : i32
    %c0_i32_1 = arith.constant 0 : i32
    return %arg0, %c0_i32, %c0_i32_0 : i32, i32, i32
  }
  func.func @transform_5(%arg0: i32) -> (i32, i32, i32) {
    %c0_i32 = arith.constant 0 : i32
    %c0_i32_0 = arith.constant 0 : i32
    %c0_i32_1 = arith.constant 0 : i32
    return %arg0, %c0_i32, %c0_i32_0 : i32, i32, i32
  }
}

module attributes {stable_mosaic.version = 11 : i64} {
  func.func @_sepconv_stage_kernel(%arg0: i32, %arg1: memref<1x16x16x4xf32, #tpu.memory_space<vmem>>, %arg2: memref<1x4xf32, #tpu.memory_space<vmem>>, %arg3: memref<1x4xf32, #tpu.memory_space<vmem>>, %arg4: memref<8x36xf32, #tpu.memory_space<vmem>>, %arg5: memref<1x8x256xf32, #tpu.memory_space<vmem>>, %arg6: memref<1x8x2xf32, #tpu.memory_space<vmem>>, %arg7: memref<18x18x4xf32, #tpu.memory_space<vmem>>, %arg8: memref<256x36xf32, #tpu.memory_space<vmem>>) attributes {dimension_semantics = [#tpu.dimension_semantics<parallel>], iteration_bounds = array<i64: 2>, scalar_prefetch = 0 : i64, scratch_operands = 2 : i64, tpu.core_type = #tpu.core_type<tc>, window_params = [{transform_indices = @transform_0, window_bounds = array<i64: 1, 16, 16, 4>}, {pipeline_mode = #tpu.pipeline_mode<synchronous>, transform_indices = @transform_1, window_bounds = array<i64: 1, 4>}, {pipeline_mode = #tpu.pipeline_mode<synchronous>, transform_indices = @transform_2, window_bounds = array<i64: 1, 4>}, {pipeline_mode = #tpu.pipeline_mode<synchronous>, transform_indices = @transform_3, window_bounds = array<i64: 8, 36>}, {transform_indices = @transform_4, window_bounds = array<i64: 1, 8, 256>}, {transform_indices = @transform_5, window_bounds = array<i64: 1, 8, 2>}]} {
    %cst = arith.constant 0.000000e+00 : f32
    %0 = vector.broadcast %cst : f32 to vector<1x18x4xf32>
    %c0 = arith.constant 0 : index
    %c0_0 = arith.constant 0 : index
    %c0_1 = arith.constant 0 : index
    %1 = vector.load %arg7[%c0, %c0_0, %c0_1] : memref<18x18x4xf32, #tpu.memory_space<vmem>>, vector<1x18x4xf32>
    tpu.vector_store %arg7[%c0, %c0_0, %c0_1], %0 {strides = array<i32>} : memref<18x18x4xf32, #tpu.memory_space<vmem>>, vector<1x18x4xf32>,
    %cst_2 = arith.constant 0.000000e+00 : f32
    %2 = vector.broadcast %cst_2 : f32 to vector<1x18x4xf32>
    %c17 = arith.constant 17 : index
    %c0_3 = arith.constant 0 : index
    %c0_4 = arith.constant 0 : index
    %3 = vector.load %arg7[%c17, %c0_3, %c0_4] : memref<18x18x4xf32, #tpu.memory_space<vmem>>, vector<1x18x4xf32>
    tpu.vector_store %arg7[%c17, %c0_3, %c0_4], %2 {strides = array<i32>} : memref<18x18x4xf32, #tpu.memory_space<vmem>>, vector<1x18x4xf32>,
    %cst_5 = arith.constant 0.000000e+00 : f32
    %4 = vector.broadcast %cst_5 : f32 to vector<18x1x4xf32>
    %c0_6 = arith.constant 0 : index
    %c0_7 = arith.constant 0 : index
    %c0_8 = arith.constant 0 : index
    %5 = vector.load %arg7[%c0_6, %c0_7, %c0_8] : memref<18x18x4xf32, #tpu.memory_space<vmem>>, vector<18x1x4xf32>
    tpu.vector_store %arg7[%c0_6, %c0_7, %c0_8], %4 {strides = array<i32>} : memref<18x18x4xf32, #tpu.memory_space<vmem>>, vector<18x1x4xf32>,
    %cst_9 = arith.constant 0.000000e+00 : f32
    %6 = vector.broadcast %cst_9 : f32 to vector<18x1x4xf32>
    %c0_10 = arith.constant 0 : index
    %c17_11 = arith.constant 17 : index
    %c0_12 = arith.constant 0 : index
    %7 = vector.load %arg7[%c0_10, %c17_11, %c0_12] : memref<18x18x4xf32, #tpu.memory_space<vmem>>, vector<18x1x4xf32>
    tpu.vector_store %arg7[%c0_10, %c17_11, %c0_12], %6 {strides = array<i32>} : memref<18x18x4xf32, #tpu.memory_space<vmem>>, vector<18x1x4xf32>,
    %c0_13 = arith.constant 0 : index
    %c0_14 = arith.constant 0 : index
    %c0_15 = arith.constant 0 : index
    %c0_16 = arith.constant 0 : index
    %8 = vector.load %arg1[%c0_13, %c0_14, %c0_15, %c0_16] : memref<1x16x16x4xf32, #tpu.memory_space<vmem>>, vector<1x16x16x4xf32>
    %9 = vector.shape_cast %8 : vector<1x16x16x4xf32> to vector<16x16x4xf32>
    %c0_17 = arith.constant 0 : index
    %c0_18 = arith.constant 0 : index
    %10 = vector.load %arg2[%c0_17, %c0_18] : memref<1x4xf32, #tpu.memory_space<vmem>>, vector<1x4xf32>
    %11 = vector.shape_cast %10 : vector<1x4xf32> to vector<4xf32>
    %12 = vector.shape_cast %11 : vector<4xf32> to vector<1x1x4xf32>
    %13 = vector.broadcast %12 : vector<1x1x4xf32> to vector<16x16x4xf32>
    %14 = arith.mulf %9, %13 : vector<16x16x4xf32>
    %c0_19 = arith.constant 0 : index
    %c0_20 = arith.constant 0 : index
    %15 = vector.load %arg3[%c0_19, %c0_20] : memref<1x4xf32, #tpu.memory_space<vmem>>, vector<1x4xf32>
    %16 = vector.shape_cast %15 : vector<1x4xf32> to vector<4xf32>
    %17 = vector.shape_cast %16 : vector<4xf32> to vector<1x1x4xf32>
    %18 = vector.broadcast %17 : vector<1x1x4xf32> to vector<16x16x4xf32>
    %19 = arith.addf %14, %18 : vector<16x16x4xf32>
    %cst_21 = arith.constant 0.000000e+00 : f32
    %20 = vector.broadcast %cst_21 : f32 to vector<16x16x4xf32>
    %21 = arith.maximumf %19, %20 : vector<16x16x4xf32>
    %c1 = arith.constant 1 : index
    %c1_22 = arith.constant 1 : index
    %c0_23 = arith.constant 0 : index
    %22 = vector.load %arg7[%c1, %c1_22, %c0_23] : memref<18x18x4xf32, #tpu.memory_space<vmem>>, vector<16x16x4xf32>
    tpu.vector_store %arg7[%c1, %c1_22, %c0_23], %21 {strides = array<i32>} : memref<18x18x4xf32, #tpu.memory_space<vmem>>, vector<16x16x4xf32>,
    %c0_24 = arith.constant 0 : index
    %c0_25 = arith.constant 0 : index
    %c0_26 = arith.constant 0 : index
    %23 = vector.load %arg7[%c0_24, %c0_25, %c0_26] : memref<18x18x4xf32, #tpu.memory_space<vmem>>, vector<16x16x4xf32>
    %24 = vector.shape_cast %23 : vector<16x16x4xf32> to vector<256x4xf32>
    %c0_27 = arith.constant 0 : index
    %c0_28 = arith.constant 0 : index
    %25 = vector.load %arg8[%c0_27, %c0_28] : memref<256x36xf32, #tpu.memory_space<vmem>>, vector<256x4xf32>
    tpu.vector_store %arg8[%c0_27, %c0_28], %24 {strides = array<i32>} : memref<256x36xf32, #tpu.memory_space<vmem>>, vector<256x4xf32>,
    %c0_29 = arith.constant 0 : index
    %c1_30 = arith.constant 1 : index
    %c0_31 = arith.constant 0 : index
    %26 = vector.load %arg7[%c0_29, %c1_30, %c0_31] : memref<18x18x4xf32, #tpu.memory_space<vmem>>, vector<16x16x4xf32>
    %27 = vector.shape_cast %26 : vector<16x16x4xf32> to vector<256x4xf32>
    %c0_32 = arith.constant 0 : index
    %c4 = arith.constant 4 : index
    %28 = vector.load %arg8[%c0_32, %c4] : memref<256x36xf32, #tpu.memory_space<vmem>>, vector<256x4xf32>
    tpu.vector_store %arg8[%c0_32, %c4], %27 {strides = array<i32>} : memref<256x36xf32, #tpu.memory_space<vmem>>, vector<256x4xf32>,
    %c0_33 = arith.constant 0 : index
    %c2 = arith.constant 2 : index
    %c0_34 = arith.constant 0 : index
    %29 = vector.load %arg7[%c0_33, %c2, %c0_34] : memref<18x18x4xf32, #tpu.memory_space<vmem>>, vector<16x16x4xf32>
    %30 = vector.shape_cast %29 : vector<16x16x4xf32> to vector<256x4xf32>
    %c0_35 = arith.constant 0 : index
    %c8 = arith.constant 8 : index
    %31 = vector.load %arg8[%c0_35, %c8] : memref<256x36xf32, #tpu.memory_space<vmem>>, vector<256x4xf32>
    tpu.vector_store %arg8[%c0_35, %c8], %30 {strides = array<i32>} : memref<256x36xf32, #tpu.memory_space<vmem>>, vector<256x4xf32>,
    %c1_36 = arith.constant 1 : index
    %c0_37 = arith.constant 0 : index
    %c0_38 = arith.constant 0 : index
    %32 = vector.load %arg7[%c1_36, %c0_37, %c0_38] : memref<18x18x4xf32, #tpu.memory_space<vmem>>, vector<16x16x4xf32>
    %33 = vector.shape_cast %32 : vector<16x16x4xf32> to vector<256x4xf32>
    %c0_39 = arith.constant 0 : index
    %c12 = arith.constant 12 : index
    %34 = vector.load %arg8[%c0_39, %c12] : memref<256x36xf32, #tpu.memory_space<vmem>>, vector<256x4xf32>
    tpu.vector_store %arg8[%c0_39, %c12], %33 {strides = array<i32>} : memref<256x36xf32, #tpu.memory_space<vmem>>, vector<256x4xf32>,
    %c1_40 = arith.constant 1 : index
    %c1_41 = arith.constant 1 : index
    %c0_42 = arith.constant 0 : index
    %35 = vector.load %arg7[%c1_40, %c1_41, %c0_42] : memref<18x18x4xf32, #tpu.memory_space<vmem>>, vector<16x16x4xf32>
    %36 = vector.shape_cast %35 : vector<16x16x4xf32> to vector<256x4xf32>
    %c0_43 = arith.constant 0 : index
    %c16 = arith.constant 16 : index
    %37 = vector.load %arg8[%c0_43, %c16] : memref<256x36xf32, #tpu.memory_space<vmem>>, vector<256x4xf32>
    tpu.vector_store %arg8[%c0_43, %c16], %36 {strides = array<i32>} : memref<256x36xf32, #tpu.memory_space<vmem>>, vector<256x4xf32>,
    %c1_44 = arith.constant 1 : index
    %c2_45 = arith.constant 2 : index
    %c0_46 = arith.constant 0 : index
    %38 = vector.load %arg7[%c1_44, %c2_45, %c0_46] : memref<18x18x4xf32, #tpu.memory_space<vmem>>, vector<16x16x4xf32>
    %39 = vector.shape_cast %38 : vector<16x16x4xf32> to vector<256x4xf32>
    %c0_47 = arith.constant 0 : index
    %c20 = arith.constant 20 : index
    %40 = vector.load %arg8[%c0_47, %c20] : memref<256x36xf32, #tpu.memory_space<vmem>>, vector<256x4xf32>
    tpu.vector_store %arg8[%c0_47, %c20], %39 {strides = array<i32>} : memref<256x36xf32, #tpu.memory_space<vmem>>, vector<256x4xf32>,
    %c2_48 = arith.constant 2 : index
    %c0_49 = arith.constant 0 : index
    %c0_50 = arith.constant 0 : index
    %41 = vector.load %arg7[%c2_48, %c0_49, %c0_50] : memref<18x18x4xf32, #tpu.memory_space<vmem>>, vector<16x16x4xf32>
    %42 = vector.shape_cast %41 : vector<16x16x4xf32> to vector<256x4xf32>
    %c0_51 = arith.constant 0 : index
    %c24 = arith.constant 24 : index
    %43 = vector.load %arg8[%c0_51, %c24] : memref<256x36xf32, #tpu.memory_space<vmem>>, vector<256x4xf32>
    tpu.vector_store %arg8[%c0_51, %c24], %42 {strides = array<i32>} : memref<256x36xf32, #tpu.memory_space<vmem>>, vector<256x4xf32>,
    %c2_52 = arith.constant 2 : index
    %c1_53 = arith.constant 1 : index
    %c0_54 = arith.constant 0 : index
    %44 = vector.load %arg7[%c2_52, %c1_53, %c0_54] : memref<18x18x4xf32, #tpu.memory_space<vmem>>, vector<16x16x4xf32>
    %45 = vector.shape_cast %44 : vector<16x16x4xf32> to vector<256x4xf32>
    %c0_55 = arith.constant 0 : index
    %c28 = arith.constant 28 : index
    %46 = vector.load %arg8[%c0_55, %c28] : memref<256x36xf32, #tpu.memory_space<vmem>>, vector<256x4xf32>
    tpu.vector_store %arg8[%c0_55, %c28], %45 {strides = array<i32>} : memref<256x36xf32, #tpu.memory_space<vmem>>, vector<256x4xf32>,
    %c2_56 = arith.constant 2 : index
    %c2_57 = arith.constant 2 : index
    %c0_58 = arith.constant 0 : index
    %47 = vector.load %arg7[%c2_56, %c2_57, %c0_58] : memref<18x18x4xf32, #tpu.memory_space<vmem>>, vector<16x16x4xf32>
    %48 = vector.shape_cast %47 : vector<16x16x4xf32> to vector<256x4xf32>
    %c0_59 = arith.constant 0 : index
    %c32 = arith.constant 32 : index
    %49 = vector.load %arg8[%c0_59, %c32] : memref<256x36xf32, #tpu.memory_space<vmem>>, vector<256x4xf32>
    tpu.vector_store %arg8[%c0_59, %c32], %48 {strides = array<i32>} : memref<256x36xf32, #tpu.memory_space<vmem>>, vector<256x4xf32>,
    %c0_60 = arith.constant 0 : index
    %c0_61 = arith.constant 0 : index
    %50 = vector.load %arg4[%c0_60, %c0_61] : memref<8x36xf32, #tpu.memory_space<vmem>>, vector<8x36xf32>
    %c0_62 = arith.constant 0 : index
    %c0_63 = arith.constant 0 : index
    %51 = vector.load %arg8[%c0_62, %c0_63] : memref<256x36xf32, #tpu.memory_space<vmem>>, vector<256x36xf32>
    %cst_64 = arith.constant dense<0.000000e+00> : vector<8x256xf32>
    %52 = tpu.matmul %50, %51, %cst_64 {dimension_numbers = #tpu.dot_dimension_numbers<[1], [1], [0], [0], [0, 0, 1, 0], [], []>, precision = #tpu.contract_precision<fp32>} : vector<8x36xf32>, vector<256x36xf32>, vector<8x256xf32> -> vector<8x256xf32>
    %c0_65 = arith.constant 0 : index
    %c0_66 = arith.constant 0 : index
    %c0_67 = arith.constant 0 : index
    %53 = vector.load %arg5[%c0_65, %c0_66, %c0_67] : memref<1x8x256xf32, #tpu.memory_space<vmem>>, vector<1x8x256xf32>
    %54 = vector.shape_cast %53 : vector<1x8x256xf32> to vector<8x256xf32>
    %55 = vector.shape_cast %52 : vector<8x256xf32> to vector<1x8x256xf32>
    tpu.vector_store %arg5[%c0_65, %c0_66, %c0_67], %55 {strides = array<i32>} : memref<1x8x256xf32, #tpu.memory_space<vmem>>, vector<1x8x256xf32>,
    %cst_68 = arith.constant dense<0.000000e+00> : vector<8xf32>
    %56 = vector.multi_reduction <add>, %52, %cst_68 [1] : vector<8x256xf32> to vector<8xf32>
    %57 = vector.shape_cast %56 : vector<8xf32> to vector<8x1xf32>
    %c0_69 = arith.constant 0 : index
    %c0_70 = arith.constant 0 : index
    %c0_71 = arith.constant 0 : index
    %58 = vector.load %arg6[%c0_69, %c0_70, %c0_71] : memref<1x8x2xf32, #tpu.memory_space<vmem>>, vector<1x8x1xf32>
    %59 = vector.shape_cast %58 : vector<1x8x1xf32> to vector<8x1xf32>
    %60 = vector.shape_cast %57 : vector<8x1xf32> to vector<1x8x1xf32>
    tpu.vector_store %arg6[%c0_69, %c0_70, %c0_71], %60 {strides = array<i32>} : memref<1x8x2xf32, #tpu.memory_space<vmem>>, vector<1x8x1xf32>,
    %61 = arith.mulf %52, %52 : vector<8x256xf32>
    %cst_72 = arith.constant dense<0.000000e+00> : vector<8xf32>
    %62 = vector.multi_reduction <add>, %61, %cst_72 [1] : vector<8x256xf32> to vector<8xf32>
    %63 = vector.shape_cast %62 : vector<8xf32> to vector<8x1xf32>
    %c0_73 = arith.constant 0 : index
    %c0_74 = arith.constant 0 : index
    %c1_75 = arith.constant 1 : index
    %64 = vector.load %arg6[%c0_73, %c0_74, %c1_75] : memref<1x8x2xf32, #tpu.memory_space<vmem>>, vector<1x8x1xf32>
    %65 = vector.shape_cast %64 : vector<1x8x1xf32> to vector<8x1xf32>
    %66 = vector.shape_cast %63 : vector<8x1xf32> to vector<1x8x1xf32>
    tpu.vector_store %arg6[%c0_73, %c0_74, %c1_75], %66 {strides = array<i32>} : memref<1x8x2xf32, #tpu.memory_space<vmem>>, vector<1x8x1xf32>,
    return
  }
  func.func @transform_0(%arg0: i32) -> (i32, i32, i32, i32) {
    %c0_i32 = arith.constant 0 : i32
    %c0_i32_0 = arith.constant 0 : i32
    %c0_i32_1 = arith.constant 0 : i32
    %c0_i32_2 = arith.constant 0 : i32
    return %arg0, %c0_i32, %c0_i32_0, %c0_i32_1 : i32, i32, i32, i32
  }
  func.func @transform_1(%arg0: i32) -> (i32, i32) {
    %c0_i32 = arith.constant 0 : i32
    %c0_i32_0 = arith.constant 0 : i32
    %c0_i32_1 = arith.constant 0 : i32
    return %c0_i32, %c0_i32_0 : i32, i32
  }
  func.func @transform_2(%arg0: i32) -> (i32, i32) {
    %c0_i32 = arith.constant 0 : i32
    %c0_i32_0 = arith.constant 0 : i32
    %c0_i32_1 = arith.constant 0 : i32
    return %c0_i32, %c0_i32_0 : i32, i32
  }
  func.func @transform_3(%arg0: i32) -> (i32, i32) {
    %c0_i32 = arith.constant 0 : i32
    %c0_i32_0 = arith.constant 0 : i32
    %c0_i32_1 = arith.constant 0 : i32
    return %c0_i32, %c0_i32_0 : i32, i32
  }
  func.func @transform_4(%arg0: i32) -> (i32, i32, i32) {
    %c0_i32 = arith.constant 0 : i32
    %c0_i32_0 = arith.constant 0 : i32
    %c0_i32_1 = arith.constant 0 : i32
    return %arg0, %c0_i32, %c0_i32_0 : i32, i32, i32
  }
  func.func @transform_5(%arg0: i32) -> (i32, i32, i32) {
    %c0_i32 = arith.constant 0 : i32
    %c0_i32_0 = arith.constant 0 : i32
    %c0_i32_1 = arith.constant 0 : i32
    return %arg0, %c0_i32, %c0_i32_0 : i32, i32, i32
  }
}

module attributes {stable_mosaic.version = 11 : i64} {
  func.func @_bn_apply_kernel(%arg0: i32, %arg1: i32, %arg2: memref<1x8x256xf32, #tpu.memory_space<vmem>>, %arg3: memref<8x1xf32, #tpu.memory_space<vmem>>, %arg4: memref<8x1xf32, #tpu.memory_space<vmem>>, %arg5: memref<1x8x256xf32, #tpu.memory_space<vmem>>) attributes {dimension_semantics = [#tpu.dimension_semantics<parallel>, #tpu.dimension_semantics<parallel>], iteration_bounds = array<i64: 2, 1>, scalar_prefetch = 0 : i64, scratch_operands = 0 : i64, tpu.core_type = #tpu.core_type<tc>, window_params = [{transform_indices = @transform_0, window_bounds = array<i64: 1, 8, 256>}, {pipeline_mode = #tpu.pipeline_mode<synchronous>, transform_indices = @transform_1, window_bounds = array<i64: 8, 1>}, {pipeline_mode = #tpu.pipeline_mode<synchronous>, transform_indices = @transform_2, window_bounds = array<i64: 8, 1>}, {transform_indices = @transform_3, window_bounds = array<i64: 1, 8, 256>}]} {
    %c0 = arith.constant 0 : index
    %c0_0 = arith.constant 0 : index
    %c0_1 = arith.constant 0 : index
    %0 = vector.load %arg2[%c0, %c0_0, %c0_1] : memref<1x8x256xf32, #tpu.memory_space<vmem>>, vector<1x8x256xf32>
    %1 = vector.shape_cast %0 : vector<1x8x256xf32> to vector<8x256xf32>
    %c0_2 = arith.constant 0 : index
    %c0_3 = arith.constant 0 : index
    %2 = vector.load %arg3[%c0_2, %c0_3] : memref<8x1xf32, #tpu.memory_space<vmem>>, vector<8x1xf32>
    %3 = vector.broadcast %2 : vector<8x1xf32> to vector<8x256xf32>
    %4 = arith.mulf %1, %3 : vector<8x256xf32>
    %c0_4 = arith.constant 0 : index
    %c0_5 = arith.constant 0 : index
    %5 = vector.load %arg4[%c0_4, %c0_5] : memref<8x1xf32, #tpu.memory_space<vmem>>, vector<8x1xf32>
    %6 = vector.broadcast %5 : vector<8x1xf32> to vector<8x256xf32>
    %7 = arith.addf %4, %6 : vector<8x256xf32>
    %c0_6 = arith.constant 0 : index
    %c0_7 = arith.constant 0 : index
    %c0_8 = arith.constant 0 : index
    %8 = vector.load %arg5[%c0_6, %c0_7, %c0_8] : memref<1x8x256xf32, #tpu.memory_space<vmem>>, vector<1x8x256xf32>
    %9 = vector.shape_cast %8 : vector<1x8x256xf32> to vector<8x256xf32>
    %10 = vector.shape_cast %7 : vector<8x256xf32> to vector<1x8x256xf32>
    tpu.vector_store %arg5[%c0_6, %c0_7, %c0_8], %10 {strides = array<i32>} : memref<1x8x256xf32, #tpu.memory_space<vmem>>, vector<1x8x256xf32>,
    return
  }
  func.func @transform_0(%arg0: i32, %arg1: i32) -> (i32, i32, i32) {
    %c0_i32 = arith.constant 0 : i32
    %c0_i32_0 = arith.constant 0 : i32
    return %arg0, %c0_i32, %arg1 : i32, i32, i32
  }
  func.func @transform_1(%arg0: i32, %arg1: i32) -> (i32, i32) {
    %c0_i32 = arith.constant 0 : i32
    %c0_i32_0 = arith.constant 0 : i32
    %c0_i32_1 = arith.constant 0 : i32
    return %c0_i32, %c0_i32_0 : i32, i32
  }
  func.func @transform_2(%arg0: i32, %arg1: i32) -> (i32, i32) {
    %c0_i32 = arith.constant 0 : i32
    %c0_i32_0 = arith.constant 0 : i32
    %c0_i32_1 = arith.constant 0 : i32
    return %c0_i32, %c0_i32_0 : i32, i32
  }
  func.func @transform_3(%arg0: i32, %arg1: i32) -> (i32, i32, i32) {
    %c0_i32 = arith.constant 0 : i32
    %c0_i32_0 = arith.constant 0 : i32
    return %arg0, %c0_i32, %arg1 : i32, i32, i32
  }
}

</mosaic_0001>

<bundles_post_ra>
// kernel: sepconv_forward.5
= control target key start
LH: loop header
LB: loop body
LE: loop exit
PB: predicated region body
PF: predicated region fallthrough
CT: control target
= control target key end

     0   :  { %s401_s12 = smov 0   ;;  %s403_s13 = smov 0   ;;  %s437_s0 = inlined_call_operand.vmem [shape: f32[2,8,256], index: 0, kind: input, shape index: {}]   ;;  %s438_s1 = inlined_call_operand.vmem [shape: f32[8,1], index: 1, kind: input, shape index: {}]   ;;  %s439_s2 = inlined_call_operand.vmem [shape: f32[8,1], index: 2, kind: input, shape index: {}]   ;;  %s440_s3 = inlined_call_operand.vmem [shape: f32[2,8,256], index: 3, kind: output, shape index: {}]  }
   0x1   :  { %s405_s14 = smov 0  }
   0x2 LB: > { %s25_s15 = sadd.s32 1, %s374_s13  ;;  %p321_p0 = scmp.ge.s32.totalorder %s378_s14, 1  ;;  %s378_s14 = sphi %s405_s14, %s13_s14   ;;  %s374_s13 = sphi %s403_s13, %s442_s13   ;;  %s370_s12 = sphi %s401_s12, %s441_s12  }
   0x3   : > { %p27_p1 = scmp.ge.s32.totalorder %s25_s15, 2  ;;  %p158_p2 = scmp.lt.s32.totalorder %s378_s14, 3 }
   0x5   : > { %s444_s15 = smov (%p27_p1, %s25_s15), 0  ;;  %p159_p3 = pnand %p321_p0, %p158_p2 }
   0x6   : > { %p191_p4 = scmp.lt.s32.totalorder (!%p159_p3), %s370_s12, 1 }
   0x7   : > { %162 = sbr.rel (%p159_p3) target bundleno = 145 (0x91), region = 32 }
   0xc   : > { %v212_v0 = vld [vmem:[%s438_s1] sm:$0xff]  ;;  %v380_v1 = vmov 0   ;;  %s446_s12 = smov (!%p191_p4, %s370_s12), 1 }
   0xd   : > { %355 = vset.pattern.permute.xlu0 %v380_v1  ;;  %v220_v2 = vld [vmem:[%s439_s2] sm:$0xff]  ;;  %s328_s20 = sshll.u32 %s446_s12, 4 }
   0xe   : > { %215 = vperm.xlu0 %355, %v212_v0   ;;  %s198_s23 = scalar_lea.vmem %s437_s0, %s328_s20  ;;  %s208_s26 = scalar_lea.vmem %s440_s3, %s328_s20 }
   0xf   : > { %v210_v4 = vld [vmem:[%s198_s23] sm:$0xff]  ;;  %v211_v5 = vld [vmem:[%s198_s23 + $0x8] sm:$0xff] }
  0x12   : > { %223 = vperm.xlu0 %355, %v220_v2  }
  0x89   : > { %v216_v3 = vpop.permute.xlu0 %215 }
  0x8a   : > { %v218_v6 = vmul.f32 %v216_v3, %v210_v4  ;;  %v219_v7 = vmul.f32 %v216_v3, %v211_v5 }
  0x8d   : > { %v224_v8 = vpop.permute.xlu0 %223 }
  0x8e   : > { %v226_v9 = vadd.f32 %v224_v8, %v218_v6  ;;  %v227_v10 = vadd.f32 %v224_v8, %v219_v7 }
  0x90   : > { %228 = vst [vmem:[%s208_s26] sm:$0xff] %v226_v9  ;;  %229 = vst [vmem:[%s208_s26 + $0x8] sm:$0xff] %v227_v10 }
  0x91 PF: > { %s13_s14 = sadd.s32 1, %s378_s14   ;;  %s441_s12 = smov %s374_s13 }
  0x92   : > { %p10_p5 = scmp.ge.s32.totalorder %s13_s14, 4   ;;  %s442_s13 = smov %s444_s15 }
  0x94   :  { %12 = sbr.rel (!%p10_p5) target bundleno = 2 (0x2), region = 62 }

// kernel: sepconv_forward.4
= control target key start
LH: loop header
LB: loop body
LE: loop exit
PB: predicated region body
PF: predicated region fallthrough
CT: control target
= control target key end

     0   :  { %s3440_s18 = smov 0   ;;  %s5181_s0 = inlined_call_operand.vmem [shape: f32[2,16,16,4], index: 0, kind: input, shape index: {}]   ;;  %s5182_s1 = inlined_call_operand.vmem [shape: f32[1,4], index: 1, kind: input, shape index: {}]   ;;  %s5183_s2 = inlined_call_operand.vmem [shape: f32[1,4], index: 2, kind: input, shape index: {}]   ;;  %s5184_s3 = inlined_call_operand.vmem [shape: f32[8,36], index: 3, kind: input, shape index: {}]   ;;  %s5185_s4 = inlined_call_operand.vmem [shape: f32[2,8,256], index: 4, kind: output, shape index: {0}]   ;;  %s5186_s5 = inlined_call_operand.vmem [shape: f32[2,8,2], index: 5, kind: output, shape index: {1}]  }
   0x1 LB: > { %s3154_s19 = sadd.s32 4294967295, %s3399_s18   ;;  %p3158_p0 = scmp.ge.s32.totalorder %s3399_s18, 1  ;;  %s3399_s18 = sphi %s3440_s18, %s16_s18  }
   0x2   : > { %p190_p1 = scmp.lt.s32.totalorder %s3399_s18, 3 }
   0x4   : > { %p191_p2 = pnand %p3158_p0, %p190_p1 }
   0x6   : > { %194 = sbr.rel (%p191_p2) target bundleno = 1156 (0x484), region = 36 }
   0xb   : > { %p3450_p3 = scmp.lt.s32.totalorder %s3154_s19, 1  ;;  %vm236_vm0 = vcmask 31744   ;;  %vm245_vm1 = vcmask 24576   ;;  %v3401_v0 = vmov 0.0   ;;  %vm239_vm2 = vcmask 25600   ;;  %s3402_s29 = smov 8  }
   0xc   : > { %279 = vst.msk [vmem:[#allocation2 + $0x179] sm:$0x1] %vm245_vm1, %v3401_v0  ;;  %247 = vst.msk [vmem:[#allocation2 + $0x18] sm:$0x1] %vm245_vm1, %v3401_v0  ;;  %v3504_v1 = vld [vmem:[%s5182_s1] ss:$0 sm:$0xff] }
   0xd   : > { %237 = vst.msk [vmem:[#allocation2] sm:$0xff] %vm236_vm0, %v3401_v0  ;;  %238 = vst.msk [vmem:[#allocation2 + $0x8] sm:$0xff] %vm236_vm0, %v3401_v0  ;;  %s5316_s19 = smov (!%p3450_p3, %s3154_s19), 1  ;;  %v3514_v2 = vld [vmem:[%s5183_s2] ss:$0 sm:$0xff]  ;;  %s3403_s30 = smov 4  }
   0xe   : > { %242 = vst.msk [vmem:[#allocation2 + $0x198] sm:$0xff] %vm236_vm0, %v3401_v0  ;;  %243 = vst.msk [vmem:[#allocation2 + $0x1a0] sm:$0xff] %vm236_vm0, %v3401_v0  ;;  %s3168_s21 = sshll.u32 %s5316_s19, 8  ;;  %s3404_s6 = smov 12   ;;  %vm681_vm3 = vcmask 64544   ;;  %vm874_vm4 = vcmask 97344  }
   0xf   : > { %248 = vst.msk [vmem:[#allocation2 + $0x30] sm:$0x1] %vm245_vm1, %v3401_v0  ;;  %249 = vst.msk [vmem:[#allocation2 + $0x48] sm:$0x1] %vm245_vm1, %v3401_v0  ;;  %s3509_s26 = scalar_lea.vmem %s5181_s0, %s3168_s21  ;;  %s3405_s7 = smov 16   ;;  %vm1067_vm5 = vcmask 130144  }
  0x10   : > { %250 = vst.msk [vmem:[#allocation2 + $0x60] sm:$0x1] %vm245_vm1, %v3401_v0  ;;  %251 = vst.msk [vmem:[#allocation2 + $0x78] sm:$0x1] %vm245_vm1, %v3401_v0  ;;  %v311_v3 = vld [vmem:[%s3509_s26 + $0xe8] sm:$0xff]  ;;  %v296_v5 = vld [vmem:[%s3509_s26 + $0x70] sm:$0xff] }
  0x11   : > { %252 = vst.msk [vmem:[#allocation2 + $0x90] sm:$0x1] %vm245_vm1, %v3401_v0  ;;  %253 = vst.msk [vmem:[#allocation2 + $0xa8] sm:$0x1] %vm245_vm1, %v3401_v0  ;;  %v295_v4 = vld [vmem:[%s3509_s26 + $0x68] sm:$0xff]  ;;  %v350_v6 = vmul.f32 %v3504_v1, %v311_v3  ;;  %v297_v8 = vld [vmem:[%s3509_s26 + $0x78] sm:$0xff]  ;;  %v335_v9 = vmul.f32 %v3504_v1, %v296_v5 }
  0x12   : > { %254 = vst.msk [vmem:[#allocation2 + $0xc0] sm:$0x1] %vm245_vm1, %v3401_v0  ;;  %255 = vst.msk [vmem:[#allocation2 + $0xd8] sm:$0x1] %vm245_vm1, %v3401_v0  ;;  %v334_v7 = vmul.f32 %v3504_v1, %v295_v4  ;;  %v312_v10 = vld [vmem:[%s3509_s26 + $0xf0] sm:$0xff]  ;;  %v313_v11 = vld [vmem:[%s3509_s26 + $0xf8] sm:$0xff]  ;;  %v336_v12 = vmul.f32 %v3504_v1, %v297_v8 }
  0x13   : > { %256 = vst.msk [vmem:[#allocation2 + $0xf0] sm:$0x1] %vm245_vm1, %v3401_v0  ;;  %257 = vst.msk [vmem:[#allocation2 + $0x108] sm:$0x1] %vm245_vm1, %v3401_v0  ;;  %v351_v13 = vmul.f32 %v3504_v1, %v312_v10  ;;  %v352_v14 = vmul.f32 %v3504_v1, %v313_v11  ;;  %v310_v15 = vld [vmem:[%s3509_s26 + $0xe0] sm:$0xff]  ;;  %v389_v17 = vadd.f32 %v3514_v2, %v350_v6  ;;  %v299_v26 = vld [vmem:[%s3509_s26 + $0x88] sm:$0xff] }
  0x14   : > { %258 = vst.msk [vmem:[#allocation2 + $0x120] sm:$0x1] %vm245_vm1, %v3401_v0  ;;  %259 = vst.msk [vmem:[#allocation2 + $0x138] sm:$0x1] %vm245_vm1, %v3401_v0  ;;  %v294_v16 = vld [vmem:[%s3509_s26 + $0x60] sm:$0xff]  ;;  %v373_v18 = vadd.f32 %v3514_v2, %v334_v7  ;;  %v374_v19 = vadd.f32 %v3514_v2, %v335_v9  ;;  %v349_v20 = vmul.f32 %v3504_v1, %v310_v15  ;;  %v309_v27 = vld [vmem:[%s3509_s26 + $0xd8] sm:$0xff] }
  0x15   : > { %260 = vst.msk [vmem:[#allocation2 + $0x150] sm:$0x1] %vm245_vm1, %v3401_v0  ;;  %261 = vst.msk [vmem:[#allocation2 + $0x168] sm:$0x1] %vm245_vm1, %v3401_v0  ;;  %v375_v21 = vadd.f32 %v3514_v2, %v336_v12  ;;  %v390_v22 = vadd.f32 %v3514_v2, %v351_v13  ;;  %v391_v23 = vadd.f32 %v3514_v2, %v352_v14  ;;  %v298_v25 = vld [vmem:[%s3509_s26 + $0x80] sm:$0xff]  ;;  %v421_v28 = vmax.f32 %v389_v17, 0.0 }
  0x16   : > { %262 = vst.msk [vmem:[#allocation2 + $0x180] sm:$0x1] %vm245_vm1, %v3401_v0  ;;  %265 = vst.msk [vmem:[#allocation2 + $0x29] sm:$0x1] %vm245_vm1, %v3401_v0  ;;  %v333_v24 = vmul.f32 %v3504_v1, %v294_v16  ;;  %v405_v29 = vmax.f32 %v373_v18, 0.0  ;;  %v406_v30 = vmax.f32 %v374_v19, 0.0  ;;  %v388_v31 = vadd.f32 %v3514_v2, %v349_v20 }
  0x17   : > { %266 = vst.msk [vmem:[#allocation2 + $0x41] sm:$0x1] %vm245_vm1, %v3401_v0  ;;  %267 = vst.msk [vmem:[#allocation2 + $0x59] sm:$0x1] %vm245_vm1, %v3401_v0  ;;  %v293_v32 = vld [vmem:[%s3509_s26 + $0x58] sm:$0xff]  ;;  %v407_v33 = vmax.f32 %v375_v21, 0.0  ;;  %v337_v41 = vmul.f32 %v3504_v1, %v298_v25  ;;  %v338_v42 = vmul.f32 %v3504_v1, %v299_v26  ;;  %v348_v43 = vmul.f32 %v3504_v1, %v309_v27 }
  0x18   : > { %268 = vst.msk [vmem:[#allocation2 + $0x71] sm:$0x1] %vm245_vm1, %v3401_v0  ;;  %269 = vst.msk [vmem:[#allocation2 + $0x89] sm:$0x1] %vm245_vm1, %v3401_v0  ;;  %v422_v34 = vmax.f32 %v390_v22, 0.0  ;;  %v423_v35 = vmax.f32 %v391_v23, 0.0  ;;  %v372_v36 = vadd.f32 %v3514_v2, %v333_v24  ;;  %v332_v46 = vmul.f32 %v3504_v1, %v293_v32 }
  0x19   : > { %270 = vst.msk [vmem:[#allocation2 + $0xa1] sm:$0x1] %vm245_vm1, %v3401_v0  ;;  %271 = vst.msk [vmem:[#allocation2 + $0xb9] sm:$0x1] %vm245_vm1, %v3401_v0  ;;  %v308_v37 = vld [vmem:[%s3509_s26 + $0xd0] sm:$0xff]  ;;  %v307_v39 = vld [vmem:[%s3509_s26 + $0xc8] sm:$0xff]  ;;  %v376_v49 = vadd.f32 %v3514_v2, %v337_v41  ;;  %v377_v50 = vadd.f32 %v3514_v2, %v338_v42  ;;  %v387_v51 = vadd.f32 %v3514_v2, %v348_v43 }
  0x1a   : > { %272 = vst.msk [vmem:[#allocation2 + $0xd1] sm:$0x1] %vm245_vm1, %v3401_v0  ;;  %273 = vst.msk [vmem:[#allocation2 + $0xe9] sm:$0x1] %vm245_vm1, %v3401_v0  ;;  %v292_v38 = vld [vmem:[%s3509_s26 + $0x50] sm:$0xff]  ;;  %v420_v40 = vmax.f32 %v388_v31, 0.0  ;;  %v347_v47 = vmul.f32 %v3504_v1, %v308_v37  ;;  %v346_v52 = vmul.f32 %v3504_v1, %v307_v39  ;;  %v371_v53 = vadd.f32 %v3514_v2, %v332_v46 }
  0x1b   : > { %274 = vst.msk [vmem:[#allocation2 + $0x101] sm:$0x1] %vm245_vm1, %v3401_v0  ;;  %275 = vst.msk [vmem:[#allocation2 + $0x119] sm:$0x1] %vm245_vm1, %v3401_v0  ;;  %v291_v44 = vld [vmem:[%s3509_s26 + $0x48] sm:$0xff]  ;;  %v404_v45 = vmax.f32 %v372_v36, 0.0  ;;  %v331_v48 = vmul.f32 %v3504_v1, %v292_v38 }
  0x1c   : > { %276 = vst.msk [vmem:[#allocation2 + $0x131] sm:$0x1] %vm245_vm1, %v3401_v0  ;;  %277 = vst.msk [vmem:[#allocation2 + $0x149] sm:$0x1] %vm245_vm1, %v3401_v0  ;;  %v386_v54 = vadd.f32 %v3514_v2, %v347_v47  ;;  %v330_v56 = vmul.f32 %v3504_v1, %v291_v44  ;;  %v408_v57 = vmax.f32 %v376_v49, 0.0  ;;  %v409_v58 = vmax.f32 %v377_v50, 0.0 }
  0x1d   : > { %278 = vst.msk [vmem:[#allocation2 + $0x161] sm:$0x1] %vm245_vm1, %v3401_v0  ;;  %280 = vst.msk [vmem:[#allocation2 + $0x191] sm:$0x1] %vm245_vm1, %v3401_v0  ;;  %v370_v55 = vadd.f32 %v3514_v2, %v331_v48  ;;  %v419_v59 = vmax.f32 %v387_v51, 0.0  ;;  %v385_v60 = vadd.f32 %v3514_v2, %v346_v52  ;;  %v403_v61 = vmax.f32 %v371_v53, 0.0 }
  0x1e   : > { %246 = vst.msk [vmem:[#allocation2] sm:$0x1] %vm245_vm1, %v3401_v0  ;;  %263 = vst.msk [vmem:[#allocation2 + $0x198] sm:$0x1] %vm245_vm1, %v3401_v0  ;;  %v418_v62 = vmax.f32 %v386_v54, 0.0  ;;  %v306_v3 = vld [vmem:[%s3509_s26 + $0xc0] sm:$0xff] }
  0x1f   : > { %244 = vst.msk [vmem:[#allocation2 + $0x1a8] sm:$0x3] %vm239_vm2, %v3401_v0  ;;  %240 = vst.msk [vmem:[#allocation2 + $0x10] sm:$0x3] %vm239_vm2, %v3401_v0  ;;  %v402_v63 = vmax.f32 %v370_v55, 0.0  ;;  %v417_v4 = vmax.f32 %v385_v60, 0.0  ;;  %v345_v5 = vmul.f32 %v3504_v1, %v306_v3 }
  0x20   : > { %281 = vst.msk [vmem:[#allocation2 + $0x1a9] sm:$0x1] %vm245_vm1, %v3401_v0  ;;  %264 = vst.msk [vmem:[#allocation2 + $0x11] sm:$0x1] %vm245_vm1, %v3401_v0  ;;  %v369_v0 = vadd.f32 %v3514_v2, %v330_v56  ;;  %v290_v25 = vld [vmem:[%s3509_s26 + $0x40] sm:$0xff]  ;;  %s3406_s8 = smov 20  }
  0x21   : > { %454 = vst.msk [vmem:[#allocation2 + $0x171] sm:$0xff] %vm236_vm0, %v421_v28  ;;  %438 = vst.msk [vmem:[#allocation2 + $0xb1] sm:$0xff] %vm236_vm0, %v405_v29  ;;  %v384_v9 = vadd.f32 %v3514_v2, %v345_v5  ;;  %v329_v26 = vmul.f32 %v3504_v1, %v290_v25  ;;  %v1518_v31 = vld [vmem:[#allocation2 + $0x1a0] sm:$0xff]  ;;  %s3407_s9 = smov 24   ;;  %v305_v38 = vld [vmem:[%s3509_s26 + $0xb8] sm:$0xff]  ;;  %s3408_s10 = smov 28  }
  0x22   : > { %439 = vst.msk [vmem:[#allocation2 + $0xc1] sm:$0xff] %vm236_vm0, %v406_v30  ;;  %440 = vst.msk [vmem:[#allocation2 + $0xc9] sm:$0xff] %vm236_vm0, %v407_v33  ;;  %v401_v8 = vmax.f32 %v369_v0, 0.0  ;;  %v344_v39 = vmul.f32 %v3504_v1, %v305_v38  ;;  %v289_v47 = vld [vmem:[%s3509_s26 + $0x38] sm:$0xff]  ;;  %s3409_s11 = smov 32   ;;  %vm1260_vm6 = vcmask 162944  }
  0x23   : > { %455 = vst.msk [vmem:[#allocation2 + $0x181] sm:$0xff] %vm236_vm0, %v422_v34  ;;  %456 = vst.msk [vmem:[#allocation2 + $0x189] sm:$0xff] %vm236_vm0, %v423_v35  ;;  %v416_v12 = vmax.f32 %v384_v9, 0.0  ;;  %v368_v29 = vadd.f32 %v3514_v2, %v329_v26  ;;  %v328_v48 = vmul.f32 %v3504_v1, %v289_v47  ;;  %vm1453_vm7 = vcmask 195744   ;;  %s3169_s20 = sshll.u32 %s5316_s19, 4  ;;  %s3163_s24 = sshll.u32 %s5316_s19, 3 }
  0x24   : > { %453 = vst.msk [vmem:[#allocation2 + $0x169] sm:$0xff] %vm236_vm0, %v420_v40  ;;  %437 = vst.msk [vmem:[#allocation2 + $0xa9] sm:$0xff] %vm236_vm0, %v404_v45  ;;  %v383_v40 = vadd.f32 %v3514_v2, %v344_v39  ;;  %vm1647_vm8 = vcmask 228544   ;;  %vm1840_vm9 = vcmask 261344   ;;  %vm2033_vm10 = vcmask 294144   ;;  %s231_s23 = scalar_lea.vmem %s5185_s4, %s3169_s20  ;;  %s235_s27 = scalar_lea.vmem %s5186_s5, %s3163_s24 }
  0x25   : > { %441 = vst.msk [vmem:[#allocation2 + $0xd9] sm:$0xff] %vm236_vm0, %v408_v57  ;;  %442 = vst.msk [vmem:[#allocation2 + $0xe1] sm:$0xff] %vm236_vm0, %v409_v58  ;;  %v400_v30 = vmax.f32 %v368_v29, 0.0  ;;  %v367_v49 = vadd.f32 %v3514_v2, %v328_v48  ;;  %v1517_v57 = vld [vmem:[#allocation2 + $0x198] sm:$0xff]  ;;  %vm2099_vm11 = vcmask 293888   ;;  %vm3059_vm12 = vcmask 7168  }
  0x26   : > { %452 = vst.msk [vmem:[#allocation2 + $0x159] sm:$0xff] %vm236_vm0, %v419_v59  ;;  %436 = vst.msk [vmem:[#allocation2 + $0x99] sm:$0xff] %vm236_vm0, %v403_v61  ;;  %v1711_v36 = vld [vmem:[#allocation2 + $0x1a1] sm:$0xff]  ;;  %v415_v43 = vmax.f32 %v383_v40, 0.0  ;;  %v1710_v61 = vld [vmem:[#allocation2 + $0x199] sm:$0xff]  ;;  %vm3066_vm13 = vcmask 15368  }
  0x27   : > { %451 = vst.msk [vmem:[#allocation2 + $0x151] sm:$0xff] %vm236_vm0, %v418_v62  ;;  %435 = vst.msk [vmem:[#allocation2 + $0x91] sm:$0xff] %vm236_vm0, %v402_v63  ;;  %v1904_v45 = vld [vmem:[#allocation2 + $0x1a2] sm:$0xff]  ;;  %v399_v52 = vmax.f32 %v367_v49, 0.0  ;;  %v304_v63 = vld [vmem:[%s3509_s26 + $0xb0] sm:$0xff] }
  0x28   : > { %v3577_v6 = vld [vmem:[#allocation2 + $0x172] sm:$0xff]  ;;  %450 = vst.msk [vmem:[#allocation2 + $0x141] sm:$0xff] %vm236_vm0, %v417_v4  ;;  %434 = vst.msk [vmem:[#allocation2 + $0x81] sm:$0xff] %vm236_vm0, %v401_v8  ;;  %v343_v0 = vmul.f32 %v3504_v1, %v304_v63  ;;  %v1903_v8 = vld [vmem:[#allocation2 + $0x19a] sm:$0xff] }
  0x29   : > { %v3579_v7 = vld [vmem:[#allocation2 + $0x171] sm:$0xff]  ;;  %840 = vrot.lane.b32.xlu1 %v3577_v6, %s3402_s29  ;;  %449 = vst.msk [vmem:[#allocation2 + $0x139] sm:$0xff] %vm236_vm0, %v416_v12  ;;  %v3600_v13 = vld [vmem:[#allocation2 + $0xc8] sm:$0xff]  ;;  %433 = vst.msk [vmem:[#allocation2 + $0x79] sm:$0xff] %vm236_vm0, %v400_v30 }
  0x2a   : > { %647 = vrot.lane.b32.xlu0 %v3579_v7, %s3403_s30  ;;  %v3590_v10 = vld [vmem:[#allocation2 + $0xb2] sm:$0xff]  ;;  %v3602_v14 = vld [vmem:[#allocation2 + $0x188] sm:$0xff]  ;;  %v3665_v33 = vld [vmem:[#allocation2 + $0x180] sm:$0xff]  ;;  %448 = vst.msk [vmem:[#allocation2 + $0x129] sm:$0xff] %vm236_vm0, %v415_v43  ;;  %v382_v3 = vadd.f32 %v3514_v2, %v343_v0 }
  0x2b   : > { %v3592_v11 = vld [vmem:[#allocation2 + $0xb1] sm:$0xff]  ;;  %v3614_v17 = vld [vmem:[#allocation2 + $0x169] sm:$0xff]  ;;  %v3682_v41 = vld [vmem:[#allocation2 + $0x181] sm:$0xff]  ;;  %432 = vst.msk [vmem:[#allocation2 + $0x69] sm:$0xff] %vm236_vm0, %v399_v52 }
  0x2c   : > { %v3604_v15 = vld [vmem:[#allocation2 + $0x170] sm:$0xff]  ;;  %v3620_v19 = vld [vmem:[#allocation2 + $0x168] sm:$0xff]  ;;  %v1502_v37 = vld [vmem:[#allocation2 + $0xe0] sm:$0xff]  ;;  %v414_v4 = vmax.f32 %v382_v3, 0.0 }
  0x2d   : > { %808 = vrot.lane.b32.xlu1 %v3590_v10, %s3402_s29  ;;  %v3610_v16 = vld [vmem:[#allocation2 + $0xb0] sm:$0xff]  ;;  %520 = vst.msk [vmem:[#allocation3 + $0xf8] sm:$0xff] %vm236_vm0, %v3604_v15  ;;  %v3622_v20 = vld [vmem:[#allocation2 + $0xa8] sm:$0xff]  ;;  %519 = vst.msk [vmem:[#allocation3 + $0xf0] sm:$0xff] %vm236_vm0, %v3620_v19 }
  0x2e   : > { %615 = vrot.lane.b32.xlu0 %v3592_v11, %s3403_s30  ;;  %v3616_v18 = vld [vmem:[#allocation2 + $0x189] sm:$0xff]  ;;  %504 = vst.msk [vmem:[#allocation3 + $0x78] sm:$0xff] %vm236_vm0, %v3610_v16  ;;  %v3630_v21 = vld [vmem:[#allocation2 + $0x158] sm:$0xff]  ;;  %503 = vst.msk [vmem:[#allocation3 + $0x70] sm:$0xff] %vm236_vm0, %v3622_v20 }
  0x2f   : > { %v3634_v22 = vld [vmem:[#allocation2 + $0x18a] sm:$0xff]  ;;  %v3638_v24 = vld [vmem:[#allocation2 + $0x98] sm:$0xff]  ;;  %518 = vst.msk [vmem:[#allocation3 + $0xe8] sm:$0xff] %vm236_vm0, %v3630_v21  ;;  %v3684_v42 = vld [vmem:[#allocation2 + $0xc0] sm:$0xff] }
  0x30   : > { %v3636_v23 = vld [vmem:[#allocation2 + $0xc9] sm:$0xff]  ;;  %502 = vst.msk [vmem:[#allocation3 + $0x68] sm:$0xff] %vm236_vm0, %v3638_v24  ;;  %v1695_v46 = vld [vmem:[#allocation2 + $0xe1] sm:$0xff]  ;;  %v3702_v51 = vld [vmem:[#allocation2 + $0x159] sm:$0xff] }
  0x31   : > { %1001 = vrot.lane.b32.xlu1 %v3600_v13, %s3404_s6  ;;  %v3650_v27 = vld [vmem:[#allocation2 + $0x16a] sm:$0xff]  ;;  %v3700_v50 = vld [vmem:[#allocation2 + $0xc1] sm:$0xff]  ;;  %v3716_v56 = vld [vmem:[#allocation2 + $0x99] sm:$0xff]  ;;  %447 = vst.msk [vmem:[#allocation2 + $0x121] sm:$0xff] %vm236_vm0, %v414_v4 }
  0x32   : > { %1033 = vrot.lane.b32.xlu0 %v3602_v14, %s3404_s6  ;;  %v3652_v28 = vld [vmem:[#allocation2 + $0xa9] sm:$0xff]  ;;  %v3714_v55 = vld [vmem:[#allocation2 + $0x15a] sm:$0xff]  ;;  %v3756_v29 = vld [vmem:[#allocation2 + $0x151] sm:$0xff] }
  0x33   : > { %v3659_v32 = vld [vmem:[#allocation2 + $0xca] sm:$0xff]  ;;  %v1888_v53 = vld [vmem:[#allocation2 + $0xe2] sm:$0xff]  ;;  %v3727_v59 = vld [vmem:[#allocation2 + $0x9a] sm:$0xff] }
  0x34   : > { %v3667_v34 = vld [vmem:[#allocation2 + $0xaa] sm:$0xff]  ;;  %v3709_v54 = vld [vmem:[#allocation2 + $0x182] sm:$0xff]  ;;  %v1501_v62 = vld [vmem:[#allocation2 + $0xd8] sm:$0xff] }
  0x35   : > { %645 = vrot.lane.b32.xlu1 %v3614_v17, %s3403_s30  ;;  %v3669_v35 = vld [vmem:[#allocation2 + $0x150] sm:$0xff]  ;;  %v3722_v58 = vld [vmem:[#allocation2 + $0xc2] sm:$0xff]  ;;  %v1694_v9 = vld [vmem:[#allocation2 + $0xd9] sm:$0xff] }
  0x36   : > { %1226 = vrot.lane.b32.xlu0 %v3616_v18, %s3405_s7  ;;  %517 = vst.msk [vmem:[#allocation3 + $0xe0] sm:$0xff] %vm236_vm0, %v3669_v35  ;;  %v3686_v44 = vld [vmem:[#allocation2 + $0x90] sm:$0xff]  ;;  %v3729_v60 = vld [vmem:[#allocation2 + $0x140] sm:$0xff]  ;;  %v3780_v39 = vld [vmem:[#allocation2 + $0x138] sm:$0xff] }
  0x37   : > { %501 = vst.msk [vmem:[#allocation3 + $0x60] sm:$0xff] %vm236_vm0, %v3686_v44  ;;  %516 = vst.msk [vmem:[#allocation3 + $0xd8] sm:$0xff] %vm236_vm0, %v3729_v60  ;;  %v3742_v5 = vld [vmem:[#allocation2 + $0x80] sm:$0xff]  ;;  %v288_v12 = vld [vmem:[%s3509_s26 + $0x30] sm:$0xff] }
  0x38   : > { %500 = vst.msk [vmem:[#allocation3 + $0x58] sm:$0xff] %vm236_vm0, %v3742_v5  ;;  %v327_v25 = vmul.f32 %v3504_v1, %v288_v12  ;;  %v3778_v38 = vld [vmem:[#allocation2 + $0x92] sm:$0xff]  ;;  %515 = vst.msk [vmem:[#allocation3 + $0xd0] sm:$0xff] %vm236_vm0, %v3780_v39  ;;  %v303_v40 = vld [vmem:[%s3509_s26 + $0xa8] sm:$0xff] }
  0x39   : > { %1419 = vrot.lane.b32.xlu1 %v3634_v22, %s3406_s8  ;;  %v3811_v48 = vld [vmem:[#allocation2 + $0x141] sm:$0xff] }
  0x3a   : > { %1194 = vrot.lane.b32.xlu0 %v3636_v23, %s3405_s7  ;;  %v366_v26 = vadd.f32 %v3514_v2, %v327_v25  ;;  %v3842_v0 = vld [vmem:[#allocation2 + $0x128] sm:$0xff] }
  0x3b   : > { %514 = vst.msk [vmem:[#allocation3 + $0xc8] sm:$0xff] %vm236_vm0, %v3842_v0 }
  0x3c   : > { %v398_v30 = vmax.f32 %v366_v26, 0.0 }
  0x3d   : > { %838 = vrot.lane.b32.xlu1 %v3650_v27, %s3402_s29 }
  0x3e   : > { %613 = vrot.lane.b32.xlu0 %v3652_v28, %s3403_s30  ;;  %431 = vst.msk [vmem:[#allocation2 + $0x61] sm:$0xff] %vm236_vm0, %v398_v30 }
  0x41   : > { %1613 = vrot.lane.b32.xlu1 %v1518_v31, %s3407_s9  ;;  %v1887_v31 = vld [vmem:[#allocation2 + $0xda] sm:$0xff] }
  0x42   : > { %1387 = vrot.lane.b32.xlu0 %v3659_v32, %s3406_s8 }
  0x45   : > { %1031 = vrot.lane.b32.xlu1 %v3665_v33, %s3404_s6  ;;  %v3861_v30 = vld [vmem:[#allocation2 + $0x68] sm:$0xff] }
  0x46   : > { %806 = vrot.lane.b32.xlu0 %v3667_v34, %s3402_s29  ;;  %498 = vst.msk [vmem:[#allocation3 + $0x48] sm:$0xff] %vm236_vm0, %v3861_v30 }
  0x49   : > { %1806 = vrot.lane.b32.xlu1 %v1711_v36, %s3408_s10  ;;  %v3766_v36 = vld [vmem:[#allocation2 + $0x152] sm:$0xff] }
  0x4a   : > { %1581 = vrot.lane.b32.xlu0 %v1502_v37, %s3407_s9  ;;  %v3768_v37 = vld [vmem:[#allocation2 + $0x91] sm:$0xff] }
  0x4d   : > { %1224 = vrot.lane.b32.xlu1 %v3682_v41, %s3405_s7 }
  0x4e   : > { %999 = vrot.lane.b32.xlu0 %v3684_v42, %s3404_s6 }
  0x51   : > { %1999 = vrot.lane.b32.xlu1 %v1904_v45, %s3409_s11 }
  0x52   : > { %1774 = vrot.lane.b32.xlu0 %v1695_v46, %s3408_s10  ;;  %v3795_v46 = vld [vmem:[#allocation2 + $0x78] sm:$0xff] }
  0x53   : > { %499 = vst.msk [vmem:[#allocation3 + $0x50] sm:$0xff] %vm236_vm0, %v3795_v46 }
  0x55   : > { %1192 = vrot.lane.b32.xlu1 %v3700_v50, %s3405_s7 }
  0x56   : > { %643 = vrot.lane.b32.xlu0 %v3702_v51, %s3403_s30 }
  0x59   : > { %1967 = vrot.lane.b32.xlu1 %v1888_v53, %s3409_s11 }
  0x5a   : > { %1417 = vrot.lane.b32.xlu0 %v3709_v54, %s3406_s8 }
  0x5d   : > { %836 = vrot.lane.b32.xlu1 %v3714_v55, %s3402_s29 }
  0x5e   : > { %611 = vrot.lane.b32.xlu0 %v3716_v56, %s3403_s30 }
  0x61   : > { %1611 = vrot.lane.b32.xlu1 %v1517_v57, %s3407_s9 }
  0x62   : > { %1385 = vrot.lane.b32.xlu0 %v3722_v58, %s3406_s8 }
  0x65   : > { %1029 = vrot.lane.b32.xlu1 %v3604_v15, %s3404_s6 }
  0x66   : > { %804 = vrot.lane.b32.xlu0 %v3727_v59, %s3402_s29 }
  0x69   : > { %1804 = vrot.lane.b32.xlu1 %v1710_v61, %s3408_s10  ;;  %v3838_v61 = vld [vmem:[#allocation2 + $0x82] sm:$0xff] }
  0x6a   : > { %1579 = vrot.lane.b32.xlu0 %v1501_v62, %s3407_s9 }
  0x6d   : > { %1222 = vrot.lane.b32.xlu1 %v3579_v7, %s3405_s7 }
  0x6e   : > { %997 = vrot.lane.b32.xlu0 %v3610_v16, %s3404_s6 }
  0x71   : > { %1997 = vrot.lane.b32.xlu1 %v1903_v8, %s3409_s11 }
  0x72   : > { %1772 = vrot.lane.b32.xlu0 %v1694_v9, %s3408_s10 }
  0x75   : > { %1190 = vrot.lane.b32.xlu1 %v3592_v11, %s3405_s7 }
  0x76   : > { %641 = vrot.lane.b32.xlu0 %v3756_v29, %s3403_s30 }
  0x79   : > { %1965 = vrot.lane.b32.xlu1 %v1887_v31, %s3409_s11 }
  0x7a   : > { %1415 = vrot.lane.b32.xlu0 %v3577_v6, %s3406_s8 }
  0x7d   : > { %834 = vrot.lane.b32.xlu1 %v3766_v36, %s3402_s29 }
  0x7e   : > { %609 = vrot.lane.b32.xlu0 %v3768_v37, %s3403_s30 }
  0x81   : > { %1609 = vrot.lane.b32.xlu1 %v3602_v14, %s3407_s9  ;;  %v342_v14 = vmul.f32 %v3504_v1, %v303_v40 }
  0x82   : > { %1383 = vrot.lane.b32.xlu0 %v3590_v10, %s3406_s8 }
  0x83   : > { %v381_v43 = vadd.f32 %v3514_v2, %v342_v14 }
  0x85   : > { %1027 = vrot.lane.b32.xlu1 %v3620_v19, %s3404_s6  ;;  %v413_v45 = vmax.f32 %v381_v43, 0.0  ;;  %v3879_v43 = vld [vmem:[#allocation2 + $0x139] sm:$0xff] }
  0x86   : > { %802 = vrot.lane.b32.xlu0 %v3778_v38, %s3402_s29 }
  0x87   : > { %446 = vst.msk [vmem:[#allocation2 + $0x111] sm:$0xff] %vm236_vm0, %v413_v45 }
  0x89   : > { %1802 = vrot.lane.b32.xlu1 %v3616_v18, %s3408_s10  ;;  %v287_v18 = vld [vmem:[%s3509_s26 + $0x28] sm:$0xff] }
  0x8a   : > { %1577 = vrot.lane.b32.xlu0 %v3600_v13, %s3407_s9  ;;  %v326_v47 = vmul.f32 %v3504_v1, %v287_v18 }
  0x8c   : > { %v365_v13 = vadd.f32 %v3514_v2, %v326_v47 }
  0x8d   : > { %1220 = vrot.lane.b32.xlu1 %v3614_v17, %s3405_s7 }
  0x8e   : > { %995 = vrot.lane.b32.xlu0 %v3622_v20, %s3404_s6  ;;  %v397_v49 = vmax.f32 %v365_v13, 0.0  ;;  %v3894_v13 = vld [vmem:[#allocation2 + $0x13a] sm:$0xff] }
  0x90   : > { %430 = vst.msk [vmem:[#allocation2 + $0x51] sm:$0xff] %vm236_vm0, %v397_v49  ;;  %v3896_v49 = vld [vmem:[#allocation2 + $0x79] sm:$0xff] }
  0x91   : > { %1995 = vrot.lane.b32.xlu1 %v3634_v22, %s3409_s11  ;;  %v3822_v22 = vld [vmem:[#allocation2 + $0x142] sm:$0xff] }
  0x92   : > { %1770 = vrot.lane.b32.xlu0 %v3636_v23, %s3408_s10  ;;  %v3824_v23 = vld [vmem:[#allocation2 + $0x81] sm:$0xff] }
  0x95   : > { %1188 = vrot.lane.b32.xlu1 %v3652_v28, %s3405_s7 }
  0x96   : > { %639 = vrot.lane.b32.xlu0 %v3811_v48, %s3403_s30 }
  0x99   : > { %1963 = vrot.lane.b32.xlu1 %v3659_v32, %s3409_s11 }
  0x9a   : > { %1413 = vrot.lane.b32.xlu0 %v3650_v27, %s3406_s8 }
  0x9b   : > { %v841_v52 = vpop.permute.xlu1 %840 }
  0x9c   : > { %v648_v53 = vpop.permute.xlu0 %647 }
  0x9d   : > { %713 = vst.msk [vmem:[#allocation3 + $0xf8] sm:$0xff] %vm681_vm3, %v648_v53  ;;  %832 = vrot.lane.b32.xlu1 %v3822_v22, %s3402_s29 }
  0x9e   : > { %607 = vrot.lane.b32.xlu0 %v3824_v23, %s3403_s30  ;;  %906 = vst.msk [vmem:[#allocation3 + $0xf8] sm:$0xff] %vm874_vm4, %v841_v52 }
  0x9f   : > { %v809_v32 = vpop.permute.xlu1 %808 }
  0xa0   : > { %v616_v57 = vpop.permute.xlu0 %615 }
  0xa1   : > { %697 = vst.msk [vmem:[#allocation3 + $0x78] sm:$0xff] %vm681_vm3, %v616_v57  ;;  %1607 = vrot.lane.b32.xlu1 %v3665_v33, %s3407_s9  ;;  %v302_v33 = vld [vmem:[%s3509_s26 + $0xa0] sm:$0xff] }
  0xa2   : > { %1381 = vrot.lane.b32.xlu0 %v3667_v34, %s3406_s8  ;;  %890 = vst.msk [vmem:[#allocation3 + $0x78] sm:$0xff] %vm874_vm4, %v809_v32  ;;  %v341_v8 = vmul.f32 %v3504_v1, %v302_v33  ;;  %v3910_v57 = vld [vmem:[#allocation2 + $0x7a] sm:$0xff] }
  0xa3   : > { %v1002_v62 = vpop.permute.xlu1 %1001  ;;  %v3914_v33 = vld [vmem:[#allocation2 + $0x120] sm:$0xff] }
  0xa4   : > { %v1034_v63 = vpop.permute.xlu0 %1033  ;;  %1083 = vst.msk [vmem:[#allocation3 + $0x78] sm:$0xff] %vm1067_vm5, %v1002_v62  ;;  %v380_v9 = vadd.f32 %v3514_v2, %v341_v8 }
  0xa5   : > { %1099 = vst.msk [vmem:[#allocation3 + $0xf8] sm:$0xff] %vm1067_vm5, %v1034_v63  ;;  %1025 = vrot.lane.b32.xlu1 %v3630_v21, %s3404_s6 }
  0xa6   : > { %800 = vrot.lane.b32.xlu0 %v3838_v61, %s3402_s29  ;;  %v412_v26 = vmax.f32 %v380_v9, 0.0  ;;  %513 = vst.msk [vmem:[#allocation3 + $0xc0] sm:$0xff] %vm236_vm0, %v3914_v33 }
  0xa7   : > { %v646_v3 = vpop.permute.xlu1 %645 }
  0xa8   : > { %v1227_v4 = vpop.permute.xlu0 %1226  ;;  %712 = vst.msk [vmem:[#allocation3 + $0xf0] sm:$0xff] %vm681_vm3, %v646_v3 }
  0xa9   : > { %1292 = vst.msk [vmem:[#allocation3 + $0xf8] sm:$0xff] %vm1260_vm6, %v1227_v4  ;;  %1800 = vrot.lane.b32.xlu1 %v3682_v41, %s3408_s10  ;;  %v286_v41 = vld [vmem:[%s3509_s26 + $0x20] sm:$0xff] }
  0xaa   : > { %1575 = vrot.lane.b32.xlu0 %v3684_v42, %s3407_s9  ;;  %445 = vst.msk [vmem:[#allocation2 + $0x109] sm:$0xff] %vm236_vm0, %v412_v26  ;;  %v325_v40 = vmul.f32 %v3504_v1, %v286_v41 }
  0xab   : > { %v1420_v12 = vpop.permute.xlu1 %1419 }
  0xac   : > { %v1195_v25 = vpop.permute.xlu0 %1194  ;;  %1485 = vst.msk [vmem:[#allocation3 + $0xf8] sm:$0xff] %vm1453_vm7, %v1420_v12  ;;  %v364_v14 = vadd.f32 %v3514_v2, %v325_v40 }
  0xad   : > { %1276 = vst.msk [vmem:[#allocation3 + $0x78] sm:$0xff] %vm1260_vm6, %v1195_v25  ;;  %1218 = vrot.lane.b32.xlu1 %v3702_v51, %s3405_s7 }
  0xae   : > { %993 = vrot.lane.b32.xlu0 %v3638_v24, %s3404_s6  ;;  %v396_v47 = vmax.f32 %v364_v14, 0.0 }
  0xaf   : > { %v839_v42 = vpop.permute.xlu1 %838 }
  0xb0   : > { %v614_v31 = vpop.permute.xlu0 %613  ;;  %905 = vst.msk [vmem:[#allocation3 + $0xf0] sm:$0xff] %vm874_vm4, %v839_v42 }
  0xb1   : > { %696 = vst.msk [vmem:[#allocation3 + $0x70] sm:$0xff] %vm681_vm3, %v614_v31  ;;  %1993 = vrot.lane.b32.xlu1 %v3709_v54, %s3409_s11  ;;  %v3934_v31 = vld [vmem:[#allocation2 + $0x60] sm:$0xff] }
  0xb2   : > { %1768 = vrot.lane.b32.xlu0 %v3700_v50, %s3408_s10  ;;  %429 = vst.msk [vmem:[#allocation2 + $0x49] sm:$0xff] %vm236_vm0, %v396_v47  ;;  %497 = vst.msk [vmem:[#allocation3 + $0x40] sm:$0xff] %vm236_vm0, %v3934_v31 }
  0xb3   : > { %v1614_v45 = vpop.permute.xlu1 %1613 }
  0xb4   : > { %v1388_v18 = vpop.permute.xlu0 %1387  ;;  %1679 = vst.msk [vmem:[#allocation3 + $0xf8] sm:$0xff] %vm1647_vm8, %v1614_v45 }
  0xb5   : > { %1469 = vst.msk [vmem:[#allocation3 + $0x78] sm:$0xff] %vm1453_vm7, %v1388_v18  ;;  %1186 = vrot.lane.b32.xlu1 %v3716_v56, %s3405_s7 }
  0xb6   : > { %637 = vrot.lane.b32.xlu0 %v3879_v43, %s3403_s30 }
  0xb7   : > { %v1032_v50 = vpop.permute.xlu1 %1031 }
  0xb8   : > { %v807_v54 = vpop.permute.xlu0 %806  ;;  %1098 = vst.msk [vmem:[#allocation3 + $0xf0] sm:$0xff] %vm1067_vm5, %v1032_v50 }
  0xb9   : > { %889 = vst.msk [vmem:[#allocation3 + $0x70] sm:$0xff] %vm874_vm4, %v807_v54  ;;  %1961 = vrot.lane.b32.xlu1 %v3722_v58, %s3409_s11  ;;  %v3959_v54 = vld [vmem:[#allocation2 + $0x129] sm:$0xff] }
  0xba   : > { %1411 = vrot.lane.b32.xlu0 %v3714_v55, %s3406_s8 }
  0xbb   : > { %v1807_v52 = vpop.permute.xlu1 %1806 }
  0xbc   : > { %v1582_v53 = vpop.permute.xlu0 %1581  ;;  %1872 = vst.msk [vmem:[#allocation3 + $0xf8] sm:$0xff] %vm1840_vm9, %v1807_v52 }
  0xbd   : > { %1663 = vst.msk [vmem:[#allocation3 + $0x78] sm:$0xff] %vm1647_vm8, %v1582_v53  ;;  %830 = vrot.lane.b32.xlu1 %v3894_v13, %s3402_s29 }
  0xbe   : > { %605 = vrot.lane.b32.xlu0 %v3896_v49, %s3403_s30 }
  0xbf   : > { %v1225_v58 = vpop.permute.xlu1 %1224 }
  0xc0   : > { %v1000_v32 = vpop.permute.xlu0 %999  ;;  %1291 = vst.msk [vmem:[#allocation3 + $0xf0] sm:$0xff] %vm1260_vm6, %v1225_v58 }
  0xc1   : > { %1082 = vst.msk [vmem:[#allocation3 + $0x70] sm:$0xff] %vm1067_vm5, %v1000_v32  ;;  %1605 = vrot.lane.b32.xlu1 %v3604_v15, %s3407_s9  ;;  %v301_v15 = vld [vmem:[%s3509_s26 + $0x98] sm:$0xff] }
  0xc2   : > { %1379 = vrot.lane.b32.xlu0 %v3727_v59, %s3406_s8  ;;  %v340_v8 = vmul.f32 %v3504_v1, %v301_v15 }
  0xc3   : > { %v2000_v62 = vpop.permute.xlu1 %1999 }
  0xc4   : > { %v1775_v63 = vpop.permute.xlu0 %1774  ;;  %2065 = vst.msk [vmem:[#allocation3 + $0xf8] sm:$0xff] %vm2033_vm10, %v2000_v62  ;;  %v379_v9 = vadd.f32 %v3514_v2, %v340_v8 }
  0xc5   : > { %1856 = vst.msk [vmem:[#allocation3 + $0x78] sm:$0xff] %vm1840_vm9, %v1775_v63  ;;  %1023 = vrot.lane.b32.xlu1 %v3669_v35, %s3404_s6 }
  0xc6   : > { %798 = vrot.lane.b32.xlu0 %v3910_v57, %s3402_s29  ;;  %v411_v41 = vmax.f32 %v379_v9, 0.0  ;;  %v3985_v9 = vld [vmem:[#allocation2 + $0x12a] sm:$0xff] }
  0xc7   : > { %v1193_v3 = vpop.permute.xlu1 %1192 }
  0xc8   : > { %v644_v4 = vpop.permute.xlu0 %643  ;;  %1275 = vst.msk [vmem:[#allocation3 + $0x70] sm:$0xff] %vm1260_vm6, %v1193_v3 }
  0xc9   : > { %711 = vst.msk [vmem:[#allocation3 + $0xe8] sm:$0xff] %vm681_vm3, %v644_v4  ;;  %1798 = vrot.lane.b32.xlu1 %v3579_v7, %s3408_s10 }
  0xca   : > { %1573 = vrot.lane.b32.xlu0 %v3610_v16, %s3407_s9  ;;  %444 = vst.msk [vmem:[#allocation2 + $0xf9] sm:$0xff] %vm236_vm0, %v411_v41  ;;  %v285_v16 = vld [vmem:[%s3509_s26 + $0x18] sm:$0xff] }
  0xcb   : > { %v1968_v12 = vpop.permute.xlu1 %1967  ;;  %v2098_v26 = vld [vmem:[#allocation3 + $0xf8] sm:$0xff]  ;;  %v324_v18 = vmul.f32 %v3504_v1, %v285_v16 }
  0xcc   : > { %v1418_v25 = vpop.permute.xlu0 %1417  ;;  %2049 = vst.msk [vmem:[#allocation3 + $0x78] sm:$0xff] %vm2033_vm10, %v1968_v12  ;;  %v2197_v42 = vsel %vm2099_vm11, %v2098_v26, 0  ;;  %v3987_v12 = vld [vmem:[#allocation2 + $0x69] sm:$0xff] }
  0xcd   : > { %1484 = vst.msk [vmem:[#allocation3 + $0xf0] sm:$0xff] %vm1453_vm7, %v1418_v25  ;;  %1216 = vrot.lane.b32.xlu1 %v3756_v29, %s3405_s7  ;;  %v3940_v7 = vand.u32 4294901760, %v2197_v42  ;;  %v363_v50 = vadd.f32 %v3514_v2, %v324_v18 }
  0xce   : > { %991 = vrot.lane.b32.xlu0 %v3686_v44, %s3404_s6 }
  0xcf   : > { %v837_v40 = vpop.permute.xlu1 %836  ;;  %3170 = vmatprep.subr.mxu0 %v3940_v7  ;;  %v3948_v45 = vsub.f32 %v2197_v42, %v3940_v7  ;;  %v395_v62 = vmax.f32 %v363_v50, 0.0  ;;  %v4008_v50 = vld [vmem:[#allocation2 + $0x110] sm:$0xff] }
  0xd0   : > { %v612_v14 = vpop.permute.xlu0 %611  ;;  %904 = vst.msk [vmem:[#allocation3 + $0xe8] sm:$0xff] %vm874_vm4, %v837_v40  ;;  %v4004_v40 = vld [vmem:[#allocation2 + $0x6a] sm:$0xff] }
  0xd1   : > { %695 = vst.msk [vmem:[#allocation3 + $0x68] sm:$0xff] %vm681_vm3, %v612_v14  ;;  %1991 = vrot.lane.b32.xlu1 %v3577_v6, %s3409_s11  ;;  %v5200_v47 = vand.u32 4294901760, %v3948_v45 }
  0xd2   : > { %1766 = vrot.lane.b32.xlu0 %v3592_v11, %s3408_s10  ;;  %428 = vst.msk [vmem:[#allocation2 + $0x39] sm:$0xff] %vm236_vm0, %v395_v62  ;;  %512 = vst.msk [vmem:[#allocation3 + $0xb8] sm:$0xff] %vm236_vm0, %v4008_v50 }
  0xd3   : > { %v1612_v52 = vpop.permute.xlu1 %1611  ;;  %v2423_v58 = vsub.f32 %v3948_v45, %v5200_v47  ;;  %v2082_v32 = vld [vmem:[#allocation3 + $0x78] sm:$0xff] }
  0xd4   : > { %v1386_v53 = vpop.permute.xlu0 %1385  ;;  %1678 = vst.msk [vmem:[#allocation3 + $0xf0] sm:$0xff] %vm1647_vm8, %v1612_v52  ;;  %v2149_v6 = vsel %vm2099_vm11, %v2082_v32, 0 }
  0xd5   : > { %1468 = vst.msk [vmem:[#allocation3 + $0x70] sm:$0xff] %vm1453_vm7, %v1386_v53  ;;  %1184 = vrot.lane.b32.xlu1 %v3768_v37, %s3405_s7  ;;  %v2424_v11 = vand.u32 4294901760, %v2423_v58  ;;  %v3971_v63 = vand.u32 4294901760, %v2149_v6 }
  0xd6   : > { %635 = vrot.lane.b32.xlu0 %v3959_v54, %s3403_s30 }
  0xd7   : > { %v1030_v15 = vpop.permute.xlu1 %1029  ;;  %3204 = vmatprep.subr.mxu1 %v2424_v11  ;;  %3171 = vmatpush3.xpose.msra.mxu0 %v3971_v63  ;;  %v3976_v4 = vsub.f32 %v2149_v6, %v3971_v63 }
  0xd8   : > { %v805_v3 = vpop.permute.xlu0 %804  ;;  %1097 = vst.msk [vmem:[#allocation3 + $0xe8] sm:$0xff] %vm1067_vm5, %v1030_v15 }
  0xd9   : > { %888 = vst.msk [vmem:[#allocation3 + $0x68] sm:$0xff] %vm874_vm4, %v805_v3  ;;  %1959 = vrot.lane.b32.xlu1 %v3590_v10, %s3409_s11  ;;  %v5199_v8 = vand.u32 4294901760, %v3976_v4 }
  0xda   : > { %1409 = vrot.lane.b32.xlu0 %v3766_v36, %s3406_s8 }
  0xdb   : > { %v1805_v25 = vpop.permute.xlu1 %1804  ;;  %v2311_v41 = vsub.f32 %v3976_v4, %v5199_v8 }
  0xdc   : > { %v1580_v26 = vpop.permute.xlu0 %1579  ;;  %1871 = vst.msk [vmem:[#allocation3 + $0xf0] sm:$0xff] %vm1840_vm9, %v1805_v25  ;;  %v4028_v25 = vld [vmem:[#allocation2 + $0x50] sm:$0xff] }
  0xdd   : > { %1662 = vst.msk [vmem:[#allocation3 + $0x70] sm:$0xff] %vm1647_vm8, %v1580_v26  ;;  %828 = vrot.lane.b32.xlu1 %v3985_v9, %s3402_s29  ;;  %v2312_v10 = vand.u32 4294901760, %v2311_v41 }
  0xde   : > { %603 = vrot.lane.b32.xlu0 %v3987_v12, %s3403_s30  ;;  %496 = vst.msk [vmem:[#allocation3 + $0x38] sm:$0xff] %vm236_vm0, %v4028_v25 }
  0xdf   : > { %v1223_v42 = vpop.permute.xlu1 %1222  ;;  %3205 = vmatpush3.xpose.msra.mxu1 %v2312_v10 }
  0xe0   : > { %v998_v16 = vpop.permute.xlu0 %997  ;;  %1290 = vst.msk [vmem:[#allocation3 + $0xe8] sm:$0xff] %vm1260_vm6, %v1223_v42 }
  0xe1   : > { %1081 = vst.msk [vmem:[#allocation3 + $0x68] sm:$0xff] %vm1067_vm5, %v998_v16  ;;  %1603 = vrot.lane.b32.xlu1 %v3620_v19, %s3407_s9  ;;  %v300_v19 = vld [vmem:[%s3509_s26 + $0x90] sm:$0xff] }
  0xe2   : > { %1377 = vrot.lane.b32.xlu0 %v3778_v38, %s3406_s8  ;;  %v339_v58 = vmul.f32 %v3504_v1, %v300_v19 }
  0xe3   : > { %v1998_v14 = vpop.permute.xlu1 %1997 }
  0xe4   : > { %v1773_v18 = vpop.permute.xlu0 %1772  ;;  %2064 = vst.msk [vmem:[#allocation3 + $0xf0] sm:$0xff] %vm2033_vm10, %v1998_v14  ;;  %v378_v32 = vadd.f32 %v3514_v2, %v339_v58  ;;  %v4053_v14 = vld [vmem:[#allocation2 + $0x121] sm:$0xff] }
  0xe5   : > { %1855 = vst.msk [vmem:[#allocation3 + $0x70] sm:$0xff] %vm1840_vm9, %v1773_v18  ;;  %1021 = vrot.lane.b32.xlu1 %v3729_v60, %s3404_s6 }
  0xe6   : > { %796 = vrot.lane.b32.xlu0 %v4004_v40, %s3402_s29  ;;  %v410_v15 = vmax.f32 %v378_v32, 0.0 }
  0xe7   : > { %v1191_v52 = vpop.permute.xlu1 %1190 }
  0xe8   : > { %v642_v53 = vpop.permute.xlu0 %641  ;;  %1274 = vst.msk [vmem:[#allocation3 + $0x68] sm:$0xff] %vm1260_vm6, %v1191_v52 }
  0xe9   : > { %710 = vst.msk [vmem:[#allocation3 + $0xe0] sm:$0xff] %vm681_vm3, %v642_v53  ;;  %1796 = vrot.lane.b32.xlu1 %v3614_v17, %s3408_s10 }
  0xea   : > { %1571 = vrot.lane.b32.xlu0 %v3622_v20, %s3407_s9  ;;  %443 = vst.msk [vmem:[#allocation2 + $0xf1] sm:$0xff] %vm236_vm0, %v410_v15  ;;  %v284_v20 = vld [vmem:[%s3509_s26 + $0x10] sm:$0xff] }
  0xeb   : > { %v1966_v62 = vpop.permute.xlu1 %1965  ;;  %v2097_v11 = vld [vmem:[#allocation3 + $0xf0] sm:$0xff] }
  0xec   : > { %v1416_v6 = vpop.permute.xlu0 %1415  ;;  %2048 = vst.msk [vmem:[#allocation3 + $0x70] sm:$0xff] %vm2033_vm10, %v1966_v62  ;;  %v2194_v3 = vsel %vm2099_vm11, %v2097_v11, 0  ;;  %v4081_v11 = vld [vmem:[#allocation2 + $0x61] sm:$0xff] }
  0xed   : > { %1483 = vst.msk [vmem:[#allocation3 + $0xe8] sm:$0xff] %vm1453_vm7, %v1416_v6  ;;  %1214 = vrot.lane.b32.xlu1 %v3811_v48, %s3405_s7  ;;  %v4034_v17 = vand.u32 4294901760, %v2194_v3  ;;  %v323_v48 = vmul.f32 %v3504_v1, %v284_v20  ;;  %v4079_v6 = vld [vmem:[#allocation2 + $0x122] sm:$0xff] }
  0xee   : > { %989 = vrot.lane.b32.xlu0 %v3742_v5, %s3404_s6 }
  0xef   : > { %v835_v26 = vpop.permute.xlu1 %834  ;;  %3172 = vmatprep.subr.mxu0 %v4034_v17  ;;  %v4042_v10 = vsub.f32 %v2194_v3, %v4034_v17  ;;  %v362_v16 = vadd.f32 %v3514_v2, %v323_v48 }
  0xf0   : > { %v610_v41 = vpop.permute.xlu0 %609  ;;  %903 = vst.msk [vmem:[#allocation3 + $0xe0] sm:$0xff] %vm874_vm4, %v835_v26 }
  0xf1   : > { %694 = vst.msk [vmem:[#allocation3 + $0x60] sm:$0xff] %vm681_vm3, %v610_v41  ;;  %1989 = vrot.lane.b32.xlu1 %v3650_v27, %s3409_s11  ;;  %v5196_v42 = vand.u32 4294901760, %v4042_v10  ;;  %v394_v53 = vmax.f32 %v362_v16, 0.0  ;;  %v4098_v41 = vld [vmem:[#allocation2 + $0x62] sm:$0xff] }
  0xf2   : > { %1764 = vrot.lane.b32.xlu0 %v3652_v28, %s3408_s10 }
  0xf3   : > { %v1610_v18 = vpop.permute.xlu1 %1609  ;;  %v2430_v1 = vsub.f32 %v4042_v10, %v5196_v42  ;;  %v2081_v52 = vld [vmem:[#allocation3 + $0x70] sm:$0xff]  ;;  %427 = vst.msk [vmem:[#allocation2 + $0x31] sm:$0xff] %vm236_vm0, %v394_v53 }
  0xf4   : > { %v1384_v19 = vpop.permute.xlu0 %1383  ;;  %1677 = vst.msk [vmem:[#allocation3 + $0xe8] sm:$0xff] %vm1647_vm8, %v1610_v18  ;;  %v2146_v27 = vsel %vm2099_vm11, %v2081_v52, 0  ;;  %v4102_v18 = vld [vmem:[#allocation2 + $0x108] sm:$0xff] }
  0xf5   : > { %1467 = vst.msk [vmem:[#allocation3 + $0x68] sm:$0xff] %vm1453_vm7, %v1384_v19  ;;  %1182 = vrot.lane.b32.xlu1 %v3824_v23, %s3405_s7  ;;  %v2431_v2 = vand.u32 4294901760, %v2430_v1  ;;  %v4065_v28 = vand.u32 4294901760, %v2146_v27 }
  0xf6   : > { %633 = vrot.lane.b32.xlu0 %v4053_v14, %s3403_s30  ;;  %511 = vst.msk [vmem:[#allocation3 + $0xb0] sm:$0xff] %vm236_vm0, %v4102_v18 }
  0xf7   : > { %v1028_v58 = vpop.permute.xlu1 %1027  ;;  %3206 = vmatprep.subr.mxu1 %v2431_v2  ;;  %3173 = vmatpush3.xpose.msra.mxu0 %v4065_v28  ;;  %v4070_v62 = vsub.f32 %v2146_v27, %v4065_v28  ;;  %v4119_v27 = vld [vmem:[#allocation2 + $0x48] sm:$0xff] }
  0xf8   : > { %v803_v32 = vpop.permute.xlu0 %802  ;;  %1096 = vst.msk [vmem:[#allocation3 + $0xe0] sm:$0xff] %vm1067_vm5, %v1028_v58 }
  0xf9   : > { %887 = vst.msk [vmem:[#allocation3 + $0x60] sm:$0xff] %vm874_vm4, %v803_v32  ;;  %1957 = vrot.lane.b32.xlu1 %v3667_v34, %s3409_s11  ;;  %v5195_v23 = vand.u32 4294901760, %v4070_v62 }
  0xfa   : > { %1407 = vrot.lane.b32.xlu0 %v3822_v22, %s3406_s8  ;;  %495 = vst.msk [vmem:[#allocation3 + $0x30] sm:$0xff] %vm236_vm0, %v4119_v27 }
  0xfb   : > { %v1803_v15 = vpop.permute.xlu1 %1802  ;;  %v2318_v20 = vsub.f32 %v4070_v62, %v5195_v23 }
  0xfc   : > { %v1578_v3 = vpop.permute.xlu0 %1577  ;;  %1870 = vst.msk [vmem:[#allocation3 + $0xe8] sm:$0xff] %vm1840_vm9, %v1803_v15 }
  0xfd   : > { %1661 = vst.msk [vmem:[#allocation3 + $0x68] sm:$0xff] %vm1647_vm8, %v1578_v3  ;;  %826 = vrot.lane.b32.xlu1 %v4079_v6, %s3402_s29  ;;  %v2319_v34 = vand.u32 4294901760, %v2318_v20  ;;  %v4150_v20 = vld [vmem:[%s5183_s2] ss:$0 sm:$0xff] }
  0xfe   : > { %601 = vrot.lane.b32.xlu0 %v4081_v11, %s3403_s30 }
  0xff   : > { %v1221_v22 = vpop.permute.xlu1 %1220  ;;  %3207 = vmatpush3.xpose.msra.mxu1 %v2319_v34 }
 0x100   : > { %v996_v26 = vpop.permute.xlu0 %995  ;;  %1289 = vst.msk [vmem:[#allocation3 + $0xe0] sm:$0xff] %vm1260_vm6, %v1221_v22  ;;  %v4153_v22 = vld [vmem:[#allocation2 + $0x111] sm:$0xff] }
 0x101   : > { %1080 = vst.msk [vmem:[#allocation3 + $0x60] sm:$0xff] %vm1067_vm5, %v996_v26  ;;  %1601 = vrot.lane.b32.xlu1 %v3630_v21, %s3407_s9 }
 0x102   : > { %1375 = vrot.lane.b32.xlu0 %v3838_v61, %s3406_s8 }
 0x103   : > { %v1996_v48 = vpop.permute.xlu1 %1995 }
 0x104   : > { %v1771_v16 = vpop.permute.xlu0 %1770  ;;  %2063 = vst.msk [vmem:[#allocation3 + $0xe8] sm:$0xff] %vm2033_vm10, %v1996_v48 }
 0x105   : > { %1854 = vst.msk [vmem:[#allocation3 + $0x68] sm:$0xff] %vm1840_vm9, %v1771_v16  ;;  %1019 = vrot.lane.b32.xlu1 %v3780_v39, %s3404_s6 }
 0x106   : > { %794 = vrot.lane.b32.xlu0 %v4098_v41, %s3402_s29 }
 0x107   : > { %v1189_v21 = vpop.permute.xlu1 %1188 }
 0x108   : > { %v640_v61 = vpop.permute.xlu0 %639  ;;  %1273 = vst.msk [vmem:[#allocation3 + $0x60] sm:$0xff] %vm1260_vm6, %v1189_v21 }
 0x109   : > { %709 = vst.msk [vmem:[#allocation3 + $0xd8] sm:$0xff] %vm681_vm3, %v640_v61  ;;  %1794 = vrot.lane.b32.xlu1 %v3702_v51, %s3408_s10 }
 0x10a   : > { %1569 = vrot.lane.b32.xlu0 %v3638_v24, %s3407_s9  ;;  %v283_v24 = vld [vmem:[%s3509_s26 + $0x8] sm:$0xff] }
 0x10b   : > { %v1964_v19 = vpop.permute.xlu1 %1963  ;;  %v2096_v52 = vld [vmem:[#allocation3 + $0xe8] sm:$0xff] }
 0x10c   : > { %v1414_v1 = vpop.permute.xlu0 %1413  ;;  %2047 = vst.msk [vmem:[#allocation3 + $0x68] sm:$0xff] %vm2033_vm10, %v1964_v19  ;;  %v2191_v53 = vsel %vm2099_vm11, %v2096_v52, 0 }
 0x10d   : > { %1482 = vst.msk [vmem:[#allocation3 + $0xe0] sm:$0xff] %vm1453_vm7, %v1414_v1  ;;  %1212 = vrot.lane.b32.xlu1 %v3879_v43, %s3405_s7  ;;  %v4125_v51 = vand.u32 4294901760, %v2191_v53  ;;  %v4137_v43 = vld [vmem:[%s5182_s1] ss:$0 sm:$0xff] }
 0x10e   : > { %987 = vrot.lane.b32.xlu0 %v3795_v46, %s3404_s6  ;;  %v322_v15 = vmul.f32 %v4137_v43, %v283_v24  ;;  %v4179_v24 = vld [vmem:[#allocation2 + $0x112] sm:$0xff] }
 0x10f   : > { %v833_v2 = vpop.permute.xlu1 %832  ;;  %3174 = vmatprep.subr.mxu0 %v4125_v51  ;;  %v4132_v32 = vsub.f32 %v2191_v53, %v4125_v51 }
 0x110   : > { %v608_v58 = vpop.permute.xlu0 %607  ;;  %902 = vst.msk [vmem:[#allocation3 + $0xd8] sm:$0xff] %vm874_vm4, %v833_v2  ;;  %v361_v34 = vadd.f32 %v4150_v20, %v322_v15  ;;  %v4181_v2 = vld [vmem:[#allocation2 + $0x51] sm:$0xff] }
 0x111   : > { %693 = vst.msk [vmem:[#allocation3 + $0x58] sm:$0xff] %vm681_vm3, %v608_v58  ;;  %1987 = vrot.lane.b32.xlu1 %v3714_v55, %s3409_s11  ;;  %v5194_v3 = vand.u32 4294901760, %v4132_v32 }
 0x112   : > { %1762 = vrot.lane.b32.xlu0 %v3716_v56, %s3408_s10  ;;  %v393_v21 = vmax.f32 %v361_v34, 0.0 }
 0x113   : > { %v1608_v26 = vpop.permute.xlu1 %1607  ;;  %v2437_v55 = vsub.f32 %v4132_v32, %v5194_v3  ;;  %v2080_v16 = vld [vmem:[#allocation3 + $0x68] sm:$0xff] }
 0x114   : > { %v1382_v48 = vpop.permute.xlu0 %1381  ;;  %1676 = vst.msk [vmem:[#allocation3 + $0xe0] sm:$0xff] %vm1647_vm8, %v1608_v26  ;;  %v2143_v56 = vsel %vm2099_vm11, %v2080_v16, 0 }
 0x115   : > { %1466 = vst.msk [vmem:[#allocation3 + $0x60] sm:$0xff] %vm1453_vm7, %v1382_v48  ;;  %1180 = vrot.lane.b32.xlu1 %v3896_v49, %s3405_s7  ;;  %v2438_v61 = vand.u32 4294901760, %v2437_v55  ;;  %v4165_v19 = vand.u32 4294901760, %v2143_v56  ;;  %v4198_v48 = vld [vmem:[#allocation2 + $0x52] sm:$0xff] }
 0x116   : > { %631 = vrot.lane.b32.xlu0 %v4153_v22, %s3403_s30  ;;  %426 = vst.msk [vmem:[#allocation2 + $0x21] sm:$0xff] %vm236_vm0, %v393_v21  ;;  %v4202_v21 = vld [vmem:[#allocation2 + $0xf8] sm:$0xff] }
 0x117   : > { %v1026_v1 = vpop.permute.xlu1 %1025  ;;  %3208 = vmatprep.subr.mxu1 %v2438_v61  ;;  %3175 = vmatpush3.xpose.msra.mxu0 %v4165_v19  ;;  %v4170_v53 = vsub.f32 %v2143_v56, %v4165_v19  ;;  %510 = vst.msk [vmem:[#allocation3 + $0xa8] sm:$0xff] %vm236_vm0, %v4202_v21 }
 0x118   : > { %v801_v52 = vpop.permute.xlu0 %800  ;;  %1095 = vst.msk [vmem:[#allocation3 + $0xd8] sm:$0xff] %vm1067_vm5, %v1026_v1 }
 0x119   : > { %886 = vst.msk [vmem:[#allocation3 + $0x58] sm:$0xff] %vm874_vm4, %v801_v52  ;;  %1955 = vrot.lane.b32.xlu1 %v3727_v59, %s3409_s11  ;;  %v5193_v49 = vand.u32 4294901760, %v4170_v53 }
 0x11a   : > { %1405 = vrot.lane.b32.xlu0 %v3894_v13, %s3406_s8 }
 0x11b   : > { %v1801_v58 = vpop.permute.xlu1 %1800  ;;  %v2325_v34 = vsub.f32 %v4170_v53, %v5193_v49 }
 0x11c   : > { %v1576_v15 = vpop.permute.xlu0 %1575  ;;  %1869 = vst.msk [vmem:[#allocation3 + $0xe0] sm:$0xff] %vm1840_vm9, %v1801_v58  ;;  %v4219_v58 = vld [vmem:[#allocation2 + $0x38] sm:$0xff] }
 0x11d   : > { %1660 = vst.msk [vmem:[#allocation3 + $0x60] sm:$0xff] %vm1647_vm8, %v1576_v15  ;;  %824 = vrot.lane.b32.xlu1 %v4179_v24, %s3402_s29  ;;  %v2326_v59 = vand.u32 4294901760, %v2325_v34 }
 0x11e   : > { %599 = vrot.lane.b32.xlu0 %v4181_v2, %s3403_s30  ;;  %494 = vst.msk [vmem:[#allocation3 + $0x28] sm:$0xff] %vm236_vm0, %v4219_v58 }
 0x11f   : > { %v1219_v13 = vpop.permute.xlu1 %1218  ;;  %3209 = vmatpush3.xpose.msra.mxu1 %v2326_v59 }
 0x120   : > { %v994_v26 = vpop.permute.xlu0 %993  ;;  %1288 = vst.msk [vmem:[#allocation3 + $0xd8] sm:$0xff] %vm1260_vm6, %v1219_v13 }
 0x121   : > { %1079 = vst.msk [vmem:[#allocation3 + $0x58] sm:$0xff] %vm1067_vm5, %v994_v26  ;;  %1599 = vrot.lane.b32.xlu1 %v3669_v35, %s3407_s9 }
 0x122   : > { %1373 = vrot.lane.b32.xlu0 %v3910_v57, %s3406_s8 }
 0x123   : > { %v1994_v55 = vpop.permute.xlu1 %1993 }
 0x124   : > { %v1769_v16 = vpop.permute.xlu0 %1768  ;;  %2062 = vst.msk [vmem:[#allocation3 + $0xe0] sm:$0xff] %vm2033_vm10, %v1994_v55  ;;  %v4243_v55 = vld [vmem:[#allocation2 + $0x109] sm:$0xff] }
 0x125   : > { %1853 = vst.msk [vmem:[#allocation3 + $0x60] sm:$0xff] %vm1840_vm9, %v1769_v16  ;;  %1017 = vrot.lane.b32.xlu1 %v3842_v0, %s3404_s6 }
 0x126   : > { %792 = vrot.lane.b32.xlu0 %v4198_v48, %s3402_s29 }
 0x127   : > { %v1187_v35 = vpop.permute.xlu1 %1186 }
 0x128   : > { %v638_v57 = vpop.permute.xlu0 %637  ;;  %1272 = vst.msk [vmem:[#allocation3 + $0x58] sm:$0xff] %vm1260_vm6, %v1187_v35 }
 0x129   : > { %708 = vst.msk [vmem:[#allocation3 + $0xd0] sm:$0xff] %vm681_vm3, %v638_v57  ;;  %1792 = vrot.lane.b32.xlu1 %v3756_v29, %s3408_s10 }
 0x12a   : > { %1567 = vrot.lane.b32.xlu0 %v3686_v44, %s3407_s9  ;;  %v282_v44 = vld [vmem:[%s3509_s26] sm:$0xff] }
 0x12b   : > { %v1962_v56 = vpop.permute.xlu1 %1961  ;;  %v2095_v1 = vld [vmem:[#allocation3 + $0xe0] sm:$0xff]  ;;  %v321_v13 = vmul.f32 %v4137_v43, %v282_v44 }
 0x12c   : > { %v1412_v61 = vpop.permute.xlu0 %1411  ;;  %2046 = vst.msk [vmem:[#allocation3 + $0x60] sm:$0xff] %vm2033_vm10, %v1962_v56  ;;  %v2188_v52 = vsel %vm2099_vm11, %v2095_v1, 0  ;;  %v4269_v44 = vld [vmem:[#allocation2 + $0x10a] sm:$0xff] }
 0x12d   : > { %1481 = vst.msk [vmem:[#allocation3 + $0xd8] sm:$0xff] %vm1453_vm7, %v1412_v61  ;;  %1210 = vrot.lane.b32.xlu1 %v3959_v54, %s3405_s7  ;;  %v4225_v29 = vand.u32 4294901760, %v2188_v52  ;;  %v360_v26 = vadd.f32 %v4150_v20, %v321_v13 }
 0x12e   : > { %985 = vrot.lane.b32.xlu0 %v3861_v30, %s3404_s6 }
 0x12f   : > { %v831_v15 = vpop.permute.xlu1 %830  ;;  %3176 = vmatprep.subr.mxu0 %v4225_v29  ;;  %v4232_v59 = vsub.f32 %v2188_v52, %v4225_v29  ;;  %v392_v56 = vmax.f32 %v360_v26, 0.0 }
 0x130   : > { %v606_v34 = vpop.permute.xlu0 %605  ;;  %901 = vst.msk [vmem:[#allocation3 + $0xd0] sm:$0xff] %vm874_vm4, %v831_v15  ;;  %v4271_v15 = vld [vmem:[#allocation2 + $0x49] sm:$0xff] }
 0x131   : > { %692 = vst.msk [vmem:[#allocation3 + $0x50] sm:$0xff] %vm681_vm3, %v606_v34  ;;  %1985 = vrot.lane.b32.xlu1 %v3766_v36, %s3409_s11  ;;  %v5190_v54 = vand.u32 4294901760, %v4232_v59 }
 0x132   : > { %1760 = vrot.lane.b32.xlu0 %v3768_v37, %s3408_s10  ;;  %425 = vst.msk [vmem:[#allocation2 + $0x19] sm:$0xff] %vm236_vm0, %v392_v56  ;;  %v4292_v56 = vld [vmem:[#allocation2 + $0xf0] sm:$0xff] }
 0x133   : > { %v1606_v16 = vpop.permute.xlu1 %1605  ;;  %v2444_v43 = vsub.f32 %v4232_v59, %v5190_v54  ;;  %v2079_v57 = vld [vmem:[#allocation3 + $0x60] sm:$0xff]  ;;  %509 = vst.msk [vmem:[#allocation3 + $0xa0] sm:$0xff] %vm236_vm0, %v4292_v56 }
 0x134   : > { %v1380_v35 = vpop.permute.xlu0 %1379  ;;  %1675 = vst.msk [vmem:[#allocation3 + $0xd8] sm:$0xff] %vm1647_vm8, %v1606_v16  ;;  %v2140_v36 = vsel %vm2099_vm11, %v2079_v57, 0 }
 0x135   : > { %1465 = vst.msk [vmem:[#allocation3 + $0x58] sm:$0xff] %vm1453_vm7, %v1380_v35  ;;  %1178 = vrot.lane.b32.xlu1 %v3987_v12, %s3405_s7  ;;  %v2445_v37 = vand.u32 4294901760, %v2444_v43  ;;  %v4255_v20 = vand.u32 4294901760, %v2140_v36  ;;  %v4288_v35 = vld [vmem:[#allocation2 + $0x4a] sm:$0xff] }
 0x136   : > { %629 = vrot.lane.b32.xlu0 %v4243_v55, %s3403_s30 }
 0x137   : > { %v1024_v61 = vpop.permute.xlu1 %1023  ;;  %3210 = vmatprep.subr.mxu1 %v2445_v37  ;;  %3177 = vmatpush3.xpose.msra.mxu0 %v4255_v20  ;;  %v4260_v52 = vsub.f32 %v2140_v36, %v4255_v20 }
 0x138   : > { %v799_v1 = vpop.permute.xlu0 %798  ;;  %1094 = vst.msk [vmem:[#allocation3 + $0xd0] sm:$0xff] %vm1067_vm5, %v1024_v61 }
 0x139   : > { %885 = vst.msk [vmem:[#allocation3 + $0x50] sm:$0xff] %vm874_vm4, %v799_v1  ;;  %1953 = vrot.lane.b32.xlu1 %v3778_v38, %s3409_s11  ;;  %v5189_v12 = vand.u32 4294901760, %v4260_v52 }
 0x13a   : > { %1403 = vrot.lane.b32.xlu0 %v3985_v9, %s3406_s8 }
 0x13b   : > { %v1799_v34 = vpop.permute.xlu1 %1798  ;;  %v2332_v26 = vsub.f32 %v4260_v52, %v5189_v12 }
 0x13c   : > { %v1574_v13 = vpop.permute.xlu0 %1573  ;;  %1868 = vst.msk [vmem:[#allocation3 + $0xd8] sm:$0xff] %vm1840_vm9, %v1799_v34 }
 0x13d   : > { %1659 = vst.msk [vmem:[#allocation3 + $0x58] sm:$0xff] %vm1647_vm8, %v1574_v13  ;;  %822 = vrot.lane.b32.xlu1 %v4269_v44, %s3402_s29  ;;  %v2333_v38 = vand.u32 4294901760, %v2332_v26  ;;  %v4308_v13 = vld [vmem:[#allocation2 + $0x30] sm:$0xff] }
 0x13e   : > { %597 = vrot.lane.b32.xlu0 %v4271_v15, %s3403_s30  ;;  %493 = vst.msk [vmem:[#allocation3 + $0x20] sm:$0xff] %vm236_vm0, %v4308_v13 }
 0x13f   : > { %v1217_v9 = vpop.permute.xlu1 %1216  ;;  %3211 = vmatpush3.xpose.msra.mxu1 %v2333_v38  ;;  %v1687_v38 = vld [vmem:[#allocation2 + $0x81] sm:$0xff] }
 0x140   : > { %v992_v16 = vpop.permute.xlu0 %991  ;;  %1287 = vst.msk [vmem:[#allocation3 + $0xd0] sm:$0xff] %vm1260_vm6, %v1217_v9 }
 0x141   : > { %1078 = vst.msk [vmem:[#allocation3 + $0x50] sm:$0xff] %vm1067_vm5, %v992_v16  ;;  %1597 = vrot.lane.b32.xlu1 %v3729_v60, %s3407_s9  ;;  %v1703_v60 = vld [vmem:[#allocation2 + $0x141] sm:$0xff] }
 0x142   : > { %1371 = vrot.lane.b32.xlu0 %v4004_v40, %s3406_s8 }
 0x143   : > { %v1992_v43 = vpop.permute.xlu1 %1991 }
 0x144   : > { %v1767_v57 = vpop.permute.xlu0 %1766  ;;  %2061 = vst.msk [vmem:[#allocation3 + $0xd8] sm:$0xff] %vm2033_vm10, %v1992_v43 }
 0x145   : > { %1852 = vst.msk [vmem:[#allocation3 + $0x58] sm:$0xff] %vm1840_vm9, %v1767_v57  ;;  %1015 = vrot.lane.b32.xlu1 %v3914_v33, %s3404_s6  ;;  %v4327_v57 = vld [vmem:[#allocation2 + $0xf9] sm:$0xff] }
 0x146   : > { %790 = vrot.lane.b32.xlu0 %v4288_v35, %s3402_s29 }
 0x147   : > { %v1185_v40 = vpop.permute.xlu1 %1184 }
 0x148   : > { %v636_v36 = vpop.permute.xlu0 %635  ;;  %1271 = vst.msk [vmem:[#allocation3 + $0x50] sm:$0xff] %vm1260_vm6, %v1185_v40 }
 0x149   : > { %707 = vst.msk [vmem:[#allocation3 + $0xc8] sm:$0xff] %vm681_vm3, %v636_v36  ;;  %1790 = vrot.lane.b32.xlu1 %v1703_v60, %s3408_s10 }
 0x14a   : > { %1565 = vrot.lane.b32.xlu0 %v3742_v5, %s3407_s9  ;;  %v1896_v5 = vld [vmem:[#allocation2 + $0x142] sm:$0xff] }
 0x14b   : > { %v1960_v37 = vpop.permute.xlu1 %1959  ;;  %v2094_v1 = vld [vmem:[#allocation3 + $0xd8] sm:$0xff] }
 0x14c   : > { %v1410_v61 = vpop.permute.xlu0 %1409  ;;  %2045 = vst.msk [vmem:[#allocation3 + $0x58] sm:$0xff] %vm2033_vm10, %v1960_v37  ;;  %v2185_v34 = vsel %vm2099_vm11, %v2094_v1, 0 }
 0x14d   : > { %1480 = vst.msk [vmem:[#allocation3 + $0xd0] sm:$0xff] %vm1453_vm7, %v1410_v61  ;;  %1208 = vrot.lane.b32.xlu1 %v4053_v14, %s3405_s7  ;;  %v4314_v26 = vand.u32 4294901760, %v2185_v34 }
 0x14e   : > { %983 = vrot.lane.b32.xlu0 %v3934_v31, %s3404_s6 }
 0x14f   : > { %v829_v9 = vpop.permute.xlu1 %828  ;;  %3178 = vmatprep.subr.mxu0 %v4314_v26  ;;  %v4320_v43 = vsub.f32 %v2185_v34, %v4314_v26 }
 0x150   : > { %v604_v16 = vpop.permute.xlu0 %603  ;;  %900 = vst.msk [vmem:[#allocation3 + $0xc8] sm:$0xff] %vm874_vm4, %v829_v9 }
 0x151   : > { %691 = vst.msk [vmem:[#allocation3 + $0x48] sm:$0xff] %vm681_vm3, %v604_v16  ;;  %1983 = vrot.lane.b32.xlu1 %v1896_v5, %s3409_s11  ;;  %v5188_v14 = vand.u32 4294901760, %v4320_v43  ;;  %v1880_v5 = vld [vmem:[#allocation2 + $0x82] sm:$0xff] }
 0x152   : > { %1758 = vrot.lane.b32.xlu0 %v1687_v38, %s3408_s10 }
 0x153   : > { %v1604_v60 = vpop.permute.xlu1 %1603  ;;  %v2451_v36 = vsub.f32 %v4320_v43, %v5188_v14  ;;  %v2078_v37 = vld [vmem:[#allocation3 + $0x58] sm:$0xff] }
 0x154   : > { %v1378_v40 = vpop.permute.xlu0 %1377  ;;  %1674 = vst.msk [vmem:[#allocation3 + $0xd0] sm:$0xff] %vm1647_vm8, %v1604_v60  ;;  %v2137_v61 = vsel %vm2099_vm11, %v2078_v37, 0  ;;  %v4351_v60 = vld [vmem:[#allocation2 + $0xfa] sm:$0xff] }
 0x155   : > { %1464 = vst.msk [vmem:[#allocation3 + $0x50] sm:$0xff] %vm1453_vm7, %v1378_v40  ;;  %1176 = vrot.lane.b32.xlu1 %v4081_v11, %s3405_s7  ;;  %v2452_v1 = vand.u32 4294901760, %v2451_v36  ;;  %v4339_v34 = vand.u32 4294901760, %v2137_v61  ;;  %v4353_v40 = vld [vmem:[#allocation2 + $0x39] sm:$0xff] }
 0x156   : > { %627 = vrot.lane.b32.xlu0 %v4327_v57, %s3403_s30 }
 0x157   : > { %v1022_v38 = vpop.permute.xlu1 %1021  ;;  %3212 = vmatprep.subr.mxu1 %v2452_v1  ;;  %3179 = vmatpush3.xpose.msra.mxu0 %v4339_v34  ;;  %v4343_v16 = vsub.f32 %v2137_v61, %v4339_v34 }
 0x158   : > { %v797_v9 = vpop.permute.xlu0 %796  ;;  %1093 = vst.msk [vmem:[#allocation3 + $0xc8] sm:$0xff] %vm1067_vm5, %v1022_v38  ;;  %v4370_v38 = vld [vmem:[#allocation2 + $0x3a] sm:$0xff] }
 0x159   : > { %884 = vst.msk [vmem:[#allocation3 + $0x48] sm:$0xff] %vm874_vm4, %v797_v9  ;;  %1951 = vrot.lane.b32.xlu1 %v1880_v5, %s3409_s11  ;;  %v5187_v11 = vand.u32 4294901760, %v4343_v16 }
 0x15a   : > { %1401 = vrot.lane.b32.xlu0 %v4079_v6, %s3406_s8 }
 0x15b   : > { %v1797_v36 = vpop.permute.xlu1 %1796  ;;  %v2339_v61 = vsub.f32 %v4343_v16, %v5187_v11 }
 0x15c   : > { %v1572_v37 = vpop.permute.xlu0 %1571  ;;  %1867 = vst.msk [vmem:[#allocation3 + $0xd0] sm:$0xff] %vm1840_vm9, %v1797_v36 }
 0x15d   : > { %1658 = vst.msk [vmem:[#allocation3 + $0x50] sm:$0xff] %vm1647_vm8, %v1572_v37  ;;  %820 = vrot.lane.b32.xlu1 %v4351_v60, %s3402_s29  ;;  %v2340_v6 = vand.u32 4294901760, %v2339_v61  ;;  %v4374_v37 = vld [vmem:[#allocation2 + $0xe0] sm:$0xff] }
 0x15e   : > { %595 = vrot.lane.b32.xlu0 %v4353_v40, %s3403_s30  ;;  %508 = vst.msk [vmem:[#allocation3 + $0x98] sm:$0xff] %vm236_vm0, %v4374_v37 }
 0x15f   : > { %v1215_v1 = vpop.permute.xlu1 %1214  ;;  %3213 = vmatpush3.xpose.msra.mxu1 %v2340_v6 }
 0x160   : > { %v990_v5 = vpop.permute.xlu0 %989  ;;  %1286 = vst.msk [vmem:[#allocation3 + $0xc8] sm:$0xff] %vm1260_vm6, %v1215_v1 }
 0x161   : > { %1077 = vst.msk [vmem:[#allocation3 + $0x48] sm:$0xff] %vm1067_vm5, %v990_v5  ;;  %1595 = vrot.lane.b32.xlu1 %v3780_v39, %s3407_s9  ;;  %v1702_v39 = vld [vmem:[#allocation2 + $0x139] sm:$0xff] }
 0x162   : > { %1369 = vrot.lane.b32.xlu0 %v4098_v41, %s3406_s8 }
 0x163   : > { %v1990_v9 = vpop.permute.xlu1 %1989 }
 0x164   : > { %v1765_v36 = vpop.permute.xlu0 %1764  ;;  %2060 = vst.msk [vmem:[#allocation3 + $0xd0] sm:$0xff] %vm2033_vm10, %v1990_v9 }
 0x165   : > { %1851 = vst.msk [vmem:[#allocation3 + $0x50] sm:$0xff] %vm1840_vm9, %v1765_v36  ;;  %1013 = vrot.lane.b32.xlu1 %v4008_v50, %s3404_s6  ;;  %v4390_v36 = vld [vmem:[#allocation2 + $0x20] sm:$0xff] }
 0x166   : > { %788 = vrot.lane.b32.xlu0 %v4370_v38, %s3402_s29  ;;  %492 = vst.msk [vmem:[#allocation3 + $0x18] sm:$0xff] %vm236_vm0, %v4390_v36 }
 0x167   : > { %v1183_v41 = vpop.permute.xlu1 %1182 }
 0x168   : > { %v634_v61 = vpop.permute.xlu0 %633  ;;  %1270 = vst.msk [vmem:[#allocation3 + $0x48] sm:$0xff] %vm1260_vm6, %v1183_v41  ;;  %v1686_v41 = vld [vmem:[#allocation2 + $0x79] sm:$0xff] }
 0x169   : > { %706 = vst.msk [vmem:[#allocation3 + $0xc0] sm:$0xff] %vm681_vm3, %v634_v61  ;;  %1788 = vrot.lane.b32.xlu1 %v1702_v39, %s3408_s10 }
 0x16a   : > { %1563 = vrot.lane.b32.xlu0 %v3795_v46, %s3407_s9  ;;  %v1895_v46 = vld [vmem:[#allocation2 + $0x13a] sm:$0xff] }
 0x16b   : > { %v1958_v6 = vpop.permute.xlu1 %1957  ;;  %v2093_v5 = vld [vmem:[#allocation3 + $0xd0] sm:$0xff] }
 0x16c   : > { %v1408_v1 = vpop.permute.xlu0 %1407  ;;  %2044 = vst.msk [vmem:[#allocation3 + $0x50] sm:$0xff] %vm2033_vm10, %v1958_v6  ;;  %v2182_v9 = vsel %vm2099_vm11, %v2093_v5, 0  ;;  %v4409_v5 = vld [vmem:[#allocation2 + $0xf1] sm:$0xff] }
 0x16d   : > { %1479 = vst.msk [vmem:[#allocation3 + $0xc8] sm:$0xff] %vm1453_vm7, %v1408_v1  ;;  %1206 = vrot.lane.b32.xlu1 %v4153_v22, %s3405_s7  ;;  %v4396_v39 = vand.u32 4294901760, %v2182_v9 }
 0x16e   : > { %981 = vrot.lane.b32.xlu0 %v4028_v25, %s3404_s6 }
 0x16f   : > { %5248 = vst [vmem:[#allocation4_spill] sm:$0xff] %v4396_v39  ;;  %v827_v61 = vpop.permute.xlu1 %826  ;;  %3180 = vmatprep.subr.mxu0 %v4396_v39  ;;  %v4402_v1 = vsub.f32 %v2182_v9, %v4396_v39 }
 0x170   : > { %v602_v6 = vpop.permute.xlu0 %601  ;;  %899 = vst.msk [vmem:[#allocation3 + $0xc0] sm:$0xff] %vm874_vm4, %v827_v61 }
 0x171   : > { %690 = vst.msk [vmem:[#allocation3 + $0x40] sm:$0xff] %vm681_vm3, %v602_v6  ;;  %1981 = vrot.lane.b32.xlu1 %v1895_v46, %s3409_s11  ;;  %v5191_v22 = vand.u32 4294901760, %v4402_v1  ;;  %v1879_v6 = vld [vmem:[#allocation2 + $0x7a] sm:$0xff] }
 0x172   : > { %1756 = vrot.lane.b32.xlu0 %v1686_v41, %s3408_s10 }
 0x173   : > { %v1602_v11 = vpop.permute.xlu1 %1601  ;;  %v2458_v12 = vsub.f32 %v4402_v1, %v5191_v22  ;;  %v2077_v9 = vld [vmem:[#allocation3 + $0x50] sm:$0xff] }
 0x174   : > { %v1376_v14 = vpop.permute.xlu0 %1375  ;;  %1673 = vst.msk [vmem:[#allocation3 + $0xc8] sm:$0xff] %vm1647_vm8, %v1602_v11  ;;  %v2134_v61 = vsel %vm2099_vm11, %v2077_v9, 0 }
 0x175   : > { %1463 = vst.msk [vmem:[#allocation3 + $0x48] sm:$0xff] %vm1453_vm7, %v1376_v14  ;;  %1174 = vrot.lane.b32.xlu1 %v4181_v2, %s3405_s7  ;;  %v2459_v46 = vand.u32 4294901760, %v2458_v12  ;;  %v4421_v41 = vand.u32 4294901760, %v2134_v61  ;;  %v4433_v12 = vld [vmem:[#allocation2 + $0xf2] sm:$0xff] }
 0x176   : > { %625 = vrot.lane.b32.xlu0 %v4409_v5, %s3403_s30  ;;  %v4435_v14 = vld [vmem:[#allocation2 + $0x31] sm:$0xff] }
 0x177   : > { %5249 = vst [vmem:[#allocation5_spill] sm:$0xff] %v4421_v41  ;;  %v1020_v54 = vpop.permute.xlu1 %1019  ;;  %3214 = vmatprep.subr.mxu1 %v2459_v46  ;;  %3181 = vmatpush3.xpose.msra.mxu0 %v4421_v41  ;;  %v4425_v11 = vsub.f32 %v2134_v61, %v4421_v41 }
 0x178   : > { %v795_v22 = vpop.permute.xlu0 %794  ;;  %1092 = vst.msk [vmem:[#allocation3 + $0xc0] sm:$0xff] %vm1067_vm5, %v1020_v54 }
 0x179   : > { %883 = vst.msk [vmem:[#allocation3 + $0x40] sm:$0xff] %vm874_vm4, %v795_v22  ;;  %1949 = vrot.lane.b32.xlu1 %v1879_v6, %s3409_s11  ;;  %v5192_v2 = vand.u32 4294901760, %v4425_v11  ;;  %v4452_v6 = vld [vmem:[#allocation2 + $0x32] sm:$0xff] }
 0x17a   : > { %1399 = vrot.lane.b32.xlu0 %v4179_v24, %s3406_s8 }
 0x17b   : > { %v1795_v9 = vpop.permute.xlu1 %1794  ;;  %v2346_v61 = vsub.f32 %v4425_v11, %v5192_v2  ;;  %v4472_v2 = vld [vmem:[#allocation2 + $0x18] sm:$0xff] }
 0x17c   : > { %v1570_v46 = vpop.permute.xlu0 %1569  ;;  %1866 = vst.msk [vmem:[#allocation3 + $0xc8] sm:$0xff] %vm1840_vm9, %v1795_v9 }
 0x17d   : > { %1657 = vst.msk [vmem:[#allocation3 + $0x48] sm:$0xff] %vm1647_vm8, %v1570_v46  ;;  %818 = vrot.lane.b32.xlu1 %v4433_v12, %s3402_s29  ;;  %v2347_v24 = vand.u32 4294901760, %v2346_v61  ;;  %v4456_v61 = vld [vmem:[#allocation2 + $0xd8] sm:$0xff] }
 0x17e   : > { %593 = vrot.lane.b32.xlu0 %v4435_v14, %s3403_s30  ;;  %507 = vst.msk [vmem:[#allocation3 + $0x90] sm:$0xff] %vm236_vm0, %v4456_v61  ;;  %491 = vst.msk [vmem:[#allocation3 + $0x10] sm:$0xff] %vm236_vm0, %v4472_v2 }
 0x17f   : > { %v1213_v54 = vpop.permute.xlu1 %1212  ;;  %3215 = vmatpush3.xpose.msra.mxu1 %v2347_v24 }
 0x180   : > { %v988_v22 = vpop.permute.xlu0 %987  ;;  %1285 = vst.msk [vmem:[#allocation3 + $0xc0] sm:$0xff] %vm1260_vm6, %v1213_v54 }
 0x181   : > { %1076 = vst.msk [vmem:[#allocation3 + $0x40] sm:$0xff] %vm1067_vm5, %v988_v22  ;;  %1593 = vrot.lane.b32.xlu1 %v3842_v0, %s3407_s9  ;;  %v1701_v0 = vld [vmem:[#allocation2 + $0x129] sm:$0xff] }
 0x182   : > { %1367 = vrot.lane.b32.xlu0 %v4198_v48, %s3406_s8 }
 0x183   : > { %v1988_v9 = vpop.permute.xlu1 %1987 }
 0x184   : > { %v1763_v46 = vpop.permute.xlu0 %1762  ;;  %2059 = vst.msk [vmem:[#allocation3 + $0xc8] sm:$0xff] %vm2033_vm10, %v1988_v9 }
 0x185   : > { %1850 = vst.msk [vmem:[#allocation3 + $0x48] sm:$0xff] %vm1840_vm9, %v1763_v46  ;;  %1011 = vrot.lane.b32.xlu1 %v4102_v18, %s3404_s6 }
 0x186   : > { %786 = vrot.lane.b32.xlu0 %v4452_v6, %s3402_s29 }
 0x187   : > { %v1181_v48 = vpop.permute.xlu1 %1180 }
 0x188   : > { %v632_v24 = vpop.permute.xlu0 %631  ;;  %1269 = vst.msk [vmem:[#allocation3 + $0x40] sm:$0xff] %vm1260_vm6, %v1181_v48  ;;  %v1685_v48 = vld [vmem:[#allocation2 + $0x69] sm:$0xff] }
 0x189   : > { %705 = vst.msk [vmem:[#allocation3 + $0xb8] sm:$0xff] %vm681_vm3, %v632_v24  ;;  %1786 = vrot.lane.b32.xlu1 %v1701_v0, %s3408_s10 }
 0x18a   : > { %1561 = vrot.lane.b32.xlu0 %v3861_v30, %s3407_s9  ;;  %v1894_v30 = vld [vmem:[#allocation2 + $0x12a] sm:$0xff] }
 0x18b   : > { %v1956_v54 = vpop.permute.xlu1 %1955  ;;  %v2092_v9 = vld [vmem:[#allocation3 + $0xc8] sm:$0xff] }
 0x18c   : > { %v1406_v22 = vpop.permute.xlu0 %1405  ;;  %2043 = vst.msk [vmem:[#allocation3 + $0x48] sm:$0xff] %vm2033_vm10, %v1956_v54  ;;  %v2179_v46 = vsel %vm2099_vm11, %v2092_v9, 0  ;;  %v4491_v9 = vld [vmem:[#allocation2 + $0xe1] sm:$0xff] }
 0x18d   : > { %1478 = vst.msk [vmem:[#allocation3 + $0xc0] sm:$0xff] %vm1453_vm7, %v1406_v22  ;;  %1204 = vrot.lane.b32.xlu1 %v4243_v55, %s3405_s7  ;;  %v4478_v0 = vand.u32 4294901760, %v2179_v46 }
 0x18e   : > { %979 = vrot.lane.b32.xlu0 %v4119_v27, %s3404_s6 }
 0x18f   : > { %5250 = vst [vmem:[#allocation6_spill] sm:$0xff] %v4478_v0  ;;  %v825_v24 = vpop.permute.xlu1 %824  ;;  %3182 = vmatprep.subr.mxu0 %v4478_v0  ;;  %v4484_v22 = vsub.f32 %v2179_v46, %v4478_v0 }
 0x190   : > { %v600_v54 = vpop.permute.xlu0 %599  ;;  %898 = vst.msk [vmem:[#allocation3 + $0xb8] sm:$0xff] %vm874_vm4, %v825_v24 }
 0x191   : > { %689 = vst.msk [vmem:[#allocation3 + $0x38] sm:$0xff] %vm681_vm3, %v600_v54  ;;  %1979 = vrot.lane.b32.xlu1 %v1894_v30, %s3409_s11  ;;  %v5197_v55 = vand.u32 4294901760, %v4484_v22  ;;  %v1878_v54 = vld [vmem:[#allocation2 + $0x6a] sm:$0xff] }
 0x192   : > { %1754 = vrot.lane.b32.xlu0 %v1685_v48, %s3408_s10 }
 0x193   : > { %v1600_v49 = vpop.permute.xlu1 %1599  ;;  %v2465_v23 = vsub.f32 %v4484_v22, %v5197_v55  ;;  %v2076_v46 = vld [vmem:[#allocation3 + $0x48] sm:$0xff] }
 0x194   : > { %v1374_v3 = vpop.permute.xlu0 %1373  ;;  %1672 = vst.msk [vmem:[#allocation3 + $0xc0] sm:$0xff] %vm1647_vm8, %v1600_v49  ;;  %v2131_v24 = vsel %vm2099_vm11, %v2076_v46, 0 }
 0x195   : > { %1462 = vst.msk [vmem:[#allocation3 + $0x40] sm:$0xff] %vm1453_vm7, %v1374_v3  ;;  %1172 = vrot.lane.b32.xlu1 %v4271_v15, %s3405_s7  ;;  %v2466_v30 = vand.u32 4294901760, %v2465_v23  ;;  %v4503_v48 = vand.u32 4294901760, %v2131_v24  ;;  %v4515_v3 = vld [vmem:[#allocation2 + $0xe2] sm:$0xff] }
 0x196   : > { %623 = vrot.lane.b32.xlu0 %v4491_v9, %s3403_s30  ;;  %v4517_v15 = vld [vmem:[#allocation2 + $0x21] sm:$0xff] }
 0x197   : > { %5251 = vst [vmem:[#allocation7_spill] sm:$0xff] %v4503_v48  ;;  %v1018_v42 = vpop.permute.xlu1 %1017  ;;  %3216 = vmatprep.subr.mxu1 %v2466_v30  ;;  %3183 = vmatpush3.xpose.msra.mxu0 %v4503_v48  ;;  %v4507_v49 = vsub.f32 %v2131_v24, %v4503_v48 }
 0x198   : > { %v793_v55 = vpop.permute.xlu0 %792  ;;  %1091 = vst.msk [vmem:[#allocation3 + $0xb8] sm:$0xff] %vm1067_vm5, %v1018_v42 }
 0x199   : > { %882 = vst.msk [vmem:[#allocation3 + $0x38] sm:$0xff] %vm874_vm4, %v793_v55  ;;  %1947 = vrot.lane.b32.xlu1 %v1878_v54, %s3409_s11  ;;  %v5198_v23 = vand.u32 4294901760, %v4507_v49  ;;  %v4534_v54 = vld [vmem:[#allocation2 + $0x22] sm:$0xff] }
 0x19a   : > { %1397 = vrot.lane.b32.xlu0 %v4269_v44, %s3406_s8 }
 0x19b   : > { %v1793_v46 = vpop.permute.xlu1 %1792  ;;  %v2353_v24 = vsub.f32 %v4507_v49, %v5198_v23 }
 0x19c   : > { %v1568_v30 = vpop.permute.xlu0 %1567  ;;  %1865 = vst.msk [vmem:[#allocation3 + $0xc0] sm:$0xff] %vm1840_vm9, %v1793_v46 }
 0x19d   : > { %1656 = vst.msk [vmem:[#allocation3 + $0x40] sm:$0xff] %vm1647_vm8, %v1568_v30  ;;  %816 = vrot.lane.b32.xlu1 %v4515_v3, %s3402_s29  ;;  %v2354_v42 = vand.u32 4294901760, %v2353_v24  ;;  %v1700_v24 = vld [vmem:[#allocation2 + $0x121] sm:$0xff] }
 0x19e   : > { %591 = vrot.lane.b32.xlu0 %v4517_v15, %s3403_s30 }
 0x19f   : > { %v1211_v44 = vpop.permute.xlu1 %1210  ;;  %3217 = vmatpush3.xpose.msra.mxu1 %v2354_v42 }
 0x1a0   : > { %v986_v55 = vpop.permute.xlu0 %985  ;;  %1284 = vst.msk [vmem:[#allocation3 + $0xb8] sm:$0xff] %vm1260_vm6, %v1211_v44 }
 0x1a1   : > { %1075 = vst.msk [vmem:[#allocation3 + $0x38] sm:$0xff] %vm1067_vm5, %v986_v55  ;;  %1591 = vrot.lane.b32.xlu1 %v3914_v33, %s3407_s9 }
 0x1a2   : > { %1365 = vrot.lane.b32.xlu0 %v4288_v35, %s3406_s8 }
 0x1a3   : > { %v1986_v46 = vpop.permute.xlu1 %1985 }
 0x1a4   : > { %v1761_v30 = vpop.permute.xlu0 %1760  ;;  %2058 = vst.msk [vmem:[#allocation3 + $0xc0] sm:$0xff] %vm2033_vm10, %v1986_v46 }
 0x1a5   : > { %1849 = vst.msk [vmem:[#allocation3 + $0x40] sm:$0xff] %vm1840_vm9, %v1761_v30  ;;  %1009 = vrot.lane.b32.xlu1 %v4202_v21, %s3404_s6 }
 0x1a6   : > { %784 = vrot.lane.b32.xlu0 %v4534_v54, %s3402_s29 }
 0x1a7   : > { %v1179_v42 = vpop.permute.xlu1 %1178 }
 0x1a8   : > { %v630_v33 = vpop.permute.xlu0 %629  ;;  %1268 = vst.msk [vmem:[#allocation3 + $0x38] sm:$0xff] %vm1260_vm6, %v1179_v42  ;;  %v1684_v42 = vld [vmem:[#allocation2 + $0x61] sm:$0xff] }
 0x1a9   : > { %704 = vst.msk [vmem:[#allocation3 + $0xb0] sm:$0xff] %vm681_vm3, %v630_v33  ;;  %1784 = vrot.lane.b32.xlu1 %v1700_v24, %s3408_s10  ;;  %v1893_v24 = vld [vmem:[#allocation2 + $0x122] sm:$0xff] }
 0x1aa   : > { %1559 = vrot.lane.b32.xlu0 %v3934_v31, %s3407_s9 }
 0x1ab   : > { %v1954_v35 = vpop.permute.xlu1 %1953  ;;  %v2091_v55 = vld [vmem:[#allocation3 + $0xc0] sm:$0xff] }
 0x1ac   : > { %v1404_v44 = vpop.permute.xlu0 %1403  ;;  %2042 = vst.msk [vmem:[#allocation3 + $0x40] sm:$0xff] %vm2033_vm10, %v1954_v35  ;;  %v2176_v46 = vsel %vm2099_vm11, %v2091_v55, 0  ;;  %v4565_v55 = vld [vmem:[#allocation2 + $0xd9] sm:$0xff] }
 0x1ad   : > { %1477 = vst.msk [vmem:[#allocation3 + $0xb8] sm:$0xff] %vm1453_vm7, %v1404_v44  ;;  %1202 = vrot.lane.b32.xlu1 %v4327_v57, %s3405_s7  ;;  %v4554_v30 = vand.u32 4294901760, %v2176_v46 }
 0x1ae   : > { %977 = vrot.lane.b32.xlu0 %v4219_v58, %s3404_s6 }
 0x1af   : > { %5252 = vst [vmem:[#allocation8_spill] sm:$0xff] %v4554_v30  ;;  %v823_v31 = vpop.permute.xlu1 %822  ;;  %3184 = vmatprep.subr.mxu0 %v4554_v30  ;;  %v4558_v35 = vsub.f32 %v2176_v46, %v4554_v30 }
 0x1b0   : > { %v598_v33 = vpop.permute.xlu0 %597  ;;  %897 = vst.msk [vmem:[#allocation3 + $0xb0] sm:$0xff] %vm874_vm4, %v823_v31 }
 0x1b1   : > { %688 = vst.msk [vmem:[#allocation3 + $0x30] sm:$0xff] %vm681_vm3, %v598_v33  ;;  %1977 = vrot.lane.b32.xlu1 %v1893_v24, %s3409_s11  ;;  %v5203_v44 = vand.u32 4294901760, %v4558_v35  ;;  %v1877_v33 = vld [vmem:[#allocation2 + $0x62] sm:$0xff] }
 0x1b2   : > { %1752 = vrot.lane.b32.xlu0 %v1684_v42, %s3408_s10 }
 0x1b3   : > { %v1598_v23 = vpop.permute.xlu1 %1597  ;;  %v2472_v47 = vsub.f32 %v4558_v35, %v5203_v44  ;;  %v2075_v46 = vld [vmem:[#allocation3 + $0x40] sm:$0xff] }
 0x1b4   : > { %v1372_v8 = vpop.permute.xlu0 %1371  ;;  %1671 = vst.msk [vmem:[#allocation3 + $0xb8] sm:$0xff] %vm1647_vm8, %v1598_v23  ;;  %v2128_v31 = vsel %vm2099_vm11, %v2075_v46, 0  ;;  %v4591_v46 = vld [vmem:[#allocation2 + $0x19] sm:$0xff] }
 0x1b5   : > { %1461 = vst.msk [vmem:[#allocation3 + $0x38] sm:$0xff] %vm1453_vm7, %v1372_v8  ;;  %1170 = vrot.lane.b32.xlu1 %v4353_v40, %s3405_s7  ;;  %v2473_v24 = vand.u32 4294901760, %v2472_v47  ;;  %v4577_v42 = vand.u32 4294901760, %v2128_v31  ;;  %v4589_v8 = vld [vmem:[#allocation2 + $0xda] sm:$0xff] }
 0x1b6   : > { %621 = vrot.lane.b32.xlu0 %v4565_v55, %s3403_s30 }
 0x1b7   : > { %5253 = vst [vmem:[#allocation9_spill] sm:$0xff] %v4577_v42  ;;  %v1016_v30 = vpop.permute.xlu1 %1015  ;;  %3218 = vmatprep.subr.mxu1 %v2473_v24  ;;  %3185 = vmatpush3.xpose.msra.mxu0 %v4577_v42  ;;  %v4581_v23 = vsub.f32 %v2128_v31, %v4577_v42 }
 0x1b8   : > { %v791_v44 = vpop.permute.xlu0 %790  ;;  %1090 = vst.msk [vmem:[#allocation3 + $0xb0] sm:$0xff] %vm1067_vm5, %v1016_v30 }
 0x1b9   : > { %5254 = vst [vmem:[#allocation10_spill] sm:$0xff] %v4581_v23  ;;  %881 = vst.msk [vmem:[#allocation3 + $0x30] sm:$0xff] %vm874_vm4, %v791_v44  ;;  %1945 = vrot.lane.b32.xlu1 %v1877_v33, %s3409_s11  ;;  %v5206_v47 = vand.u32 4294901760, %v4581_v23 }
 0x1ba   : > { %1395 = vrot.lane.b32.xlu0 %v4351_v60, %s3406_s8 }
 0x1bb   : > { %v1791_v24 = vpop.permute.xlu1 %1790  ;;  %v2360_v31 = vsub.f32 %v4581_v23, %v5206_v47 }
 0x1bc   : > { %v1566_v48 = vpop.permute.xlu0 %1565  ;;  %1864 = vst.msk [vmem:[#allocation3 + $0xb8] sm:$0xff] %vm1840_vm9, %v1791_v24 }
 0x1bd   : > { %1655 = vst.msk [vmem:[#allocation3 + $0x38] sm:$0xff] %vm1647_vm8, %v1566_v48  ;;  %814 = vrot.lane.b32.xlu1 %v4589_v8, %s3402_s29  ;;  %v2361_v30 = vand.u32 4294901760, %v2360_v31  ;;  %v4608_v48 = vld [vmem:[#allocation2 + $0x1a] sm:$0xff]  ;;  %v1699_v31 = vld [vmem:[#allocation2 + $0x111] sm:$0xff] }
 0x1be   : > { %589 = vrot.lane.b32.xlu0 %v4591_v46, %s3403_s30 }
 0x1bf   : > { %v1209_v44 = vpop.permute.xlu1 %1208  ;;  %3219 = vmatpush3.xpose.msra.mxu1 %v2361_v30  ;;  %v474_v30 = vld [vmem:[#allocation2 + $0xc8] sm:$0xff] }
 0x1c0   : > { %v984_v33 = vpop.permute.xlu0 %983  ;;  %1283 = vst.msk [vmem:[#allocation3 + $0xb0] sm:$0xff] %vm1260_vm6, %v1209_v44 }
 0x1c1   : > { %1074 = vst.msk [vmem:[#allocation3 + $0x30] sm:$0xff] %vm1067_vm5, %v984_v33  ;;  %1589 = vrot.lane.b32.xlu1 %v4008_v50, %s3407_s9 }
 0x1c2   : > { %1363 = vrot.lane.b32.xlu0 %v4370_v38, %s3406_s8  ;;  %506 = vst.msk [vmem:[#allocation3 + $0x88] sm:$0xff] %vm236_vm0, %v474_v30 }
 0x1c3   : > { %v1984_v24 = vpop.permute.xlu1 %1983 }
 0x1c4   : > { %v1759_v47 = vpop.permute.xlu0 %1758  ;;  %2057 = vst.msk [vmem:[#allocation3 + $0xb8] sm:$0xff] %vm2033_vm10, %v1984_v24 }
 0x1c5   : > { %1848 = vst.msk [vmem:[#allocation3 + $0x38] sm:$0xff] %vm1840_vm9, %v1759_v47  ;;  %1007 = vrot.lane.b32.xlu1 %v4292_v56, %s3404_s6 }
 0x1c6   : > { %782 = vrot.lane.b32.xlu0 %v4608_v48, %s3402_s29 }
 0x1c7   : > { %v1177_v50 = vpop.permute.xlu1 %1176 }
 0x1c8   : > { %v628_v44 = vpop.permute.xlu0 %627  ;;  %1267 = vst.msk [vmem:[#allocation3 + $0x30] sm:$0xff] %vm1260_vm6, %v1177_v50  ;;  %v1683_v50 = vld [vmem:[#allocation2 + $0x51] sm:$0xff] }
 0x1c9   : > { %703 = vst.msk [vmem:[#allocation3 + $0xa8] sm:$0xff] %vm681_vm3, %v628_v44  ;;  %1782 = vrot.lane.b32.xlu1 %v1699_v31, %s3408_s10  ;;  %v1892_v31 = vld [vmem:[#allocation2 + $0x112] sm:$0xff] }
 0x1ca   : > { %1557 = vrot.lane.b32.xlu0 %v4028_v25, %s3407_s9  ;;  %v458_v25 = vld [vmem:[#allocation2 + $0x8] sm:$0xff] }
 0x1cb   : > { %v1952_v47 = vpop.permute.xlu1 %1951  ;;  %v2090_v24 = vld [vmem:[#allocation3 + $0xb8] sm:$0xff]  ;;  %490 = vst.msk [vmem:[#allocation3 + $0x8] sm:$0xff] %vm236_vm0, %v458_v25  ;;  %v1876_v25 = vld [vmem:[#allocation2 + $0x52] sm:$0xff] }
 0x1cc   : > { %v1402_v33 = vpop.permute.xlu0 %1401  ;;  %2041 = vst.msk [vmem:[#allocation3 + $0x38] sm:$0xff] %vm2033_vm10, %v1952_v47  ;;  %v2173_v42 = vsel %vm2099_vm11, %v2090_v24, 0  ;;  %v538_v24 = vld [vmem:[#allocation2 + $0xc9] sm:$0xff] }
 0x1cd   : > { %1476 = vst.msk [vmem:[#allocation3 + $0xb0] sm:$0xff] %vm1453_vm7, %v1402_v33  ;;  %1200 = vrot.lane.b32.xlu1 %v4409_v5, %s3405_s7  ;;  %v4629_v30 = vand.u32 4294901760, %v2173_v42 }
 0x1ce   : > { %975 = vrot.lane.b32.xlu0 %v4308_v13, %s3404_s6 }
 0x1cf   : > { %5255 = vst [vmem:[#allocation11_spill] sm:$0xff] %v4629_v30  ;;  %v821_v44 = vpop.permute.xlu1 %820  ;;  %3186 = vmatprep.subr.mxu0 %v4629_v30  ;;  %v4633_v47 = vsub.f32 %v2173_v42, %v4629_v30 }
 0x1d0   : > { %v596_v0 = vpop.permute.xlu0 %595  ;;  %896 = vst.msk [vmem:[#allocation3 + $0xa8] sm:$0xff] %vm874_vm4, %v821_v44 }
 0x1d1   : > { %687 = vst.msk [vmem:[#allocation3 + $0x28] sm:$0xff] %vm681_vm3, %v596_v0  ;;  %1975 = vrot.lane.b32.xlu1 %v1892_v31, %s3409_s11  ;;  %v5230_v33 = vand.u32 4294901760, %v4633_v47 }
 0x1d2   : > { %1750 = vrot.lane.b32.xlu0 %v1683_v50, %s3408_s10 }
 0x1d3   : > { %v1596_v41 = vpop.permute.xlu1 %1595  ;;  %v2479_v42 = vsub.f32 %v4633_v47, %v5230_v33  ;;  %v2074_v30 = vld [vmem:[#allocation3 + $0x38] sm:$0xff] }
 0x1d4   : > { %v1370_v23 = vpop.permute.xlu0 %1369  ;;  %1670 = vst.msk [vmem:[#allocation3 + $0xb0] sm:$0xff] %vm1647_vm8, %v1596_v41  ;;  %v2125_v0 = vsel %vm2099_vm11, %v2074_v30, 0  ;;  %v731_v30 = vld [vmem:[#allocation2 + $0xca] sm:$0xff] }
 0x1d5   : > { %1460 = vst.msk [vmem:[#allocation3 + $0x30] sm:$0xff] %vm1453_vm7, %v1370_v23  ;;  %1168 = vrot.lane.b32.xlu1 %v4435_v14, %s3405_s7  ;;  %v2480_v31 = vand.u32 4294901760, %v2479_v42  ;;  %v4650_v50 = vand.u32 4294901760, %v2125_v0 }
 0x1d6   : > { %619 = vrot.lane.b32.xlu0 %v538_v24, %s3403_s30  ;;  %v522_v24 = vld [vmem:[#allocation2 + $0x9] sm:$0xff] }
 0x1d7   : > { %v1014_v44 = vpop.permute.xlu1 %1013  ;;  %3220 = vmatprep.subr.mxu1 %v2480_v31  ;;  %3187 = vmatpush3.xpose.msra.mxu0 %v4650_v50  ;;  %v4654_v41 = vsub.f32 %v2125_v0, %v4650_v50 }
 0x1d8   : > { %v789_v39 = vpop.permute.xlu0 %788  ;;  %1089 = vst.msk [vmem:[#allocation3 + $0xa8] sm:$0xff] %vm1067_vm5, %v1014_v44 }
 0x1d9   : > { %880 = vst.msk [vmem:[#allocation3 + $0x28] sm:$0xff] %vm874_vm4, %v789_v39  ;;  %1943 = vrot.lane.b32.xlu1 %v1876_v25, %s3409_s11  ;;  %v5219_v23 = vand.u32 4294901760, %v4654_v41 }
 0x1da   : > { %1393 = vrot.lane.b32.xlu0 %v4433_v12, %s3406_s8 }
 0x1db   : > { %v1789_v42 = vpop.permute.xlu1 %1788  ;;  %v2367_v0 = vsub.f32 %v4654_v41, %v5219_v23 }
 0x1dc   : > { %v1564_v31 = vpop.permute.xlu0 %1563  ;;  %1863 = vst.msk [vmem:[#allocation3 + $0xb0] sm:$0xff] %vm1840_vm9, %v1789_v42  ;;  %v715_v42 = vld [vmem:[#allocation2 + $0xa] sm:$0xff] }
 0x1dd   : > { %1654 = vst.msk [vmem:[#allocation3 + $0x30] sm:$0xff] %vm1647_vm8, %v1564_v31  ;;  %812 = vrot.lane.b32.xlu1 %v731_v30, %s3402_s29  ;;  %v2368_v39 = vand.u32 4294901760, %v2367_v0  ;;  %v1698_v30 = vld [vmem:[#allocation2 + $0x109] sm:$0xff] }
 0x1de   : > { %587 = vrot.lane.b32.xlu0 %v522_v24, %s3403_s30  ;;  %v473_v24 = vld [vmem:[#allocation2 + $0xc0] sm:$0xff] }
 0x1df   : > { %v1207_v25 = vpop.permute.xlu1 %1206  ;;  %3221 = vmatpush3.xpose.msra.mxu1 %v2368_v39  ;;  %505 = vst.msk [vmem:[#allocation3 + $0x80] sm:$0xff] %vm236_vm0, %v473_v24 }
 0x1e0   : > { %v982_v44 = vpop.permute.xlu0 %981  ;;  %1282 = vst.msk [vmem:[#allocation3 + $0xa8] sm:$0xff] %vm1260_vm6, %v1207_v25 }
 0x1e1   : > { %1073 = vst.msk [vmem:[#allocation3 + $0x28] sm:$0xff] %vm1067_vm5, %v982_v44  ;;  %1587 = vrot.lane.b32.xlu1 %v4102_v18, %s3407_s9 }
 0x1e2   : > { %1361 = vrot.lane.b32.xlu0 %v4452_v6, %s3406_s8 }
 0x1e3   : > { %v1982_v31 = vpop.permute.xlu1 %1981 }
 0x1e4   : > { %v1757_v23 = vpop.permute.xlu0 %1756  ;;  %2056 = vst.msk [vmem:[#allocation3 + $0xb0] sm:$0xff] %vm2033_vm10, %v1982_v31  ;;  %v1682_v31 = vld [vmem:[#allocation2 + $0x49] sm:$0xff] }
 0x1e5   : > { %1847 = vst.msk [vmem:[#allocation3 + $0x30] sm:$0xff] %vm1840_vm9, %v1757_v23  ;;  %1005 = vrot.lane.b32.xlu1 %v4374_v37, %s3404_s6 }
 0x1e6   : > { %780 = vrot.lane.b32.xlu0 %v715_v42, %s3402_s29  ;;  %v1891_v42 = vld [vmem:[#allocation2 + $0x10a] sm:$0xff] }
 0x1e7   : > { %v1175_v0 = vpop.permute.xlu1 %1174 }
 0x1e8   : > { %v626_v39 = vpop.permute.xlu0 %625  ;;  %1266 = vst.msk [vmem:[#allocation3 + $0x28] sm:$0xff] %vm1260_vm6, %v1175_v0 }
 0x1e9   : > { %702 = vst.msk [vmem:[#allocation3 + $0xa0] sm:$0xff] %vm681_vm3, %v626_v39  ;;  %1780 = vrot.lane.b32.xlu1 %v1698_v30, %s3408_s10 }
 0x1ea   : > { %1555 = vrot.lane.b32.xlu0 %v4119_v27, %s3407_s9  ;;  %v457_v27 = vld [vmem:[#allocation2] sm:$0xff] }
 0x1eb   : > { %v1950_v18 = vpop.permute.xlu1 %1949  ;;  %v2089_v37 = vld [vmem:[#allocation3 + $0xb0] sm:$0xff]  ;;  %489 = vst.msk [vmem:[#allocation3] sm:$0xff] %vm236_vm0, %v457_v27  ;;  %v1875_v27 = vld [vmem:[#allocation2 + $0x4a] sm:$0xff] }
 0x1ec   : > { %v1400_v23 = vpop.permute.xlu0 %1399  ;;  %2040 = vst.msk [vmem:[#allocation3 + $0x30] sm:$0xff] %vm2033_vm10, %v1950_v18  ;;  %v2170_v25 = vsel %vm2099_vm11, %v2089_v37, 0 }
 0x1ed   : > { %1475 = vst.msk [vmem:[#allocation3 + $0xa8] sm:$0xff] %vm1453_vm7, %v1400_v23  ;;  %1198 = vrot.lane.b32.xlu1 %v4491_v9, %s3405_s7  ;;  %v4693_v44 = vand.u32 4294901760, %v2170_v25  ;;  %v537_v9 = vld [vmem:[#allocation2 + $0xc1] sm:$0xff] }
 0x1ee   : > { %973 = vrot.lane.b32.xlu0 %v4390_v36, %s3404_s6 }
 0x1ef   : > { %v819_v30 = vpop.permute.xlu1 %818  ;;  %3188 = vmatprep.subr.mxu0 %v4693_v44  ;;  %v4697_v0 = vsub.f32 %v2170_v25, %v4693_v44 }
 0x1f0   : > { %v594_v24 = vpop.permute.xlu0 %593  ;;  %895 = vst.msk [vmem:[#allocation3 + $0xa0] sm:$0xff] %vm874_vm4, %v819_v30 }
 0x1f1   : > { %686 = vst.msk [vmem:[#allocation3 + $0x20] sm:$0xff] %vm681_vm3, %v594_v24  ;;  %1973 = vrot.lane.b32.xlu1 %v1891_v42, %s3409_s11  ;;  %v5229_v36 = vand.u32 4294901760, %v4697_v0 }
 0x1f2   : > { %1748 = vrot.lane.b32.xlu0 %v1682_v31, %s3408_s10 }
 0x1f3   : > { %v1594_v39 = vpop.permute.xlu1 %1593  ;;  %v2486_v23 = vsub.f32 %v4697_v0, %v5229_v36  ;;  %v2073_v37 = vld [vmem:[#allocation3 + $0x30] sm:$0xff] }
 0x1f4   : > { %v1368_v18 = vpop.permute.xlu0 %1367  ;;  %1669 = vst.msk [vmem:[#allocation3 + $0xa8] sm:$0xff] %vm1647_vm8, %v1594_v39  ;;  %v2122_v25 = vsel %vm2099_vm11, %v2073_v37, 0 }
 0x1f5   : > { %1459 = vst.msk [vmem:[#allocation3 + $0x28] sm:$0xff] %vm1453_vm7, %v1368_v18  ;;  %1166 = vrot.lane.b32.xlu1 %v4517_v15, %s3405_s7  ;;  %v2487_v42 = vand.u32 4294901760, %v2486_v23  ;;  %v4714_v31 = vand.u32 4294901760, %v2122_v25  ;;  %v521_v18 = vld [vmem:[#allocation2 + $0x1] sm:$0xff] }
 0x1f6   : > { %617 = vrot.lane.b32.xlu0 %v537_v9, %s3403_s30  ;;  %v730_v9 = vld [vmem:[#allocation2 + $0xc2] sm:$0xff] }
 0x1f7   : > { %v1012_v30 = vpop.permute.xlu1 %1011  ;;  %3222 = vmatprep.subr.mxu1 %v2487_v42  ;;  %3189 = vmatpush3.xpose.msra.mxu0 %v4714_v31  ;;  %v4718_v39 = vsub.f32 %v2122_v25, %v4714_v31 }
 0x1f8   : > { %v787_v24 = vpop.permute.xlu0 %786  ;;  %1088 = vst.msk [vmem:[#allocation3 + $0xa0] sm:$0xff] %vm1067_vm5, %v1012_v30  ;;  %v714_v30 = vld [vmem:[#allocation2 + $0x2] sm:$0xff] }
 0x1f9   : > { %879 = vst.msk [vmem:[#allocation3 + $0x20] sm:$0xff] %vm874_vm4, %v787_v24  ;;  %1941 = vrot.lane.b32.xlu1 %v1875_v27, %s3409_s11  ;;  %v5227_v15 = vand.u32 4294901760, %v4718_v39 }
 0x1fa   : > { %1391 = vrot.lane.b32.xlu0 %v4515_v3, %s3406_s8 }
 0x1fb   : > { %v1787_v23 = vpop.permute.xlu1 %1786  ;;  %v2374_v25 = vsub.f32 %v4718_v39, %v5227_v15 }
 0x1fc   : > { %v1562_v37 = vpop.permute.xlu0 %1561  ;;  %1862 = vst.msk [vmem:[#allocation3 + $0xa8] sm:$0xff] %vm1840_vm9, %v1787_v23 }
 0x1fd   : > { %1653 = vst.msk [vmem:[#allocation3 + $0x28] sm:$0xff] %vm1647_vm8, %v1562_v37  ;;  %810 = vrot.lane.b32.xlu1 %v730_v9, %s3402_s29  ;;  %v2375_v42 = vand.u32 4294901760, %v2374_v25 }
 0x1fe   : > { %585 = vrot.lane.b32.xlu0 %v521_v18, %s3403_s30 }
 0x1ff   : > { %v1205_v3 = vpop.permute.xlu1 %1204  ;;  %3223 = vmatpush3.xpose.msra.mxu1 %v2375_v42 }
 0x200   : > { %v980_v27 = vpop.permute.xlu0 %979  ;;  %1281 = vst.msk [vmem:[#allocation3 + $0xa0] sm:$0xff] %vm1260_vm6, %v1205_v3 }
 0x201   : > { %1072 = vst.msk [vmem:[#allocation3 + $0x20] sm:$0xff] %vm1067_vm5, %v980_v27  ;;  %1585 = vrot.lane.b32.xlu1 %v4202_v21, %s3407_s9 }
 0x202   : > { %1359 = vrot.lane.b32.xlu0 %v4534_v54, %s3406_s8 }
 0x203   : > { %v1980_v24 = vpop.permute.xlu1 %1979 }
 0x204   : > { %v1755_v23 = vpop.permute.xlu0 %1754  ;;  %2055 = vst.msk [vmem:[#allocation3 + $0xa8] sm:$0xff] %vm2033_vm10, %v1980_v24 }
 0x205   : > { %1846 = vst.msk [vmem:[#allocation3 + $0x28] sm:$0xff] %vm1840_vm9, %v1755_v23  ;;  %1003 = vrot.lane.b32.xlu1 %v4456_v61, %s3404_s6 }
 0x206   : > { %778 = vrot.lane.b32.xlu0 %v714_v30, %s3402_s29 }
 0x207   : > { %v1173_v9 = vpop.permute.xlu1 %1172 }
 0x208   : > { %v624_v18 = vpop.permute.xlu0 %623  ;;  %1265 = vst.msk [vmem:[#allocation3 + $0x20] sm:$0xff] %vm1260_vm6, %v1173_v9 }
 0x209   : > { %701 = vst.msk [vmem:[#allocation3 + $0x98] sm:$0xff] %vm681_vm3, %v624_v18  ;;  %1778 = vrot.lane.b32.xlu1 %v4327_v57, %s3408_s10 }
 0x20a   : > { %1553 = vrot.lane.b32.xlu0 %v4219_v58, %s3407_s9 }
 0x20b   : > { %v1948_v21 = vpop.permute.xlu1 %1947  ;;  %v2088_v37 = vld [vmem:[#allocation3 + $0xa8] sm:$0xff] }
 0x20c   : > { %v1398_v54 = vpop.permute.xlu0 %1397  ;;  %2039 = vst.msk [vmem:[#allocation3 + $0x28] sm:$0xff] %vm2033_vm10, %v1948_v21  ;;  %v2167_v61 = vsel %vm2099_vm11, %v2088_v37, 0  ;;  %v2066_v37 = vld [vmem:[%s5184_s3] sm:$0xff] }
 0x20d   : > { %1474 = vst.msk [vmem:[#allocation3 + $0xa0] sm:$0xff] %vm1453_vm7, %v1398_v54  ;;  %1196 = vrot.lane.b32.xlu1 %v4565_v55, %s3405_s7  ;;  %v4757_v25 = vand.u32 4294901760, %v2167_v61 }
 0x20e   : > { %971 = vrot.lane.b32.xlu0 %v4472_v2, %s3404_s6 }
 0x20f   : > { %v817_v57 = vpop.permute.xlu1 %816  ;;  %3190 = vmatprep.subr.mxu0 %v4757_v25  ;;  %v4761_v58 = vsub.f32 %v2167_v61, %v4757_v25 }
 0x210   : > { %v592_v42 = vpop.permute.xlu0 %591  ;;  %894 = vst.msk [vmem:[#allocation3 + $0x98] sm:$0xff] %vm874_vm4, %v817_v57 }
 0x211   : > { %685 = vst.msk [vmem:[#allocation3 + $0x18] sm:$0xff] %vm681_vm3, %v592_v42  ;;  %1971 = vrot.lane.b32.xlu1 %v4351_v60, %s3409_s11  ;;  %v5225_v2 = vand.u32 4294901760, %v4761_v58 }
 0x212   : > { %1746 = vrot.lane.b32.xlu0 %v4353_v40, %s3408_s10 }
 0x213   : > { %v1592_v55 = vpop.permute.xlu1 %1591  ;;  %v2493_v27 = vsub.f32 %v4761_v58, %v5225_v2  ;;  %v2072_v30 = vld [vmem:[#allocation3 + $0x28] sm:$0xff] }
 0x214   : > { %v1366_v3 = vpop.permute.xlu0 %1365  ;;  %1668 = vst.msk [vmem:[#allocation3 + $0xa0] sm:$0xff] %vm1647_vm8, %v1592_v55  ;;  %v2119_v24 = vsel %vm2099_vm11, %v2072_v30, 0 }
 0x215   : > { %1458 = vst.msk [vmem:[#allocation3 + $0x20] sm:$0xff] %vm1453_vm7, %v1366_v3  ;;  %1389 = vrot.lane.b32.xlu1 %v4589_v8, %s3406_s8  ;;  %v2494_v60 = vand.u32 4294901760, %v2493_v27  ;;  %v4780_v40 = vand.u32 4294901760, %v2119_v24 }
 0x216   : > { %1164 = vrot.lane.b32.xlu0 %v4591_v46, %s3405_s7 }
 0x217   : > { %v1010_v23 = vpop.permute.xlu1 %1009  ;;  %3224 = vmatprep.subr.mxu1 %v2494_v60  ;;  %3191 = vmatpush3.xpose.msra.mxu0 %v4780_v40  ;;  %v4784_v18 = vsub.f32 %v2119_v24, %v4780_v40 }
 0x218   : > { %v785_v9 = vpop.permute.xlu0 %784  ;;  %1087 = vst.msk [vmem:[#allocation3 + $0x98] sm:$0xff] %vm1067_vm5, %v1010_v23 }
 0x219   : > { %878 = vst.msk [vmem:[#allocation3 + $0x18] sm:$0xff] %vm874_vm4, %v785_v9  ;;  %1357 = vrot.lane.b32.xlu1 %v4608_v48, %s3406_s8  ;;  %v5224_v8 = vand.u32 4294901760, %v4784_v18  ;;  %v2101_v48 = vsel %vm2099_vm11, %v2066_v37, 0 }
 0x21a   : > { %1939 = vrot.lane.b32.xlu0 %v4370_v38, %s3409_s11  ;;  %v4806_v61 = vand.u32 4294901760, %v2101_v48 }
 0x21b   : > { %v1785_v46 = vpop.permute.xlu1 %1784  ;;  %v2381_v54 = vsub.f32 %v4784_v18, %v5224_v8 }
 0x21c   : > { %v1560_v21 = vpop.permute.xlu0 %1559  ;;  %1861 = vst.msk [vmem:[#allocation3 + $0xa0] sm:$0xff] %vm1840_vm9, %v1785_v46  ;;  %v4809_v55 = vsub.f32 %v2101_v48, %v4806_v61  ;;  %3236 = vmatprep.mubr.f32.mxu1 %v4806_v61 }
 0x21d   : > { %1652 = vst.msk [vmem:[#allocation3 + $0x20] sm:$0xff] %vm1647_vm8, %v1560_v21  ;;  %1551 = vrot.lane.b32.xlu1 %v4308_v13, %s3407_s9  ;;  %v2382_v38 = vand.u32 4294901760, %v2381_v54 }
 0x21e   : > { %1583 = vrot.lane.b32.xlu0 %v4292_v56, %s3407_s9  ;;  %v4819_v56 = vand.u32 4294901760, %v4809_v55 }
 0x21f   : > { %v1203_v57 = vpop.permute.xlu1 %1202  ;;  %3225 = vmatpush3.xpose.msra.mxu1 %v2382_v38 }
 0x220   : > { %v978_v42 = vpop.permute.xlu0 %977  ;;  %1280 = vst.msk [vmem:[#allocation3 + $0x98] sm:$0xff] %vm1260_vm6, %v1203_v57  ;;  %v2299_v27 = vsub.f32 %v4809_v55, %v4819_v56 }
 0x221   : > { %1071 = vst.msk [vmem:[#allocation3 + $0x18] sm:$0xff] %vm1067_vm5, %v978_v42  ;;  %1744 = vrot.lane.b32.xlu1 %v4435_v14, %s3408_s10 }
 0x222   : > { %1776 = vrot.lane.b32.xlu0 %v4409_v5, %s3408_s10  ;;  %v4829_v14 = vand.u32 4294901760, %v2299_v27 }
 0x223   : > { %v1978_v13 = vpop.permute.xlu1 %1977 }
 0x224   : > { %v1753_v3 = vpop.permute.xlu0 %1752  ;;  %2054 = vst.msk [vmem:[#allocation3 + $0xa0] sm:$0xff] %vm2033_vm10, %v1978_v13  ;;  %3202 = vmatprep.mubr.f32.mxu0 %v4829_v14 }
 0x225   : > { %1845 = vst.msk [vmem:[#allocation3 + $0x20] sm:$0xff] %vm1840_vm9, %v1753_v3  ;;  %1937 = vrot.lane.b32.xlu1 %v4452_v6, %s3409_s11 }
 0x226   : > { %1969 = vrot.lane.b32.xlu0 %v4433_v12, %s3409_s11 }
 0x227   : > { %v1171_v5 = vpop.permute.xlu1 %1170 }
 0x228   : > { %v622_v30 = vpop.permute.xlu0 %621  ;;  %1264 = vst.msk [vmem:[#allocation3 + $0x18] sm:$0xff] %vm1260_vm6, %v1171_v5 }
 0x229   : > { %700 = vst.msk [vmem:[#allocation3 + $0x90] sm:$0xff] %vm681_vm3, %v622_v30 }
 0x22b   : > { %v1946_v24 = vpop.permute.xlu1 %1945  ;;  %v2087_v23 = vld [vmem:[#allocation3 + $0xa0] sm:$0xff] }
 0x22c   : > { %v1396_v60 = vpop.permute.xlu0 %1395  ;;  %2038 = vst.msk [vmem:[#allocation3 + $0x20] sm:$0xff] %vm2033_vm10, %v1946_v24  ;;  %v2164_v6 = vsel %vm2099_vm11, %v2087_v23, 0 }
 0x22d   : > { %1473 = vst.msk [vmem:[#allocation3 + $0x98] sm:$0xff] %vm1453_vm7, %v1396_v60  ;;  %v4837_v12 = vand.u32 4294901760, %v2164_v6 }
 0x22f   : > { %5256 = vst [vmem:[#allocation12_spill] sm:$0xff] %v4837_v12  ;;  %v815_v9 = vpop.permute.xlu1 %814  ;;  %3192 = vmatprep.subr.mxu0 %v4837_v12  ;;  %v4841_v21 = vsub.f32 %v2164_v6, %v4837_v12 }
 0x230   : > { %v590_v46 = vpop.permute.xlu0 %589  ;;  %893 = vst.msk [vmem:[#allocation3 + $0x90] sm:$0xff] %vm874_vm4, %v815_v9 }
 0x231   : > { %684 = vst.msk [vmem:[#allocation3 + $0x10] sm:$0xff] %vm681_vm3, %v590_v46  ;;  %v5223_v54 = vand.u32 4294901760, %v4841_v21 }
 0x233   : > { %v1590_v37 = vpop.permute.xlu1 %1589  ;;  %v2500_v38 = vsub.f32 %v4841_v21, %v5223_v54  ;;  %v2071_v57 = vld [vmem:[#allocation3 + $0x20] sm:$0xff] }
 0x234   : > { %v1364_v48 = vpop.permute.xlu0 %1363  ;;  %1667 = vst.msk [vmem:[#allocation3 + $0x98] sm:$0xff] %vm1647_vm8, %v1590_v37  ;;  %v2116_v42 = vsel %vm2099_vm11, %v2071_v57, 0 }
 0x235   : > { %1457 = vst.msk [vmem:[#allocation3 + $0x18] sm:$0xff] %vm1453_vm7, %v1364_v48  ;;  %v2501_v13 = vand.u32 4294901760, %v2500_v38  ;;  %v4852_v3 = vand.u32 4294901760, %v2116_v42 }
 0x237   : > { %5257 = vst [vmem:[#allocation13_spill] sm:$0xff] %v4852_v3  ;;  %v1008_v27 = vpop.permute.xlu1 %1007  ;;  %3226 = vmatprep.subr.mxu1 %v2501_v13  ;;  %3193 = vmatpush3.xpose.msra.mxu0 %v4852_v3  ;;  %v4856_v30 = vsub.f32 %v2116_v42, %v4852_v3 }
 0x238   : > { %v783_v5 = vpop.permute.xlu0 %782  ;;  %1086 = vst.msk [vmem:[#allocation3 + $0x90] sm:$0xff] %vm1067_vm5, %v1008_v27 }
 0x239   : > { %877 = vst.msk [vmem:[#allocation3 + $0x10] sm:$0xff] %vm874_vm4, %v783_v5  ;;  %v5221_v24 = vand.u32 4294901760, %v4856_v30 }
 0x23b   : > { %v1783_v60 = vpop.permute.xlu1 %1782  ;;  %v2388_v6 = vsub.f32 %v4856_v30, %v5221_v24 }
 0x23c   : > { %v1558_v23 = vpop.permute.xlu0 %1557  ;;  %1860 = vst.msk [vmem:[#allocation3 + $0x98] sm:$0xff] %vm1840_vm9, %v1783_v60 }
 0x23d   : > { %1651 = vst.msk [vmem:[#allocation3 + $0x18] sm:$0xff] %vm1647_vm8, %v1558_v23  ;;  %v2389_v9 = vand.u32 4294901760, %v2388_v6 }
 0x23f   : > { %v1201_v46 = vpop.permute.xlu1 %1200  ;;  %3227 = vmatpush3.xpose.msra.mxu1 %v2389_v9 }
 0x240   : > { %v976_v37 = vpop.permute.xlu0 %975  ;;  %1279 = vst.msk [vmem:[#allocation3 + $0x90] sm:$0xff] %vm1260_vm6, %v1201_v46 }
 0x241   : > { %1070 = vst.msk [vmem:[#allocation3 + $0x10] sm:$0xff] %vm1067_vm5, %v976_v37 }
 0x243   : > { %v1976_v48 = vpop.permute.xlu1 %1975 }
 0x244   : > { %v1751_v38 = vpop.permute.xlu0 %1750  ;;  %2053 = vst.msk [vmem:[#allocation3 + $0x98] sm:$0xff] %vm2033_vm10, %v1976_v48 }
 0x245   : > { %1844 = vst.msk [vmem:[#allocation3 + $0x18] sm:$0xff] %vm1840_vm9, %v1751_v38 }
 0x247   : > { %v1169_v57 = vpop.permute.xlu1 %1168 }
 0x248   : > { %v620_v42 = vpop.permute.xlu0 %619  ;;  %1263 = vst.msk [vmem:[#allocation3 + $0x10] sm:$0xff] %vm1260_vm6, %v1169_v57 }
 0x249   : > { %699 = vst.msk [vmem:[#allocation3 + $0x88] sm:$0xff] %vm681_vm3, %v620_v42 }
 0x24b   : > { %v1944_v13 = vpop.permute.xlu1 %1943  ;;  %v2086_v5 = vld [vmem:[#allocation3 + $0x98] sm:$0xff] }
 0x24c   : > { %v1394_v27 = vpop.permute.xlu0 %1393  ;;  %2037 = vst.msk [vmem:[#allocation3 + $0x18] sm:$0xff] %vm2033_vm10, %v1944_v13  ;;  %v2161_v60 = vsel %vm2099_vm11, %v2086_v5, 0 }
 0x24d   : > { %1472 = vst.msk [vmem:[#allocation3 + $0x90] sm:$0xff] %vm1453_vm7, %v1394_v27  ;;  %v4875_v23 = vand.u32 4294901760, %v2161_v60 }
 0x24f   : > { %5258 = vst [vmem:[#allocation14_spill] sm:$0xff] %v4875_v23  ;;  %v813_v6 = vpop.permute.xlu1 %812  ;;  %3194 = vmatprep.subr.mxu0 %v4875_v23  ;;  %v4879_v46 = vsub.f32 %v2161_v60, %v4875_v23 }
 0x250   : > { %v588_v9 = vpop.permute.xlu0 %587  ;;  %892 = vst.msk [vmem:[#allocation3 + $0x88] sm:$0xff] %vm874_vm4, %v813_v6 }
 0x251   : > { %683 = vst.msk [vmem:[#allocation3 + $0x8] sm:$0xff] %vm681_vm3, %v588_v9  ;;  %v5220_v37 = vand.u32 4294901760, %v4879_v46 }
 0x253   : > { %v1588_v48 = vpop.permute.xlu1 %1587  ;;  %v2507_v57 = vsub.f32 %v4879_v46, %v5220_v37  ;;  %v2070_v42 = vld [vmem:[#allocation3 + $0x18] sm:$0xff] }
 0x254   : > { %v1362_v38 = vpop.permute.xlu0 %1361  ;;  %1666 = vst.msk [vmem:[#allocation3 + $0x90] sm:$0xff] %vm1647_vm8, %v1588_v48  ;;  %v2113_v13 = vsel %vm2099_vm11, %v2070_v42, 0 }
 0x255   : > { %1456 = vst.msk [vmem:[#allocation3 + $0x10] sm:$0xff] %vm1453_vm7, %v1362_v38  ;;  %v2508_v27 = vand.u32 4294901760, %v2507_v57  ;;  %v4890_v5 = vand.u32 4294901760, %v2113_v13 }
 0x257   : > { %v1006_v60 = vpop.permute.xlu1 %1005  ;;  %3228 = vmatprep.subr.mxu1 %v2508_v27  ;;  %3195 = vmatpush3.xpose.msra.mxu0 %v4890_v5  ;;  %v4894_v9 = vsub.f32 %v2113_v13, %v4890_v5 }
 0x258   : > { %v781_v6 = vpop.permute.xlu0 %780  ;;  %1085 = vst.msk [vmem:[#allocation3 + $0x88] sm:$0xff] %vm1067_vm5, %v1006_v60 }
 0x259   : > { %876 = vst.msk [vmem:[#allocation3 + $0x8] sm:$0xff] %vm874_vm4, %v781_v6  ;;  %v5222_v48 = vand.u32 4294901760, %v4894_v9 }
 0x25b   : > { %v1781_v38 = vpop.permute.xlu1 %1780  ;;  %v2395_v57 = vsub.f32 %v4894_v9, %v5222_v48 }
 0x25c   : > { %v1556_v37 = vpop.permute.xlu0 %1555  ;;  %1859 = vst.msk [vmem:[#allocation3 + $0x90] sm:$0xff] %vm1840_vm9, %v1781_v38 }
 0x25d   : > { %1650 = vst.msk [vmem:[#allocation3 + $0x10] sm:$0xff] %vm1647_vm8, %v1556_v37  ;;  %v2396_v42 = vand.u32 4294901760, %v2395_v57 }
 0x25f   : > { %v1199_v27 = vpop.permute.xlu1 %1198  ;;  %3229 = vmatpush3.xpose.msra.mxu1 %v2396_v42 }
 0x260   : > { %v974_v13 = vpop.permute.xlu0 %973  ;;  %1278 = vst.msk [vmem:[#allocation3 + $0x88] sm:$0xff] %vm1260_vm6, %v1199_v27 }
 0x261   : > { %1069 = vst.msk [vmem:[#allocation3 + $0x8] sm:$0xff] %vm1067_vm5, %v974_v13 }
 0x263   : > { %v1974_v60 = vpop.permute.xlu1 %1973 }
 0x264   : > { %v1749_v6 = vpop.permute.xlu0 %1748  ;;  %2052 = vst.msk [vmem:[#allocation3 + $0x90] sm:$0xff] %vm2033_vm10, %v1974_v60 }
 0x265   : > { %1843 = vst.msk [vmem:[#allocation3 + $0x10] sm:$0xff] %vm1840_vm9, %v1749_v6 }
 0x267   : > { %v1167_v24 = vpop.permute.xlu1 %1166 }
 0x268   : > { %v618_v48 = vpop.permute.xlu0 %617  ;;  %1262 = vst.msk [vmem:[#allocation3 + $0x8] sm:$0xff] %vm1260_vm6, %v1167_v24 }
 0x269   : > { %698 = vst.msk [vmem:[#allocation3 + $0x80] sm:$0xff] %vm681_vm3, %v618_v48 }
 0x26b   : > { %v1942_v37 = vpop.permute.xlu1 %1941  ;;  %v2085_v57 = vld [vmem:[#allocation3 + $0x90] sm:$0xff] }
 0x26c   : > { %v1392_v38 = vpop.permute.xlu0 %1391  ;;  %2036 = vst.msk [vmem:[#allocation3 + $0x10] sm:$0xff] %vm2033_vm10, %v1942_v37  ;;  %v2158_v42 = vsel %vm2099_vm11, %v2085_v57, 0 }
 0x26d   : > { %1471 = vst.msk [vmem:[#allocation3 + $0x88] sm:$0xff] %vm1453_vm7, %v1392_v38  ;;  %v4913_v27 = vand.u32 4294901760, %v2158_v42 }
 0x26f   : > { %5259 = vst [vmem:[#allocation15_spill] sm:$0xff] %v4913_v27  ;;  %v811_v13 = vpop.permute.xlu1 %810  ;;  %3196 = vmatprep.subr.mxu0 %v4913_v27  ;;  %v4917_v6 = vsub.f32 %v2158_v42, %v4913_v27 }
 0x270   : > { %v586_v60 = vpop.permute.xlu0 %585  ;;  %891 = vst.msk [vmem:[#allocation3 + $0x80] sm:$0xff] %vm874_vm4, %v811_v13 }
 0x271   : > { %5260 = vst [vmem:[#allocation16_spill] sm:$0xff] %v4917_v6  ;;  %682 = vst.msk [vmem:[#allocation3] sm:$0xff] %vm681_vm3, %v586_v60  ;;  %v5226_v24 = vand.u32 4294901760, %v4917_v6 }
 0x273   : > { %v1586_v48 = vpop.permute.xlu1 %1585  ;;  %v2514_v38 = vsub.f32 %v4917_v6, %v5226_v24  ;;  %v2069_v57 = vld [vmem:[#allocation3 + $0x10] sm:$0xff] }
 0x274   : > { %v1360_v37 = vpop.permute.xlu0 %1359  ;;  %1665 = vst.msk [vmem:[#allocation3 + $0x88] sm:$0xff] %vm1647_vm8, %v1586_v48  ;;  %v2110_v42 = vsel %vm2099_vm11, %v2069_v57, 0 }
 0x275   : > { %1455 = vst.msk [vmem:[#allocation3 + $0x8] sm:$0xff] %vm1453_vm7, %v1360_v37  ;;  %v2515_v54 = vand.u32 4294901760, %v2514_v38  ;;  %v4928_v8 = vand.u32 4294901760, %v2110_v42 }
 0x277   : > { %5261 = vst [vmem:[#allocation17_spill] sm:$0xff] %v4928_v8  ;;  %v1004_v13 = vpop.permute.xlu1 %1003  ;;  %3230 = vmatprep.subr.mxu1 %v2515_v54  ;;  %3197 = vmatpush3.xpose.msra.mxu0 %v4928_v8  ;;  %v4932_v2 = vsub.f32 %v2110_v42, %v4928_v8 }
 0x278   : > { %v779_v60 = vpop.permute.xlu0 %778  ;;  %1084 = vst.msk [vmem:[#allocation3 + $0x80] sm:$0xff] %vm1067_vm5, %v1004_v13 }
 0x279   : > { %875 = vst.msk [vmem:[#allocation3] sm:$0xff] %vm874_vm4, %v779_v60  ;;  %v5228_v48 = vand.u32 4294901760, %v4932_v2 }
 0x27b   : > { %v1779_v37 = vpop.permute.xlu1 %1778  ;;  %v2402_v38 = vsub.f32 %v4932_v2, %v5228_v48 }
 0x27c   : > { %v1554_v24 = vpop.permute.xlu0 %1553  ;;  %1858 = vst.msk [vmem:[#allocation3 + $0x88] sm:$0xff] %vm1840_vm9, %v1779_v37 }
 0x27d   : > { %1649 = vst.msk [vmem:[#allocation3 + $0x8] sm:$0xff] %vm1647_vm8, %v1554_v24  ;;  %v2403_v54 = vand.u32 4294901760, %v2402_v38 }
 0x27f   : > { %v1197_v57 = vpop.permute.xlu1 %1196  ;;  %3231 = vmatpush3.xpose.msra.mxu1 %v2403_v54 }
 0x280   : > { %v972_v42 = vpop.permute.xlu0 %971  ;;  %1277 = vst.msk [vmem:[#allocation3 + $0x80] sm:$0xff] %vm1260_vm6, %v1197_v57 }
 0x281   : > { %1068 = vst.msk [vmem:[#allocation3] sm:$0xff] %vm1067_vm5, %v972_v42 }
 0x283   : > { %v1972_v13 = vpop.permute.xlu1 %1971 }
 0x284   : > { %v1747_v60 = vpop.permute.xlu0 %1746  ;;  %2051 = vst.msk [vmem:[#allocation3 + $0x88] sm:$0xff] %vm2033_vm10, %v1972_v13 }
 0x285   : > { %1842 = vst.msk [vmem:[#allocation3 + $0x8] sm:$0xff] %vm1840_vm9, %v1747_v60 }
 0x287   : > { %v1390_v15 = vpop.permute.xlu1 %1389 }
 0x288   : > { %v1165_v48 = vpop.permute.xlu0 %1164  ;;  %1470 = vst.msk [vmem:[#allocation3 + $0x80] sm:$0xff] %vm1453_vm7, %v1390_v15 }
 0x289   : > { %1261 = vst.msk [vmem:[#allocation3] sm:$0xff] %vm1260_vm6, %v1165_v48 }
 0x28b   : > { %v1358_v24 = vpop.permute.xlu1 %1357  ;;  %v2084_v38 = vld [vmem:[#allocation3 + $0x88] sm:$0xff] }
 0x28c   : > { %v1940_v37 = vpop.permute.xlu0 %1939  ;;  %1454 = vst.msk [vmem:[#allocation3] sm:$0xff] %vm1453_vm7, %v1358_v24  ;;  %v2155_v54 = vsel %vm2099_vm11, %v2084_v38, 0 }
 0x28d   : > { %2035 = vst.msk [vmem:[#allocation3 + $0x8] sm:$0xff] %vm2033_vm10, %v1940_v37  ;;  %v4951_v57 = vand.u32 4294901760, %v2155_v54 }
 0x28f   : > { %5262 = vst [vmem:[#allocation18_spill] sm:$0xff] %v4951_v57  ;;  %v1552_v42 = vpop.permute.xlu1 %1551  ;;  %3198 = vmatprep.subr.mxu0 %v4951_v57  ;;  %v4955_v60 = vsub.f32 %v2155_v54, %v4951_v57 }
 0x290   : > { %v1584_v13 = vpop.permute.xlu0 %1583  ;;  %1648 = vst.msk [vmem:[#allocation3] sm:$0xff] %vm1647_vm8, %v1552_v42 }
 0x291   : > { %1664 = vst.msk [vmem:[#allocation3 + $0x80] sm:$0xff] %vm1647_vm8, %v1584_v13  ;;  %v5233_v15 = vand.u32 4294901760, %v4955_v60 }
 0x293   : > { %v1745_v48 = vpop.permute.xlu1 %1744  ;;  %v2521_v38 = vsub.f32 %v4955_v60, %v5233_v15 }
 0x294   : > { %v1777_v24 = vpop.permute.xlu0 %1776  ;;  %v2068_v37 = vld [vmem:[#allocation3 + $0x8] sm:$0xff]  ;;  %1841 = vst.msk [vmem:[#allocation3] sm:$0xff] %vm1840_vm9, %v1745_v48 }
 0x295   : > { %1857 = vst.msk [vmem:[#allocation3 + $0x80] sm:$0xff] %vm1840_vm9, %v1777_v24  ;;  %v2107_v54 = vsel %vm2099_vm11, %v2068_v37, 0  ;;  %v2522_v42 = vand.u32 4294901760, %v2521_v38 }
 0x296   : > { %v4966_v36 = vand.u32 4294901760, %v2107_v54 }
 0x297   : > { %v1938_v33 = vpop.permute.xlu1 %1937  ;;  %3232 = vmatprep.subr.mxu1 %v2522_v42 }
 0x298   : > { %5263 = vst [vmem:[#allocation19_spill] sm:$0xff] %v4966_v36  ;;  %v1970_v13 = vpop.permute.xlu0 %1969  ;;  %3199 = vmatpush3.xpose.msra.mxu0 %v4966_v36  ;;  %v4970_v57 = vsub.f32 %v2107_v54, %v4966_v36  ;;  %2034 = vst.msk [vmem:[#allocation3] sm:$0xff] %vm2033_vm10, %v1938_v33 }
 0x299   : > { %2050 = vst.msk [vmem:[#allocation3 + $0x80] sm:$0xff] %vm2033_vm10, %v1970_v13 }
 0x29a   : > { %5264 = vst [vmem:[#allocation20_spill] sm:$0xff] %v4970_v57  ;;  %v5240_v48 = vand.u32 4294901760, %v4970_v57 }
 0x29c   : > { %v2409_v24 = vsub.f32 %v4970_v57, %v5240_v48  ;;  %v5272_v48 = vld [vmem:[#allocation11_spill] sm:$0xff] }
 0x29e   : > { %v2410_v37 = vand.u32 4294901760, %v2409_v24 }
 0x29f   : > { %v2067_v15 = vld [vmem:[#allocation3] sm:$0xff] }
 0x2a0   : > { %3233 = vmatpush3.xpose.msra.mxu1 %v2410_v37  ;;  %v2083_v38 = vld [vmem:[#allocation3 + $0x80] sm:$0xff]  ;;  %v2104_v42 = vsel %vm2099_vm11, %v2067_v15, 0 }
 0x2a1   : > { %v2152_v8 = vsel %vm2099_vm11, %v2083_v38, 0  ;;  %v4982_v36 = vand.u32 4294901760, %v2104_v42 }
 0x2a2   : > { %v4980_v54 = vand.u32 4294901760, %v2152_v8 }
 0x2a3   : > { %v4989_v13 = vsub.f32 %v2104_v42, %v4982_v36 }
 0x2a4   : > { %3200 = vmatprep.subr.mxu0 %v4980_v54  ;;  %v4986_v33 = vsub.f32 %v2152_v8, %v4980_v54 }
 0x2a5   : > { %3201 = vmatpush3.xpose.msra.mxu0 %v4982_v36  ;;  %v5238_v15 = vand.u32 4294901760, %v4989_v13 }
 0x2a6   : > { %3238 = vmatprep.subr.mxu0 %v3948_v45  ;;  %v5239_v24 = vand.u32 4294901760, %v4986_v33 }
 0x2a7   : > { %v2416_v8 = vsub.f32 %v4989_v13, %v5238_v15  ;;  %v5270_v15 = vld [vmem:[#allocation8_spill] sm:$0xff] }
 0x2a8   : > { %3203 = vmatmul.mubr.f32.vlgmr.msra.gmra.mxu0 %v4829_v14  ;;  %v2528_v37 = vsub.f32 %v4986_v33, %v5239_v24  ;;  %v5265_v14 = vld [vmem:[#allocation4_spill] sm:$0xff]  ;;  %v5271_v24 = vld [vmem:[#allocation9_spill] sm:$0xff] }
 0x2a9   : > { %3239 = vmatpush3.xpose.msra.mxu0 %v3976_v4  ;;  %3270 = vmatprep.mubr.f32.mxu0 %v4809_v55  ;;  %v2417_v42 = vand.u32 4294901760, %v2416_v8  ;;  %v5267_v8 = vld [vmem:[#allocation5_spill] sm:$0xff] }
 0x2aa   : > { %3240 = vmatprep.subr.mxu0 %v4042_v10  ;;  %v2529_v38 = vand.u32 4294901760, %v2528_v37  ;;  %v5266_v37 = vld [vmem:[#allocation10_spill] sm:$0xff] }
 0x2ac   : > { %3234 = vmatprep.subr.mxu1 %v2529_v38  ;;  %v5268_v38 = vld [vmem:[#allocation6_spill] sm:$0xff] }
 0x2ad   : > { %3235 = vmatpush3.xpose.msra.mxu1 %v2417_v42  ;;  %3241 = vmatpush3.xpose.msra.mxu0 %v4070_v62  ;;  %v5269_v42 = vld [vmem:[#allocation7_spill] sm:$0xff] }
 0x2ae   : > { %3242 = vmatprep.subr.mxu0 %v4132_v32  ;;  %3272 = vmatprep.subr.mxu1 %v3940_v7 }
 0x2b0   : > { %3237 = vmatmul.mubr.f32.vlgmr.msra.gmra.mxu1 %v4806_v61 }
 0x2b1   : > { %3243 = vmatpush3.xpose.msra.mxu0 %v4170_v53  ;;  %3273 = vmatpush3.xpose.msra.mxu1 %v3971_v63 }
 0x2b2   : > { %3244 = vmatprep.subr.mxu0 %v4232_v59  ;;  %3274 = vmatprep.subr.mxu1 %v4034_v17 }
 0x2b3   : > { %3304 = vmatprep.mubr.f32.mxu1 %v4819_v56 }
 0x2b5   : > { %3245 = vmatpush3.xpose.msra.mxu0 %v4260_v52  ;;  %3275 = vmatpush3.xpose.msra.mxu1 %v4065_v28 }
 0x2b6   : > { %3246 = vmatprep.subr.mxu0 %v4320_v43  ;;  %3276 = vmatprep.subr.mxu1 %v4125_v51 }
 0x2b9   : > { %3247 = vmatpush3.xpose.msra.mxu0 %v4343_v16  ;;  %3277 = vmatpush3.xpose.msra.mxu1 %v4165_v19 }
 0x2ba   : > { %3248 = vmatprep.subr.mxu0 %v4402_v1  ;;  %3278 = vmatprep.subr.mxu1 %v4225_v29 }
 0x2bd   : > { %3249 = vmatpush3.xpose.msra.mxu0 %v4425_v11  ;;  %3279 = vmatpush3.xpose.msra.mxu1 %v4255_v20 }
 0x2be   : > { %3250 = vmatprep.subr.mxu0 %v4484_v22  ;;  %3280 = vmatprep.subr.mxu1 %v4314_v26 }
 0x2c1   : > { %3251 = vmatpush3.xpose.msra.mxu0 %v4507_v49  ;;  %3281 = vmatpush3.xpose.msra.mxu1 %v4339_v34 }
 0x2c2   : > { %3252 = vmatprep.subr.mxu0 %v4558_v35  ;;  %3282 = vmatprep.subr.mxu1 %v5265_v14 }
 0x2c5   : > { %3253 = vmatpush3.xpose.msra.mxu0 %v5266_v37  ;;  %3283 = vmatpush3.xpose.msra.mxu1 %v5267_v8 }
 0x2c6   : > { %3254 = vmatprep.subr.mxu0 %v4633_v47  ;;  %3284 = vmatprep.subr.mxu1 %v5268_v38 }
 0x2c9   : > { %3255 = vmatpush3.xpose.msra.mxu0 %v4654_v41  ;;  %3285 = vmatpush3.xpose.msra.mxu1 %v5269_v42 }
 0x2ca   : > { %3256 = vmatprep.subr.mxu0 %v4697_v0  ;;  %3286 = vmatprep.subr.mxu1 %v5270_v15 }
 0x2cd   : > { %3257 = vmatpush3.xpose.msra.mxu0 %v4718_v39  ;;  %3287 = vmatpush3.xpose.msra.mxu1 %v5271_v24 }
 0x2ce   : > { %3258 = vmatprep.subr.mxu0 %v4761_v58  ;;  %3288 = vmatprep.subr.mxu1 %v5272_v48 }
 0x2d1   : > { %3259 = vmatpush3.xpose.msra.mxu0 %v4784_v18  ;;  %3289 = vmatpush3.xpose.msra.mxu1 %v4650_v50 }
 0x2d2   : > { %3260 = vmatprep.subr.mxu0 %v4841_v21  ;;  %3290 = vmatprep.subr.mxu1 %v4693_v44 }
 0x2d5   : > { %3261 = vmatpush3.xpose.msra.mxu0 %v4856_v30  ;;  %3291 = vmatpush3.xpose.msra.mxu1 %v4714_v31 }
 0x2d6   : > { %3262 = vmatprep.subr.mxu0 %v4879_v46  ;;  %3292 = vmatprep.subr.mxu1 %v4757_v25 }
 0x2d9   : > { %3263 = vmatpush3.xpose.msra.mxu0 %v4894_v9  ;;  %3293 = vmatpush3.xpose.msra.mxu1 %v4780_v40 }
 0x2da   : > { %3264 = vmatprep.subr.mxu0 %v4917_v6  ;;  %3294 = vmatprep.subr.mxu1 %v4837_v12  ;;  %v5273_v6 = vld [vmem:[#allocation17_spill] sm:$0xff]  ;;  %v5274_v12 = vld [vmem:[#allocation18_spill] sm:$0xff] }
 0x2dd   : > { %3265 = vmatpush3.xpose.msra.mxu0 %v4932_v2  ;;  %3295 = vmatpush3.xpose.msra.mxu1 %v4852_v3  ;;  %v5275_v3 = vand.u32 4294901760, %v3948_v45  ;;  %v5280_v45 = vand.u32 4294901760, %v4132_v32  ;;  %v5285_v32 = vand.u32 4294901760, %v4343_v16  ;;  %v5299_v16 = vand.u32 4294901760, %v4856_v30 }
 0x2de   : > { %3266 = vmatprep.subr.mxu0 %v4955_v60  ;;  %3296 = vmatprep.subr.mxu1 %v4875_v23  ;;  %v5276_v23 = vld [vmem:[#allocation19_spill] sm:$0xff] }
 0x2e1   : > { %3267 = vmatpush3.xpose.msra.mxu0 %v4970_v57  ;;  %3297 = vmatpush3.xpose.msra.mxu1 %v4890_v5  ;;  %v5277_v57 = vand.u32 4294901760, %v3976_v4  ;;  %v5281_v4 = vand.u32 4294901760, %v4170_v53  ;;  %v5291_v53 = vand.u32 4294901760, %v5266_v37 }
 0x2e2   : > { %3268 = vmatprep.subr.mxu0 %v4986_v33  ;;  %3298 = vmatprep.subr.mxu1 %v4913_v27  ;;  %v5278_v27 = vand.u32 4294901760, %v4042_v10  ;;  %v5282_v10 = vand.u32 4294901760, %v4232_v59  ;;  %v5293_v59 = vand.u32 4294901760, %v4654_v41  ;;  %v5307_v41 = vand.u32 4294901760, %v4955_v60 }
 0x2e5   : > { %3269 = vmatpush3.xpose.msra.mxu0 %v4989_v13  ;;  %3299 = vmatpush3.xpose.msra.mxu1 %v5273_v6 }
 0x2e6   : > { %3300 = vmatprep.subr.mxu1 %v5274_v12  ;;  %3306 = vmatprep.subr.mxu0 %v5275_v3  ;;  %v5279_v12 = vand.u32 4294901760, %v4070_v62  ;;  %v5283_v62 = vand.u32 4294901760, %v4260_v52  ;;  %v5295_v52 = vand.u32 4294901760, %v4718_v39  ;;  %v5311_v39 = vand.u32 4294901760, %v4986_v33 }
 0x2e8   : > { %3271 = vmatmul.mubr.f32.vlgmr.msra.gmra.mxu0 %v4809_v55 }
 0x2e9   : > { %3301 = vmatpush3.xpose.msra.mxu1 %v5276_v23  ;;  %3307 = vmatpush3.xpose.msra.mxu0 %v5277_v57 }
 0x2ea   : > { %3302 = vmatprep.subr.mxu1 %v4980_v54  ;;  %3308 = vmatprep.subr.mxu0 %v5278_v27 }
 0x2eb   : > { %3338 = vmatprep.mubr.f32.mxu0 %v4806_v61 }
 0x2ed   : > { %3303 = vmatpush3.xpose.msra.mxu1 %v4982_v36  ;;  %3309 = vmatpush3.xpose.msra.mxu0 %v5279_v12 }
 0x2ee   : > { %3310 = vmatprep.subr.mxu0 %v5280_v45  ;;  %3340 = vmatprep.subr.mxu1 %v3940_v7  ;;  %v5284_v7 = vand.u32 4294901760, %v4320_v43  ;;  %v5297_v43 = vand.u32 4294901760, %v4784_v18 }
 0x2f0   : > { %3305 = vmatmul.mubr.f32.vlgmr.msra.gmra.mxu1 %v4819_v56 }
 0x2f1   : > { %3311 = vmatpush3.xpose.msra.mxu0 %v5281_v4  ;;  %3341 = vmatpush3.xpose.msra.mxu1 %v3971_v63  ;;  %v5286_v63 = vand.u32 4294901760, %v4402_v1  ;;  %v5300_v1 = vand.u32 4294901760, %v4879_v46 }
 0x2f2   : > { %3312 = vmatprep.subr.mxu0 %v5282_v10  ;;  %3342 = vmatprep.subr.mxu1 %v4034_v17  ;;  %v5287_v17 = vand.u32 4294901760, %v4425_v11  ;;  %v5301_v11 = vand.u32 4294901760, %v4894_v9 }
 0x2f3   : > { %3372 = vmatprep.mubr.f32.mxu1 %v4806_v61 }
 0x2f5   : > { %3313 = vmatpush3.xpose.msra.mxu0 %v5283_v62  ;;  %3343 = vmatpush3.xpose.msra.mxu1 %v4065_v28  ;;  %v5288_v28 = vand.u32 4294901760, %v4484_v22  ;;  %v5302_v22 = vld [vmem:[#allocation16_spill] sm:$0xff] }
 0x2f6   : > { %3314 = vmatprep.subr.mxu0 %v5284_v7  ;;  %3344 = vmatprep.subr.mxu1 %v4125_v51  ;;  %v5289_v51 = vand.u32 4294901760, %v4507_v49  ;;  %v5303_v49 = vand.u32 4294901760, %v5302_v22 }
 0x2f9   : > { %3315 = vmatpush3.xpose.msra.mxu0 %v5285_v32  ;;  %3345 = vmatpush3.xpose.msra.mxu1 %v4165_v19  ;;  %v5290_v19 = vand.u32 4294901760, %v4558_v35  ;;  %v5304_v35 = vld [vmem:[#allocation12_spill] sm:$0xff] }
 0x2fa   : > { %3316 = vmatprep.subr.mxu0 %v5286_v63  ;;  %3346 = vmatprep.subr.mxu1 %v4225_v29  ;;  %v5292_v29 = vand.u32 4294901760, %v4633_v47  ;;  %v5305_v47 = vand.u32 4294901760, %v4932_v2  ;;  %v5314_v2 = vld [vmem:[#allocation18_spill] sm:$0xff] }
 0x2fd   : > { %3317 = vmatpush3.xpose.msra.mxu0 %v5287_v17  ;;  %3347 = vmatpush3.xpose.msra.mxu1 %v4255_v20  ;;  %v5294_v20 = vand.u32 4294901760, %v4697_v0  ;;  %v5309_v0 = vld [vmem:[#allocation20_spill] sm:$0xff] }
 0x2fe   : > { %3318 = vmatprep.subr.mxu0 %v5288_v28  ;;  %3348 = vmatprep.subr.mxu1 %v4314_v26  ;;  %v5296_v26 = vand.u32 4294901760, %v4761_v58  ;;  %v5313_v58 = vand.u32 4294901760, %v4989_v13 }
 0x301   : > { %3319 = vmatpush3.xpose.msra.mxu0 %v5289_v51  ;;  %3349 = vmatpush3.xpose.msra.mxu1 %v4339_v34  ;;  %v5298_v34 = vand.u32 4294901760, %v4841_v21 }
 0x302   : > { %3320 = vmatprep.subr.mxu0 %v5290_v19  ;;  %3350 = vmatprep.subr.mxu1 %v5265_v14 }
 0x305   : > { %3321 = vmatpush3.xpose.msra.mxu0 %v5291_v53  ;;  %3351 = vmatpush3.xpose.msra.mxu1 %v5267_v8 }
 0x306   : > { %3322 = vmatprep.subr.mxu0 %v5292_v29  ;;  %3352 = vmatprep.subr.mxu1 %v5268_v38 }
 0x309   : > { %3323 = vmatpush3.xpose.msra.mxu0 %v5293_v59  ;;  %3353 = vmatpush3.xpose.msra.mxu1 %v5269_v42 }
 0x30a   : > { %3324 = vmatprep.subr.mxu0 %v5294_v20  ;;  %3354 = vmatprep.subr.mxu1 %v5270_v15 }
 0x30d   : > { %3325 = vmatpush3.xpose.msra.mxu0 %v5295_v52  ;;  %3355 = vmatpush3.xpose.msra.mxu1 %v5271_v24 }
 0x30e   : > { %3326 = vmatprep.subr.mxu0 %v5296_v26  ;;  %3356 = vmatprep.subr.mxu1 %v5272_v48 }
 0x311   : > { %3327 = vmatpush3.xpose.msra.mxu0 %v5297_v43  ;;  %3357 = vmatpush3.xpose.msra.mxu1 %v4650_v50  ;;  %v5306_v50 = vld [vmem:[#allocation13_spill] sm:$0xff] }
 0x312   : > { %3328 = vmatprep.subr.mxu0 %v5298_v34  ;;  %3358 = vmatprep.subr.mxu1 %v4693_v44  ;;  %v5308_v44 = vld [vmem:[#allocation14_spill] sm:$0xff] }
 0x315   : > { %3329 = vmatpush3.xpose.msra.mxu0 %v5299_v16  ;;  %3359 = vmatpush3.xpose.msra.mxu1 %v4714_v31  ;;  %v5310_v31 = vand.u32 4294901760, %v5309_v0 }
 0x316   : > { %3330 = vmatprep.subr.mxu0 %v5300_v1  ;;  %3360 = vmatprep.subr.mxu1 %v4757_v25  ;;  %v5312_v25 = vld [vmem:[#allocation15_spill] sm:$0xff] }
 0x319   : > { %3331 = vmatpush3.xpose.msra.mxu0 %v5301_v11  ;;  %3361 = vmatpush3.xpose.msra.mxu1 %v4780_v40 }
 0x31a   : > { %3332 = vmatprep.subr.mxu0 %v5303_v49  ;;  %3362 = vmatprep.subr.mxu1 %v5304_v35 }
 0x31d   : > { %3333 = vmatpush3.xpose.msra.mxu0 %v5305_v47  ;;  %3363 = vmatpush3.xpose.msra.mxu1 %v5306_v50 }
 0x31e   : > { %3334 = vmatprep.subr.mxu0 %v5307_v41  ;;  %3364 = vmatprep.subr.mxu1 %v5308_v44 }
 0x321   : > { %3335 = vmatpush3.xpose.msra.mxu0 %v5310_v31  ;;  %3365 = vmatpush3.xpose.msra.mxu1 %v4890_v5 }
 0x322   : > { %3336 = vmatprep.subr.mxu0 %v5311_v39  ;;  %3366 = vmatprep.subr.mxu1 %v5312_v25 }
 0x325   : > { %3337 = vmatpush3.xpose.msra.mxu0 %v5313_v58  ;;  %3367 = vmatpush3.xpose.msra.mxu1 %v5273_v6 }
 0x326   : > { %3368 = vmatprep.subr.mxu1 %v5314_v2 }
 0x328   : > { %3339 = vmatmul.mubr.f32.vlgmr.msra.gmra.mxu0 %v4806_v61 }
 0x329   : > { %3369 = vmatpush3.xpose.msra.mxu1 %v5276_v23 }
 0x32a   : > { %3370 = vmatprep.subr.mxu1 %v4980_v54 }
 0x32d   : > { %3371 = vmatpush3.xpose.msra.mxu1 %v4982_v36 }
 0x330   : > { %3373 = vmatmul.mubr.f32.vlgmr.msra.gmra.mxu1 %v4806_v61 }
 0x368   : > { %v2302_v40 = vpop.f32.mrf.mxu0 }
 0x36a   : > { %v2304_v18 = vpop.f32.mrf.mxu0 }
 0x370   : > { %v2534_v55 = vpop.f32.mrf.mxu1 }
 0x371   : > { %v2535_v30 = vadd.f32 %v2534_v55, %v2302_v40 }
 0x372   : > { %v2536_v12 = vpop.f32.mrf.mxu1 }
 0x373   : > { %v2537_v5 = vadd.f32 %v2536_v12, %v2304_v18 }
 0x3a8   : > { %v2671_v56 = vpop.f32.mrf.mxu0 }
 0x3a9   : > { %v2672_v9 = vadd.f32 %v2671_v56, %v2535_v30 }
 0x3aa   : > { %v2673_v21 = vpop.f32.mrf.mxu0 }
 0x3ab   : > { %v2674_v23 = vadd.f32 %v2673_v21, %v2537_v5 }
 0x3b0   : > { %v2777_v3 = vpop.f32.mrf.mxu1 }
 0x3b1   : > { %v2778_v6 = vadd.f32 %v2777_v3, %v2672_v9 }
 0x3b2   : > { %v2779_v27 = vpop.f32.mrf.mxu1 }
 0x3b3   : > { %v2780_v36 = vadd.f32 %v2779_v27, %v2674_v23 }
 0x3e8   : > { %v2945_v46 = vpop.f32.mrf.mxu0 }
 0x3e9   : > { %v2946_v60 = vadd.f32 %v2945_v46, %v2778_v6 }
 0x3ea   : > { %v2947_v57 = vpop.f32.mrf.mxu0 }
 0x3eb   : > { %v2948_v48 = vadd.f32 %v2947_v57, %v2780_v36 }
 0x3f0   : > { %v3049_v61 = vpop.f32.mrf.mxu1 }
 0x3f1   : > { %v3050_v54 = vadd.f32 %v3049_v61, %v2946_v60 }
 0x3f2   : > { %v3051_v33 = vpop.f32.mrf.mxu1 }
 0x3f3   : > { %3054 = vst [vmem:[%s231_s23] sm:$0xff] %v3050_v54  ;;  %v3052_v13 = vadd.f32 %v3051_v33, %v2948_v48  ;;  %v3061_v24 = vmul.f32 %v3050_v54, %v3050_v54 }
 0x3f5   : > { %3055 = vst [vmem:[%s231_s23 + $0x8] sm:$0xff] %v3052_v13  ;;  %v3062_v15 = vmul.f32 %v3052_v13, %v3052_v13  ;;  %v3056_v14 = vadd.f32 %v3052_v13, %v3050_v54 }
 0x3f7   : > { %3057 = vadd.xlane.f32.xlu0 %v3056_v14  ;;  %v3063_v37 = vadd.f32 %v3062_v15, %v3061_v24 }
 0x3f9   : > { %3064 = vadd.xlane.f32.xlu1 %v3063_v37 }
 0x480   : > { %v3058_v8 = vpop.xlane.xlu0 %3057 }
 0x481   : > { %3060 = vst.msk [vmem:[%s235_s27] sm:$0xff] %vm3059_vm12, %v3058_v8 }
 0x482   : > { %v3065_v38 = vpop.xlane.xlu1 %3064 }
 0x483   : > { %3067 = vst.msk [vmem:[%s235_s27] sm:$0xff] %vm3066_vm13, %v3065_v38 }
 0x484 PF: > { %s16_s18 = sadd.s32 1, %s3399_s18  }
 0x485   : > { %p13_p4 = scmp.ge.s32.totalorder %s16_s18, 4  }
 0x487   :  { %15 = sbr.rel (!%p13_p4) target bundleno = 1 (0x1), region = 81 }

// kernel: sepconv_forward.3
= control target key start
LH: loop header
LB: loop body
LE: loop exit
PB: predicated region body
PF: predicated region fallthrough
CT: control target
= control target key end

     0   :  { %s4977_s18 = smov 0   ;;  %s7015_s0 = inlined_call_operand.vmem [shape: f32[2,16,16,4], index: 0, kind: input, shape index: {}]   ;;  %s7016_s1 = inlined_call_operand.vmem [shape: f32[1,4], index: 1, kind: input, shape index: {}]   ;;  %s7017_s2 = inlined_call_operand.vmem [shape: f32[1,4], index: 2, kind: input, shape index: {}]   ;;  %s7018_s3 = inlined_call_operand.vmem [shape: f32[36,4], index: 3, kind: input, shape index: {}]   ;;  %s7019_s4 = inlined_call_operand.vmem [shape: f32[2,256,4], index: 4, kind: output, shape index: {0}]   ;;  %s7020_s5 = inlined_call_operand.vmem [shape: f32[2,2,4], index: 5, kind: output, shape index: {1}]  }
   0x1 LB: > { %s4325_s19 = sadd.s32 4294967295, %s4936_s18   ;;  %p4329_p0 = scmp.ge.s32.totalorder %s4936_s18, 1  ;;  %s4936_s18 = sphi %s4977_s18, %s16_s18  }
   0x2   : > { %p190_p1 = scmp.lt.s32.totalorder %s4936_s18, 3 }
   0x4   : > { %p191_p2 = pnand %p4329_p0, %p190_p1 }
   0x6   : > { %194 = sbr.rel (%p191_p2) target bundleno = 1028 (0x404), region = 36 }
   0xb   : > { %vm236_vm0 = vcmask 31744   ;;  %vm245_vm1 = vcmask 24576   ;;  %vm239_vm2 = vcmask 25600   ;;  %v4938_v0 = vmov 0.0   ;;  %p222_p3 = scmp.lt.s32.totalorder %s4325_s19, 1  ;;  %s4939_s28 = smov 4  }
   0xc   : > { %237 = vst.msk [vmem:[#allocation2] sm:$0xff] %vm236_vm0, %v4938_v0  ;;  %238 = vst.msk [vmem:[#allocation2 + $0x8] sm:$0xff] %vm236_vm0, %v4938_v0  ;;  %v5037_v1 = vld [vmem:[%s7016_s1] ss:$0 sm:$0xff]  ;;  %s4940_s29 = smov 8   ;;  %s4941_s30 = smov 12  }
   0xd   : > { %242 = vst.msk [vmem:[#allocation2 + $0x198] sm:$0xff] %vm236_vm0, %v4938_v0  ;;  %243 = vst.msk [vmem:[#allocation2 + $0x1a0] sm:$0xff] %vm236_vm0, %v4938_v0  ;;  %s7272_s19 = smov (!%p222_p3, %s4325_s19), 1  ;;  %v5049_v2 = vld [vmem:[%s7017_s2] ss:$0 sm:$0xff]  ;;  %s4942_s6 = smov 16  }
   0xe   : > { %247 = vst.msk [vmem:[#allocation2 + $0x18] sm:$0x1] %vm245_vm1, %v4938_v0  ;;  %248 = vst.msk [vmem:[#allocation2 + $0x30] sm:$0x1] %vm245_vm1, %v4938_v0  ;;  %s4339_s20 = sshll.u32 %s7272_s19, 8  ;;  %s4943_s7 = smov 20  }
   0xf   : > { %249 = vst.msk [vmem:[#allocation2 + $0x48] sm:$0x1] %vm245_vm1, %v4938_v0  ;;  %250 = vst.msk [vmem:[#allocation2 + $0x60] sm:$0x1] %vm245_vm1, %v4938_v0  ;;  %s5044_s25 = scalar_lea.vmem %s7015_s0, %s4339_s20  ;;  %s4944_s8 = smov 24   ;;  %vm2200_vm3 = vcmask 1043456  }
  0x10   : > { %251 = vst.msk [vmem:[#allocation2 + $0x78] sm:$0x1] %vm245_vm1, %v4938_v0  ;;  %252 = vst.msk [vmem:[#allocation2 + $0x90] sm:$0x1] %vm245_vm1, %v4938_v0  ;;  %v284_v3 = vld [vmem:[%s5044_s25 + $0x10] sm:$0xff]  ;;  %v282_v4 = vld [vmem:[%s5044_s25] sm:$0xff] }
  0x11   : > { %253 = vst.msk [vmem:[#allocation2 + $0xa8] sm:$0x1] %vm245_vm1, %v4938_v0  ;;  %254 = vst.msk [vmem:[#allocation2 + $0xc0] sm:$0x1] %vm245_vm1, %v4938_v0  ;;  %v286_v5 = vld [vmem:[%s5044_s25 + $0x20] sm:$0xff]  ;;  %v323_v8 = vmul.f32 %v5037_v1, %v284_v3  ;;  %v321_v9 = vmul.f32 %v5037_v1, %v282_v4  ;;  %v283_v12 = vld [vmem:[%s5044_s25 + $0x8] sm:$0xff] }
  0x12   : > { %255 = vst.msk [vmem:[#allocation2 + $0xd8] sm:$0x1] %vm245_vm1, %v4938_v0  ;;  %256 = vst.msk [vmem:[#allocation2 + $0xf0] sm:$0x1] %vm245_vm1, %v4938_v0  ;;  %v325_v10 = vmul.f32 %v5037_v1, %v286_v5  ;;  %v288_v13 = vld [vmem:[%s5044_s25 + $0x30] sm:$0xff]  ;;  %v322_v17 = vmul.f32 %v5037_v1, %v283_v12  ;;  %v285_v18 = vld [vmem:[%s5044_s25 + $0x18] sm:$0xff] }
  0x13   : > { %257 = vst.msk [vmem:[#allocation2 + $0x108] sm:$0x1] %vm245_vm1, %v4938_v0  ;;  %258 = vst.msk [vmem:[#allocation2 + $0x120] sm:$0x1] %vm245_vm1, %v4938_v0  ;;  %v521_v6 = vld [vmem:[#allocation2 + $0x1] sm:$0xff]  ;;  %v362_v14 = vadd.f32 %v5049_v2, %v323_v8  ;;  %v360_v15 = vadd.f32 %v5049_v2, %v321_v9  ;;  %v327_v21 = vmul.f32 %v5037_v1, %v288_v13  ;;  %v289_v25 = vld [vmem:[%s5044_s25 + $0x38] sm:$0xff] }
  0x14   : > { %259 = vst.msk [vmem:[#allocation2 + $0x138] sm:$0x1] %vm245_vm1, %v4938_v0  ;;  %260 = vst.msk [vmem:[#allocation2 + $0x150] sm:$0x1] %vm245_vm1, %v4938_v0  ;;  %v714_v7 = vld [vmem:[#allocation2 + $0x2] sm:$0xff]  ;;  %585 = vrot.lane.b32.xlu0 %v521_v6, %s4939_s28  ;;  %v364_v16 = vadd.f32 %v5049_v2, %v325_v10  ;;  %v324_v22 = vmul.f32 %v5037_v1, %v285_v18  ;;  %v361_v31 = vadd.f32 %v5049_v2, %v322_v17  ;;  %v293_v6 = vld [vmem:[%s5044_s25 + $0x58] sm:$0xff] }
  0x15   : > { %261 = vst.msk [vmem:[#allocation2 + $0x168] sm:$0x1] %vm245_vm1, %v4938_v0  ;;  %262 = vst.msk [vmem:[#allocation2 + $0x180] sm:$0x1] %vm245_vm1, %v4938_v0  ;;  %778 = vrot.lane.b32.xlu1 %v714_v7, %s4940_s29  ;;  %v290_v19 = vld [vmem:[%s5044_s25 + $0x40] sm:$0xff]  ;;  %v287_v20 = vld [vmem:[%s5044_s25 + $0x28] sm:$0xff]  ;;  %v366_v33 = vadd.f32 %v5049_v2, %v327_v21  ;;  %v328_v38 = vmul.f32 %v5037_v1, %v289_v25  ;;  %v332_v7 = vmul.f32 %v5037_v1, %v293_v6 }
  0x16   : > { %265 = vst.msk [vmem:[#allocation2 + $0x29] sm:$0x1] %vm245_vm1, %v4938_v0  ;;  %266 = vst.msk [vmem:[#allocation2 + $0x41] sm:$0x1] %vm245_vm1, %v4938_v0  ;;  %v329_v23 = vmul.f32 %v5037_v1, %v290_v19  ;;  %v326_v24 = vmul.f32 %v5037_v1, %v287_v20  ;;  %v458_v27 = vld [vmem:[#allocation2 + $0x8] sm:$0xff]  ;;  %v394_v28 = vmax.f32 %v362_v14, 0.0  ;;  %v363_v34 = vadd.f32 %v5049_v2, %v324_v22 }
  0x17   : > { %267 = vst.msk [vmem:[#allocation2 + $0x59] sm:$0x1] %vm245_vm1, %v4938_v0  ;;  %268 = vst.msk [vmem:[#allocation2 + $0x71] sm:$0x1] %vm245_vm1, %v4938_v0  ;;  %v392_v29 = vmax.f32 %v360_v15, 0.0  ;;  %v396_v30 = vmax.f32 %v364_v16, 0.0  ;;  %v367_v44 = vadd.f32 %v5049_v2, %v328_v38  ;;  %v371_v9 = vadd.f32 %v5049_v2, %v332_v7 }
  0x18   : > { %269 = vst.msk [vmem:[#allocation2 + $0x89] sm:$0x1] %vm245_vm1, %v4938_v0  ;;  %270 = vst.msk [vmem:[#allocation2 + $0xa1] sm:$0x1] %vm245_vm1, %v4938_v0  ;;  %v291_v32 = vld [vmem:[%s5044_s25 + $0x48] sm:$0xff]  ;;  %v368_v35 = vadd.f32 %v5049_v2, %v329_v23  ;;  %v365_v36 = vadd.f32 %v5049_v2, %v326_v24  ;;  %v393_v37 = vmax.f32 %v361_v31, 0.0 }
  0x19   : > { %271 = vst.msk [vmem:[#allocation2 + $0xb9] sm:$0x1] %vm245_vm1, %v4938_v0  ;;  %272 = vst.msk [vmem:[#allocation2 + $0xd1] sm:$0x1] %vm245_vm1, %v4938_v0  ;;  %v330_v39 = vmul.f32 %v5037_v1, %v291_v32  ;;  %v398_v40 = vmax.f32 %v366_v33, 0.0  ;;  %v395_v41 = vmax.f32 %v363_v34, 0.0 }
  0x1a   : > { %273 = vst.msk [vmem:[#allocation2 + $0xe9] sm:$0x1] %vm245_vm1, %v4938_v0  ;;  %274 = vst.msk [vmem:[#allocation2 + $0x101] sm:$0x1] %vm245_vm1, %v4938_v0  ;;  %v400_v42 = vmax.f32 %v368_v35, 0.0  ;;  %v397_v43 = vmax.f32 %v365_v36, 0.0 }
  0x1b   : > { %275 = vst.msk [vmem:[#allocation2 + $0x119] sm:$0x1] %vm245_vm1, %v4938_v0  ;;  %276 = vst.msk [vmem:[#allocation2 + $0x131] sm:$0x1] %vm245_vm1, %v4938_v0  ;;  %v369_v45 = vadd.f32 %v5049_v2, %v330_v39  ;;  %v399_v46 = vmax.f32 %v367_v44, 0.0  ;;  %v403_v13 = vmax.f32 %v371_v9, 0.0 }
  0x1c   : > { %277 = vst.msk [vmem:[#allocation2 + $0x149] sm:$0x1] %vm245_vm1, %v4938_v0  ;;  %278 = vst.msk [vmem:[#allocation2 + $0x161] sm:$0x1] %vm245_vm1, %v4938_v0  ;;  %v2102_v18 = vld [vmem:[%s7018_s3 + $0x20] sm:$0xf] }
  0x1d   : > { %279 = vst.msk [vmem:[#allocation2 + $0x179] sm:$0x1] %vm245_vm1, %v4938_v0  ;;  %280 = vst.msk [vmem:[#allocation2 + $0x191] sm:$0x1] %vm245_vm1, %v4938_v0  ;;  %v401_v47 = vmax.f32 %v369_v45, 0.0  ;;  %v2202_v19 = vsel %vm2200_vm3, %v2102_v18, 0 }
  0x1e   : > { %240 = vst.msk [vmem:[#allocation2 + $0x10] sm:$0x3] %vm239_vm2, %v4938_v0  ;;  %244 = vst.msk [vmem:[#allocation2 + $0x1a8] sm:$0x3] %vm239_vm2, %v4938_v0  ;;  %v5189_v20 = vand.u32 4294901760, %v2202_v19  ;;  %v2101_v21 = vld [vmem:[%s7018_s3 + $0x18] sm:$0xff] }
  0x1f   : > { %246 = vst.msk [vmem:[#allocation2] sm:$0x1] %vm245_vm1, %v4938_v0  ;;  %263 = vst.msk [vmem:[#allocation2 + $0x198] sm:$0x1] %vm245_vm1, %v4938_v0  ;;  %v5200_v23 = vand.u32 4294901760, %v2101_v21  ;;  %v2100_v24 = vld [vmem:[%s7018_s3 + $0x10] sm:$0xff] }
  0x20   : > { %264 = vst.msk [vmem:[#allocation2 + $0x11] sm:$0x1] %vm245_vm1, %v4938_v0  ;;  %281 = vst.msk [vmem:[#allocation2 + $0x1a9] sm:$0x1] %vm245_vm1, %v4938_v0  ;;  %v292_v0 = vld [vmem:[%s5044_s25 + $0x50] sm:$0xff]  ;;  %v5198_v22 = vsub.f32 %v2202_v19, %v5189_v20  ;;  %4563 = vmatprep.subr.mxu0 %v5189_v20  ;;  %v294_v25 = vld [vmem:[%s5044_s25 + $0x60] sm:$0xff] }
  0x21   : > { %490 = vst.msk [vmem:[#allocation3 + $0x8] sm:$0xff] %vm236_vm0, %v458_v27  ;;  %427 = vst.msk [vmem:[#allocation2 + $0x31] sm:$0xff] %vm236_vm0, %v394_v28  ;;  %v331_v5 = vmul.f32 %v5037_v1, %v292_v0  ;;  %v5211_v27 = vsub.f32 %v2101_v21, %v5200_v23  ;;  %v5213_v28 = vand.u32 4294901760, %v2100_v24  ;;  %4564 = vmatpush3.msra.mxu0 %v5189_v20  ;;  %s4945_s17 = smov 28   ;;  %v2098_v35 = vld [vmem:[%s7018_s3] sm:$0xff]  ;;  %s4946_s23 = smov 32  }
  0x22   : > { %425 = vst.msk [vmem:[#allocation2 + $0x19] sm:$0xff] %vm236_vm0, %v392_v29  ;;  %429 = vst.msk [vmem:[#allocation2 + $0x49] sm:$0xff] %vm236_vm0, %v396_v30  ;;  %v333_v29 = vmul.f32 %v5037_v1, %v294_v25  ;;  %v2099_v30 = vld [vmem:[%s7018_s3 + $0x8] sm:$0xff]  ;;  %4565 = vmatprep.subr.mxu0 %v5200_v23  ;;  %vm681_vm4 = vcmask 64544   ;;  %vm874_vm5 = vcmask 97344   ;;  %v298_v25 = vld [vmem:[%s5044_s25 + $0x80] sm:$0xff] }
  0x23   : > { %426 = vst.msk [vmem:[#allocation2 + $0x21] sm:$0xff] %vm236_vm0, %v393_v37  ;;  %431 = vst.msk [vmem:[#allocation2 + $0x61] sm:$0xff] %vm236_vm0, %v398_v40  ;;  %v370_v8 = vadd.f32 %v5049_v2, %v331_v5  ;;  %v5228_v32 = vand.u32 4294901760, %v5211_v27  ;;  %v5231_v33 = vsub.f32 %v2100_v24, %v5213_v28  ;;  %v5233_v34 = vand.u32 4294901760, %v2099_v30  ;;  %4566 = vmatpush3.msra.mxu0 %v5200_v23  ;;  %v295_v37 = vld [vmem:[%s5044_s25 + $0x68] sm:$0xff] }
  0x24   : > { %428 = vst.msk [vmem:[#allocation2 + $0x39] sm:$0xff] %vm236_vm0, %v395_v41  ;;  %433 = vst.msk [vmem:[#allocation2 + $0x79] sm:$0xff] %vm236_vm0, %v400_v42  ;;  %v372_v36 = vadd.f32 %v5049_v2, %v333_v29  ;;  %4567 = vmatprep.subr.mxu0 %v5213_v28  ;;  %v5250_v42 = vand.u32 4294901760, %v2098_v35  ;;  %v334_v44 = vmul.f32 %v5037_v1, %v295_v37  ;;  %vm1067_vm6 = vcmask 130144  }
  0x25   : > { %v522_v11 = vld [vmem:[#allocation2 + $0x9] sm:$0xff]  ;;  %430 = vst.msk [vmem:[#allocation2 + $0x51] sm:$0xff] %vm236_vm0, %v397_v43  ;;  %432 = vst.msk [vmem:[#allocation2 + $0x69] sm:$0xff] %vm236_vm0, %v399_v46  ;;  %v402_v12 = vmax.f32 %v370_v8, 0.0  ;;  %v2627_v39 = vsub.f32 %v5211_v27, %v5228_v32  ;;  %v5244_v40 = vand.u32 4294901760, %v5231_v33  ;;  %v5248_v41 = vsub.f32 %v2099_v30, %v5233_v34  ;;  %4568 = vmatpush3.msra.mxu0 %v5213_v28 }
  0x26   : > { %v457_v26 = vld [vmem:[#allocation2] sm:$0xff]  ;;  %587 = vrot.lane.b32.xlu0 %v522_v11, %s4939_s28  ;;  %434 = vst.msk [vmem:[#allocation2 + $0x81] sm:$0xff] %vm236_vm0, %v401_v47  ;;  %436 = vst.msk [vmem:[#allocation2 + $0x99] sm:$0xff] %vm236_vm0, %v403_v13  ;;  %v404_v43 = vmax.f32 %v372_v36, 0.0  ;;  %4569 = vmatprep.subr.mxu0 %v5233_v34  ;;  %v297_v13 = vld [vmem:[%s5044_s25 + $0x78] sm:$0xff]  ;;  %v337_v29 = vmul.f32 %v5037_v1, %v298_v25  ;;  %vm1260_vm7 = vcmask 162944  }
  0x27   : > { %489 = vst.msk [vmem:[#allocation3] sm:$0xff] %vm236_vm0, %v457_v26  ;;  %v715_v10 = vld [vmem:[#allocation2 + $0xa] sm:$0xff]  ;;  %435 = vst.msk [vmem:[#allocation2 + $0x91] sm:$0xff] %vm236_vm0, %v402_v12  ;;  %v5208_v26 = vand.u32 4294901760, %v5198_v22  ;;  %v2628_v45 = vand.u32 4294901760, %v2627_v39  ;;  %v2634_v46 = vsub.f32 %v5231_v33, %v5244_v40  ;;  %4570 = vmatpush3.msra.mxu0 %v5233_v34  ;;  %vm1453_vm8 = vcmask 195744  }
  0x28   : > { %v5096_v48 = vld [vmem:[#allocation2 + $0x31] sm:$0xff]  ;;  %437 = vst.msk [vmem:[#allocation2 + $0xa9] sm:$0xff] %vm236_vm0, %v404_v43  ;;  %4571 = vmatprep.subr.mxu0 %v5250_v42  ;;  %vm1647_vm9 = vcmask 228544   ;;  %vm1840_vm10 = vcmask 261344   ;;  %vm2033_vm11 = vcmask 294144   ;;  %vm2103_vm12 = vcmask 293888  }
  0x29   : > { %v523_v49 = vld [vmem:[#allocation2 + $0x19] sm:$0xff]  ;;  %v5101_v51 = vld [vmem:[#allocation2 + $0x30] sm:$0xff]  ;;  %v5103_v52 = vld [vmem:[#allocation2 + $0x48] sm:$0xff]  ;;  %v2620_v31 = vsub.f32 %v5198_v22, %v5208_v26  ;;  %4572 = vmatpush3.msra.mxu0 %v5250_v42 }
  0x2a   : > { %593 = vrot.lane.b32.xlu0 %v5096_v48, %s4939_s28  ;;  %589 = vrot.lane.b32.xlu1 %v523_v49, %s4939_s28  ;;  %v907_v50 = vld [vmem:[#allocation2 + $0x18] sm:$0xff]  ;;  %v5105_v53 = vld [vmem:[#allocation2 + $0x49] sm:$0xff]  ;;  %v524_v54 = vld [vmem:[#allocation2 + $0x21] sm:$0xff]  ;;  %493 = vst.msk [vmem:[#allocation3 + $0x20] sm:$0xff] %vm236_vm0, %v5101_v51 }
  0x2b   : > { %v908_v55 = vld [vmem:[#allocation2 + $0x20] sm:$0xff]  ;;  %491 = vst.msk [vmem:[#allocation3 + $0x10] sm:$0xff] %vm236_vm0, %v907_v50  ;;  %495 = vst.msk [vmem:[#allocation3 + $0x30] sm:$0xff] %vm236_vm0, %v5103_v52  ;;  %v5113_v56 = vld [vmem:[#allocation2 + $0x38] sm:$0xff]  ;;  %v2621_v38 = vand.u32 4294901760, %v2620_v31  ;;  %4679 = vmatprep.subr.mxu0 %v5198_v22 }
  0x2c   : > { %492 = vst.msk [vmem:[#allocation3 + $0x18] sm:$0xff] %vm236_vm0, %v908_v55  ;;  %v5118_v57 = vld [vmem:[#allocation2 + $0x50] sm:$0xff]  ;;  %494 = vst.msk [vmem:[#allocation3 + $0x28] sm:$0xff] %vm236_vm0, %v5113_v56  ;;  %v5122_v58 = vld [vmem:[#allocation2 + $0x61] sm:$0xff] }
  0x2d   : > { %v5124_v59 = vld [vmem:[#allocation2 + $0x39] sm:$0xff]  ;;  %496 = vst.msk [vmem:[#allocation3 + $0x38] sm:$0xff] %vm236_vm0, %v5118_v57  ;;  %v5130_v61 = vld [vmem:[#allocation2 + $0x68] sm:$0xff]  ;;  %v5151_v4 = vld [vmem:[#allocation2 + $0x51] sm:$0xff]  ;;  %4621 = vmatprep.subr.mxu1 %v2621_v38 }
  0x2e   : > { %597 = vrot.lane.b32.xlu0 %v5105_v53, %s4939_s28  ;;  %591 = vrot.lane.b32.xlu1 %v524_v54, %s4939_s28  ;;  %v5128_v60 = vld [vmem:[#allocation2 + $0x60] sm:$0xff]  ;;  %v5132_v62 = vld [vmem:[#allocation2 + $0x78] sm:$0xff]  ;;  %498 = vst.msk [vmem:[#allocation3 + $0x48] sm:$0xff] %vm236_vm0, %v5130_v61  ;;  %v5162_v11 = vld [vmem:[#allocation2 + $0x69] sm:$0xff] }
  0x2f   : > { %497 = vst.msk [vmem:[#allocation3 + $0x40] sm:$0xff] %vm236_vm0, %v5128_v60  ;;  %v5136_v63 = vld [vmem:[#allocation2 + $0x80] sm:$0xff]  ;;  %499 = vst.msk [vmem:[#allocation3 + $0x50] sm:$0xff] %vm236_vm0, %v5132_v62  ;;  %v5171_v14 = vld [vmem:[#allocation2 + $0x90] sm:$0xff]  ;;  %4622 = vmatpush3.msra.mxu1 %v2621_v38 }
  0x30   : > { %500 = vst.msk [vmem:[#allocation3 + $0x58] sm:$0xff] %vm236_vm0, %v5136_v63  ;;  %v5149_v3 = vld [vmem:[#allocation2 + $0x79] sm:$0xff]  ;;  %501 = vst.msk [vmem:[#allocation3 + $0x60] sm:$0xff] %vm236_vm0, %v5171_v14  ;;  %v1294_v17 = vld [vmem:[#allocation2 + $0x22] sm:$0xff]  ;;  %4623 = vmatprep.subr.mxu1 %v2628_v45 }
  0x31   : > { %v5173_v15 = vld [vmem:[#allocation2 + $0x98] sm:$0xff]  ;;  %4624 = vmatpush3.msra.mxu1 %v2628_v45  ;;  %v5287_v7 = vld [vmem:[#allocation2 + $0xa8] sm:$0xff] }
  0x32   : > { %601 = vrot.lane.b32.xlu0 %v5122_v58, %s4939_s28  ;;  %595 = vrot.lane.b32.xlu1 %v5124_v59, %s4939_s28  ;;  %502 = vst.msk [vmem:[#allocation3 + $0x68] sm:$0xff] %vm236_vm0, %v5173_v15  ;;  %v716_v16 = vld [vmem:[#allocation2 + $0x1a] sm:$0xff]  ;;  %v1873_v47 = vld [vmem:[#allocation2 + $0x32] sm:$0xff]  ;;  %503 = vst.msk [vmem:[#allocation3 + $0x70] sm:$0xff] %vm236_vm0, %v5287_v7 }
  0x33   : > { %v1874_v8 = vld [vmem:[#allocation2 + $0x3a] sm:$0xff]  ;;  %v1878_v37 = vld [vmem:[#allocation2 + $0x6a] sm:$0xff] }
  0x36   : > { %605 = vrot.lane.b32.xlu0 %v5149_v3, %s4939_s28  ;;  %599 = vrot.lane.b32.xlu1 %v5151_v4, %s4939_s28 }
  0x3a   : > { %780 = vrot.lane.b32.xlu0 %v715_v10, %s4940_s29  ;;  %603 = vrot.lane.b32.xlu1 %v5162_v11, %s4939_s28 }
  0x3e   : > { %973 = vrot.lane.b32.xlu0 %v908_v55, %s4941_s30  ;;  %971 = vrot.lane.b32.xlu1 %v907_v50, %s4941_s30  ;;  %v5264_v50 = vsub.f32 %v2098_v35, %v5250_v42 }
  0x40   : > { %v5273_v55 = vand.u32 4294901760, %v5264_v50 }
  0x42   : > { %1166 = vrot.lane.b32.xlu0 %v524_v54, %s4942_s6  ;;  %1164 = vrot.lane.b32.xlu1 %v523_v49, %s4942_s6  ;;  %v5261_v49 = vand.u32 4294901760, %v5248_v41  ;;  %v2648_v5 = vsub.f32 %v5264_v50, %v5273_v55 }
  0x44   : > { %v2641_v54 = vsub.f32 %v5248_v41, %v5261_v49  ;;  %v2649_v6 = vand.u32 4294901760, %v2648_v5 }
  0x46   : > { %782 = vrot.lane.b32.xlu0 %v716_v16, %s4940_s29  ;;  %1357 = vrot.lane.b32.xlu1 %v716_v16, %s4943_s7  ;;  %v2642_v0 = vand.u32 4294901760, %v2641_v54  ;;  %v1879_v54 = vld [vmem:[#allocation2 + $0x7a] sm:$0xff] }
  0x4a   : > { %1551 = vrot.lane.b32.xlu0 %v5101_v51, %s4944_s8  ;;  %1359 = vrot.lane.b32.xlu1 %v1294_v17, %s4943_s7 }
  0x4e   : > { %975 = vrot.lane.b32.xlu0 %v5101_v51, %s4941_s30  ;;  %784 = vrot.lane.b32.xlu1 %v1294_v17, %s4940_s29  ;;  %v373_v51 = vadd.f32 %v5049_v2, %v334_v44  ;;  %v336_v17 = vmul.f32 %v5037_v1, %v297_v13 }
  0x50   : > { %v375_v18 = vadd.f32 %v5049_v2, %v336_v17 }
  0x52   : > { %1744 = vrot.lane.b32.xlu0 %v5096_v48, %s4945_s17  ;;  %1553 = vrot.lane.b32.xlu1 %v5113_v56, %s4944_s8 }
  0x56   : > { %1168 = vrot.lane.b32.xlu0 %v5096_v48, %s4942_s6  ;;  %977 = vrot.lane.b32.xlu1 %v5113_v56, %s4941_s30  ;;  %v2635_v48 = vand.u32 4294901760, %v2634_v46  ;;  %v405_v56 = vmax.f32 %v373_v51, 0.0 }
  0x58   : > { %438 = vst.msk [vmem:[#allocation2 + $0xb1] sm:$0xff] %vm236_vm0, %v405_v56  ;;  %4625 = vmatprep.subr.mxu1 %v2635_v48  ;;  %v1687_v56 = vld [vmem:[#allocation2 + $0x81] sm:$0xff] }
  0x59   : > { %4626 = vmatpush3.msra.mxu1 %v2635_v48 }
  0x5a   : > { %1937 = vrot.lane.b32.xlu0 %v1873_v47, %s4946_s23  ;;  %1746 = vrot.lane.b32.xlu1 %v5124_v59, %s4945_s17 }
  0x5b   : > { %4627 = vmatprep.subr.mxu1 %v2642_v0 }
  0x5c   : > { %4628 = vmatpush3.msra.mxu1 %v2642_v0 }
  0x5d   : > { %4629 = vmatprep.subr.mxu1 %v2649_v6 }
  0x5e   : > { %1361 = vrot.lane.b32.xlu0 %v1873_v47, %s4943_s7  ;;  %1170 = vrot.lane.b32.xlu1 %v5124_v59, %s4942_s6  ;;  %v296_v59 = vld [vmem:[%s5044_s25 + $0x70] sm:$0xff] }
  0x5f   : > { %v5293_v9 = vld [vmem:[#allocation2 + $0xb0] sm:$0xff]  ;;  %4630 = vmatpush3.msra.mxu1 %v2649_v6  ;;  %v335_v10 = vmul.f32 %v5037_v1, %v296_v59 }
  0x60   : > { %504 = vst.msk [vmem:[#allocation3 + $0x78] sm:$0xff] %vm236_vm0, %v5293_v9  ;;  %4737 = vmatprep.subr.mxu1 %v5189_v20  ;;  %v300_v6 = vld [vmem:[%s5044_s25 + $0x90] sm:$0xff] }
  0x61   : > { %v374_v12 = vadd.f32 %v5049_v2, %v335_v10  ;;  %v339_v59 = vmul.f32 %v5037_v1, %v300_v6  ;;  %v1880_v10 = vld [vmem:[#allocation2 + $0x82] sm:$0xff] }
  0x62   : > { %786 = vrot.lane.b32.xlu0 %v1873_v47, %s4940_s29  ;;  %1939 = vrot.lane.b32.xlu1 %v1874_v8, %s4946_s23 }
  0x63   : > { %v406_v16 = vmax.f32 %v374_v12, 0.0  ;;  %v301_v12 = vld [vmem:[%s5044_s25 + $0x98] sm:$0xff] }
  0x64   : > { %v340_v17 = vmul.f32 %v5037_v1, %v301_v12 }
  0x65   : > { %439 = vst.msk [vmem:[#allocation2 + $0xc1] sm:$0xff] %vm236_vm0, %v406_v16 }
  0x66   : > { %1555 = vrot.lane.b32.xlu0 %v5103_v52, %s4944_s8  ;;  %1363 = vrot.lane.b32.xlu1 %v1874_v8, %s4943_s7 }
  0x6a   : > { %979 = vrot.lane.b32.xlu0 %v5103_v52, %s4941_s30  ;;  %788 = vrot.lane.b32.xlu1 %v1874_v8, %s4940_s29  ;;  %v1875_v52 = vld [vmem:[#allocation2 + $0x4a] sm:$0xff] }
  0x6c   : > { %v5326_v19 = vld [vmem:[#allocation2 + $0xc0] sm:$0xff] }
  0x6d   : > { %505 = vst.msk [vmem:[#allocation3 + $0x80] sm:$0xff] %vm236_vm0, %v5326_v19 }
  0x6e   : > { %1748 = vrot.lane.b32.xlu0 %v5105_v53, %s4945_s17  ;;  %1557 = vrot.lane.b32.xlu1 %v5118_v57, %s4944_s8 }
  0x72   : > { %1172 = vrot.lane.b32.xlu0 %v5105_v53, %s4942_s6  ;;  %981 = vrot.lane.b32.xlu1 %v5118_v57, %s4941_s30  ;;  %v407_v53 = vmax.f32 %v375_v18, 0.0  ;;  %v1876_v57 = vld [vmem:[#allocation2 + $0x52] sm:$0xff]  ;;  %v379_v18 = vadd.f32 %v5049_v2, %v340_v17 }
  0x74   : > { %440 = vst.msk [vmem:[#allocation2 + $0xc9] sm:$0xff] %vm236_vm0, %v407_v53 }
  0x76   : > { %1941 = vrot.lane.b32.xlu0 %v1875_v52, %s4946_s23  ;;  %1750 = vrot.lane.b32.xlu1 %v5151_v4, %s4945_s17 }
  0x7a   : > { %1365 = vrot.lane.b32.xlu0 %v1875_v52, %s4943_s7  ;;  %1174 = vrot.lane.b32.xlu1 %v5151_v4, %s4942_s6  ;;  %v1877_v4 = vld [vmem:[#allocation2 + $0x62] sm:$0xff] }
  0x7b   : > { %v5332_v21 = vld [vmem:[#allocation2 + $0xc8] sm:$0xff] }
  0x7c   : > { %506 = vst.msk [vmem:[#allocation3 + $0x88] sm:$0xff] %vm236_vm0, %v5332_v21 }
  0x7e   : > { %790 = vrot.lane.b32.xlu0 %v1875_v52, %s4940_s29  ;;  %1943 = vrot.lane.b32.xlu1 %v1876_v57, %s4946_s23 }
  0x82   : > { %1559 = vrot.lane.b32.xlu0 %v5128_v60, %s4944_s8  ;;  %1367 = vrot.lane.b32.xlu1 %v1876_v57, %s4943_s7 }
  0x86   : > { %983 = vrot.lane.b32.xlu0 %v5128_v60, %s4941_s30  ;;  %792 = vrot.lane.b32.xlu1 %v1876_v57, %s4940_s29  ;;  %v586_v24 = vpop.permute.xlu0 %585 }
  0x87   : > { %v779_v60 = vpop.permute.xlu1 %778  ;;  %682 = vst.msk [vmem:[#allocation3] sm:$0xff] %vm681_vm4, %v586_v24 }
  0x88   : > { %875 = vst.msk [vmem:[#allocation3] sm:$0xff] %vm874_vm5, %v779_v60 }
  0x8a   : > { %1752 = vrot.lane.b32.xlu0 %v5122_v58, %s4945_s17  ;;  %1561 = vrot.lane.b32.xlu1 %v5130_v61, %s4944_s8 }
  0x8e   : > { %1176 = vrot.lane.b32.xlu0 %v5122_v58, %s4942_s6  ;;  %985 = vrot.lane.b32.xlu1 %v5130_v61, %s4941_s30  ;;  %v376_v58 = vadd.f32 %v5049_v2, %v337_v29  ;;  %v299_v61 = vld [vmem:[%s5044_s25 + $0x88] sm:$0xff] }
  0x8f   : > { %v338_v35 = vmul.f32 %v5037_v1, %v299_v61  ;;  %v1688_v61 = vld [vmem:[#allocation2 + $0x91] sm:$0xff] }
  0x90   : > { %v408_v31 = vmax.f32 %v376_v58, 0.0 }
  0x91   : > { %v377_v36 = vadd.f32 %v5049_v2, %v338_v35 }
  0x92   : > { %1945 = vrot.lane.b32.xlu0 %v1877_v4, %s4946_s23  ;;  %1754 = vrot.lane.b32.xlu1 %v5162_v11, %s4945_s17  ;;  %441 = vst.msk [vmem:[#allocation2 + $0xd9] sm:$0xff] %vm236_vm0, %v408_v31 }
  0x93   : > { %v409_v38 = vmax.f32 %v377_v36, 0.0  ;;  %v1689_v36 = vld [vmem:[#allocation2 + $0x99] sm:$0xff] }
  0x95   : > { %442 = vst.msk [vmem:[#allocation2 + $0xe1] sm:$0xff] %vm236_vm0, %v409_v38  ;;  %v1881_v38 = vld [vmem:[#allocation2 + $0x92] sm:$0xff] }
  0x96   : > { %1369 = vrot.lane.b32.xlu0 %v1877_v4, %s4943_s7  ;;  %1178 = vrot.lane.b32.xlu1 %v5162_v11, %s4942_s6 }
  0x98   : > { %v588_v30 = vpop.permute.xlu0 %587 }
  0x99   : > { %683 = vst.msk [vmem:[#allocation3 + $0x8] sm:$0xff] %vm681_vm4, %v588_v30  ;;  %v5371_v44 = vld [vmem:[#allocation2 + $0xd8] sm:$0xff] }
  0x9a   : > { %794 = vrot.lane.b32.xlu0 %v1877_v4, %s4940_s29  ;;  %1947 = vrot.lane.b32.xlu1 %v1878_v37, %s4946_s23  ;;  %507 = vst.msk [vmem:[#allocation3 + $0x90] sm:$0xff] %vm236_vm0, %v5371_v44  ;;  %v411_v4 = vmax.f32 %v379_v18, 0.0 }
  0x9c   : > { %v594_v39 = vpop.permute.xlu0 %593  ;;  %v590_v43 = vpop.permute.xlu1 %589  ;;  %v5380_v46 = vld [vmem:[#allocation2 + $0xe0] sm:$0xff]  ;;  %444 = vst.msk [vmem:[#allocation2 + $0xf9] sm:$0xff] %vm236_vm0, %v411_v4 }
  0x9d   : > { %686 = vst.msk [vmem:[#allocation3 + $0x20] sm:$0xff] %vm681_vm4, %v594_v39  ;;  %684 = vst.msk [vmem:[#allocation3 + $0x10] sm:$0xff] %vm681_vm4, %v590_v43 }
  0x9e   : > { %1563 = vrot.lane.b32.xlu0 %v5132_v62, %s4944_s8  ;;  %1371 = vrot.lane.b32.xlu1 %v1878_v37, %s4943_s7  ;;  %508 = vst.msk [vmem:[#allocation3 + $0x98] sm:$0xff] %vm236_vm0, %v5380_v46 }
  0xa0   : > { %v598_v11 = vpop.permute.xlu0 %597  ;;  %v592_v45 = vpop.permute.xlu1 %591 }
  0xa1   : > { %688 = vst.msk [vmem:[#allocation3 + $0x30] sm:$0xff] %vm681_vm4, %v598_v11  ;;  %685 = vst.msk [vmem:[#allocation3 + $0x18] sm:$0xff] %vm681_vm4, %v592_v45 }
  0xa2   : > { %987 = vrot.lane.b32.xlu0 %v5132_v62, %s4941_s30  ;;  %796 = vrot.lane.b32.xlu1 %v1878_v37, %s4940_s29 }
  0xa4   : > { %v602_v47 = vpop.permute.xlu0 %601  ;;  %v596_v51 = vpop.permute.xlu1 %595 }
  0xa5   : > { %690 = vst.msk [vmem:[#allocation3 + $0x40] sm:$0xff] %vm681_vm4, %v602_v47  ;;  %687 = vst.msk [vmem:[#allocation3 + $0x28] sm:$0xff] %vm681_vm4, %v596_v51 }
  0xa6   : > { %1756 = vrot.lane.b32.xlu0 %v5149_v3, %s4945_s17  ;;  %1565 = vrot.lane.b32.xlu1 %v5136_v63, %s4944_s8 }
  0xa8   : > { %v606_v48 = vpop.permute.xlu0 %605  ;;  %v600_v62 = vpop.permute.xlu1 %599 }
  0xa9   : > { %692 = vst.msk [vmem:[#allocation3 + $0x50] sm:$0xff] %vm681_vm4, %v606_v48  ;;  %689 = vst.msk [vmem:[#allocation3 + $0x38] sm:$0xff] %vm681_vm4, %v600_v62  ;;  %v1882_v48 = vld [vmem:[#allocation2 + $0x9a] sm:$0xff]  ;;  %v303_v62 = vld [vmem:[%s5044_s25 + $0xa8] sm:$0xff] }
  0xaa   : > { %1180 = vrot.lane.b32.xlu0 %v5149_v3, %s4942_s6  ;;  %989 = vrot.lane.b32.xlu1 %v5136_v63, %s4941_s30  ;;  %v378_v63 = vadd.f32 %v5049_v2, %v339_v59  ;;  %v342_v6 = vmul.f32 %v5037_v1, %v303_v62 }
  0xac   : > { %v781_v0 = vpop.permute.xlu0 %780  ;;  %v604_v5 = vpop.permute.xlu1 %603  ;;  %v410_v16 = vmax.f32 %v378_v63, 0.0  ;;  %v381_v59 = vadd.f32 %v5049_v2, %v342_v6 }
  0xad   : > { %876 = vst.msk [vmem:[#allocation3 + $0x8] sm:$0xff] %vm874_vm5, %v781_v0 }
  0xae   : > { %691 = vst.msk [vmem:[#allocation3 + $0x48] sm:$0xff] %vm681_vm4, %v604_v5  ;;  %1949 = vrot.lane.b32.xlu0 %v1879_v54, %s4946_s23  ;;  %1758 = vrot.lane.b32.xlu1 %v1687_v56, %s4945_s17 }
  0xaf   : > { %443 = vst.msk [vmem:[#allocation2 + $0xf1] sm:$0xff] %vm236_vm0, %v410_v16 }
  0xb0   : > { %v974_v8 = vpop.permute.xlu0 %973  ;;  %v972_v3 = vpop.permute.xlu1 %971 }
  0xb1   : > { %1069 = vst.msk [vmem:[#allocation3 + $0x8] sm:$0xff] %vm1067_vm6, %v974_v8  ;;  %1068 = vst.msk [vmem:[#allocation3] sm:$0xff] %vm1067_vm6, %v972_v3 }
  0xb2   : > { %1373 = vrot.lane.b32.xlu0 %v1879_v54, %s4943_s7  ;;  %1182 = vrot.lane.b32.xlu1 %v1687_v56, %s4942_s6 }
  0xb4   : > { %v1167_v52 = vpop.permute.xlu0 %1166  ;;  %v1165_v13 = vpop.permute.xlu1 %1164 }
  0xb5   : > { %1262 = vst.msk [vmem:[#allocation3 + $0x8] sm:$0xff] %vm1260_vm7, %v1167_v52  ;;  %1261 = vst.msk [vmem:[#allocation3] sm:$0xff] %vm1260_vm7, %v1165_v13  ;;  %v413_v52 = vmax.f32 %v381_v59, 0.0 }
  0xb6   : > { %607 = vrot.lane.b32.xlu0 %v1687_v56, %s4939_s28  ;;  %1951 = vrot.lane.b32.xlu1 %v1880_v10, %s4946_s23  ;;  %v5425_v25 = vld [vmem:[#allocation2 + $0xf0] sm:$0xff]  ;;  %v5434_v30 = vld [vmem:[#allocation2 + $0xf8] sm:$0xff] }
  0xb7   : > { %509 = vst.msk [vmem:[#allocation3 + $0xa0] sm:$0xff] %vm236_vm0, %v5425_v25  ;;  %510 = vst.msk [vmem:[#allocation3 + $0xa8] sm:$0xff] %vm236_vm0, %v5434_v30 }
  0xb8   : > { %v783_v53 = vpop.permute.xlu0 %782  ;;  %v1358_v57 = vpop.permute.xlu1 %1357  ;;  %446 = vst.msk [vmem:[#allocation2 + $0x111] sm:$0xff] %vm236_vm0, %v413_v52 }
  0xb9   : > { %877 = vst.msk [vmem:[#allocation3 + $0x10] sm:$0xff] %vm874_vm5, %v783_v53 }
  0xba   : > { %1454 = vst.msk [vmem:[#allocation3] sm:$0xff] %vm1453_vm8, %v1358_v57  ;;  %1375 = vrot.lane.b32.xlu0 %v1880_v10, %s4943_s7  ;;  %798 = vrot.lane.b32.xlu1 %v1879_v54, %s4940_s29 }
  0xbc   : > { %v1552_v24 = vpop.permute.xlu0 %1551  ;;  %v1360_v60 = vpop.permute.xlu1 %1359 }
  0xbd   : > { %1648 = vst.msk [vmem:[#allocation3] sm:$0xff] %vm1647_vm9, %v1552_v24 }
  0xbe   : > { %1455 = vst.msk [vmem:[#allocation3 + $0x8] sm:$0xff] %vm1453_vm8, %v1360_v60  ;;  %800 = vrot.lane.b32.xlu0 %v1880_v10, %s4940_s29  ;;  %1567 = vrot.lane.b32.xlu1 %v5171_v14, %s4944_s8 }
  0xc0   : > { %v976_v29 = vpop.permute.xlu0 %975  ;;  %v785_v58 = vpop.permute.xlu1 %784 }
  0xc1   : > { %1070 = vst.msk [vmem:[#allocation3 + $0x10] sm:$0xff] %vm1067_vm6, %v976_v29 }
  0xc2   : > { %878 = vst.msk [vmem:[#allocation3 + $0x18] sm:$0xff] %vm874_vm5, %v785_v58  ;;  %1569 = vrot.lane.b32.xlu0 %v5173_v15, %s4944_s8  ;;  %991 = vrot.lane.b32.xlu1 %v5171_v14, %s4941_s30 }
  0xc4   : > { %v1745_v31 = vpop.permute.xlu0 %1744  ;;  %v1554_v35 = vpop.permute.xlu1 %1553 }
  0xc5   : > { %1841 = vst.msk [vmem:[#allocation3] sm:$0xff] %vm1840_vm10, %v1745_v31 }
  0xc6   : > { %1649 = vst.msk [vmem:[#allocation3 + $0x8] sm:$0xff] %vm1647_vm9, %v1554_v35  ;;  %993 = vrot.lane.b32.xlu0 %v5173_v15, %s4941_s30  ;;  %1760 = vrot.lane.b32.xlu1 %v1688_v61, %s4945_s17  ;;  %v302_v15 = vld [vmem:[%s5044_s25 + $0xa0] sm:$0xff] }
  0xc7   : > { %v341_v47 = vmul.f32 %v5037_v1, %v302_v15 }
  0xc8   : > { %v1169_v37 = vpop.permute.xlu0 %1168  ;;  %v978_v14 = vpop.permute.xlu1 %977 }
  0xc9   : > { %1263 = vst.msk [vmem:[#allocation3 + $0x10] sm:$0xff] %vm1260_vm7, %v1169_v37  ;;  %v380_v51 = vadd.f32 %v5049_v2, %v341_v47 }
  0xca   : > { %1071 = vst.msk [vmem:[#allocation3 + $0x18] sm:$0xff] %vm1067_vm6, %v978_v14  ;;  %1762 = vrot.lane.b32.xlu0 %v1689_v36, %s4945_s17  ;;  %1184 = vrot.lane.b32.xlu1 %v1688_v61, %s4942_s6 }
  0xcb   : > { %v412_v5 = vmax.f32 %v380_v51, 0.0 }
  0xcc   : > { %v1938_v39 = vpop.permute.xlu0 %1937  ;;  %v1747_v43 = vpop.permute.xlu1 %1746 }
  0xcd   : > { %2034 = vst.msk [vmem:[#allocation3] sm:$0xff] %vm2033_vm11, %v1938_v39  ;;  %v1691_v39 = vld [vmem:[#allocation2 + $0xb1] sm:$0xff] }
  0xce   : > { %1842 = vst.msk [vmem:[#allocation3 + $0x8] sm:$0xff] %vm1840_vm10, %v1747_v43  ;;  %609 = vrot.lane.b32.xlu0 %v1688_v61, %s4939_s28  ;;  %1953 = vrot.lane.b32.xlu1 %v1881_v38, %s4946_s23 }
  0xcf   : > { %445 = vst.msk [vmem:[#allocation2 + $0x109] sm:$0xff] %vm236_vm0, %v412_v5 }
  0xd0   : > { %v1362_v11 = vpop.permute.xlu0 %1361  ;;  %v1171_v45 = vpop.permute.xlu1 %1170 }
  0xd1   : > { %1456 = vst.msk [vmem:[#allocation3 + $0x10] sm:$0xff] %vm1453_vm8, %v1362_v11 }
  0xd2   : > { %1264 = vst.msk [vmem:[#allocation3 + $0x18] sm:$0xff] %vm1260_vm7, %v1171_v45  ;;  %1377 = vrot.lane.b32.xlu0 %v1881_v38, %s4943_s7  ;;  %1186 = vrot.lane.b32.xlu1 %v1689_v36, %s4942_s6 }
  0xd4   : > { %v787_v54 = vpop.permute.xlu0 %786  ;;  %v1940_v56 = vpop.permute.xlu1 %1939  ;;  %v2066_v0 = vld [vmem:[#allocation3] sm:$0xff] }
  0xd5   : > { %879 = vst.msk [vmem:[#allocation3 + $0x20] sm:$0xff] %vm874_vm5, %v787_v54  ;;  %v2105_v8 = vsel %vm2103_vm12, %v2066_v0, 0  ;;  %v305_v0 = vld [vmem:[%s5044_s25 + $0xb8] sm:$0xff] }
  0xd6   : > { %2035 = vst.msk [vmem:[#allocation3 + $0x8] sm:$0xff] %vm2033_vm11, %v1940_v56  ;;  %611 = vrot.lane.b32.xlu0 %v1689_v36, %s4939_s28  ;;  %1955 = vrot.lane.b32.xlu1 %v1882_v48, %s4946_s23  ;;  %v5469_v3 = vand.u32 4294901760, %v2105_v8  ;;  %v5489_v4 = vld [vmem:[#allocation2 + $0x108] sm:$0xff]  ;;  %v5504_v31 = vld [vmem:[#allocation2 + $0x110] sm:$0xff]  ;;  %v344_v59 = vmul.f32 %v5037_v1, %v305_v0 }
  0xd7   : > { %511 = vst.msk [vmem:[#allocation3 + $0xb0] sm:$0xff] %vm236_vm0, %v5489_v4  ;;  %512 = vst.msk [vmem:[#allocation3 + $0xb8] sm:$0xff] %vm236_vm0, %v5504_v31  ;;  %v1690_v36 = vld [vmem:[#allocation2 + $0xa9] sm:$0xff]  ;;  %v1884_v56 = vld [vmem:[#allocation2 + $0xb2] sm:$0xff] }
  0xd8   : > { %v1556_v63 = vpop.permute.xlu0 %1555  ;;  %v1364_v10 = vpop.permute.xlu1 %1363  ;;  %4631 = vmatprep.mubr.f32.mxu1 %v5469_v3  ;;  %v5475_v12 = vsub.f32 %v2105_v8, %v5469_v3 }
  0xd9   : > { %1650 = vst.msk [vmem:[#allocation3 + $0x10] sm:$0xff] %vm1647_vm9, %v1556_v63 }
  0xda   : > { %1457 = vst.msk [vmem:[#allocation3 + $0x18] sm:$0xff] %vm1453_vm8, %v1364_v10  ;;  %1379 = vrot.lane.b32.xlu0 %v1882_v48, %s4943_s7  ;;  %802 = vrot.lane.b32.xlu1 %v1881_v38, %s4940_s29  ;;  %v7038_v13 = vand.u32 4294901760, %v5475_v12 }
  0xdc   : > { %v980_v16 = vpop.permute.xlu0 %979  ;;  %v789_v17 = vpop.permute.xlu1 %788  ;;  %v2277_v18 = vsub.f32 %v5475_v12, %v7038_v13 }
  0xdd   : > { %v2067_v53 = vld [vmem:[#allocation3 + $0x8] sm:$0xff]  ;;  %1072 = vst.msk [vmem:[#allocation3 + $0x20] sm:$0xff] %vm1067_vm6, %v980_v16 }
  0xde   : > { %880 = vst.msk [vmem:[#allocation3 + $0x28] sm:$0xff] %vm874_vm5, %v789_v17  ;;  %v2108_v57 = vsel %vm2103_vm12, %v2067_v53, 0  ;;  %804 = vrot.lane.b32.xlu0 %v1882_v48, %s4940_s29  ;;  %1571 = vrot.lane.b32.xlu1 %v5287_v7, %s4944_s8  ;;  %v2278_v24 = vand.u32 4294901760, %v2277_v18 }
  0xdf   : > { %v5494_v60 = vand.u32 4294901760, %v2108_v57 }
  0xe0   : > { %v1749_v29 = vpop.permute.xlu0 %1748  ;;  %4573 = vmatprep.mubr.f32.mxu0 %v2278_v24  ;;  %v1558_v58 = vpop.permute.xlu1 %1557 }
  0xe1   : > { %4632 = vmatmul.mubr.f32.vlgmr.msra.gmra.mxu1 %v5494_v60  ;;  %v5500_v61 = vsub.f32 %v2108_v57, %v5494_v60  ;;  %1843 = vst.msk [vmem:[#allocation3 + $0x10] sm:$0xff] %vm1840_vm10, %v1749_v29 }
  0xe2   : > { %1651 = vst.msk [vmem:[#allocation3 + $0x18] sm:$0xff] %vm1647_vm9, %v1558_v58  ;;  %4738 = vmatpush3.msra.mxu1 %v5189_v20  ;;  %1573 = vrot.lane.b32.xlu0 %v5293_v9, %s4944_s8 }
  0xe3   : > { %995 = vrot.lane.b32.xlu1 %v5287_v7, %s4941_s30  ;;  %v7037_v35 = vand.u32 4294901760, %v5500_v61  ;;  %4739 = vmatprep.subr.mxu1 %v5200_v23 }
  0xe4   : > { %v1173_v37 = vpop.permute.xlu0 %1172  ;;  %v982_v14 = vpop.permute.xlu1 %981  ;;  %4740 = vmatpush3.msra.mxu1 %v5200_v23 }
  0xe5   : > { %v2287_v38 = vsub.f32 %v5500_v61, %v7037_v35  ;;  %1265 = vst.msk [vmem:[#allocation3 + $0x20] sm:$0xff] %vm1260_vm7, %v1173_v37  ;;  %4741 = vmatprep.subr.mxu1 %v5213_v28 }
  0xe6   : > { %1073 = vst.msk [vmem:[#allocation3 + $0x28] sm:$0xff] %vm1067_vm6, %v982_v14  ;;  %997 = vrot.lane.b32.xlu0 %v5293_v9, %s4941_s30  ;;  %4742 = vmatpush3.msra.mxu1 %v5213_v28  ;;  %v1883_v9 = vld [vmem:[#allocation2 + $0xaa] sm:$0xff] }
  0xe7   : > { %1764 = vrot.lane.b32.xlu1 %v1690_v36, %s4945_s17  ;;  %v2288_v7 = vand.u32 4294901760, %v2287_v38  ;;  %4743 = vmatprep.subr.mxu1 %v5233_v34 }
  0xe8   : > { %v1942_v43 = vpop.permute.xlu0 %1941  ;;  %v1751_v15 = vpop.permute.xlu1 %1750  ;;  %4744 = vmatpush3.msra.mxu1 %v5233_v34 }
  0xe9   : > { %4574 = vmatmul.mubr.f32.vlgmr.msra.gmra.mxu0 %v2288_v7  ;;  %2036 = vst.msk [vmem:[#allocation3 + $0x10] sm:$0xff] %vm2033_vm11, %v1942_v43  ;;  %4745 = vmatprep.subr.mxu1 %v5250_v42 }
  0xea   : > { %1844 = vst.msk [vmem:[#allocation3 + $0x18] sm:$0xff] %vm1840_vm10, %v1751_v15  ;;  %4680 = vmatpush3.msra.mxu0 %v5198_v22  ;;  %1766 = vrot.lane.b32.xlu0 %v1691_v39, %s4945_s17  ;;  %v304_v22 = vld [vmem:[%s5044_s25 + $0xb0] sm:$0xff]  ;;  %v1692_v15 = vld [vmem:[#allocation2 + $0xc1] sm:$0xff] }
  0xeb   : > { %1188 = vrot.lane.b32.xlu1 %v1690_v36, %s4942_s6  ;;  %4681 = vmatprep.subr.mxu0 %v5211_v27  ;;  %v343_v48 = vmul.f32 %v5037_v1, %v304_v22  ;;  %v5574_v1 = vld [vmem:[%s7017_s2] ss:$0 sm:$0xff] }
  0xec   : > { %v1366_v11 = vpop.permute.xlu0 %1365  ;;  %v1175_v45 = vpop.permute.xlu1 %1174  ;;  %4682 = vmatpush3.msra.mxu0 %v5211_v27  ;;  %4746 = vmatpush3.msra.mxu1 %v5250_v42 }
  0xed   : > { %1458 = vst.msk [vmem:[#allocation3 + $0x20] sm:$0xff] %vm1453_vm8, %v1366_v11  ;;  %4683 = vmatprep.subr.mxu0 %v5231_v33  ;;  %4853 = vmatprep.subr.mxu1 %v5189_v20  ;;  %v382_v54 = vadd.f32 %v5049_v2, %v343_v48 }
  0xee   : > { %1266 = vst.msk [vmem:[#allocation3 + $0x28] sm:$0xff] %vm1260_vm7, %v1175_v45  ;;  %613 = vrot.lane.b32.xlu0 %v1690_v36, %s4939_s28  ;;  %4684 = vmatpush3.msra.mxu0 %v5231_v33  ;;  %v1693_v45 = vld [vmem:[#allocation2 + $0xc9] sm:$0xff] }
  0xef   : > { %1957 = vrot.lane.b32.xlu1 %v1883_v9, %s4946_s23  ;;  %4685 = vmatprep.subr.mxu0 %v5248_v41 }
  0xf0   : > { %v791_v47 = vpop.permute.xlu0 %790  ;;  %v1944_v27 = vpop.permute.xlu1 %1943  ;;  %v2068_v51 = vld [vmem:[#allocation3 + $0x10] sm:$0xff]  ;;  %4686 = vmatpush3.msra.mxu0 %v5248_v41  ;;  %v414_v41 = vmax.f32 %v382_v54, 0.0 }
  0xf1   : > { %881 = vst.msk [vmem:[#allocation3 + $0x30] sm:$0xff] %vm874_vm5, %v791_v47  ;;  %v2111_v62 = vsel %vm2103_vm12, %v2068_v51, 0  ;;  %4687 = vmatprep.subr.mxu0 %v5264_v50  ;;  %v1885_v47 = vld [vmem:[#allocation2 + $0xc2] sm:$0xff] }
  0xf2   : > { %2037 = vst.msk [vmem:[#allocation3 + $0x18] sm:$0xff] %vm2033_vm11, %v1944_v27  ;;  %1381 = vrot.lane.b32.xlu0 %v1883_v9, %s4943_s7  ;;  %v5553_v33 = vand.u32 4294901760, %v2111_v62  ;;  %4688 = vmatpush3.msra.mxu0 %v5264_v50  ;;  %v383_v50 = vadd.f32 %v5574_v1, %v344_v59  ;;  %v306_v54 = vld [vmem:[%s5044_s25 + $0xc0] sm:$0xff] }
  0xf3   : > { %1190 = vrot.lane.b32.xlu1 %v1691_v39, %s4942_s6  ;;  %4795 = vmatprep.subr.mxu0 %v5208_v26  ;;  %447 = vst.msk [vmem:[#allocation2 + $0x121] sm:$0xff] %vm236_vm0, %v414_v41 }
  0xf4   : > { %v1560_v5 = vpop.permute.xlu0 %1559  ;;  %v1368_v6 = vpop.permute.xlu1 %1367  ;;  %4634 = vmatprep.mubr.f32.mxu1 %v5553_v33  ;;  %v5560_v8 = vsub.f32 %v2111_v62, %v5553_v33  ;;  %v415_v17 = vmax.f32 %v383_v50, 0.0 }
  0xf5   : > { %1652 = vst.msk [vmem:[#allocation3 + $0x20] sm:$0xff] %vm1647_vm9, %v1560_v5 }
  0xf6   : > { %1459 = vst.msk [vmem:[#allocation3 + $0x28] sm:$0xff] %vm1453_vm8, %v1368_v6  ;;  %615 = vrot.lane.b32.xlu0 %v1691_v39, %s4939_s28  ;;  %v7034_v2 = vand.u32 4294901760, %v5560_v8  ;;  %v5639_v6 = vld [vmem:[%s7016_s1] ss:$0 sm:$0xff] }
  0xf7   : > { %1959 = vrot.lane.b32.xlu1 %v1884_v56, %s4946_s23  ;;  %448 = vst.msk [vmem:[#allocation2 + $0x129] sm:$0xff] %vm236_vm0, %v415_v17  ;;  %v345_v41 = vmul.f32 %v5639_v6, %v306_v54 }
  0xf8   : > { %v984_v63 = vpop.permute.xlu0 %983  ;;  %v793_v10 = vpop.permute.xlu1 %792  ;;  %v2297_v52 = vsub.f32 %v5560_v8, %v7034_v2 }
  0xf9   : > { %v2069_v16 = vld [vmem:[#allocation3 + $0x18] sm:$0xff]  ;;  %1074 = vst.msk [vmem:[#allocation3 + $0x30] sm:$0xff] %vm1067_vm6, %v984_v63  ;;  %v384_v50 = vadd.f32 %v5574_v1, %v345_v41 }
  0xfa   : > { %882 = vst.msk [vmem:[#allocation3 + $0x38] sm:$0xff] %vm874_vm5, %v793_v10  ;;  %v2114_v18 = vsel %vm2103_vm12, %v2069_v16, 0  ;;  %1383 = vrot.lane.b32.xlu0 %v1884_v56, %s4943_s7  ;;  %v2298_v53 = vand.u32 4294901760, %v2297_v52  ;;  %v5594_v36 = vld [vmem:[#allocation2 + $0x120] sm:$0xff]  ;;  %v1886_v63 = vld [vmem:[#allocation2 + $0xca] sm:$0xff] }
  0xfb   : > { %806 = vrot.lane.b32.xlu1 %v1883_v9, %s4940_s29  ;;  %v5585_v57 = vand.u32 4294901760, %v2114_v18  ;;  %513 = vst.msk [vmem:[#allocation3 + $0xc0] sm:$0xff] %vm236_vm0, %v5594_v36 }
  0xfc   : > { %v1753_v24 = vpop.permute.xlu0 %1752  ;;  %v1562_v29 = vpop.permute.xlu1 %1561  ;;  %4576 = vmatprep.mubr.f32.mxu0 %v2298_v53  ;;  %v307_v53 = vld [vmem:[%s5044_s25 + $0xc8] sm:$0xff] }
  0xfd   : > { %4635 = vmatmul.mubr.f32.gmra.mxu1 %v5585_v57  ;;  %v5590_v58 = vsub.f32 %v2114_v18, %v5585_v57  ;;  %1845 = vst.msk [vmem:[#allocation3 + $0x20] sm:$0xff] %vm1840_vm10, %v1753_v24  ;;  %v416_v18 = vmax.f32 %v384_v50, 0.0  ;;  %v1695_v50 = vld [vmem:[#allocation2 + $0xe1] sm:$0xff] }
  0xfe   : > { %1653 = vst.msk [vmem:[#allocation3 + $0x28] sm:$0xff] %vm1647_vm9, %v1562_v29  ;;  %808 = vrot.lane.b32.xlu0 %v1884_v56, %s4940_s29  ;;  %v5607_v39 = vld [vmem:[#allocation2 + $0x128] sm:$0xff]  ;;  %v346_v29 = vmul.f32 %v5639_v6, %v307_v53 }
  0xff   : > { %1575 = vrot.lane.b32.xlu1 %v5326_v19, %s4944_s8  ;;  %v7033_v37 = vand.u32 4294901760, %v5590_v58  ;;  %514 = vst.msk [vmem:[#allocation3 + $0xc8] sm:$0xff] %vm236_vm0, %v5607_v39  ;;  %449 = vst.msk [vmem:[#allocation2 + $0x139] sm:$0xff] %vm236_vm0, %v416_v18 }
 0x100   : > { %v1177_v14 = vpop.permute.xlu0 %1176  ;;  %v986_v38 = vpop.permute.xlu1 %985 }
 0x101   : > { %v2307_v7 = vsub.f32 %v5590_v58, %v7033_v37  ;;  %1267 = vst.msk [vmem:[#allocation3 + $0x30] sm:$0xff] %vm1260_vm7, %v1177_v14 }
 0x102   : > { %1075 = vst.msk [vmem:[#allocation3 + $0x38] sm:$0xff] %vm1067_vm6, %v986_v38  ;;  %1577 = vrot.lane.b32.xlu0 %v5332_v21, %s4944_s8 }
 0x103   : > { %999 = vrot.lane.b32.xlu1 %v5326_v19, %s4941_s30  ;;  %v2308_v43 = vand.u32 4294901760, %v2307_v7  ;;  %v385_v7 = vadd.f32 %v5574_v1, %v346_v29 }
 0x104   : > { %v1946_v9 = vpop.permute.xlu0 %1945  ;;  %v1755_v11 = vpop.permute.xlu1 %1754 }
 0x105   : > { %4577 = vmatmul.mubr.f32.gmra.mxu0 %v2308_v43  ;;  %2038 = vst.msk [vmem:[#allocation3 + $0x20] sm:$0xff] %vm2033_vm11, %v1946_v9 }
 0x106   : > { %1846 = vst.msk [vmem:[#allocation3 + $0x28] sm:$0xff] %vm1840_vm10, %v1755_v11  ;;  %1001 = vrot.lane.b32.xlu0 %v5332_v21, %s4941_s30  ;;  %v417_v11 = vmax.f32 %v385_v7, 0.0 }
 0x107   : > { %1768 = vrot.lane.b32.xlu1 %v1692_v15, %s4945_s17 }
 0x108   : > { %v1370_v22 = vpop.permute.xlu0 %1369  ;;  %v1179_v19 = vpop.permute.xlu1 %1178  ;;  %450 = vst.msk [vmem:[#allocation2 + $0x141] sm:$0xff] %vm236_vm0, %v417_v11 }
 0x109   : > { %1460 = vst.msk [vmem:[#allocation3 + $0x30] sm:$0xff] %vm1453_vm8, %v1370_v22 }
 0x10a   : > { %1268 = vst.msk [vmem:[#allocation3 + $0x38] sm:$0xff] %vm1260_vm7, %v1179_v19  ;;  %1770 = vrot.lane.b32.xlu0 %v1693_v45, %s4945_s17 }
 0x10b   : > { %1192 = vrot.lane.b32.xlu1 %v1692_v15, %s4942_s6 }
 0x10c   : > { %v795_v27 = vpop.permute.xlu0 %794  ;;  %v1948_v51 = vpop.permute.xlu1 %1947  ;;  %v2070_v48 = vld [vmem:[#allocation3 + $0x20] sm:$0xff] }
 0x10d   : > { %883 = vst.msk [vmem:[#allocation3 + $0x40] sm:$0xff] %vm874_vm5, %v795_v27  ;;  %v2117_v21 = vsel %vm2103_vm12, %v2070_v48, 0 }
 0x10e   : > { %2039 = vst.msk [vmem:[#allocation3 + $0x28] sm:$0xff] %vm2033_vm11, %v1948_v51  ;;  %617 = vrot.lane.b32.xlu0 %v1692_v15, %s4939_s28  ;;  %v5629_v62 = vand.u32 4294901760, %v2117_v21  ;;  %v5677_v51 = vld [vmem:[#allocation2 + $0x138] sm:$0xff] }
 0x10f   : > { %1961 = vrot.lane.b32.xlu1 %v1885_v47, %s4946_s23  ;;  %515 = vst.msk [vmem:[#allocation3 + $0xd0] sm:$0xff] %vm236_vm0, %v5677_v51  ;;  %v5690_v54 = vld [vmem:[#allocation2 + $0x140] sm:$0xff] }
 0x110   : > { %v1564_v56 = vpop.permute.xlu0 %1563  ;;  %v1372_v0 = vpop.permute.xlu1 %1371  ;;  %4637 = vmatprep.mubr.f32.mxu1 %v5629_v62  ;;  %v5634_v5 = vsub.f32 %v2117_v21, %v5629_v62  ;;  %516 = vst.msk [vmem:[#allocation3 + $0xd8] sm:$0xff] %vm236_vm0, %v5690_v54 }
 0x111   : > { %1654 = vst.msk [vmem:[#allocation3 + $0x30] sm:$0xff] %vm1647_vm9, %v1564_v56  ;;  %v1694_v56 = vld [vmem:[#allocation2 + $0xd9] sm:$0xff] }
 0x112   : > { %1461 = vst.msk [vmem:[#allocation3 + $0x38] sm:$0xff] %vm1453_vm8, %v1372_v0  ;;  %1385 = vrot.lane.b32.xlu0 %v1885_v47, %s4943_s7  ;;  %v7032_v59 = vand.u32 4294901760, %v5634_v5 }
 0x113   : > { %1194 = vrot.lane.b32.xlu1 %v1693_v45, %s4942_s6 }
 0x114   : > { %v988_v10 = vpop.permute.xlu0 %987  ;;  %v797_v52 = vpop.permute.xlu1 %796  ;;  %v2317_v16 = vsub.f32 %v5634_v5, %v7032_v59 }
 0x115   : > { %v2071_v17 = vld [vmem:[#allocation3 + $0x28] sm:$0xff]  ;;  %1076 = vst.msk [vmem:[#allocation3 + $0x40] sm:$0xff] %vm1067_vm6, %v988_v10 }
 0x116   : > { %884 = vst.msk [vmem:[#allocation3 + $0x48] sm:$0xff] %vm874_vm5, %v797_v52  ;;  %v2120_v24 = vsel %vm2103_vm12, %v2071_v17, 0  ;;  %619 = vrot.lane.b32.xlu0 %v1693_v45, %s4939_s28  ;;  %v2318_v14 = vand.u32 4294901760, %v2317_v16 }
 0x117   : > { %1963 = vrot.lane.b32.xlu1 %v1886_v63, %s4946_s23  ;;  %v5658_v38 = vand.u32 4294901760, %v2120_v24 }
 0x118   : > { %v1757_v43 = vpop.permute.xlu0 %1756  ;;  %v1566_v15 = vpop.permute.xlu1 %1565  ;;  %4579 = vmatprep.mubr.f32.mxu0 %v2318_v14 }
 0x119   : > { %4638 = vmatmul.mubr.f32.gmra.mxu1 %v5658_v38  ;;  %v5664_v9 = vsub.f32 %v2120_v24, %v5658_v38  ;;  %1847 = vst.msk [vmem:[#allocation3 + $0x30] sm:$0xff] %vm1840_vm10, %v1757_v43 }
 0x11a   : > { %1655 = vst.msk [vmem:[#allocation3 + $0x38] sm:$0xff] %vm1647_vm9, %v1566_v15  ;;  %1387 = vrot.lane.b32.xlu0 %v1886_v63, %s4943_s7  ;;  %v308_v15 = vld [vmem:[%s5044_s25 + $0xd0] sm:$0xff] }
 0x11b   : > { %810 = vrot.lane.b32.xlu1 %v1885_v47, %s4940_s29  ;;  %v7031_v45 = vand.u32 4294901760, %v5664_v9 }
 0x11c   : > { %v1181_v22 = vpop.permute.xlu0 %1180  ;;  %v990_v19 = vpop.permute.xlu1 %989 }
 0x11d   : > { %v2327_v27 = vsub.f32 %v5664_v9, %v7031_v45  ;;  %1269 = vst.msk [vmem:[#allocation3 + $0x40] sm:$0xff] %vm1260_vm7, %v1181_v22  ;;  %v347_v22 = vmul.f32 %v5639_v6, %v308_v15 }
 0x11e   : > { %1077 = vst.msk [vmem:[#allocation3 + $0x48] sm:$0xff] %vm1067_vm6, %v990_v19  ;;  %812 = vrot.lane.b32.xlu0 %v1886_v63, %s4940_s29 }
 0x11f   : > { %1579 = vrot.lane.b32.xlu1 %v5371_v44, %s4944_s8  ;;  %v2328_v47 = vand.u32 4294901760, %v2327_v27 }
 0x120   : > { %v1950_v48 = vpop.permute.xlu0 %1949  ;;  %v1759_v21 = vpop.permute.xlu1 %1758 }
 0x121   : > { %4580 = vmatmul.mubr.f32.gmra.mxu0 %v2328_v47  ;;  %2040 = vst.msk [vmem:[#allocation3 + $0x30] sm:$0xff] %vm2033_vm11, %v1950_v48  ;;  %v1888_v47 = vld [vmem:[#allocation2 + $0xe2] sm:$0xff]  ;;  %v386_v48 = vadd.f32 %v5574_v1, %v347_v22 }
 0x122   : > { %1848 = vst.msk [vmem:[#allocation3 + $0x38] sm:$0xff] %vm1840_vm10, %v1759_v21  ;;  %1581 = vrot.lane.b32.xlu0 %v5380_v46, %s4944_s8 }
 0x123   : > { %1003 = vrot.lane.b32.xlu1 %v5371_v44, %s4941_s30 }
 0x124   : > { %v1374_v0 = vpop.permute.xlu0 %1373  ;;  %v1183_v41 = vpop.permute.xlu1 %1182 }
 0x125   : > { %1462 = vst.msk [vmem:[#allocation3 + $0x40] sm:$0xff] %vm1453_vm8, %v1374_v0 }
 0x126   : > { %1270 = vst.msk [vmem:[#allocation3 + $0x48] sm:$0xff] %vm1260_vm7, %v1183_v41  ;;  %1005 = vrot.lane.b32.xlu0 %v5380_v46, %s4941_s30  ;;  %v1887_v46 = vld [vmem:[#allocation2 + $0xda] sm:$0xff] }
 0x127   : > { %1772 = vrot.lane.b32.xlu1 %v1694_v56, %s4945_s17  ;;  %v309_v41 = vld [vmem:[%s5044_s25 + $0xd8] sm:$0xff] }
 0x128   : > { %v608_v63 = vpop.permute.xlu0 %607  ;;  %v1952_v44 = vpop.permute.xlu1 %1951  ;;  %v2072_v10 = vld [vmem:[#allocation3 + $0x30] sm:$0xff] }
 0x129   : > { %693 = vst.msk [vmem:[#allocation3 + $0x58] sm:$0xff] %vm681_vm4, %v608_v63  ;;  %v2123_v52 = vsel %vm2103_vm12, %v2072_v10, 0  ;;  %v418_v63 = vmax.f32 %v386_v48, 0.0 }
 0x12a   : > { %2041 = vst.msk [vmem:[#allocation3 + $0x38] sm:$0xff] %vm2033_vm11, %v1952_v44  ;;  %1774 = vrot.lane.b32.xlu0 %v1695_v50, %s4945_s17  ;;  %v5704_v16 = vand.u32 4294901760, %v2123_v52  ;;  %v348_v44 = vmul.f32 %v5639_v6, %v309_v41 }
 0x12b   : > { %1196 = vrot.lane.b32.xlu1 %v1694_v56, %s4942_s6  ;;  %451 = vst.msk [vmem:[#allocation2 + $0x151] sm:$0xff] %vm236_vm0, %v418_v63 }
 0x12c   : > { %v1376_v17 = vpop.permute.xlu0 %1375  ;;  %v799_v18 = vpop.permute.xlu1 %798  ;;  %4640 = vmatprep.mubr.f32.mxu1 %v5704_v16  ;;  %v5708_v53 = vsub.f32 %v2123_v52, %v5704_v16  ;;  %v387_v52 = vadd.f32 %v5574_v1, %v348_v44 }
 0x12d   : > { %1463 = vst.msk [vmem:[#allocation3 + $0x48] sm:$0xff] %vm1453_vm8, %v1376_v17 }
 0x12e   : > { %885 = vst.msk [vmem:[#allocation3 + $0x50] sm:$0xff] %vm874_vm5, %v799_v18  ;;  %621 = vrot.lane.b32.xlu0 %v1694_v56, %s4939_s28  ;;  %v7028_v24 = vand.u32 4294901760, %v5708_v53 }
 0x12f   : > { %1965 = vrot.lane.b32.xlu1 %v1887_v46, %s4946_s23 }
 0x130   : > { %v801_v29 = vpop.permute.xlu0 %800  ;;  %v1568_v14 = vpop.permute.xlu1 %1567  ;;  %v2337_v7 = vsub.f32 %v5708_v53, %v7028_v24 }
 0x131   : > { %v2073_v43 = vld [vmem:[#allocation3 + $0x38] sm:$0xff]  ;;  %886 = vst.msk [vmem:[#allocation3 + $0x58] sm:$0xff] %vm874_vm5, %v801_v29 }
 0x132   : > { %1656 = vst.msk [vmem:[#allocation3 + $0x40] sm:$0xff] %vm1647_vm9, %v1568_v14  ;;  %v2126_v11 = vsel %vm2103_vm12, %v2073_v43, 0  ;;  %1389 = vrot.lane.b32.xlu0 %v1887_v46, %s4943_s7  ;;  %v2338_v19 = vand.u32 4294901760, %v2337_v7  ;;  %v419_v14 = vmax.f32 %v387_v52, 0.0  ;;  %v5754_v15 = vld [vmem:[#allocation2 + $0x150] sm:$0xff] }
 0x133   : > { %1198 = vrot.lane.b32.xlu1 %v1695_v50, %s4942_s6  ;;  %v5725_v27 = vand.u32 4294901760, %v2126_v11  ;;  %517 = vst.msk [vmem:[#allocation3 + $0xe0] sm:$0xff] %vm236_vm0, %v5754_v15 }
 0x134   : > { %v1570_v21 = vpop.permute.xlu0 %1569  ;;  %v992_v56 = vpop.permute.xlu1 %991  ;;  %4582 = vmatprep.mubr.f32.mxu0 %v2338_v19  ;;  %452 = vst.msk [vmem:[#allocation2 + $0x159] sm:$0xff] %vm236_vm0, %v419_v14  ;;  %v1696_v19 = vld [vmem:[#allocation2 + $0xf1] sm:$0xff] }
 0x135   : > { %4641 = vmatmul.mubr.f32.gmra.mxu1 %v5725_v27  ;;  %v5730_v0 = vsub.f32 %v2126_v11, %v5725_v27  ;;  %1657 = vst.msk [vmem:[#allocation3 + $0x48] sm:$0xff] %vm1647_vm9, %v1570_v21  ;;  %v1697_v21 = vld [vmem:[#allocation2 + $0xf9] sm:$0xff] }
 0x136   : > { %1078 = vst.msk [vmem:[#allocation3 + $0x50] sm:$0xff] %vm1067_vm6, %v992_v56  ;;  %623 = vrot.lane.b32.xlu0 %v1695_v50, %s4939_s28 }
 0x137   : > { %1967 = vrot.lane.b32.xlu1 %v1888_v47, %s4946_s23  ;;  %v7024_v10 = vand.u32 4294901760, %v5730_v0 }
 0x138   : > { %v994_v17 = vpop.permute.xlu0 %993  ;;  %v1761_v18 = vpop.permute.xlu1 %1760 }
 0x139   : > { %v2347_v29 = vsub.f32 %v5730_v0, %v7024_v10  ;;  %1079 = vst.msk [vmem:[#allocation3 + $0x58] sm:$0xff] %vm1067_vm6, %v994_v17 }
 0x13a   : > { %1849 = vst.msk [vmem:[#allocation3 + $0x40] sm:$0xff] %vm1840_vm10, %v1761_v18  ;;  %1391 = vrot.lane.b32.xlu0 %v1888_v47, %s4943_s7 }
 0x13b   : > { %814 = vrot.lane.b32.xlu1 %v1887_v46, %s4940_s29  ;;  %v2348_v50 = vand.u32 4294901760, %v2347_v29  ;;  %v5764_v22 = vld [vmem:[#allocation2 + $0x158] sm:$0xff] }
 0x13c   : > { %v1763_v7 = vpop.permute.xlu0 %1762  ;;  %v1185_v43 = vpop.permute.xlu1 %1184  ;;  %518 = vst.msk [vmem:[#allocation3 + $0xe8] sm:$0xff] %vm236_vm0, %v5764_v22  ;;  %v1898_v37 = vld [vmem:[#allocation2 + $0x15a] sm:$0xff] }
 0x13d   : > { %4583 = vmatmul.mubr.f32.gmra.mxu0 %v2348_v50  ;;  %1850 = vst.msk [vmem:[#allocation3 + $0x48] sm:$0xff] %vm1840_vm10, %v1763_v7 }
 0x13e   : > { %1271 = vst.msk [vmem:[#allocation3 + $0x50] sm:$0xff] %vm1260_vm7, %v1185_v43  ;;  %816 = vrot.lane.b32.xlu0 %v1888_v47, %s4940_s29 }
 0x13f   : > { %1583 = vrot.lane.b32.xlu1 %v5425_v25, %s4944_s8 }
 0x140   : > { %v610_v46 = vpop.permute.xlu0 %609  ;;  %v1954_v11 = vpop.permute.xlu1 %1953 }
 0x141   : > { %694 = vst.msk [vmem:[#allocation3 + $0x60] sm:$0xff] %vm681_vm4, %v610_v46  ;;  %v310_v46 = vld [vmem:[%s5044_s25 + $0xe0] sm:$0xff] }
 0x142   : > { %2042 = vst.msk [vmem:[#allocation3 + $0x40] sm:$0xff] %vm2033_vm11, %v1954_v11  ;;  %1585 = vrot.lane.b32.xlu0 %v5434_v30, %s4944_s8 }
 0x143   : > { %1007 = vrot.lane.b32.xlu1 %v5425_v25, %s4941_s30 }
 0x144   : > { %v1378_v47 = vpop.permute.xlu0 %1377  ;;  %v1187_v48 = vpop.permute.xlu1 %1186 }
 0x145   : > { %1464 = vst.msk [vmem:[#allocation3 + $0x50] sm:$0xff] %vm1453_vm8, %v1378_v47 }
 0x146   : > { %1272 = vst.msk [vmem:[#allocation3 + $0x58] sm:$0xff] %vm1260_vm7, %v1187_v48  ;;  %1009 = vrot.lane.b32.xlu0 %v5434_v30, %s4941_s30  ;;  %v1889_v30 = vld [vmem:[#allocation2 + $0xf2] sm:$0xff] }
 0x147   : > { %1776 = vrot.lane.b32.xlu1 %v1696_v19, %s4945_s17 }
 0x148   : > { %v612_v56 = vpop.permute.xlu0 %611  ;;  %v1956_v25 = vpop.permute.xlu1 %1955 }
 0x149   : > { %v2074_v41 = vld [vmem:[#allocation3 + $0x40] sm:$0xff]  ;;  %695 = vst.msk [vmem:[#allocation3 + $0x68] sm:$0xff] %vm681_vm4, %v612_v56  ;;  %v1890_v56 = vld [vmem:[#allocation2 + $0xfa] sm:$0xff] }
 0x14a   : > { %2043 = vst.msk [vmem:[#allocation3 + $0x48] sm:$0xff] %vm2033_vm11, %v1956_v25  ;;  %v2129_v63 = vsel %vm2103_vm12, %v2074_v41, 0  ;;  %1778 = vrot.lane.b32.xlu0 %v1697_v21, %s4945_s17 }
 0x14b   : > { %1200 = vrot.lane.b32.xlu1 %v1696_v19, %s4942_s6  ;;  %v5778_v44 = vand.u32 4294901760, %v2129_v63 }
 0x14c   : > { %v1380_v52 = vpop.permute.xlu0 %1379  ;;  %v803_v17 = vpop.permute.xlu1 %802 }
 0x14d   : > { %4643 = vmatprep.mubr.f32.mxu1 %v5778_v44  ;;  %v5782_v18 = vsub.f32 %v2129_v63, %v5778_v44  ;;  %1465 = vst.msk [vmem:[#allocation3 + $0x58] sm:$0xff] %vm1453_vm8, %v1380_v52 }
 0x14e   : > { %887 = vst.msk [vmem:[#allocation3 + $0x60] sm:$0xff] %vm874_vm5, %v803_v17  ;;  %625 = vrot.lane.b32.xlu0 %v1696_v19, %s4939_s28  ;;  %v349_v19 = vmul.f32 %v5639_v6, %v310_v46  ;;  %v311_v17 = vld [vmem:[%s5044_s25 + $0xe8] sm:$0xff] }
 0x14f   : > { %1969 = vrot.lane.b32.xlu1 %v1889_v30, %s4946_s23  ;;  %v7023_v29 = vand.u32 4294901760, %v5782_v18 }
 0x150   : > { %v805_v14 = vpop.permute.xlu0 %804  ;;  %v1572_v50 = vpop.permute.xlu1 %1571  ;;  %v388_v25 = vadd.f32 %v5574_v1, %v349_v19 }
 0x151   : > { %v2357_v7 = vsub.f32 %v5782_v18, %v7023_v29  ;;  %v2075_v43 = vld [vmem:[#allocation3 + $0x48] sm:$0xff]  ;;  %888 = vst.msk [vmem:[#allocation3 + $0x68] sm:$0xff] %vm874_vm5, %v805_v14 }
 0x152   : > { %1658 = vst.msk [vmem:[#allocation3 + $0x50] sm:$0xff] %vm1647_vm9, %v1572_v50  ;;  %v2132_v11 = vsel %vm2103_vm12, %v2075_v43, 0  ;;  %1393 = vrot.lane.b32.xlu0 %v1889_v30, %s4943_s7  ;;  %v420_v14 = vmax.f32 %v388_v25, 0.0  ;;  %v350_v50 = vmul.f32 %v5639_v6, %v311_v17 }
 0x153   : > { %1202 = vrot.lane.b32.xlu1 %v1697_v21, %s4942_s6  ;;  %v2358_v47 = vand.u32 4294901760, %v2357_v7  ;;  %v5799_v48 = vand.u32 4294901760, %v2132_v11 }
 0x154   : > { %v1574_v41 = vpop.permute.xlu0 %1573  ;;  %453 = vst.msk [vmem:[#allocation2 + $0x169] sm:$0xff] %vm236_vm0, %v420_v14  ;;  %v389_v43 = vadd.f32 %v5574_v1, %v350_v50  ;;  %v1698_v14 = vld [vmem:[#allocation2 + $0x109] sm:$0xff] }
 0x155   : > { %v996_v63 = vpop.permute.xlu1 %995  ;;  %4585 = vmatprep.mubr.f32.mxu0 %v2358_v47  ;;  %4644 = vmatmul.mubr.f32.gmra.mxu1 %v5799_v48  ;;  %v5804_v52 = vsub.f32 %v2132_v11, %v5799_v48  ;;  %1659 = vst.msk [vmem:[#allocation3 + $0x58] sm:$0xff] %vm1647_vm9, %v1574_v41 }
 0x156   : > { %1080 = vst.msk [vmem:[#allocation3 + $0x60] sm:$0xff] %vm1067_vm6, %v996_v63  ;;  %627 = vrot.lane.b32.xlu0 %v1697_v21, %s4939_s28  ;;  %v421_v47 = vmax.f32 %v389_v43, 0.0 }
 0x157   : > { %1971 = vrot.lane.b32.xlu1 %v1890_v56, %s4946_s23  ;;  %v7021_v7 = vand.u32 4294901760, %v5804_v52 }
 0x158   : > { %v998_v46 = vpop.permute.xlu0 %997  ;;  %454 = vst.msk [vmem:[#allocation2 + $0x171] sm:$0xff] %vm236_vm0, %v421_v47 }
 0x159   : > { %v1765_v11 = vpop.permute.xlu1 %1764  ;;  %v2367_v19 = vsub.f32 %v5804_v52, %v7021_v7  ;;  %1081 = vst.msk [vmem:[#allocation3 + $0x68] sm:$0xff] %vm1067_vm6, %v998_v46  ;;  %v1699_v46 = vld [vmem:[#allocation2 + $0x111] sm:$0xff] }
 0x15a   : > { %1851 = vst.msk [vmem:[#allocation3 + $0x50] sm:$0xff] %vm1840_vm10, %v1765_v11  ;;  %1395 = vrot.lane.b32.xlu0 %v1890_v56, %s4943_s7  ;;  %v1892_v7 = vld [vmem:[#allocation2 + $0x112] sm:$0xff] }
 0x15b   : > { %818 = vrot.lane.b32.xlu1 %v1889_v30, %s4940_s29  ;;  %v2368_v21 = vand.u32 4294901760, %v2367_v19  ;;  %v5828_v63 = vld [vmem:[#allocation2 + $0x168] sm:$0xff] }
 0x15c   : > { %v1767_v25 = vpop.permute.xlu0 %1766  ;;  %519 = vst.msk [vmem:[#allocation3 + $0xf0] sm:$0xff] %vm236_vm0, %v5828_v63 }
 0x15d   : > { %v1189_v41 = vpop.permute.xlu1 %1188  ;;  %4586 = vmatmul.mubr.f32.gmra.mxu0 %v2368_v21  ;;  %1852 = vst.msk [vmem:[#allocation3 + $0x58] sm:$0xff] %vm1840_vm10, %v1767_v25 }
 0x15e   : > { %1273 = vst.msk [vmem:[#allocation3 + $0x60] sm:$0xff] %vm1260_vm7, %v1189_v41  ;;  %820 = vrot.lane.b32.xlu0 %v1890_v56, %s4940_s29 }
 0x15f   : > { %1587 = vrot.lane.b32.xlu1 %v5489_v4, %s4944_s8  ;;  %v5838_v56 = vld [vmem:[#allocation2 + $0x170] sm:$0xff] }
 0x160   : > { %v614_v30 = vpop.permute.xlu0 %613  ;;  %520 = vst.msk [vmem:[#allocation3 + $0xf8] sm:$0xff] %vm236_vm0, %v5838_v56 }
 0x161   : > { %v1958_v17 = vpop.permute.xlu1 %1957  ;;  %696 = vst.msk [vmem:[#allocation3 + $0x70] sm:$0xff] %vm681_vm4, %v614_v30 }
 0x162   : > { %2044 = vst.msk [vmem:[#allocation3 + $0x50] sm:$0xff] %vm2033_vm11, %v1958_v17  ;;  %1589 = vrot.lane.b32.xlu0 %v5504_v31, %s4944_s8 }
 0x163   : > { %1011 = vrot.lane.b32.xlu1 %v5489_v4, %s4941_s30 }
 0x164   : > { %v1382_v50 = vpop.permute.xlu0 %1381 }
 0x165   : > { %v1191_v43 = vpop.permute.xlu1 %1190  ;;  %1466 = vst.msk [vmem:[#allocation3 + $0x60] sm:$0xff] %vm1453_vm8, %v1382_v50 }
 0x166   : > { %1274 = vst.msk [vmem:[#allocation3 + $0x68] sm:$0xff] %vm1260_vm7, %v1191_v43  ;;  %1013 = vrot.lane.b32.xlu0 %v5504_v31, %s4941_s30  ;;  %v1891_v31 = vld [vmem:[#allocation2 + $0x10a] sm:$0xff] }
 0x167   : > { %1780 = vrot.lane.b32.xlu1 %v1698_v14, %s4945_s17 }
 0x168   : > { %v616_v11 = vpop.permute.xlu0 %615 }
 0x169   : > { %v1960_v4 = vpop.permute.xlu1 %1959  ;;  %v2076_v19 = vld [vmem:[#allocation3 + $0x50] sm:$0xff]  ;;  %697 = vst.msk [vmem:[#allocation3 + $0x78] sm:$0xff] %vm681_vm4, %v616_v11 }
 0x16a   : > { %2045 = vst.msk [vmem:[#allocation3 + $0x58] sm:$0xff] %vm2033_vm11, %v1960_v4  ;;  %v2135_v47 = vsel %vm2103_vm12, %v2076_v19, 0  ;;  %1782 = vrot.lane.b32.xlu0 %v1699_v46, %s4945_s17  ;;  %v312_v19 = vld [vmem:[%s5044_s25 + $0xf0] sm:$0xff] }
 0x16b   : > { %1204 = vrot.lane.b32.xlu1 %v1698_v14, %s4942_s6  ;;  %v5852_v21 = vand.u32 4294901760, %v2135_v47 }
 0x16c   : > { %v1384_v25 = vpop.permute.xlu0 %1383 }
 0x16d   : > { %7091 = vst [vmem:[#allocation4_spill] sm:$0xff] %v5852_v21  ;;  %v807_v41 = vpop.permute.xlu1 %806  ;;  %4646 = vmatprep.mubr.f32.mxu1 %v5852_v21  ;;  %v5856_v30 = vsub.f32 %v2135_v47, %v5852_v21  ;;  %1467 = vst.msk [vmem:[#allocation3 + $0x68] sm:$0xff] %vm1453_vm8, %v1384_v25 }
 0x16e   : > { %889 = vst.msk [vmem:[#allocation3 + $0x70] sm:$0xff] %vm874_vm5, %v807_v41  ;;  %629 = vrot.lane.b32.xlu0 %v1698_v14, %s4939_s28  ;;  %v351_v14 = vmul.f32 %v5639_v6, %v312_v19 }
 0x16f   : > { %1973 = vrot.lane.b32.xlu1 %v1891_v31, %s4946_s23  ;;  %v7022_v17 = vand.u32 4294901760, %v5856_v30 }
 0x170   : > { %v809_v50 = vpop.permute.xlu0 %808 }
 0x171   : > { %v1576_v43 = vpop.permute.xlu1 %1575  ;;  %v2377_v11 = vsub.f32 %v5856_v30, %v7022_v17  ;;  %v2077_v4 = vld [vmem:[#allocation3 + $0x58] sm:$0xff]  ;;  %890 = vst.msk [vmem:[#allocation3 + $0x78] sm:$0xff] %vm874_vm5, %v809_v50  ;;  %v390_v17 = vadd.f32 %v5574_v1, %v351_v14 }
 0x172   : > { %1660 = vst.msk [vmem:[#allocation3 + $0x60] sm:$0xff] %vm1647_vm9, %v1576_v43  ;;  %v2138_v47 = vsel %vm2103_vm12, %v2077_v4, 0  ;;  %1397 = vrot.lane.b32.xlu0 %v1891_v31, %s4943_s7  ;;  %v313_v43 = vld [vmem:[%s5044_s25 + $0xf8] sm:$0xff] }
 0x173   : > { %1206 = vrot.lane.b32.xlu1 %v1699_v46, %s4942_s6  ;;  %v2378_v25 = vand.u32 4294901760, %v2377_v11  ;;  %v5873_v41 = vand.u32 4294901760, %v2138_v47  ;;  %v422_v4 = vmax.f32 %v390_v17, 0.0  ;;  %v352_v11 = vmul.f32 %v5639_v6, %v313_v43 }
 0x174   : > { %v1578_v29 = vpop.permute.xlu0 %1577 }
 0x175   : > { %7092 = vst [vmem:[#allocation5_spill] sm:$0xff] %v5873_v41  ;;  %v1000_v10 = vpop.permute.xlu1 %999  ;;  %4588 = vmatprep.mubr.f32.mxu0 %v2378_v25  ;;  %4647 = vmatmul.mubr.f32.gmra.mxu1 %v5873_v41  ;;  %v5878_v50 = vsub.f32 %v2138_v47, %v5873_v41  ;;  %1661 = vst.msk [vmem:[#allocation3 + $0x68] sm:$0xff] %vm1647_vm9, %v1578_v29  ;;  %v391_v14 = vadd.f32 %v5574_v1, %v352_v11 }
 0x176   : > { %1082 = vst.msk [vmem:[#allocation3 + $0x70] sm:$0xff] %vm1067_vm6, %v1000_v10  ;;  %631 = vrot.lane.b32.xlu0 %v1699_v46, %s4939_s28 }
 0x177   : > { %1975 = vrot.lane.b32.xlu1 %v1892_v7, %s4946_s23  ;;  %v7027_v19 = vand.u32 4294901760, %v5878_v50  ;;  %455 = vst.msk [vmem:[#allocation2 + $0x181] sm:$0xff] %vm236_vm0, %v422_v4  ;;  %v423_v6 = vmax.f32 %v391_v14, 0.0 }
 0x178   : > { %v1002_v47 = vpop.permute.xlu0 %1001 }
 0x179   : > { %v1769_v25 = vpop.permute.xlu1 %1768  ;;  %v2387_v29 = vsub.f32 %v5878_v50, %v7027_v19  ;;  %1083 = vst.msk [vmem:[#allocation3 + $0x78] sm:$0xff] %vm1067_vm6, %v1002_v47  ;;  %v1896_v19 = vld [vmem:[#allocation2 + $0x142] sm:$0xff] }
 0x17a   : > { %1853 = vst.msk [vmem:[#allocation3 + $0x60] sm:$0xff] %vm1840_vm10, %v1769_v25  ;;  %1399 = vrot.lane.b32.xlu0 %v1892_v7, %s4943_s7 }
 0x17b   : > { %822 = vrot.lane.b32.xlu1 %v1891_v31, %s4940_s29  ;;  %v2388_v10 = vand.u32 4294901760, %v2387_v29  ;;  %456 = vst.msk [vmem:[#allocation2 + $0x189] sm:$0xff] %vm236_vm0, %v423_v6  ;;  %v1700_v31 = vld [vmem:[#allocation2 + $0x121] sm:$0xff] }
 0x17c   : > { %v1771_v46 = vpop.permute.xlu0 %1770  ;;  %v1893_v6 = vld [vmem:[#allocation2 + $0x122] sm:$0xff] }
 0x17d   : > { %v1193_v1 = vpop.permute.xlu1 %1192  ;;  %4589 = vmatmul.mubr.f32.gmra.mxu0 %v2388_v10  ;;  %1854 = vst.msk [vmem:[#allocation3 + $0x68] sm:$0xff] %vm1840_vm10, %v1771_v46 }
 0x17e   : > { %1275 = vst.msk [vmem:[#allocation3 + $0x70] sm:$0xff] %vm1260_vm7, %v1193_v1  ;;  %824 = vrot.lane.b32.xlu0 %v1892_v7, %s4940_s29  ;;  %v1701_v7 = vld [vmem:[#allocation2 + $0x129] sm:$0xff] }
 0x17f   : > { %1591 = vrot.lane.b32.xlu1 %v5594_v36, %s4944_s8 }
 0x180   : > { %v618_v17 = vpop.permute.xlu0 %617 }
 0x181   : > { %v1962_v43 = vpop.permute.xlu1 %1961  ;;  %698 = vst.msk [vmem:[#allocation3 + $0x80] sm:$0xff] %vm681_vm4, %v618_v17 }
 0x182   : > { %2046 = vst.msk [vmem:[#allocation3 + $0x60] sm:$0xff] %vm2033_vm11, %v1962_v43  ;;  %1593 = vrot.lane.b32.xlu0 %v5607_v39, %s4944_s8 }
 0x183   : > { %1015 = vrot.lane.b32.xlu1 %v5594_v36, %s4941_s30 }
 0x184   : > { %v1386_v4 = vpop.permute.xlu0 %1385 }
 0x185   : > { %v1195_v11 = vpop.permute.xlu1 %1194  ;;  %1468 = vst.msk [vmem:[#allocation3 + $0x70] sm:$0xff] %vm1453_vm8, %v1386_v4 }
 0x186   : > { %1276 = vst.msk [vmem:[#allocation3 + $0x78] sm:$0xff] %vm1260_vm7, %v1195_v11  ;;  %1017 = vrot.lane.b32.xlu0 %v5607_v39, %s4941_s30 }
 0x187   : > { %1784 = vrot.lane.b32.xlu1 %v1700_v31, %s4945_s17 }
 0x188   : > { %v620_v14 = vpop.permute.xlu0 %619 }
 0x189   : > { %v1964_v47 = vpop.permute.xlu1 %1963  ;;  %v2078_v25 = vld [vmem:[#allocation3 + $0x60] sm:$0xff]  ;;  %699 = vst.msk [vmem:[#allocation3 + $0x88] sm:$0xff] %vm681_vm4, %v620_v14 }
 0x18a   : > { %2047 = vst.msk [vmem:[#allocation3 + $0x68] sm:$0xff] %vm2033_vm11, %v1964_v47  ;;  %v2141_v36 = vsel %vm2103_vm12, %v2078_v25, 0  ;;  %1786 = vrot.lane.b32.xlu0 %v1701_v7, %s4945_s17  ;;  %v1894_v25 = vld [vmem:[#allocation2 + $0x12a] sm:$0xff] }
 0x18b   : > { %1208 = vrot.lane.b32.xlu1 %v1700_v31, %s4942_s6  ;;  %v5918_v29 = vand.u32 4294901760, %v2141_v36 }
 0x18c   : > { %v1388_v39 = vpop.permute.xlu0 %1387 }
 0x18d   : > { %7093 = vst [vmem:[#allocation6_spill] sm:$0xff] %v5918_v29  ;;  %v811_v10 = vpop.permute.xlu1 %810  ;;  %4649 = vmatprep.mubr.f32.mxu1 %v5918_v29  ;;  %v5922_v46 = vsub.f32 %v2141_v36, %v5918_v29  ;;  %1469 = vst.msk [vmem:[#allocation3 + $0x78] sm:$0xff] %vm1453_vm8, %v1388_v39 }
 0x18e   : > { %891 = vst.msk [vmem:[#allocation3 + $0x80] sm:$0xff] %vm874_vm5, %v811_v10  ;;  %633 = vrot.lane.b32.xlu0 %v1700_v31, %s4939_s28 }
 0x18f   : > { %1977 = vrot.lane.b32.xlu1 %v1893_v6, %s4946_s23  ;;  %v7026_v1 = vand.u32 4294901760, %v5922_v46 }
 0x190   : > { %v813_v17 = vpop.permute.xlu0 %812 }
 0x191   : > { %v1580_v43 = vpop.permute.xlu1 %1579  ;;  %v2397_v4 = vsub.f32 %v5922_v46, %v7026_v1  ;;  %v2079_v11 = vld [vmem:[#allocation3 + $0x68] sm:$0xff]  ;;  %892 = vst.msk [vmem:[#allocation3 + $0x88] sm:$0xff] %vm874_vm5, %v813_v17 }
 0x192   : > { %1662 = vst.msk [vmem:[#allocation3 + $0x70] sm:$0xff] %vm1647_vm9, %v1580_v43  ;;  %v2144_v14 = vsel %vm2103_vm12, %v2079_v11, 0  ;;  %1401 = vrot.lane.b32.xlu0 %v1893_v6, %s4943_s7  ;;  %v1895_v1 = vld [vmem:[#allocation2 + $0x13a] sm:$0xff] }
 0x193   : > { %1210 = vrot.lane.b32.xlu1 %v1701_v7, %s4942_s6  ;;  %v2398_v31 = vand.u32 4294901760, %v2397_v4  ;;  %v5937_v47 = vand.u32 4294901760, %v2144_v14 }
 0x194   : > { %v1582_v36 = vpop.permute.xlu0 %1581 }
 0x195   : > { %7094 = vst [vmem:[#allocation7_spill] sm:$0xff] %v5937_v47  ;;  %v1004_v39 = vpop.permute.xlu1 %1003  ;;  %4591 = vmatprep.mubr.f32.mxu0 %v2398_v31  ;;  %4650 = vmatmul.mubr.f32.gmra.mxu1 %v5937_v47  ;;  %v5941_v10 = vsub.f32 %v2144_v14, %v5937_v47  ;;  %1663 = vst.msk [vmem:[#allocation3 + $0x78] sm:$0xff] %vm1647_vm9, %v1582_v36 }
 0x196   : > { %1084 = vst.msk [vmem:[#allocation3 + $0x80] sm:$0xff] %vm1067_vm6, %v1004_v39  ;;  %635 = vrot.lane.b32.xlu0 %v1701_v7, %s4939_s28 }
 0x197   : > { %1979 = vrot.lane.b32.xlu1 %v1894_v25, %s4946_s23  ;;  %v7025_v17 = vand.u32 4294901760, %v5941_v10 }
 0x198   : > { %v1006_v43 = vpop.permute.xlu0 %1005 }
 0x199   : > { %v1773_v4 = vpop.permute.xlu1 %1772  ;;  %v2407_v11 = vsub.f32 %v5941_v10, %v7025_v17  ;;  %1085 = vst.msk [vmem:[#allocation3 + $0x88] sm:$0xff] %vm1067_vm6, %v1006_v43 }
 0x19a   : > { %1855 = vst.msk [vmem:[#allocation3 + $0x70] sm:$0xff] %vm1840_vm10, %v1773_v4  ;;  %1403 = vrot.lane.b32.xlu0 %v1894_v25, %s4943_s7 }
 0x19b   : > { %826 = vrot.lane.b32.xlu1 %v1893_v6, %s4940_s29  ;;  %v2408_v14 = vand.u32 4294901760, %v2407_v11  ;;  %v1702_v6 = vld [vmem:[#allocation2 + $0x139] sm:$0xff]  ;;  %v1703_v11 = vld [vmem:[#allocation2 + $0x141] sm:$0xff] }
 0x19c   : > { %v1775_v7 = vpop.permute.xlu0 %1774 }
 0x19d   : > { %v1197_v31 = vpop.permute.xlu1 %1196  ;;  %4592 = vmatmul.mubr.f32.gmra.mxu0 %v2408_v14  ;;  %1856 = vst.msk [vmem:[#allocation3 + $0x78] sm:$0xff] %vm1840_vm10, %v1775_v7 }
 0x19e   : > { %1277 = vst.msk [vmem:[#allocation3 + $0x80] sm:$0xff] %vm1260_vm7, %v1197_v31  ;;  %828 = vrot.lane.b32.xlu0 %v1894_v25, %s4940_s29 }
 0x19f   : > { %1595 = vrot.lane.b32.xlu1 %v5677_v51, %s4944_s8 }
 0x1a0   : > { %v622_v36 = vpop.permute.xlu0 %621 }
 0x1a1   : > { %700 = vst.msk [vmem:[#allocation3 + $0x90] sm:$0xff] %vm681_vm4, %v622_v36  ;;  %v1966_v39 = vpop.permute.xlu1 %1965  ;;  %v4633_v4 = vpop.f32.mrf.mxu1 }
 0x1a2   : > { %2048 = vst.msk [vmem:[#allocation3 + $0x70] sm:$0xff] %vm2033_vm11, %v1966_v39  ;;  %1597 = vrot.lane.b32.xlu0 %v5690_v54, %s4944_s8 }
 0x1a3   : > { %1019 = vrot.lane.b32.xlu1 %v5677_v51, %s4941_s30  ;;  %v2686_v39 = vpop.f32.mrf.mxu1 }
 0x1a4   : > { %v1390_v43 = vpop.permute.xlu0 %1389 }
 0x1a5   : > { %1470 = vst.msk [vmem:[#allocation3 + $0x80] sm:$0xff] %vm1453_vm8, %v1390_v43  ;;  %v1199_v25 = vpop.permute.xlu1 %1198 }
 0x1a6   : > { %1278 = vst.msk [vmem:[#allocation3 + $0x88] sm:$0xff] %vm1260_vm7, %v1199_v25  ;;  %1021 = vrot.lane.b32.xlu0 %v5690_v54, %s4941_s30 }
 0x1a7   : > { %1788 = vrot.lane.b32.xlu1 %v1702_v6, %s4945_s17 }
 0x1a8   : > { %v624_v14 = vpop.permute.xlu0 %623 }
 0x1a9   : > { %v4575_v7 = vpop.f32.mrf.mxu0  ;;  %701 = vst.msk [vmem:[#allocation3 + $0x98] sm:$0xff] %vm681_vm4, %v624_v14  ;;  %v1968_v51 = vpop.permute.xlu1 %1967  ;;  %v2080_v36 = vld [vmem:[#allocation3 + $0x70] sm:$0xff] }
 0x1aa   : > { %v5972_v31 = vadd.f32 %v4633_v4, %v4575_v7  ;;  %2049 = vst.msk [vmem:[#allocation3 + $0x78] sm:$0xff] %vm2033_vm11, %v1968_v51  ;;  %1790 = vrot.lane.b32.xlu0 %v1703_v11, %s4945_s17  ;;  %v2147_v54 = vsel %vm2103_vm12, %v2080_v36, 0 }
 0x1ab   : > { %v2280_v43 = vpop.f32.mrf.mxu0  ;;  %1212 = vrot.lane.b32.xlu1 %v1702_v6, %s4942_s6  ;;  %v5980_v17 = vand.u32 4294901760, %v2147_v54 }
 0x1ac   : > { %7095 = vst [vmem:[#allocation8_spill] sm:$0xff] %v5972_v31  ;;  %v5978_v25 = vadd.f32 %v2686_v39, %v2280_v43  ;;  %v1392_v14 = vpop.permute.xlu0 %1391 }
 0x1ad   : > { %7097 = vst [vmem:[#allocation10_spill] sm:$0xff] %v5980_v17  ;;  %1471 = vst.msk [vmem:[#allocation3 + $0x88] sm:$0xff] %vm1453_vm8, %v1392_v14  ;;  %v815_v4 = vpop.permute.xlu1 %814  ;;  %4652 = vmatprep.mubr.f32.mxu1 %v5980_v17  ;;  %v5985_v7 = vsub.f32 %v2147_v54, %v5980_v17 }
 0x1ae   : > { %7096 = vst [vmem:[#allocation9_spill] sm:$0xff] %v5978_v25  ;;  %893 = vst.msk [vmem:[#allocation3 + $0x90] sm:$0xff] %vm874_vm5, %v815_v4  ;;  %637 = vrot.lane.b32.xlu0 %v1702_v6, %s4939_s28 }
 0x1af   : > { %1981 = vrot.lane.b32.xlu1 %v1895_v1, %s4946_s23  ;;  %v7029_v51 = vand.u32 4294901760, %v5985_v7 }
 0x1b0   : > { %v817_v36 = vpop.permute.xlu0 %816 }
 0x1b1   : > { %894 = vst.msk [vmem:[#allocation3 + $0x98] sm:$0xff] %vm874_vm5, %v817_v36  ;;  %v1584_v39 = vpop.permute.xlu1 %1583  ;;  %v2417_v43 = vsub.f32 %v5985_v7, %v7029_v51  ;;  %v2081_v14 = vld [vmem:[#allocation3 + $0x78] sm:$0xff] }
 0x1b2   : > { %1664 = vst.msk [vmem:[#allocation3 + $0x80] sm:$0xff] %vm1647_vm9, %v1584_v39  ;;  %1405 = vrot.lane.b32.xlu0 %v1895_v1, %s4943_s7  ;;  %v2150_v6 = vsel %vm2103_vm12, %v2081_v14, 0 }
 0x1b3   : > { %1214 = vrot.lane.b32.xlu1 %v1703_v11, %s4942_s6  ;;  %v2418_v54 = vand.u32 4294901760, %v2417_v43  ;;  %v5999_v4 = vand.u32 4294901760, %v2150_v6 }
 0x1b4   : > { %v1586_v24 = vpop.permute.xlu0 %1585 }
 0x1b5   : > { %7098 = vst [vmem:[#allocation11_spill] sm:$0xff] %v5999_v4  ;;  %1665 = vst.msk [vmem:[#allocation3 + $0x88] sm:$0xff] %vm1647_vm9, %v1586_v24  ;;  %v1008_v36 = vpop.permute.xlu1 %1007  ;;  %4594 = vmatprep.mubr.f32.mxu0 %v2418_v54  ;;  %4653 = vmatmul.mubr.f32.gmra.mxu1 %v5999_v4  ;;  %v6004_v51 = vsub.f32 %v2150_v6, %v5999_v4 }
 0x1b6   : > { %1086 = vst.msk [vmem:[#allocation3 + $0x90] sm:$0xff] %vm1067_vm6, %v1008_v36  ;;  %639 = vrot.lane.b32.xlu0 %v1703_v11, %s4939_s28 }
 0x1b7   : > { %1983 = vrot.lane.b32.xlu1 %v1896_v19, %s4946_s23  ;;  %v7030_v39 = vand.u32 4294901760, %v6004_v51 }
 0x1b8   : > { %v1010_v43 = vpop.permute.xlu0 %1009 }
 0x1b9   : > { %1087 = vst.msk [vmem:[#allocation3 + $0x98] sm:$0xff] %vm1067_vm6, %v1010_v43  ;;  %v1777_v14 = vpop.permute.xlu1 %1776  ;;  %v2427_v24 = vsub.f32 %v6004_v51, %v7030_v39 }
 0x1ba   : > { %1857 = vst.msk [vmem:[#allocation3 + $0x80] sm:$0xff] %vm1840_vm10, %v1777_v14  ;;  %1407 = vrot.lane.b32.xlu0 %v1896_v19, %s4943_s7 }
 0x1bb   : > { %830 = vrot.lane.b32.xlu1 %v1895_v1, %s4940_s29  ;;  %v2428_v6 = vand.u32 4294901760, %v2427_v24  ;;  %v1704_v1 = vld [vmem:[#allocation2 + $0x151] sm:$0xff] }
 0x1bc   : > { %v1779_v11 = vpop.permute.xlu0 %1778 }
 0x1bd   : > { %1858 = vst.msk [vmem:[#allocation3 + $0x88] sm:$0xff] %vm1840_vm10, %v1779_v11  ;;  %v1201_v54 = vpop.permute.xlu1 %1200  ;;  %4595 = vmatmul.mubr.f32.gmra.mxu0 %v2428_v6  ;;  %v4636_v14 = vpop.f32.mrf.mxu1 }
 0x1be   : > { %1279 = vst.msk [vmem:[#allocation3 + $0x90] sm:$0xff] %vm1260_vm7, %v1201_v54  ;;  %832 = vrot.lane.b32.xlu0 %v1896_v19, %s4940_s29 }
 0x1bf   : > { %1599 = vrot.lane.b32.xlu1 %v5754_v15, %s4944_s8  ;;  %v2698_v54 = vpop.f32.mrf.mxu1 }
 0x1c0   : > { %v626_v36 = vpop.permute.xlu0 %625 }
 0x1c1   : > { %702 = vst.msk [vmem:[#allocation3 + $0xa0] sm:$0xff] %vm681_vm4, %v626_v36  ;;  %v1970_v43 = vpop.permute.xlu1 %1969 }
 0x1c2   : > { %2050 = vst.msk [vmem:[#allocation3 + $0x80] sm:$0xff] %vm2033_vm11, %v1970_v43  ;;  %1601 = vrot.lane.b32.xlu0 %v5764_v22, %s4944_s8 }
 0x1c3   : > { %1023 = vrot.lane.b32.xlu1 %v5754_v15, %s4941_s30  ;;  %v1705_v15 = vld [vmem:[#allocation2 + $0x159] sm:$0xff] }
 0x1c4   : > { %v1394_v24 = vpop.permute.xlu0 %1393 }
 0x1c5   : > { %v4578_v6 = vpop.f32.mrf.mxu0  ;;  %1472 = vst.msk [vmem:[#allocation3 + $0x90] sm:$0xff] %vm1453_vm8, %v1394_v24  ;;  %v1203_v19 = vpop.permute.xlu1 %1202 }
 0x1c6   : > { %v6029_v11 = vadd.f32 %v4636_v14, %v4578_v6  ;;  %1280 = vst.msk [vmem:[#allocation3 + $0x98] sm:$0xff] %vm1260_vm7, %v1203_v19  ;;  %1025 = vrot.lane.b32.xlu0 %v5764_v22, %s4941_s30  ;;  %v1897_v6 = vld [vmem:[#allocation2 + $0x152] sm:$0xff] }
 0x1c7   : > { %1792 = vrot.lane.b32.xlu1 %v1704_v1, %s4945_s17  ;;  %v2300_v36 = vpop.f32.mrf.mxu0 }
 0x1c8   : > { %7099 = vst [vmem:[#allocation12_spill] sm:$0xff] %v6029_v11  ;;  %v6035_v43 = vadd.f32 %v2698_v54, %v2300_v36  ;;  %v628_v39 = vpop.permute.xlu0 %627 }
 0x1c9   : > { %703 = vst.msk [vmem:[#allocation3 + $0xa8] sm:$0xff] %vm681_vm4, %v628_v39  ;;  %v1972_v45 = vpop.permute.xlu1 %1971  ;;  %v2082_v24 = vld [vmem:[#allocation3 + $0x80] sm:$0xff] }
 0x1ca   : > { %7100 = vst [vmem:[#allocation13_spill] sm:$0xff] %v6035_v43  ;;  %2051 = vst.msk [vmem:[#allocation3 + $0x88] sm:$0xff] %vm2033_vm11, %v1972_v45  ;;  %1794 = vrot.lane.b32.xlu0 %v1705_v15, %s4945_s17  ;;  %v2153_v14 = vsel %vm2103_vm12, %v2082_v24, 0 }
 0x1cb   : > { %1216 = vrot.lane.b32.xlu1 %v1704_v1, %s4942_s6  ;;  %v6042_v22 = vand.u32 4294901760, %v2153_v14 }
 0x1cc   : > { %v1396_v19 = vpop.permute.xlu0 %1395 }
 0x1cd   : > { %7101 = vst [vmem:[#allocation14_spill] sm:$0xff] %v6042_v22  ;;  %1473 = vst.msk [vmem:[#allocation3 + $0x98] sm:$0xff] %vm1453_vm8, %v1396_v19  ;;  %v819_v54 = vpop.permute.xlu1 %818  ;;  %4655 = vmatprep.mubr.f32.mxu1 %v6042_v22  ;;  %v6047_v39 = vsub.f32 %v2153_v14, %v6042_v22 }
 0x1ce   : > { %895 = vst.msk [vmem:[#allocation3 + $0xa0] sm:$0xff] %vm874_vm5, %v819_v54  ;;  %641 = vrot.lane.b32.xlu0 %v1704_v1, %s4939_s28 }
 0x1cf   : > { %1985 = vrot.lane.b32.xlu1 %v1897_v6, %s4946_s23  ;;  %v7035_v45 = vand.u32 4294901760, %v6047_v39 }
 0x1d0   : > { %v821_v36 = vpop.permute.xlu0 %820 }
 0x1d1   : > { %896 = vst.msk [vmem:[#allocation3 + $0xa8] sm:$0xff] %vm874_vm5, %v821_v36  ;;  %v1588_v24 = vpop.permute.xlu1 %1587  ;;  %v2437_v19 = vsub.f32 %v6047_v39, %v7035_v45  ;;  %v2083_v59 = vld [vmem:[#allocation3 + $0x88] sm:$0xff] }
 0x1d2   : > { %1666 = vst.msk [vmem:[#allocation3 + $0x90] sm:$0xff] %vm1647_vm9, %v1588_v24  ;;  %1409 = vrot.lane.b32.xlu0 %v1897_v6, %s4943_s7  ;;  %v2156_v1 = vsel %vm2103_vm12, %v2083_v59, 0 }
 0x1d3   : > { %1218 = vrot.lane.b32.xlu1 %v1705_v15, %s4942_s6  ;;  %v2438_v14 = vand.u32 4294901760, %v2437_v19  ;;  %v6061_v54 = vand.u32 4294901760, %v2156_v1 }
 0x1d4   : > { %v1590_v2 = vpop.permute.xlu0 %1589 }
 0x1d5   : > { %7102 = vst [vmem:[#allocation15_spill] sm:$0xff] %v6061_v54  ;;  %1667 = vst.msk [vmem:[#allocation3 + $0x98] sm:$0xff] %vm1647_vm9, %v1590_v2  ;;  %v1012_v36 = vpop.permute.xlu1 %1011  ;;  %4597 = vmatprep.mubr.f32.mxu0 %v2438_v14  ;;  %4656 = vmatmul.mubr.f32.gmra.mxu1 %v6061_v54  ;;  %v6066_v45 = vsub.f32 %v2156_v1, %v6061_v54 }
 0x1d6   : > { %1088 = vst.msk [vmem:[#allocation3 + $0xa0] sm:$0xff] %vm1067_vm6, %v1012_v36  ;;  %643 = vrot.lane.b32.xlu0 %v1705_v15, %s4939_s28 }
 0x1d7   : > { %1987 = vrot.lane.b32.xlu1 %v1898_v37, %s4946_s23  ;;  %v7036_v59 = vand.u32 4294901760, %v6066_v45 }
 0x1d8   : > { %v1014_v24 = vpop.permute.xlu0 %1013 }
 0x1d9   : > { %1089 = vst.msk [vmem:[#allocation3 + $0xa8] sm:$0xff] %vm1067_vm6, %v1014_v24  ;;  %v1781_v19 = vpop.permute.xlu1 %1780  ;;  %v2447_v2 = vsub.f32 %v6066_v45, %v7036_v59  ;;  %v4639_v36 = vpop.f32.mrf.mxu1 }
 0x1da   : > { %1859 = vst.msk [vmem:[#allocation3 + $0x90] sm:$0xff] %vm1840_vm10, %v1781_v19  ;;  %1411 = vrot.lane.b32.xlu0 %v1898_v37, %s4943_s7 }
 0x1db   : > { %834 = vrot.lane.b32.xlu1 %v1897_v6, %s4940_s29  ;;  %v2448_v1 = vand.u32 4294901760, %v2447_v2  ;;  %v2710_v2 = vpop.f32.mrf.mxu1 }
 0x1dc   : > { %v1783_v15 = vpop.permute.xlu0 %1782 }
 0x1dd   : > { %1860 = vst.msk [vmem:[#allocation3 + $0x98] sm:$0xff] %vm1840_vm10, %v1783_v15  ;;  %v1205_v14 = vpop.permute.xlu1 %1204  ;;  %4598 = vmatmul.mubr.f32.gmra.mxu0 %v2448_v1  ;;  %v1706_v15 = vld [vmem:[#allocation2 + $0x169] sm:$0xff] }
 0x1de   : > { %1281 = vst.msk [vmem:[#allocation3 + $0xa0] sm:$0xff] %vm1260_vm7, %v1205_v14  ;;  %836 = vrot.lane.b32.xlu0 %v1898_v37, %s4940_s29 }
 0x1df   : > { %1603 = vrot.lane.b32.xlu1 %v5828_v63, %s4944_s8 }
 0x1e0   : > { %v630_v24 = vpop.permute.xlu0 %629 }
 0x1e1   : > { %v4581_v19 = vpop.f32.mrf.mxu0  ;;  %704 = vst.msk [vmem:[#allocation3 + $0xb0] sm:$0xff] %vm681_vm4, %v630_v24  ;;  %v1974_v59 = vpop.permute.xlu1 %1973 }
 0x1e2   : > { %v6085_v6 = vadd.f32 %v4639_v36, %v4581_v19  ;;  %2052 = vst.msk [vmem:[#allocation3 + $0x90] sm:$0xff] %vm2033_vm11, %v1974_v59  ;;  %1605 = vrot.lane.b32.xlu0 %v5838_v56, %s4944_s8  ;;  %v1707_v59 = vld [vmem:[#allocation2 + $0x171] sm:$0xff] }
 0x1e3   : > { %1027 = vrot.lane.b32.xlu1 %v5828_v63, %s4941_s30  ;;  %v2320_v37 = vpop.f32.mrf.mxu0 }
 0x1e4   : > { %7103 = vst [vmem:[#allocation16_spill] sm:$0xff] %v6085_v6  ;;  %v6092_v1 = vadd.f32 %v2710_v2, %v2320_v37  ;;  %v1398_v14 = vpop.permute.xlu0 %1397 }
 0x1e5   : > { %1474 = vst.msk [vmem:[#allocation3 + $0xa0] sm:$0xff] %vm1453_vm8, %v1398_v14  ;;  %v1207_v24 = vpop.permute.xlu1 %1206  ;;  %v1899_v14 = vld [vmem:[#allocation2 + $0x16a] sm:$0xff] }
 0x1e6   : > { %7104 = vst [vmem:[#allocation17_spill] sm:$0xff] %v6092_v1  ;;  %1282 = vst.msk [vmem:[#allocation3 + $0xa8] sm:$0xff] %vm1260_vm7, %v1207_v24  ;;  %1029 = vrot.lane.b32.xlu0 %v5838_v56, %s4941_s30  ;;  %v1900_v1 = vld [vmem:[#allocation2 + $0x172] sm:$0xff] }
 0x1e7   : > { %1796 = vrot.lane.b32.xlu1 %v1706_v15, %s4945_s17 }
 0x1e8   : > { %v632_v36 = vpop.permute.xlu0 %631 }
 0x1e9   : > { %705 = vst.msk [vmem:[#allocation3 + $0xb8] sm:$0xff] %vm681_vm4, %v632_v36  ;;  %v1976_v63 = vpop.permute.xlu1 %1975  ;;  %v2084_v19 = vld [vmem:[#allocation3 + $0x90] sm:$0xff] }
 0x1ea   : > { %2053 = vst.msk [vmem:[#allocation3 + $0x98] sm:$0xff] %vm2033_vm11, %v1976_v63  ;;  %1798 = vrot.lane.b32.xlu0 %v1707_v59, %s4945_s17  ;;  %v2159_v2 = vsel %vm2103_vm12, %v2084_v19, 0 }
 0x1eb   : > { %1220 = vrot.lane.b32.xlu1 %v1706_v15, %s4942_s6  ;;  %v6104_v37 = vand.u32 4294901760, %v2159_v2 }
 0x1ec   : > { %v1400_v56 = vpop.permute.xlu0 %1399 }
 0x1ed   : > { %7105 = vst [vmem:[#allocation18_spill] sm:$0xff] %v6104_v37  ;;  %1475 = vst.msk [vmem:[#allocation3 + $0xa8] sm:$0xff] %vm1453_vm8, %v1400_v56  ;;  %v823_v24 = vpop.permute.xlu1 %822  ;;  %4658 = vmatprep.mubr.f32.mxu1 %v6104_v37  ;;  %v6109_v36 = vsub.f32 %v2159_v2, %v6104_v37 }
 0x1ee   : > { %897 = vst.msk [vmem:[#allocation3 + $0xb0] sm:$0xff] %vm874_vm5, %v823_v24  ;;  %645 = vrot.lane.b32.xlu0 %v1706_v15, %s4939_s28 }
 0x1ef   : > { %1989 = vrot.lane.b32.xlu1 %v1899_v14, %s4946_s23  ;;  %v7039_v63 = vand.u32 4294901760, %v6109_v36 }
 0x1f0   : > { %v825_v19 = vpop.permute.xlu0 %824 }
 0x1f1   : > { %898 = vst.msk [vmem:[#allocation3 + $0xb8] sm:$0xff] %vm874_vm5, %v825_v19  ;;  %v1592_v35 = vpop.permute.xlu1 %1591  ;;  %v2457_v56 = vsub.f32 %v6109_v36, %v7039_v63  ;;  %v2085_v13 = vld [vmem:[#allocation3 + $0x98] sm:$0xff] }
 0x1f2   : > { %1668 = vst.msk [vmem:[#allocation3 + $0xa0] sm:$0xff] %vm1647_vm9, %v1592_v35  ;;  %1413 = vrot.lane.b32.xlu0 %v1899_v14, %s4943_s7  ;;  %v2162_v15 = vsel %vm2103_vm12, %v2085_v13, 0 }
 0x1f3   : > { %1222 = vrot.lane.b32.xlu1 %v1707_v59, %s4942_s6  ;;  %v2458_v2 = vand.u32 4294901760, %v2457_v56  ;;  %v6123_v24 = vand.u32 4294901760, %v2162_v15 }
 0x1f4   : > { %v1594_v6 = vpop.permute.xlu0 %1593 }
 0x1f5   : > { %7106 = vst [vmem:[#allocation19_spill] sm:$0xff] %v6123_v24  ;;  %1669 = vst.msk [vmem:[#allocation3 + $0xa8] sm:$0xff] %vm1647_vm9, %v1594_v6  ;;  %v1016_v19 = vpop.permute.xlu1 %1015  ;;  %4600 = vmatprep.mubr.f32.mxu0 %v2458_v2  ;;  %4659 = vmatmul.mubr.f32.gmra.mxu1 %v6123_v24  ;;  %v6128_v63 = vsub.f32 %v2162_v15, %v6123_v24  ;;  %v4642_v2 = vpop.f32.mrf.mxu1  ;;  %v1515_v15 = vld [vmem:[#allocation2 + $0x180] sm:$0xff] }
 0x1f6   : > { %1090 = vst.msk [vmem:[#allocation3 + $0xb0] sm:$0xff] %vm1067_vm6, %v1016_v19  ;;  %647 = vrot.lane.b32.xlu0 %v1707_v59, %s4939_s28 }
 0x1f7   : > { %1991 = vrot.lane.b32.xlu1 %v1900_v1, %s4946_s23  ;;  %v7040_v13 = vand.u32 4294901760, %v6128_v63  ;;  %v2722_v25 = vpop.f32.mrf.mxu1 }
 0x1f8   : > { %v1018_v35 = vpop.permute.xlu0 %1017 }
 0x1f9   : > { %1091 = vst.msk [vmem:[#allocation3 + $0xb8] sm:$0xff] %vm1067_vm6, %v1018_v35  ;;  %v1785_v56 = vpop.permute.xlu1 %1784  ;;  %v2467_v6 = vsub.f32 %v6128_v63, %v7040_v13 }
 0x1fa   : > { %1861 = vst.msk [vmem:[#allocation3 + $0xa0] sm:$0xff] %vm1840_vm10, %v1785_v56  ;;  %1415 = vrot.lane.b32.xlu0 %v1900_v1, %s4943_s7 }
 0x1fb   : > { %838 = vrot.lane.b32.xlu1 %v1899_v14, %s4940_s29  ;;  %v2468_v59 = vand.u32 4294901760, %v2467_v6  ;;  %v1516_v14 = vld [vmem:[#allocation2 + $0x188] sm:$0xff] }
 0x1fc   : > { %v1787_v19 = vpop.permute.xlu0 %1786 }
 0x1fd   : > { %v4584_v43 = vpop.f32.mrf.mxu0  ;;  %1862 = vst.msk [vmem:[#allocation3 + $0xa8] sm:$0xff] %vm1840_vm10, %v1787_v19  ;;  %v1209_v11 = vpop.permute.xlu1 %1208  ;;  %4601 = vmatmul.mubr.f32.gmra.mxu0 %v2468_v59 }
 0x1fe   : > { %v6142_v35 = vadd.f32 %v4642_v2, %v4584_v43  ;;  %1283 = vst.msk [vmem:[#allocation3 + $0xb0] sm:$0xff] %vm1260_vm7, %v1209_v11  ;;  %840 = vrot.lane.b32.xlu0 %v1900_v1, %s4940_s29  ;;  %v1708_v43 = vld [vmem:[#allocation2 + $0x181] sm:$0xff]  ;;  %s6721_s29 = scalar_lea.vmem %s7019_s4, %s4339_s20  ;;  %s4334_s20 = sshll.u32 %s7272_s19, 1 }
 0x1ff   : > { %1607 = vrot.lane.b32.xlu1 %v1515_v15, %s4944_s8  ;;  %v2340_v56 = vpop.f32.mrf.mxu0 }
 0x200   : > { %7107 = vst [vmem:[#allocation20_spill] sm:$0xff] %v6142_v35  ;;  %v6147_v13 = vadd.f32 %v2722_v25, %v2340_v56  ;;  %v634_v6 = vpop.permute.xlu0 %633  ;;  %v1709_v25 = vld [vmem:[#allocation2 + $0x189] sm:$0xff] }
 0x201   : > { %706 = vst.msk [vmem:[#allocation3 + $0xc0] sm:$0xff] %vm681_vm4, %v634_v6  ;;  %v1978_v31 = vpop.permute.xlu1 %1977  ;;  %v1901_v56 = vld [vmem:[#allocation2 + $0x182] sm:$0xff] }
 0x202   : > { %7108 = vst [vmem:[#allocation21_spill] sm:$0xff] %v6147_v13  ;;  %2054 = vst.msk [vmem:[#allocation3 + $0xa0] sm:$0xff] %vm2033_vm11, %v1978_v31  ;;  %1609 = vrot.lane.b32.xlu0 %v1516_v14, %s4944_s8  ;;  %v1517_v13 = vld [vmem:[#allocation2 + $0x198] sm:$0xff] }
 0x203   : > { %1031 = vrot.lane.b32.xlu1 %v1515_v15, %s4941_s30 }
 0x204   : > { %v1402_v11 = vpop.permute.xlu0 %1401 }
 0x205   : > { %1476 = vst.msk [vmem:[#allocation3 + $0xb0] sm:$0xff] %vm1453_vm8, %v1402_v11  ;;  %v1211_v1 = vpop.permute.xlu1 %1210 }
 0x206   : > { %1284 = vst.msk [vmem:[#allocation3 + $0xb8] sm:$0xff] %vm1260_vm7, %v1211_v1  ;;  %1033 = vrot.lane.b32.xlu0 %v1516_v14, %s4941_s30 }
 0x207   : > { %1800 = vrot.lane.b32.xlu1 %v1708_v43, %s4945_s17 }
 0x208   : > { %v636_v2 = vpop.permute.xlu0 %635 }
 0x209   : > { %707 = vst.msk [vmem:[#allocation3 + $0xc8] sm:$0xff] %vm681_vm4, %v636_v2  ;;  %v1980_v31 = vpop.permute.xlu1 %1979  ;;  %v2086_v59 = vld [vmem:[#allocation3 + $0xa0] sm:$0xff] }
 0x20a   : > { %2055 = vst.msk [vmem:[#allocation3 + $0xa8] sm:$0xff] %vm2033_vm11, %v1980_v31  ;;  %1802 = vrot.lane.b32.xlu0 %v1709_v25, %s4945_s17  ;;  %v2165_v15 = vsel %vm2103_vm12, %v2086_v59, 0 }
 0x20b   : > { %1224 = vrot.lane.b32.xlu1 %v1708_v43, %s4942_s6  ;;  %v6162_v19 = vand.u32 4294901760, %v2165_v15  ;;  %v1902_v43 = vld [vmem:[#allocation2 + $0x18a] sm:$0xff] }
 0x20c   : > { %v1404_v14 = vpop.permute.xlu0 %1403 }
 0x20d   : > { %7109 = vst [vmem:[#allocation22_spill] sm:$0xff] %v6162_v19  ;;  %1477 = vst.msk [vmem:[#allocation3 + $0xb8] sm:$0xff] %vm1453_vm8, %v1404_v14  ;;  %v827_v6 = vpop.permute.xlu1 %826  ;;  %4661 = vmatprep.mubr.f32.mxu1 %v6162_v19  ;;  %v6167_v11 = vsub.f32 %v2165_v15, %v6162_v19 }
 0x20e   : > { %899 = vst.msk [vmem:[#allocation3 + $0xc0] sm:$0xff] %vm874_vm5, %v827_v6  ;;  %1226 = vrot.lane.b32.xlu0 %v1709_v25, %s4942_s6 }
 0x20f   : > { %1993 = vrot.lane.b32.xlu1 %v1901_v56, %s4946_s23  ;;  %v7041_v1 = vand.u32 4294901760, %v6167_v11 }
 0x210   : > { %v829_v2 = vpop.permute.xlu0 %828 }
 0x211   : > { %900 = vst.msk [vmem:[#allocation3 + $0xc8] sm:$0xff] %vm874_vm5, %v829_v2  ;;  %v1596_v31 = vpop.permute.xlu1 %1595  ;;  %v2477_v59 = vsub.f32 %v6167_v11, %v7041_v1  ;;  %v2087_v14 = vld [vmem:[#allocation3 + $0xa8] sm:$0xff] }
 0x212   : > { %1670 = vst.msk [vmem:[#allocation3 + $0xb0] sm:$0xff] %vm1647_vm9, %v1596_v31  ;;  %1995 = vrot.lane.b32.xlu0 %v1902_v43, %s4946_s23  ;;  %v2168_v25 = vsel %vm2103_vm12, %v2087_v14, 0  ;;  %v1518_v31 = vld [vmem:[#allocation2 + $0x1a0] sm:$0xff] }
 0x213   : > { %1417 = vrot.lane.b32.xlu1 %v1901_v56, %s4943_s7  ;;  %v2478_v15 = vand.u32 4294901760, %v2477_v59  ;;  %v6181_v6 = vand.u32 4294901760, %v2168_v25  ;;  %v1710_v56 = vld [vmem:[#allocation2 + $0x199] sm:$0xff] }
 0x214   : > { %v1598_v35 = vpop.permute.xlu0 %1597 }
 0x215   : > { %7110 = vst [vmem:[#allocation23_spill] sm:$0xff] %v6181_v6  ;;  %1671 = vst.msk [vmem:[#allocation3 + $0xb8] sm:$0xff] %vm1647_vm9, %v1598_v35  ;;  %v1020_v2 = vpop.permute.xlu1 %1019  ;;  %4603 = vmatprep.mubr.f32.mxu0 %v2478_v15  ;;  %4662 = vmatmul.mubr.f32.gmra.mxu1 %v6181_v6  ;;  %v6186_v1 = vsub.f32 %v2168_v25, %v6181_v6  ;;  %v4645_v25 = vpop.f32.mrf.mxu1 }
 0x216   : > { %1092 = vst.msk [vmem:[#allocation3 + $0xc0] sm:$0xff] %vm1067_vm6, %v1020_v2  ;;  %1611 = vrot.lane.b32.xlu0 %v1517_v13, %s4944_s8  ;;  %v1711_v2 = vld [vmem:[#allocation2 + $0x1a1] sm:$0xff] }
 0x217   : > { %1419 = vrot.lane.b32.xlu1 %v1902_v43, %s4943_s7  ;;  %v7050_v59 = vand.u32 4294901760, %v6186_v1  ;;  %v1903_v43 = vld [vmem:[#allocation2 + $0x19a] sm:$0xff]  ;;  %v2734_v37 = vpop.f32.mrf.mxu1  ;;  %s235_s7 = scalar_lea.vmem %s7020_s5, %s4334_s20 }
 0x218   : > { %v1022_v14 = vpop.permute.xlu0 %1021 }
 0x219   : > { %1093 = vst.msk [vmem:[#allocation3 + $0xc8] sm:$0xff] %vm1067_vm6, %v1022_v14  ;;  %v1789_v35 = vpop.permute.xlu1 %1788  ;;  %v2487_v15 = vsub.f32 %v6186_v1, %v7050_v59 }
 0x21a   : > { %1863 = vst.msk [vmem:[#allocation3 + $0xb0] sm:$0xff] %vm1840_vm10, %v1789_v35  ;;  %1804 = vrot.lane.b32.xlu0 %v1710_v56, %s4945_s17  ;;  %v1904_v35 = vld [vmem:[#allocation2 + $0x1a2] sm:$0xff] }
 0x21b   : > { %1613 = vrot.lane.b32.xlu1 %v1518_v31, %s4944_s8  ;;  %v2488_v13 = vand.u32 4294901760, %v2487_v15 }
 0x21c   : > { %v1791_v6 = vpop.permute.xlu0 %1790 }
 0x21d   : > { %v4587_v19 = vpop.f32.mrf.mxu0  ;;  %1864 = vst.msk [vmem:[#allocation3 + $0xb8] sm:$0xff] %vm1840_vm10, %v1791_v6  ;;  %v1213_v14 = vpop.permute.xlu1 %1212  ;;  %4604 = vmatmul.mubr.f32.gmra.mxu0 %v2488_v13 }
 0x21e   : > { %v6200_v24 = vadd.f32 %v4645_v25, %v4587_v19  ;;  %1285 = vst.msk [vmem:[#allocation3 + $0xc0] sm:$0xff] %vm1260_vm7, %v1213_v14  ;;  %1997 = vrot.lane.b32.xlu0 %v1903_v43, %s4946_s23 }
 0x21f   : > { %1806 = vrot.lane.b32.xlu1 %v1711_v2, %s4945_s17  ;;  %v2360_v56 = vpop.f32.mrf.mxu0 }
 0x220   : > { %7111 = vst [vmem:[#allocation24_spill] sm:$0xff] %v6200_v24  ;;  %v6205_v31 = vadd.f32 %v2734_v37, %v2360_v56  ;;  %v638_v15 = vpop.permute.xlu0 %637 }
 0x221   : > { %708 = vst.msk [vmem:[#allocation3 + $0xd0] sm:$0xff] %vm681_vm4, %v638_v15  ;;  %v1982_v59 = vpop.permute.xlu1 %1981 }
 0x222   : > { %7112 = vst [vmem:[#allocation25_spill] sm:$0xff] %v6205_v31  ;;  %2056 = vst.msk [vmem:[#allocation3 + $0xb0] sm:$0xff] %vm2033_vm11, %v1982_v59 }
 0x223   : > { %1999 = vrot.lane.b32.xlu1 %v1904_v35, %s4946_s23 }
 0x224   : > { %v1406_v19 = vpop.permute.xlu0 %1405 }
 0x225   : > { %1478 = vst.msk [vmem:[#allocation3 + $0xc0] sm:$0xff] %vm1453_vm8, %v1406_v19  ;;  %v1215_v6 = vpop.permute.xlu1 %1214 }
 0x226   : > { %1286 = vst.msk [vmem:[#allocation3 + $0xc8] sm:$0xff] %vm1260_vm7, %v1215_v6 }
 0x228   : > { %v640_v25 = vpop.permute.xlu0 %639 }
 0x229   : > { %709 = vst.msk [vmem:[#allocation3 + $0xd8] sm:$0xff] %vm681_vm4, %v640_v25  ;;  %v1984_v37 = vpop.permute.xlu1 %1983  ;;  %v2088_v13 = vld [vmem:[#allocation3 + $0xb0] sm:$0xff] }
 0x22a   : > { %2057 = vst.msk [vmem:[#allocation3 + $0xb8] sm:$0xff] %vm2033_vm11, %v1984_v37  ;;  %v2171_v43 = vsel %vm2103_vm12, %v2088_v13, 0 }
 0x22b   : > { %v6215_v2 = vand.u32 4294901760, %v2171_v43 }
 0x22c   : > { %v1408_v59 = vpop.permute.xlu0 %1407 }
 0x22d   : > { %7113 = vst [vmem:[#allocation26_spill] sm:$0xff] %v6215_v2  ;;  %1479 = vst.msk [vmem:[#allocation3 + $0xc8] sm:$0xff] %vm1453_vm8, %v1408_v59  ;;  %v831_v14 = vpop.permute.xlu1 %830  ;;  %4664 = vmatprep.mubr.f32.mxu1 %v6215_v2  ;;  %v6220_v56 = vsub.f32 %v2171_v43, %v6215_v2 }
 0x22e   : > { %901 = vst.msk [vmem:[#allocation3 + $0xd0] sm:$0xff] %vm874_vm5, %v831_v14 }
 0x22f   : > { %v7051_v35 = vand.u32 4294901760, %v6220_v56 }
 0x230   : > { %v833_v15 = vpop.permute.xlu0 %832 }
 0x231   : > { %902 = vst.msk [vmem:[#allocation3 + $0xd8] sm:$0xff] %vm874_vm5, %v833_v15  ;;  %v1600_v19 = vpop.permute.xlu1 %1599  ;;  %v2497_v6 = vsub.f32 %v6220_v56, %v7051_v35  ;;  %v2089_v25 = vld [vmem:[#allocation3 + $0xb8] sm:$0xff] }
 0x232   : > { %1672 = vst.msk [vmem:[#allocation3 + $0xc0] sm:$0xff] %vm1647_vm9, %v1600_v19  ;;  %v2174_v37 = vsel %vm2103_vm12, %v2089_v25, 0 }
 0x233   : > { %v2498_v13 = vand.u32 4294901760, %v2497_v6  ;;  %v6230_v43 = vand.u32 4294901760, %v2174_v37 }
 0x234   : > { %v1602_v59 = vpop.permute.xlu0 %1601 }
 0x235   : > { %7114 = vst [vmem:[#allocation27_spill] sm:$0xff] %v6230_v43  ;;  %1673 = vst.msk [vmem:[#allocation3 + $0xc8] sm:$0xff] %vm1647_vm9, %v1602_v59  ;;  %v1024_v14 = vpop.permute.xlu1 %1023  ;;  %4606 = vmatprep.mubr.f32.mxu0 %v2498_v13  ;;  %4665 = vmatmul.mubr.f32.gmra.mxu1 %v6230_v43  ;;  %v6235_v15 = vsub.f32 %v2174_v37, %v6230_v43  ;;  %v4648_v59 = vpop.f32.mrf.mxu1 }
 0x236   : > { %1094 = vst.msk [vmem:[#allocation3 + $0xd0] sm:$0xff] %vm1067_vm6, %v1024_v14 }
 0x237   : > { %v7058_v35 = vand.u32 4294901760, %v6235_v15  ;;  %v2746_v43 = vpop.f32.mrf.mxu1 }
 0x238   : > { %v1026_v19 = vpop.permute.xlu0 %1025 }
 0x239   : > { %1095 = vst.msk [vmem:[#allocation3 + $0xd8] sm:$0xff] %vm1067_vm6, %v1026_v19  ;;  %v1793_v6 = vpop.permute.xlu1 %1792  ;;  %v2507_v25 = vsub.f32 %v6235_v15, %v7058_v35 }
 0x23a   : > { %1865 = vst.msk [vmem:[#allocation3 + $0xc0] sm:$0xff] %vm1840_vm10, %v1793_v6 }
 0x23b   : > { %v2508_v13 = vand.u32 4294901760, %v2507_v25 }
 0x23c   : > { %v1795_v31 = vpop.permute.xlu0 %1794 }
 0x23d   : > { %v4590_v24 = vpop.f32.mrf.mxu0  ;;  %1866 = vst.msk [vmem:[#allocation3 + $0xc8] sm:$0xff] %vm1840_vm10, %v1795_v31  ;;  %v1217_v37 = vpop.permute.xlu1 %1216  ;;  %4607 = vmatmul.mubr.f32.gmra.mxu0 %v2508_v13 }
 0x23e   : > { %v6245_v14 = vadd.f32 %v4648_v59, %v4590_v24  ;;  %1287 = vst.msk [vmem:[#allocation3 + $0xd0] sm:$0xff] %vm1260_vm7, %v1217_v37 }
 0x23f   : > { %v2380_v19 = vpop.f32.mrf.mxu0 }
 0x240   : > { %7115 = vst [vmem:[#allocation28_spill] sm:$0xff] %v6245_v14  ;;  %v6248_v2 = vadd.f32 %v2746_v43, %v2380_v19  ;;  %v642_v54 = vpop.permute.xlu0 %641 }
 0x241   : > { %710 = vst.msk [vmem:[#allocation3 + $0xe0] sm:$0xff] %vm681_vm4, %v642_v54  ;;  %v1986_v35 = vpop.permute.xlu1 %1985 }
 0x242   : > { %7116 = vst [vmem:[#allocation29_spill] sm:$0xff] %v6248_v2  ;;  %2058 = vst.msk [vmem:[#allocation3 + $0xc0] sm:$0xff] %vm2033_vm11, %v1986_v35 }
 0x244   : > { %v1410_v6 = vpop.permute.xlu0 %1409 }
 0x245   : > { %1480 = vst.msk [vmem:[#allocation3 + $0xd0] sm:$0xff] %vm1453_vm8, %v1410_v6  ;;  %v1219_v31 = vpop.permute.xlu1 %1218 }
 0x246   : > { %1288 = vst.msk [vmem:[#allocation3 + $0xd8] sm:$0xff] %vm1260_vm7, %v1219_v31 }
 0x248   : > { %v644_v24 = vpop.permute.xlu0 %643 }
 0x249   : > { %711 = vst.msk [vmem:[#allocation3 + $0xe8] sm:$0xff] %vm681_vm4, %v644_v24  ;;  %v1988_v25 = vpop.permute.xlu1 %1987  ;;  %v2090_v59 = vld [vmem:[#allocation3 + $0xc0] sm:$0xff] }
 0x24a   : > { %2059 = vst.msk [vmem:[#allocation3 + $0xc8] sm:$0xff] %vm2033_vm11, %v1988_v25  ;;  %v2177_v43 = vsel %vm2103_vm12, %v2090_v59, 0 }
 0x24b   : > { %v6257_v13 = vand.u32 4294901760, %v2177_v43 }
 0x24c   : > { %v1412_v54 = vpop.permute.xlu0 %1411 }
 0x24d   : > { %7117 = vst [vmem:[#allocation30_spill] sm:$0xff] %v6257_v13  ;;  %1481 = vst.msk [vmem:[#allocation3 + $0xd8] sm:$0xff] %vm1453_vm8, %v1412_v54  ;;  %v835_v35 = vpop.permute.xlu1 %834  ;;  %4667 = vmatprep.mubr.f32.mxu1 %v6257_v13  ;;  %v6262_v37 = vsub.f32 %v2177_v43, %v6257_v13 }
 0x24e   : > { %903 = vst.msk [vmem:[#allocation3 + $0xe0] sm:$0xff] %vm874_vm5, %v835_v35 }
 0x24f   : > { %v7059_v19 = vand.u32 4294901760, %v6262_v37 }
 0x250   : > { %v837_v6 = vpop.permute.xlu0 %836 }
 0x251   : > { %904 = vst.msk [vmem:[#allocation3 + $0xe8] sm:$0xff] %vm874_vm5, %v837_v6  ;;  %v1604_v31 = vpop.permute.xlu1 %1603  ;;  %v2517_v24 = vsub.f32 %v6262_v37, %v7059_v19  ;;  %v2091_v25 = vld [vmem:[#allocation3 + $0xc8] sm:$0xff] }
 0x252   : > { %1674 = vst.msk [vmem:[#allocation3 + $0xd0] sm:$0xff] %vm1647_vm9, %v1604_v31  ;;  %v2180_v59 = vsel %vm2103_vm12, %v2091_v25, 0 }
 0x253   : > { %v2518_v54 = vand.u32 4294901760, %v2517_v24  ;;  %v6272_v43 = vand.u32 4294901760, %v2180_v59 }
 0x254   : > { %v1606_v2 = vpop.permute.xlu0 %1605 }
 0x255   : > { %7118 = vst [vmem:[#allocation31_spill] sm:$0xff] %v6272_v43  ;;  %1675 = vst.msk [vmem:[#allocation3 + $0xd8] sm:$0xff] %vm1647_vm9, %v1606_v2  ;;  %v1028_v35 = vpop.permute.xlu1 %1027  ;;  %4609 = vmatprep.mubr.f32.mxu0 %v2518_v54  ;;  %4668 = vmatmul.mubr.f32.gmra.mxu1 %v6272_v43  ;;  %v6277_v6 = vsub.f32 %v2180_v59, %v6272_v43  ;;  %v4651_v2 = vpop.f32.mrf.mxu1 }
 0x256   : > { %1096 = vst.msk [vmem:[#allocation3 + $0xe0] sm:$0xff] %vm1067_vm6, %v1028_v35 }
 0x257   : > { %v7068_v19 = vand.u32 4294901760, %v6277_v6  ;;  %v2758_v43 = vpop.f32.mrf.mxu1 }
 0x258   : > { %v1030_v31 = vpop.permute.xlu0 %1029 }
 0x259   : > { %1097 = vst.msk [vmem:[#allocation3 + $0xe8] sm:$0xff] %vm1067_vm6, %v1030_v31  ;;  %v1797_v24 = vpop.permute.xlu1 %1796  ;;  %v2527_v25 = vsub.f32 %v6277_v6, %v7068_v19 }
 0x25a   : > { %1867 = vst.msk [vmem:[#allocation3 + $0xd0] sm:$0xff] %vm1840_vm10, %v1797_v24 }
 0x25b   : > { %v2528_v54 = vand.u32 4294901760, %v2527_v25 }
 0x25c   : > { %v1799_v14 = vpop.permute.xlu0 %1798 }
 0x25d   : > { %v4593_v13 = vpop.f32.mrf.mxu0  ;;  %1868 = vst.msk [vmem:[#allocation3 + $0xd8] sm:$0xff] %vm1840_vm10, %v1799_v14  ;;  %v1221_v59 = vpop.permute.xlu1 %1220  ;;  %4610 = vmatmul.mubr.f32.gmra.mxu0 %v2528_v54 }
 0x25e   : > { %v6287_v35 = vadd.f32 %v4651_v2, %v4593_v13  ;;  %1289 = vst.msk [vmem:[#allocation3 + $0xe0] sm:$0xff] %vm1260_vm7, %v1221_v59 }
 0x25f   : > { %v2400_v31 = vpop.f32.mrf.mxu0 }
 0x260   : > { %7119 = vst [vmem:[#allocation32_spill] sm:$0xff] %v6287_v35  ;;  %v6290_v22 = vadd.f32 %v2758_v43, %v2400_v31  ;;  %v646_v4 = vpop.permute.xlu0 %645 }
 0x261   : > { %712 = vst.msk [vmem:[#allocation3 + $0xf0] sm:$0xff] %vm681_vm4, %v646_v4  ;;  %v1990_v19 = vpop.permute.xlu1 %1989 }
 0x262   : > { %7120 = vst [vmem:[#allocation33_spill] sm:$0xff] %v6290_v22  ;;  %2060 = vst.msk [vmem:[#allocation3 + $0xd0] sm:$0xff] %vm2033_vm11, %v1990_v19 }
 0x264   : > { %v1414_v24 = vpop.permute.xlu0 %1413 }
 0x265   : > { %1482 = vst.msk [vmem:[#allocation3 + $0xe0] sm:$0xff] %vm1453_vm8, %v1414_v24  ;;  %v1223_v14 = vpop.permute.xlu1 %1222 }
 0x266   : > { %1290 = vst.msk [vmem:[#allocation3 + $0xe8] sm:$0xff] %vm1260_vm7, %v1223_v14 }
 0x268   : > { %v648_v13 = vpop.permute.xlu0 %647 }
 0x269   : > { %713 = vst.msk [vmem:[#allocation3 + $0xf8] sm:$0xff] %vm681_vm4, %v648_v13  ;;  %v1992_v25 = vpop.permute.xlu1 %1991  ;;  %v2092_v2 = vld [vmem:[#allocation3 + $0xd0] sm:$0xff] }
 0x26a   : > { %2061 = vst.msk [vmem:[#allocation3 + $0xd8] sm:$0xff] %vm2033_vm11, %v1992_v25  ;;  %v2183_v43 = vsel %vm2103_vm12, %v2092_v2, 0 }
 0x26b   : > { %v6299_v54 = vand.u32 4294901760, %v2183_v43 }
 0x26c   : > { %v1416_v4 = vpop.permute.xlu0 %1415 }
 0x26d   : > { %7121 = vst [vmem:[#allocation34_spill] sm:$0xff] %v6299_v54  ;;  %1483 = vst.msk [vmem:[#allocation3 + $0xe8] sm:$0xff] %vm1453_vm8, %v1416_v4  ;;  %v839_v19 = vpop.permute.xlu1 %838  ;;  %4670 = vmatprep.mubr.f32.mxu1 %v6299_v54  ;;  %v6304_v59 = vsub.f32 %v2183_v43, %v6299_v54 }
 0x26e   : > { %905 = vst.msk [vmem:[#allocation3 + $0xf0] sm:$0xff] %vm874_vm5, %v839_v19 }
 0x26f   : > { %v7069_v31 = vand.u32 4294901760, %v6304_v59 }
 0x270   : > { %v841_v24 = vpop.permute.xlu0 %840 }
 0x271   : > { %906 = vst.msk [vmem:[#allocation3 + $0xf8] sm:$0xff] %vm874_vm5, %v841_v24  ;;  %v1608_v14 = vpop.permute.xlu1 %1607  ;;  %v2537_v13 = vsub.f32 %v6304_v59, %v7069_v31  ;;  %v2093_v25 = vld [vmem:[#allocation3 + $0xd8] sm:$0xff] }
 0x272   : > { %1676 = vst.msk [vmem:[#allocation3 + $0xe0] sm:$0xff] %vm1647_vm9, %v1608_v14  ;;  %v2186_v2 = vsel %vm2103_vm12, %v2093_v25, 0 }
 0x273   : > { %v2538_v4 = vand.u32 4294901760, %v2537_v13  ;;  %v6314_v43 = vand.u32 4294901760, %v2186_v2 }
 0x274   : > { %v1610_v22 = vpop.permute.xlu0 %1609 }
 0x275   : > { %7122 = vst [vmem:[#allocation35_spill] sm:$0xff] %v6314_v43  ;;  %1677 = vst.msk [vmem:[#allocation3 + $0xe8] sm:$0xff] %vm1647_vm9, %v1610_v22  ;;  %v1032_v19 = vpop.permute.xlu1 %1031  ;;  %4612 = vmatprep.mubr.f32.mxu0 %v2538_v4  ;;  %4671 = vmatmul.mubr.f32.gmra.mxu1 %v6314_v43  ;;  %v6319_v24 = vsub.f32 %v2186_v2, %v6314_v43  ;;  %v4654_v22 = vpop.f32.mrf.mxu1 }
 0x276   : > { %1098 = vst.msk [vmem:[#allocation3 + $0xf0] sm:$0xff] %vm1067_vm6, %v1032_v19 }
 0x277   : > { %v7078_v31 = vand.u32 4294901760, %v6319_v24 }
 0x278   : > { %v1034_v14 = vpop.permute.xlu0 %1033 }
 0x279   : > { %1099 = vst.msk [vmem:[#allocation3 + $0xf8] sm:$0xff] %vm1067_vm6, %v1034_v14  ;;  %v1801_v13 = vpop.permute.xlu1 %1800  ;;  %v2547_v25 = vsub.f32 %v6319_v24, %v7078_v31  ;;  %v2770_v14 = vpop.f32.mrf.mxu1 }
 0x27a   : > { %1869 = vst.msk [vmem:[#allocation3 + $0xe0] sm:$0xff] %vm1840_vm10, %v1801_v13 }
 0x27b   : > { %v2548_v4 = vand.u32 4294901760, %v2547_v25 }
 0x27c   : > { %v1803_v35 = vpop.permute.xlu0 %1802 }
 0x27d   : > { %1870 = vst.msk [vmem:[#allocation3 + $0xe8] sm:$0xff] %vm1840_vm10, %v1803_v35  ;;  %v1225_v2 = vpop.permute.xlu1 %1224  ;;  %v4596_v43 = vpop.f32.mrf.mxu0  ;;  %4613 = vmatmul.mubr.f32.gmra.mxu0 %v2548_v4 }
 0x27e   : > { %1291 = vst.msk [vmem:[#allocation3 + $0xf0] sm:$0xff] %vm1260_vm7, %v1225_v2  ;;  %v6330_v19 = vadd.f32 %v4654_v22, %v4596_v43 }
 0x27f   : > { %v2420_v54 = vpop.f32.mrf.mxu0 }
 0x280   : > { %7123 = vst [vmem:[#allocation36_spill] sm:$0xff] %v6330_v19  ;;  %v6332_v17 = vadd.f32 %v2770_v14, %v2420_v54  ;;  %v1227_v47 = vpop.permute.xlu0 %1226 }
 0x281   : > { %1292 = vst.msk [vmem:[#allocation3 + $0xf8] sm:$0xff] %vm1260_vm7, %v1227_v47  ;;  %v1994_v13 = vpop.permute.xlu1 %1993 }
 0x282   : > { %7124 = vst [vmem:[#allocation37_spill] sm:$0xff] %v6332_v17  ;;  %2062 = vst.msk [vmem:[#allocation3 + $0xe0] sm:$0xff] %vm2033_vm11, %v1994_v13 }
 0x284   : > { %v1996_v25 = vpop.permute.xlu0 %1995 }
 0x285   : > { %2063 = vst.msk [vmem:[#allocation3 + $0xe8] sm:$0xff] %vm2033_vm11, %v1996_v25  ;;  %v1418_v35 = vpop.permute.xlu1 %1417 }
 0x286   : > { %1484 = vst.msk [vmem:[#allocation3 + $0xf0] sm:$0xff] %vm1453_vm8, %v1418_v35 }
 0x288   : > { %v1612_v4 = vpop.permute.xlu0 %1611 }
 0x289   : > { %1678 = vst.msk [vmem:[#allocation3 + $0xf0] sm:$0xff] %vm1647_vm9, %v1612_v4  ;;  %v1420_v43 = vpop.permute.xlu1 %1419  ;;  %v2094_v22 = vld [vmem:[#allocation3 + $0xe0] sm:$0xff] }
 0x28a   : > { %1485 = vst.msk [vmem:[#allocation3 + $0xf8] sm:$0xff] %vm1453_vm8, %v1420_v43  ;;  %v2189_v54 = vsel %vm2103_vm12, %v2094_v22, 0 }
 0x28b   : > { %v6341_v2 = vand.u32 4294901760, %v2189_v54 }
 0x28c   : > { %v1805_v47 = vpop.permute.xlu0 %1804  ;;  %v2095_v14 = vld [vmem:[#allocation3 + $0xe8] sm:$0xff] }
 0x28d   : > { %7125 = vst [vmem:[#allocation38_spill] sm:$0xff] %v6341_v2  ;;  %1871 = vst.msk [vmem:[#allocation3 + $0xf0] sm:$0xff] %vm1840_vm10, %v1805_v47  ;;  %v1614_v13 = vpop.permute.xlu1 %1613  ;;  %4673 = vmatprep.mubr.f32.mxu1 %v6341_v2  ;;  %v2192_v25 = vsel %vm2103_vm12, %v2095_v14, 0  ;;  %v6347_v35 = vsub.f32 %v2189_v54, %v6341_v2 }
 0x28e   : > { %1679 = vst.msk [vmem:[#allocation3 + $0xf8] sm:$0xff] %vm1647_vm9, %v1614_v13  ;;  %v6350_v4 = vand.u32 4294901760, %v2192_v25 }
 0x28f   : > { %v7083_v43 = vand.u32 4294901760, %v6347_v35 }
 0x290   : > { %7126 = vst [vmem:[#allocation39_spill] sm:$0xff] %v6350_v4  ;;  %v1998_v22 = vpop.permute.xlu0 %1997  ;;  %4674 = vmatmul.mubr.f32.gmra.mxu1 %v6350_v4  ;;  %v6355_v31 = vsub.f32 %v2192_v25, %v6350_v4 }
 0x291   : > { %2064 = vst.msk [vmem:[#allocation3 + $0xf0] sm:$0xff] %vm2033_vm11, %v1998_v22  ;;  %v1807_v47 = vpop.permute.xlu1 %1806  ;;  %v2557_v54 = vsub.f32 %v6347_v35, %v7083_v43 }
 0x292   : > { %1872 = vst.msk [vmem:[#allocation3 + $0xf8] sm:$0xff] %vm1840_vm10, %v1807_v47  ;;  %v7086_v14 = vand.u32 4294901760, %v6355_v31 }
 0x293   : > { %v2558_v13 = vand.u32 4294901760, %v2557_v54 }
 0x294   : > { %v2567_v17 = vsub.f32 %v6355_v31, %v7086_v14 }
 0x295   : > { %v2000_v19 = vpop.permute.xlu1 %1999  ;;  %4615 = vmatprep.mubr.f32.mxu0 %v2558_v13  ;;  %v4657_v43 = vpop.f32.mrf.mxu1 }
 0x296   : > { %2065 = vst.msk [vmem:[#allocation3 + $0xf8] sm:$0xff] %vm2033_vm11, %v2000_v19  ;;  %v2568_v25 = vand.u32 4294901760, %v2567_v17 }
 0x297   : > { %v2782_v19 = vpop.f32.mrf.mxu1 }
 0x298   : > { %4616 = vmatmul.mubr.f32.gmra.mxu0 %v2568_v25  ;;  %v2096_v22 = vld [vmem:[#allocation3 + $0xf0] sm:$0xff] }
 0x299   : > { %v2195_v4 = vsel %vm2103_vm12, %v2096_v22, 0 }
 0x29a   : > { %v6368_v2 = vand.u32 4294901760, %v2195_v4 }
 0x29c   : > { %4676 = vmatprep.mubr.f32.mxu1 %v6368_v2  ;;  %v6372_v47 = vsub.f32 %v2195_v4, %v6368_v2 }
 0x29d   : > { %v4599_v54 = vpop.f32.mrf.mxu0  ;;  %v2097_v29 = vld [vmem:[#allocation3 + $0xf8] sm:$0xff] }
 0x29e   : > { %v6374_v14 = vadd.f32 %v4657_v43, %v4599_v54  ;;  %v2198_v13 = vsel %vm2103_vm12, %v2097_v29, 0  ;;  %v2576_v17 = vand.u32 4294901760, %v6372_v47  ;;  %v7128_v43 = vand.u32 4294901760, %v5475_v12 }
 0x29f   : > { %v2440_v25 = vpop.f32.mrf.mxu0  ;;  %v6378_v41 = vand.u32 4294901760, %v2198_v13 }
 0x2a0   : > { %7127 = vst [vmem:[#allocation40_spill] sm:$0xff] %v6374_v14  ;;  %v6380_v22 = vadd.f32 %v2782_v19, %v2440_v25  ;;  %v2577_v21 = vsub.f32 %v6372_v47, %v2576_v17  ;;  %v7129_v14 = vand.u32 4294901760, %v5500_v61  ;;  %v7130_v25 = vand.u32 4294901760, %v5560_v8 }
 0x2a1   : > { %4677 = vmatmul.mubr.f32.gmra.mxu1 %v6378_v41  ;;  %v6387_v4 = vsub.f32 %v2198_v13, %v6378_v41 }
 0x2a2   : > { %4747 = vmatprep.mubr.f32.mxu1 %v7128_v43  ;;  %v2578_v29 = vand.u32 4294901760, %v2577_v21  ;;  %v7131_v21 = vand.u32 4294901760, %v5590_v58  ;;  %v7157_v43 = vand.u32 4294901760, %v6355_v31 }
 0x2a3   : > { %v2586_v54 = vand.u32 4294901760, %v6387_v4 }
 0x2a4   : > { %4618 = vmatprep.mubr.f32.mxu0 %v2578_v29 }
 0x2a5   : > { %4748 = vmatmul.mubr.f32.vlgmr.msra.gmra.mxu1 %v7129_v14  ;;  %v2587_v19 = vsub.f32 %v6387_v4, %v2586_v54  ;;  %v7132_v14 = vand.u32 4294901760, %v5634_v5 }
 0x2a6   : > { %4750 = vmatprep.mubr.f32.mxu1 %v7130_v25  ;;  %4854 = vmatpush3.msra.mxu1 %v5189_v20  ;;  %v7133_v20 = vand.u32 4294901760, %v5664_v9  ;;  %v7176_v25 = vld [vmem:[#allocation30_spill] sm:$0xff] }
 0x2a7   : > { %v2588_v13 = vand.u32 4294901760, %v2587_v19  ;;  %4855 = vmatprep.subr.mxu1 %v5200_v23  ;;  %v7175_v19 = vld [vmem:[#allocation27_spill] sm:$0xff] }
 0x2a8   : > { %4856 = vmatpush3.msra.mxu1 %v5200_v23  ;;  %v7134_v23 = vand.u32 4294901760, %v5708_v53 }
 0x2a9   : > { %4619 = vmatmul.mubr.f32.gmra.mxu0 %v2588_v13  ;;  %4751 = vmatmul.mubr.f32.gmra.mxu1 %v7131_v21  ;;  %v7177_v13 = vld [vmem:[#allocation31_spill] sm:$0xff]  ;;  %v7178_v21 = vld [vmem:[#allocation34_spill] sm:$0xff] }
 0x2aa   : > { %4689 = vmatprep.mubr.f32.mxu0 %v5475_v12  ;;  %4753 = vmatprep.mubr.f32.mxu1 %v7132_v14  ;;  %v7138_v12 = vand.u32 4294901760, %v5856_v30  ;;  %v7179_v14 = vld [vmem:[#allocation35_spill] sm:$0xff] }
 0x2ab   : > { %4857 = vmatprep.subr.mxu1 %v5213_v28 }
 0x2ac   : > { %4858 = vmatpush3.msra.mxu1 %v5213_v28  ;;  %v7135_v28 = vand.u32 4294901760, %v5730_v0 }
 0x2ad   : > { %4690 = vmatmul.mubr.f32.vlgmr.msra.gmra.mxu0 %v5500_v61  ;;  %4754 = vmatmul.mubr.f32.gmra.mxu1 %v7133_v20  ;;  %v7180_v20 = vld [vmem:[#allocation38_spill] sm:$0xff] }
 0x2ae   : > { %4796 = vmatpush3.msra.mxu0 %v5208_v26  ;;  %4692 = vmatprep.mubr.f32.mxu0 %v5560_v8  ;;  %v7136_v26 = vand.u32 4294901760, %v5782_v18 }
 0x2af   : > { %4756 = vmatprep.mubr.f32.mxu1 %v7134_v23  ;;  %4797 = vmatprep.subr.mxu0 %v5228_v32 }
 0x2b0   : > { %4798 = vmatpush3.msra.mxu0 %v5228_v32  ;;  %4859 = vmatprep.subr.mxu1 %v5233_v34  ;;  %v7137_v32 = vand.u32 4294901760, %v5804_v52 }
 0x2b1   : > { %4693 = vmatmul.mubr.f32.gmra.mxu0 %v5590_v58  ;;  %4757 = vmatmul.mubr.f32.gmra.mxu1 %v7135_v28  ;;  %v7142_v58 = vand.u32 4294901760, %v5985_v7 }
 0x2b2   : > { %4695 = vmatprep.mubr.f32.mxu0 %v5634_v5  ;;  %4759 = vmatprep.mubr.f32.mxu1 %v7136_v26  ;;  %v7181_v26 = vld [vmem:[#allocation39_spill] sm:$0xff] }
 0x2b3   : > { %4799 = vmatprep.subr.mxu0 %v5244_v40  ;;  %4860 = vmatpush3.msra.mxu1 %v5233_v34  ;;  %v7139_v34 = vand.u32 4294901760, %v5878_v50 }
 0x2b4   : > { %4800 = vmatpush3.msra.mxu0 %v5244_v40  ;;  %4861 = vmatprep.subr.mxu1 %v5250_v42  ;;  %v7140_v40 = vand.u32 4294901760, %v5922_v46 }
 0x2b5   : > { %4696 = vmatmul.mubr.f32.gmra.mxu0 %v5664_v9  ;;  %4760 = vmatmul.mubr.f32.gmra.mxu1 %v7137_v32  ;;  %v4660_v61 = vpop.f32.mrf.mxu1 }
 0x2b6   : > { %4698 = vmatprep.mubr.f32.mxu0 %v5708_v53  ;;  %4762 = vmatprep.mubr.f32.mxu1 %v7138_v12 }
 0x2b7   : > { %4801 = vmatprep.subr.mxu0 %v5261_v49  ;;  %4862 = vmatpush3.msra.mxu1 %v5250_v42  ;;  %v7141_v42 = vand.u32 4294901760, %v5941_v10  ;;  %v2794_v5 = vpop.f32.mrf.mxu1 }
 0x2b8   : > { %4802 = vmatpush3.msra.mxu0 %v5261_v49 }
 0x2b9   : > { %4699 = vmatmul.mubr.f32.gmra.mxu0 %v5730_v0  ;;  %4763 = vmatmul.mubr.f32.gmra.mxu1 %v7139_v34  ;;  %v7144_v0 = vand.u32 4294901760, %v6047_v39 }
 0x2ba   : > { %4701 = vmatprep.mubr.f32.mxu0 %v5782_v18  ;;  %4765 = vmatprep.mubr.f32.mxu1 %v7140_v40  ;;  %v7145_v18 = vand.u32 4294901760, %v6066_v45 }
 0x2bb   : > { %4803 = vmatprep.subr.mxu0 %v5273_v55 }
 0x2bc   : > { %4804 = vmatpush3.msra.mxu0 %v5273_v55  ;;  %v7143_v55 = vand.u32 4294901760, %v6004_v51 }
 0x2bd   : > { %v4602_v8 = vpop.f32.mrf.mxu0  ;;  %4702 = vmatmul.mubr.f32.gmra.mxu0 %v5804_v52  ;;  %4766 = vmatmul.mubr.f32.gmra.mxu1 %v7141_v42  ;;  %v7146_v52 = vand.u32 4294901760, %v6109_v36 }
 0x2be   : > { %v6449_v49 = vadd.f32 %v4660_v61, %v4602_v8  ;;  %4704 = vmatprep.mubr.f32.mxu0 %v5856_v30  ;;  %4768 = vmatprep.mubr.f32.mxu1 %v7142_v58  ;;  %v7147_v30 = vand.u32 4294901760, %v6128_v63 }
 0x2bf   : > { %v2460_v9 = vpop.f32.mrf.mxu0 }
 0x2c0   : > { %v6454_v53 = vadd.f32 %v2794_v5, %v2460_v9 }
 0x2c1   : > { %4705 = vmatmul.mubr.f32.gmra.mxu0 %v5878_v50  ;;  %4769 = vmatmul.mubr.f32.gmra.mxu1 %v7143_v55  ;;  %v7148_v50 = vand.u32 4294901760, %v6167_v11 }
 0x2c2   : > { %4707 = vmatprep.mubr.f32.mxu0 %v5922_v46  ;;  %4771 = vmatprep.mubr.f32.mxu1 %v7144_v0  ;;  %v7149_v46 = vand.u32 4294901760, %v6186_v1 }
 0x2c5   : > { %4708 = vmatmul.mubr.f32.gmra.mxu0 %v5941_v10  ;;  %4772 = vmatmul.mubr.f32.gmra.mxu1 %v7145_v18  ;;  %v7150_v10 = vand.u32 4294901760, %v6220_v56 }
 0x2c6   : > { %4710 = vmatprep.mubr.f32.mxu0 %v5985_v7  ;;  %4774 = vmatprep.mubr.f32.mxu1 %v7146_v52  ;;  %v7151_v7 = vand.u32 4294901760, %v6235_v15 }
 0x2c9   : > { %4711 = vmatmul.mubr.f32.gmra.mxu0 %v6004_v51  ;;  %4775 = vmatmul.mubr.f32.gmra.mxu1 %v7147_v30  ;;  %v7152_v51 = vand.u32 4294901760, %v6262_v37 }
 0x2ca   : > { %4713 = vmatprep.mubr.f32.mxu0 %v6047_v39  ;;  %4777 = vmatprep.mubr.f32.mxu1 %v7148_v50  ;;  %v7153_v39 = vand.u32 4294901760, %v6277_v6 }
 0x2cd   : > { %4714 = vmatmul.mubr.f32.gmra.mxu0 %v6066_v45  ;;  %4778 = vmatmul.mubr.f32.gmra.mxu1 %v7149_v46  ;;  %v7154_v45 = vand.u32 4294901760, %v6304_v59 }
 0x2ce   : > { %4716 = vmatprep.mubr.f32.mxu0 %v6109_v36  ;;  %4780 = vmatprep.mubr.f32.mxu1 %v7150_v10  ;;  %v7155_v36 = vand.u32 4294901760, %v6319_v24 }
 0x2d1   : > { %4717 = vmatmul.mubr.f32.gmra.mxu0 %v6128_v63  ;;  %4781 = vmatmul.mubr.f32.gmra.mxu1 %v7151_v7  ;;  %v7156_v63 = vand.u32 4294901760, %v6347_v35 }
 0x2d2   : > { %4719 = vmatprep.mubr.f32.mxu0 %v6167_v11  ;;  %4783 = vmatprep.mubr.f32.mxu1 %v7152_v51 }
 0x2d5   : > { %4720 = vmatmul.mubr.f32.gmra.mxu0 %v6186_v1  ;;  %4784 = vmatmul.mubr.f32.gmra.mxu1 %v7153_v39  ;;  %v4663_v11 = vpop.f32.mrf.mxu1 }
 0x2d6   : > { %4722 = vmatprep.mubr.f32.mxu0 %v6220_v56  ;;  %4786 = vmatprep.mubr.f32.mxu1 %v7154_v45 }
 0x2d9   : > { %4723 = vmatmul.mubr.f32.gmra.mxu0 %v6235_v15  ;;  %4787 = vmatmul.mubr.f32.gmra.mxu1 %v7155_v36  ;;  %v2806_v15 = vpop.f32.mrf.mxu1 }
 0x2da   : > { %4725 = vmatprep.mubr.f32.mxu0 %v6262_v37  ;;  %4789 = vmatprep.mubr.f32.mxu1 %v7156_v63 }
 0x2dd   : > { %v4605_v1 = vpop.f32.mrf.mxu0  ;;  %4726 = vmatmul.mubr.f32.gmra.mxu0 %v6277_v6  ;;  %4790 = vmatmul.mubr.f32.gmra.mxu1 %v7157_v43  ;;  %v7163_v6 = vld [vmem:[#allocation7_spill] sm:$0xff] }
 0x2de   : > { %v6501_v56 = vadd.f32 %v4663_v11, %v4605_v1  ;;  %4728 = vmatprep.mubr.f32.mxu0 %v6304_v59  ;;  %4792 = vmatprep.mubr.f32.mxu1 %v2576_v17  ;;  %v7172_v17 = vld [vmem:[#allocation22_spill] sm:$0xff] }
 0x2df   : > { %v2480_v29 = vpop.f32.mrf.mxu0 }
 0x2e0   : > { %7158 = vst [vmem:[#allocation41_spill] sm:$0xff] %v6501_v56  ;;  %v6506_v37 = vadd.f32 %v2806_v15, %v2480_v29 }
 0x2e1   : > { %4729 = vmatmul.mubr.f32.gmra.mxu0 %v6319_v24  ;;  %4793 = vmatmul.mubr.f32.gmra.mxu1 %v2586_v54  ;;  %v7168_v24 = vld [vmem:[#allocation14_spill] sm:$0xff] }
 0x2e2   : > { %7159 = vst [vmem:[#allocation42_spill] sm:$0xff] %v6506_v37  ;;  %4731 = vmatprep.mubr.f32.mxu0 %v6347_v35  ;;  %4863 = vmatprep.mubr.f32.mxu1 %v5469_v3  ;;  %v7170_v35 = vld [vmem:[#allocation18_spill] sm:$0xff]  ;;  %v7222_v37 = vld [vmem:[#allocation20_spill] sm:$0xff] }
 0x2e3   : > { %v7174_v54 = vld [vmem:[#allocation26_spill] sm:$0xff] }
 0x2e5   : > { %4732 = vmatmul.mubr.f32.gmra.mxu0 %v6355_v31  ;;  %4864 = vmatmul.mubr.f32.vlgmr.msra.gmra.mxu1 %v5494_v60 }
 0x2e6   : > { %4734 = vmatprep.mubr.f32.mxu0 %v6372_v47  ;;  %4866 = vmatprep.mubr.f32.mxu1 %v5553_v33  ;;  %v7171_v47 = vld [vmem:[#allocation19_spill] sm:$0xff] }
 0x2e9   : > { %4735 = vmatmul.mubr.f32.gmra.mxu0 %v6387_v4  ;;  %4867 = vmatmul.mubr.f32.gmra.mxu1 %v5585_v57  ;;  %v7173_v4 = vld [vmem:[#allocation23_spill] sm:$0xff] }
 0x2ea   : > { %4805 = vmatprep.mubr.f32.mxu0 %v5469_v3  ;;  %4869 = vmatprep.mubr.f32.mxu1 %v5629_v62  ;;  %v7160_v3 = vld [vmem:[#allocation4_spill] sm:$0xff] }
 0x2ed   : > { %4806 = vmatmul.mubr.f32.vlgmr.msra.gmra.mxu0 %v5494_v60  ;;  %4870 = vmatmul.mubr.f32.gmra.mxu1 %v5658_v38  ;;  %v7161_v60 = vld [vmem:[#allocation5_spill] sm:$0xff] }
 0x2ee   : > { %4808 = vmatprep.mubr.f32.mxu0 %v5553_v33  ;;  %4872 = vmatprep.mubr.f32.mxu1 %v5704_v16  ;;  %v7162_v33 = vld [vmem:[#allocation6_spill] sm:$0xff] }
 0x2f1   : > { %4809 = vmatmul.mubr.f32.gmra.mxu0 %v5585_v57  ;;  %4873 = vmatmul.mubr.f32.gmra.mxu1 %v5725_v27 }
 0x2f2   : > { %4811 = vmatprep.mubr.f32.mxu0 %v5629_v62  ;;  %4875 = vmatprep.mubr.f32.mxu1 %v5778_v44 }
 0x2f5   : > { %4812 = vmatmul.mubr.f32.gmra.mxu0 %v5658_v38  ;;  %4876 = vmatmul.mubr.f32.gmra.mxu1 %v5799_v48  ;;  %v4666_v57 = vpop.f32.mrf.mxu1 }
 0x2f6   : > { %4814 = vmatprep.mubr.f32.mxu0 %v5704_v16  ;;  %4878 = vmatprep.mubr.f32.mxu1 %v7160_v3  ;;  %v7165_v16 = vld [vmem:[#allocation10_spill] sm:$0xff] }
 0x2f7   : > { %v2818_v59 = vpop.f32.mrf.mxu1 }
 0x2f9   : > { %4815 = vmatmul.mubr.f32.gmra.mxu0 %v5725_v27  ;;  %4879 = vmatmul.mubr.f32.gmra.mxu1 %v7161_v60 }
 0x2fa   : > { %4817 = vmatprep.mubr.f32.mxu0 %v5778_v44  ;;  %4881 = vmatprep.mubr.f32.mxu1 %v7162_v33  ;;  %v7167_v44 = vld [vmem:[#allocation11_spill] sm:$0xff] }
 0x2fd   : > { %v4608_v62 = vpop.f32.mrf.mxu0  ;;  %4818 = vmatmul.mubr.f32.gmra.mxu0 %v5799_v48  ;;  %4882 = vmatmul.mubr.f32.gmra.mxu1 %v7163_v6  ;;  %v7169_v48 = vld [vmem:[#allocation15_spill] sm:$0xff] }
 0x2fe   : > { %v6539_v38 = vadd.f32 %v4666_v57, %v4608_v62  ;;  %4820 = vmatprep.mubr.f32.mxu0 %v7160_v3  ;;  %4884 = vmatprep.mubr.f32.mxu1 %v7165_v16 }
 0x2ff   : > { %v2500_v27 = vpop.f32.mrf.mxu0 }
 0x300   : > { %7164 = vst [vmem:[#allocation4_spill] sm:$0xff] %v6539_v38  ;;  %v6543_v31 = vadd.f32 %v2818_v59, %v2500_v27 }
 0x301   : > { %4821 = vmatmul.mubr.f32.gmra.mxu0 %v7161_v60  ;;  %4885 = vmatmul.mubr.f32.gmra.mxu1 %v7167_v44 }
 0x302   : > { %7166 = vst [vmem:[#allocation5_spill] sm:$0xff] %v6543_v31  ;;  %4823 = vmatprep.mubr.f32.mxu0 %v7162_v33  ;;  %4887 = vmatprep.mubr.f32.mxu1 %v7168_v24 }
 0x305   : > { %4824 = vmatmul.mubr.f32.gmra.mxu0 %v7163_v6  ;;  %4888 = vmatmul.mubr.f32.gmra.mxu1 %v7169_v48 }
 0x306   : > { %4826 = vmatprep.mubr.f32.mxu0 %v7165_v16  ;;  %4890 = vmatprep.mubr.f32.mxu1 %v7170_v35 }
 0x309   : > { %4827 = vmatmul.mubr.f32.gmra.mxu0 %v7167_v44  ;;  %4891 = vmatmul.mubr.f32.gmra.mxu1 %v7171_v47 }
 0x30a   : > { %4829 = vmatprep.mubr.f32.mxu0 %v7168_v24  ;;  %4893 = vmatprep.mubr.f32.mxu1 %v7172_v17 }
 0x30d   : > { %4830 = vmatmul.mubr.f32.gmra.mxu0 %v7169_v48  ;;  %4894 = vmatmul.mubr.f32.gmra.mxu1 %v7173_v4 }
 0x30e   : > { %4832 = vmatprep.mubr.f32.mxu0 %v7170_v35  ;;  %4896 = vmatprep.mubr.f32.mxu1 %v7174_v54 }
 0x311   : > { %4833 = vmatmul.mubr.f32.gmra.mxu0 %v7171_v47  ;;  %4897 = vmatmul.mubr.f32.gmra.mxu1 %v7175_v19 }
 0x312   : > { %4835 = vmatprep.mubr.f32.mxu0 %v7172_v17  ;;  %4899 = vmatprep.mubr.f32.mxu1 %v7176_v25 }
 0x315   : > { %4836 = vmatmul.mubr.f32.gmra.mxu0 %v7173_v4  ;;  %4900 = vmatmul.mubr.f32.gmra.mxu1 %v7177_v13  ;;  %v4669_v23 = vpop.f32.mrf.mxu1 }
 0x316   : > { %4838 = vmatprep.mubr.f32.mxu0 %v7174_v54  ;;  %4902 = vmatprep.mubr.f32.mxu1 %v7178_v21 }
 0x317   : > { %v2830_v12 = vpop.f32.mrf.mxu1 }
 0x319   : > { %4839 = vmatmul.mubr.f32.gmra.mxu0 %v7175_v19  ;;  %4903 = vmatmul.mubr.f32.gmra.mxu1 %v7179_v14 }
 0x31a   : > { %4841 = vmatprep.mubr.f32.mxu0 %v7176_v25  ;;  %4905 = vmatprep.mubr.f32.mxu1 %v7180_v20 }
 0x31d   : > { %v4611_v28 = vpop.f32.mrf.mxu0  ;;  %4842 = vmatmul.mubr.f32.gmra.mxu0 %v7177_v13  ;;  %4906 = vmatmul.mubr.f32.gmra.mxu1 %v7181_v26 }
 0x31e   : > { %v6575_v32 = vadd.f32 %v4669_v23, %v4611_v28  ;;  %4844 = vmatprep.mubr.f32.mxu0 %v7178_v21  ;;  %4908 = vmatprep.mubr.f32.mxu1 %v6368_v2 }
 0x31f   : > { %v2520_v34 = vpop.f32.mrf.mxu0 }
 0x320   : > { %7182 = vst [vmem:[#allocation6_spill] sm:$0xff] %v6575_v32  ;;  %v6579_v40 = vadd.f32 %v2830_v12, %v2520_v34 }
 0x321   : > { %4845 = vmatmul.mubr.f32.gmra.mxu0 %v7179_v14  ;;  %4909 = vmatmul.mubr.f32.gmra.mxu1 %v6378_v41 }
 0x322   : > { %7183 = vst [vmem:[#allocation7_spill] sm:$0xff] %v6579_v40  ;;  %4847 = vmatprep.mubr.f32.mxu0 %v7180_v20 }
 0x325   : > { %4848 = vmatmul.mubr.f32.gmra.mxu0 %v7181_v26 }
 0x326   : > { %4850 = vmatprep.mubr.f32.mxu0 %v6368_v2 }
 0x329   : > { %4851 = vmatmul.mubr.f32.gmra.mxu0 %v6378_v41 }
 0x335   : > { %v4672_v61 = vpop.f32.mrf.mxu1 }
 0x337   : > { %v2842_v58 = vpop.f32.mrf.mxu1 }
 0x33d   : > { %v4614_v8 = vpop.f32.mrf.mxu0 }
 0x33e   : > { %v6587_v42 = vadd.f32 %v4672_v61, %v4614_v8 }
 0x33f   : > { %v2540_v5 = vpop.f32.mrf.mxu0 }
 0x340   : > { %7184 = vst [vmem:[#allocation10_spill] sm:$0xff] %v6587_v42  ;;  %v6589_v9 = vadd.f32 %v2842_v58, %v2540_v5 }
 0x342   : > { %7185 = vst [vmem:[#allocation11_spill] sm:$0xff] %v6589_v9 }
 0x350   : > { %v4675_v55 = vpop.f32.mrf.mxu1 }
 0x352   : > { %v2854_v52 = vpop.f32.mrf.mxu1 }
 0x358   : > { %v4617_v0 = vpop.f32.mrf.mxu0 }
 0x359   : > { %v6591_v18 = vadd.f32 %v4675_v55, %v4617_v0 }
 0x35a   : > { %v2560_v30 = vpop.f32.mrf.mxu0 }
 0x35b   : > { %7186 = vst [vmem:[#allocation14_spill] sm:$0xff] %v6591_v18  ;;  %v6593_v50 = vadd.f32 %v2854_v52, %v2560_v30 }
 0x35d   : > { %7187 = vst [vmem:[#allocation15_spill] sm:$0xff] %v6593_v50 }
 0x361   : > { %v4678_v46 = vpop.f32.mrf.mxu1 }
 0x363   : > { %v2866_v2 = vpop.f32.mrf.mxu1 }
 0x365   : > { %v6595_v10 = vpop.f32.mrf.mxu1 }
 0x367   : > { %v6597_v41 = vpop.f32.mrf.mxu1 }
 0x369   : > { %v4620_v7 = vpop.f32.mrf.mxu0  ;;  %v6599_v51 = vpop.f32.mrf.mxu1 }
 0x36a   : > { %v6601_v39 = vadd.f32 %v4678_v46, %v4620_v7 }
 0x36b   : > { %v2580_v45 = vpop.f32.mrf.mxu0  ;;  %v6603_v36 = vpop.f32.mrf.mxu1 }
 0x36c   : > { %7188 = vst [vmem:[#allocation18_spill] sm:$0xff] %v6601_v39  ;;  %v6605_v63 = vadd.f32 %v2866_v2, %v2580_v45 }
 0x36d   : > { %v4691_v11 = vpop.f32.mrf.mxu0  ;;  %v6607_v1 = vpop.f32.mrf.mxu1 }
 0x36e   : > { %7189 = vst [vmem:[#allocation19_spill] sm:$0xff] %v6605_v63 }
 0x36f   : > { %v2954_v43 = vpop.f32.mrf.mxu0  ;;  %v6609_v15 = vpop.f32.mrf.mxu1 }
 0x371   : > { %v4694_v29 = vpop.f32.mrf.mxu0  ;;  %v6611_v3 = vpop.f32.mrf.mxu1 }
 0x373   : > { %v2968_v60 = vpop.f32.mrf.mxu0  ;;  %v6613_v33 = vpop.f32.mrf.mxu1 }
 0x375   : > { %v4697_v57 = vpop.f32.mrf.mxu0  ;;  %v6615_v62 = vpop.f32.mrf.mxu1 }
 0x377   : > { %v2982_v6 = vpop.f32.mrf.mxu0  ;;  %v6617_v16 = vpop.f32.mrf.mxu1 }
 0x379   : > { %v4700_v59 = vpop.f32.mrf.mxu0  ;;  %v6619_v27 = vpop.f32.mrf.mxu1 }
 0x37b   : > { %v2996_v44 = vpop.f32.mrf.mxu0  ;;  %v6621_v24 = vpop.f32.mrf.mxu1 }
 0x37d   : > { %v4703_v48 = vpop.f32.mrf.mxu0  ;;  %v6623_v35 = vpop.f32.mrf.mxu1 }
 0x37f   : > { %v3010_v47 = vpop.f32.mrf.mxu0  ;;  %v6625_v17 = vpop.f32.mrf.mxu1 }
 0x381   : > { %v4706_v4 = vpop.f32.mrf.mxu0  ;;  %v6627_v54 = vpop.f32.mrf.mxu1 }
 0x383   : > { %v3024_v19 = vpop.f32.mrf.mxu0  ;;  %v6629_v25 = vpop.f32.mrf.mxu1 }
 0x385   : > { %v4709_v13 = vpop.f32.mrf.mxu0  ;;  %v6631_v21 = vpop.f32.mrf.mxu1 }
 0x387   : > { %v3038_v14 = vpop.f32.mrf.mxu0  ;;  %v6633_v20 = vpop.f32.mrf.mxu1 }
 0x389   : > { %v6635_v23 = vpop.f32.mrf.mxu0  ;;  %v6637_v28 = vpop.f32.mrf.mxu1 }
 0x38a   : > { %7190 = vst [vmem:[#allocation22_spill] sm:$0xff] %v6637_v28  ;;  %v7224_v28 = vld [vmem:[#allocation24_spill] sm:$0xff] }
 0x38b   : > { %v6639_v26 = vpop.f32.mrf.mxu0  ;;  %v6641_v12 = vpop.f32.mrf.mxu1 }
 0x38c   : > { %7191 = vst [vmem:[#allocation23_spill] sm:$0xff] %v6641_v12  ;;  %v3004_v12 = vadd.f32 %v4700_v59, %v7222_v37  ;;  %v7228_v37 = vld [vmem:[#allocation32_spill] sm:$0xff] }
 0x38d   : > { %v6643_v34 = vpop.f32.mrf.mxu0  ;;  %v6645_v61 = vpop.f32.mrf.mxu1  ;;  %v3046_v59 = vadd.f32 %v4709_v13, %v7228_v37 }
 0x38e   : > { %7192 = vst [vmem:[#allocation26_spill] sm:$0xff] %v6645_v61  ;;  %v3306_v13 = vadd.f32 %v6611_v3, %v3004_v12  ;;  %v7231_v3 = vld [vmem:[#allocation37_spill] sm:$0xff] }
 0x38f   : > { %v6647_v8 = vpop.f32.mrf.mxu0  ;;  %v6649_v58 = vpop.f32.mrf.mxu1 }
 0x390   : > { %7193 = vst [vmem:[#allocation27_spill] sm:$0xff] %v6649_v58 }
 0x391   : > { %v6651_v5 = vpop.f32.mrf.mxu0  ;;  %v6653_v55 = vpop.f32.mrf.mxu1 }
 0x392   : > { %7194 = vst [vmem:[#allocation30_spill] sm:$0xff] %v6653_v55 }
 0x393   : > { %v6655_v0 = vpop.f32.mrf.mxu0  ;;  %v6657_v52 = vpop.f32.mrf.mxu1 }
 0x394   : > { %7195 = vst [vmem:[#allocation31_spill] sm:$0xff] %v6657_v52 }
 0x395   : > { %v6659_v30 = vpop.f32.mrf.mxu0  ;;  %v6661_v46 = vpop.f32.mrf.mxu1 }
 0x396   : > { %7196 = vst [vmem:[#allocation34_spill] sm:$0xff] %v6659_v30  ;;  %7197 = vst [vmem:[#allocation35_spill] sm:$0xff] %v6661_v46 }
 0x397   : > { %v6663_v2 = vpop.f32.mrf.mxu0  ;;  %v6665_v7 = vpop.f32.mrf.mxu1 }
 0x398   : > { %7198 = vst [vmem:[#allocation38_spill] sm:$0xff] %v6663_v2  ;;  %7199 = vst [vmem:[#allocation39_spill] sm:$0xff] %v6665_v7  ;;  %v7221_v2 = vld [vmem:[#allocation17_spill] sm:$0xff] }
 0x399   : > { %v6667_v45 = vpop.f32.mrf.mxu0  ;;  %v6669_v63 = vpop.f32.mrf.mxu1 }
 0x39a   : > { %7200 = vst [vmem:[#allocation43_spill] sm:$0xff] %v6667_v45  ;;  %7201 = vst [vmem:[#allocation44_spill] sm:$0xff] %v6669_v63 }
 0x39b   : > { %v6671_v39 = vpop.f32.mrf.mxu0  ;;  %v6673_v50 = vpop.f32.mrf.mxu1 }
 0x39c   : > { %7202 = vst [vmem:[#allocation45_spill] sm:$0xff] %v6671_v39  ;;  %7203 = vst [vmem:[#allocation46_spill] sm:$0xff] %v6673_v50  ;;  %v7214_v39 = vld [vmem:[#allocation8_spill] sm:$0xff] }
 0x39d   : > { %v6675_v18 = vpop.f32.mrf.mxu0  ;;  %v6677_v9 = vpop.f32.mrf.mxu1 }
 0x39e   : > { %7204 = vst [vmem:[#allocation47_spill] sm:$0xff] %v6675_v18  ;;  %7205 = vst [vmem:[#allocation48_spill] sm:$0xff] %v6677_v9  ;;  %v2962_v9 = vadd.f32 %v4691_v11, %v7214_v39  ;;  %v7223_v11 = vld [vmem:[#allocation21_spill] sm:$0xff] }
 0x39f   : > { %v6679_v42 = vpop.f32.mrf.mxu0  ;;  %v6681_v40 = vpop.f32.mrf.mxu1 }
 0x3a0   : > { %7206 = vst [vmem:[#allocation49_spill] sm:$0xff] %v6679_v42  ;;  %7207 = vst [vmem:[#allocation50_spill] sm:$0xff] %v6681_v40  ;;  %v7216_v40 = vld [vmem:[#allocation9_spill] sm:$0xff]  ;;  %v3258_v39 = vadd.f32 %v6595_v10, %v2962_v9 }
 0x3a1   : > { %v6683_v46 = vpop.f32.mrf.mxu0  ;;  %v6685_v52 = vpop.f32.mrf.mxu1  ;;  %v2955_v58 = vadd.f32 %v2954_v43, %v7216_v40  ;;  %v3018_v40 = vadd.f32 %v4703_v48, %v7224_v28  ;;  %v7225_v43 = vld [vmem:[#allocation25_spill] sm:$0xff] }
 0x3a2   : > { %7208 = vst [vmem:[#allocation51_spill] sm:$0xff] %v6683_v46  ;;  %7209 = vst [vmem:[#allocation52_spill] sm:$0xff] %v6685_v52  ;;  %v7217_v46 = vld [vmem:[#allocation12_spill] sm:$0xff]  ;;  %v7218_v52 = vld [vmem:[#allocation13_spill] sm:$0xff] }
 0x3a3   : > { %v6687_v7 = vpop.f32.mrf.mxu0  ;;  %v6689_v55 = vpop.f32.mrf.mxu1  ;;  %v2976_v45 = vadd.f32 %v4694_v29, %v7217_v46  ;;  %v2969_v38 = vadd.f32 %v2968_v60, %v7218_v52  ;;  %v3011_v29 = vadd.f32 %v3010_v47, %v7225_v43  ;;  %v7226_v46 = vld [vmem:[#allocation28_spill] sm:$0xff]  ;;  %v3250_v56 = vadd.f32 %v6597_v41, %v2955_v58  ;;  %v7229_v9 = vld [vmem:[#allocation33_spill] sm:$0xff] }
 0x3a4   : > { %7210 = vst [vmem:[#allocation53_spill] sm:$0xff] %v6687_v7  ;;  %7211 = vst [vmem:[#allocation54_spill] sm:$0xff] %v6689_v55  ;;  %v7219_v7 = vld [vmem:[#allocation16_spill] sm:$0xff]  ;;  %v3032_v60 = vadd.f32 %v4706_v4, %v7226_v46  ;;  %v3039_v10 = vadd.f32 %v3038_v14, %v7229_v9 }
 0x3a5   : > { %v6691_v63 = vpop.f32.mrf.mxu0  ;;  %v4865_v32 = vpop.f32.mrf.mxu1  ;;  %v2990_v61 = vadd.f32 %v4697_v57, %v7219_v7  ;;  %v7227_v7 = vld [vmem:[#allocation29_spill] sm:$0xff]  ;;  %v3266_v47 = vadd.f32 %v6603_v36, %v2969_v38  ;;  %v6736_v38 = vadd.f32 %v6617_v16, %v3011_v29 }
 0x3a6   : > { %7212 = vst [vmem:[#allocation55_spill] sm:$0xff] %v6691_v63  ;;  %v6756_v12 = vadd.f32 %v6625_v17, %v3039_v10  ;;  %v3088_v17 = vadd.f32 %v6651_v5, %v6449_v49 }
 0x3a7   : > { %v6693_v50 = vpop.f32.mrf.mxu0  ;;  %v3845_v18 = vpop.f32.mrf.mxu1  ;;  %v3290_v4 = vadd.f32 %v6607_v1, %v2990_v61 }
 0x3a8   : > { %7213 = vst [vmem:[#allocation56_spill] sm:$0xff] %v6693_v50  ;;  %v2983_v50 = vadd.f32 %v2982_v6, %v7221_v2  ;;  %v3274_v6 = vadd.f32 %v6599_v51, %v2976_v45  ;;  %v6733_v2 = vadd.f32 %v6615_v62, %v3018_v40 }
 0x3a9   : > { %v6696_v31 = vpop.f32.mrf.mxu0  ;;  %v4868_v42 = vpop.f32.mrf.mxu1 }
 0x3aa   : > { %7215 = vst [vmem:[#allocation8_spill] sm:$0xff] %v6696_v31  ;;  %v2997_v31 = vadd.f32 %v2996_v44, %v7223_v11  ;;  %v3282_v51 = vadd.f32 %v6609_v15, %v2983_v50 }
 0x3ab   : > { %v6702_v55 = vpop.f32.mrf.mxu0  ;;  %v3857_v63 = vpop.f32.mrf.mxu1 }
 0x3ac   : > { %7220 = vst [vmem:[#allocation9_spill] sm:$0xff] %v6702_v55  ;;  %v3025_v55 = vadd.f32 %v3024_v19, %v7227_v7  ;;  %v6730_v58 = vadd.f32 %v6613_v33, %v2997_v31  ;;  %v7230_v31 = vld [vmem:[#allocation36_spill] sm:$0xff]  ;;  %v3053_v33 = vadd.f32 %v6639_v26, %v7231_v3 }
 0x3ad   : > { %v4807_v52 = vpop.f32.mrf.mxu0  ;;  %v4871_v57 = vpop.f32.mrf.mxu1  ;;  %v3060_v15 = vadd.f32 %v6635_v23, %v7230_v31 }
 0x3ae   : > { %v3590_v30 = vadd.f32 %v4807_v52, %v3258_v39  ;;  %v6744_v1 = vadd.f32 %v6621_v24, %v3025_v55  ;;  %v7232_v55 = vld [vmem:[#allocation40_spill] sm:$0xff]  ;;  %v6780_v7 = vadd.f32 %v6629_v25, %v3053_v33 }
 0x3af   : > { %v3583_v44 = vpop.f32.mrf.mxu0  ;;  %v3869_v48 = vpop.f32.mrf.mxu1  ;;  %v3074_v26 = vadd.f32 %v6643_v34, %v7232_v55  ;;  %v3081_v34 = vadd.f32 %v6655_v0, %v6454_v53 }
 0x3b0   : > { %v3852_v41 = vadd.f32 %v4865_v32, %v3590_v30  ;;  %v3584_v19 = vadd.f32 %v3583_v44, %v3250_v56  ;;  %v6739_v32 = vadd.f32 %v6619_v27, %v3032_v60  ;;  %v6753_v27 = vadd.f32 %v6623_v35, %v3046_v59  ;;  %v7234_v59 = vld [vmem:[#allocation34_spill] sm:$0xff] }
 0x3b1   : > { %v4810_v14 = vpop.f32.mrf.mxu0  ;;  %v6727_v28 = vpop.f32.mrf.mxu1  ;;  %v3067_v30 = vadd.f32 %v6647_v8, %v6380_v22  ;;  %v6777_v60 = vadd.f32 %v6627_v54, %v3060_v15  ;;  %v6788_v37 = vadd.f32 %v6631_v21, %v3074_v26  ;;  %v7235_v44 = vld [vmem:[#allocation22_spill] sm:$0xff] }
 0x3b2   : > { %4036 = vst.msk [vmem:[%s6721_s29 + $0x8] sm:$0xff] %vm236_vm0, %v3852_v41  ;;  %v4138_v56 = vmul.f32 %v3852_v41, %v3852_v41  ;;  %v3846_v50 = vadd.f32 %v3845_v18, %v3584_v19  ;;  %v3602_v36 = vadd.f32 %v4810_v14, %v3274_v6  ;;  %v4068_v18 = vsel %vm236_vm0, %v3852_v41, 0.0  ;;  %v7236_v14 = vld [vmem:[#allocation23_spill] sm:$0xff] }
 0x3b3   : > { %v3595_v62 = vpop.f32.mrf.mxu0  ;;  %v6750_v16 = vpop.f32.mrf.mxu1  ;;  %v6791_v54 = vadd.f32 %v6633_v20, %v3067_v30  ;;  %v6803_v20 = vadd.f32 %v7236_v14, %v3081_v34 }
 0x3b4   : > { %4035 = vst.msk [vmem:[%s6721_s29] sm:$0xff] %vm236_vm0, %v3846_v50  ;;  %v4067_v24 = vsel %vm236_vm0, %v3846_v50, 0.0  ;;  %v4137_v23 = vmul.f32 %v3846_v50, %v3846_v50  ;;  %v3864_v61 = vadd.f32 %v4868_v42, %v3602_v36  ;;  %v3596_v45 = vadd.f32 %v3595_v62, %v3266_v47 }
 0x3b5   : > { %v4069_v35 = vadd.f32 %v4068_v18, %v4067_v24  ;;  %v4813_v39 = vpop.f32.mrf.mxu0  ;;  %v4877_v11 = vpop.f32.mrf.mxu1  ;;  %v4170_v40 = vsel %vm236_vm0, %v4138_v56, 0.0  ;;  %v6798_v47 = vadd.f32 %v7235_v44, %v3088_v17  ;;  %v7237_v18 = vld [vmem:[#allocation42_spill] sm:$0xff] }
 0x3b6   : > { %v4169_v43 = vsel %vm236_vm0, %v4137_v23, 0.0  ;;  %4038 = vst.msk [vmem:[%s6721_s29 + $0x18] sm:$0xff] %vm236_vm0, %v3864_v61  ;;  %v3614_v42 = vadd.f32 %v4813_v39, %v3290_v4  ;;  %v3858_v22 = vadd.f32 %v3857_v63, %v3596_v45  ;;  %v4140_v49 = vmul.f32 %v3864_v61, %v3864_v61  ;;  %v7238_v24 = vld [vmem:[#allocation38_spill] sm:$0xff] }
 0x3b7   : > { %v4171_v29 = vadd.f32 %v4170_v40, %v4169_v43  ;;  %v3607_v8 = vpop.f32.mrf.mxu0  ;;  %v6774_v46 = vpop.f32.mrf.mxu1  ;;  %v4072_v4 = vsel %vm236_vm0, %v3864_v61, 0.0  ;;  %v3095_v23 = vadd.f32 %v7238_v24, %v7237_v18  ;;  %v7245_v18 = vld [vmem:[#allocation6_spill] sm:$0xff]  ;;  %v7246_v24 = vld [vmem:[#allocation47_spill] sm:$0xff] }
 0x3b8   : > { %v3876_v5 = vadd.f32 %v4871_v57, %v3614_v42  ;;  %v3608_v52 = vadd.f32 %v3607_v8, %v3282_v51  ;;  %4037 = vst.msk [vmem:[%s6721_s29 + $0x10] sm:$0xff] %vm236_vm0, %v3858_v22  ;;  %v4070_v6 = vsel %vm236_vm0, %v3858_v22, 0.0  ;;  %v4139_v53 = vmul.f32 %v3858_v22, %v3858_v22  ;;  %v7233_v57 = vld [vmem:[#allocation41_spill] sm:$0xff] }
 0x3b9   : > { %v4816_v0 = vpop.f32.mrf.mxu0  ;;  %v6785_v63 = vpop.f32.mrf.mxu1  ;;  %v3102_v9 = vadd.f32 %v7234_v59, %v7233_v57  ;;  %v4071_v25 = vadd.f32 %v4070_v6, %v4069_v35  ;;  %v4174_v56 = vsel %vm236_vm0, %v4140_v49, 0.0  ;;  %v7239_v49 = vld [vmem:[#allocation26_spill] sm:$0xff] }
 0x3ba   : > { %4040 = vst.msk [vmem:[%s6721_s29 + $0x28] sm:$0xff] %vm236_vm0, %v3876_v5  ;;  %v3870_v10 = vadd.f32 %v3869_v48, %v3608_v52  ;;  %v4172_v41 = vsel %vm236_vm0, %v4139_v53, 0.0  ;;  %v3626_v19 = vadd.f32 %v4816_v0, %v3306_v13  ;;  %v4142_v31 = vmul.f32 %v3876_v5, %v3876_v5  ;;  %v7241_v52 = vld [vmem:[#allocation43_spill] sm:$0xff] }
 0x3bb   : > { %v3619_v21 = vpop.f32.mrf.mxu0  ;;  %v3905_v51 = vpop.f32.mrf.mxu1  ;;  %v4173_v50 = vadd.f32 %v4172_v41, %v4171_v29  ;;  %v4073_v48 = vadd.f32 %v4072_v4, %v4071_v25  ;;  %v4076_v30 = vsel %vm236_vm0, %v3876_v5, 0.0  ;;  %v7240_v5 = vld [vmem:[#allocation4_spill] sm:$0xff] }
 0x3bc   : > { %4039 = vst.msk [vmem:[%s6721_s29 + $0x20] sm:$0xff] %vm236_vm0, %v3870_v10  ;;  %v4074_v36 = vsel %vm236_vm0, %v3870_v10, 0.0  ;;  %v4141_v15 = vmul.f32 %v3870_v10, %v3870_v10  ;;  %v3888_v3 = vadd.f32 %v6727_v28, %v3626_v19  ;;  %v3620_v13 = vadd.f32 %v3619_v21, %v6730_v58 }
 0x3bd   : > { %v4819_v33 = vpop.f32.mrf.mxu0  ;;  %v6811_v62 = vpop.f32.mrf.mxu1  ;;  %v4075_v61 = vadd.f32 %v4074_v36, %v4073_v48  ;;  %v4175_v55 = vadd.f32 %v4174_v56, %v4173_v50  ;;  %v3116_v6 = vadd.f32 %v7241_v52, %v7240_v5 }
 0x3be   : > { %v3638_v26 = vadd.f32 %v4819_v33, %v6733_v2  ;;  %v4176_v35 = vsel %vm236_vm0, %v4141_v15, 0.0  ;;  %4042 = vst.msk [vmem:[%s6721_s29 + $0x38] sm:$0xff] %vm236_vm0, %v3888_v3  ;;  %v4144_v28 = vmul.f32 %v3888_v3, %v3888_v3  ;;  %v3882_v58 = vadd.f32 %v6750_v16, %v3620_v13  ;;  %v7243_v13 = vld [vmem:[#allocation5_spill] sm:$0xff] }
 0x3bf   : > { %v3631_v45 = vpop.f32.mrf.mxu0  ;;  %v6821_v39 = vpop.f32.mrf.mxu1  ;;  %v4177_v17 = vadd.f32 %v4176_v35, %v4175_v55  ;;  %v4077_v40 = vadd.f32 %v4076_v30, %v4075_v61  ;;  %v4178_v2 = vsel %vm236_vm0, %v4142_v31, 0.0  ;;  %v6829_v16 = vadd.f32 %v7239_v49, %v3102_v9 }
 0x3c0   : > { %v3900_v43 = vadd.f32 %v4877_v11, %v3638_v26  ;;  %v3632_v42 = vadd.f32 %v3631_v45, %v6736_v38  ;;  %4041 = vst.msk [vmem:[%s6721_s29 + $0x30] sm:$0xff] %vm236_vm0, %v3882_v58  ;;  %v4078_v34 = vsel %vm236_vm0, %v3882_v58, 0.0  ;;  %v4143_v29 = vmul.f32 %v3882_v58, %v3882_v58  ;;  %v7242_v38 = vld [vmem:[#allocation27_spill] sm:$0xff] }
 0x3c1   : > { %v4822_v22 = vpop.f32.mrf.mxu0  ;;  %v4886_v8 = vpop.f32.mrf.mxu1  ;;  %v4079_v53 = vadd.f32 %v4078_v34, %v4077_v40  ;;  %v4179_v11 = vadd.f32 %v4178_v2, %v4177_v17  ;;  %v6836_v0 = vadd.f32 %v7242_v38, %v3095_v23  ;;  %v4080_v57 = vsel %vm236_vm0, %v3888_v3, 0.0 }
 0x3c2   : > { %4044 = vst.msk [vmem:[%s6721_s29 + $0x48] sm:$0xff] %vm236_vm0, %v3900_v43  ;;  %v4180_v59 = vsel %vm236_vm0, %v4143_v29, 0.0  ;;  %v3894_v25 = vadd.f32 %v6774_v46, %v3632_v42  ;;  %v3650_v9 = vadd.f32 %v4822_v22, %v6739_v32  ;;  %v4182_v4 = vsel %vm236_vm0, %v4144_v28, 0.0 }
 0x3c3   : > { %v3643_v10 = vpop.f32.mrf.mxu0  ;;  %v6842_v44 = vpop.f32.mrf.mxu1  ;;  %v4181_v41 = vadd.f32 %v4180_v59, %v4179_v11  ;;  %v4081_v19 = vadd.f32 %v4080_v57, %v4079_v53  ;;  %v4146_v14 = vmul.f32 %v3900_v43, %v3900_v43  ;;  %v3130_v23 = vadd.f32 %v7246_v24, %v7245_v18 }
 0x3c4   : > { %v3644_v21 = vadd.f32 %v3643_v10, %v6744_v1  ;;  %4043 = vst.msk [vmem:[%s6721_s29 + $0x40] sm:$0xff] %vm236_vm0, %v3894_v25  ;;  %v4082_v56 = vsel %vm236_vm0, %v3894_v25, 0.0  ;;  %v4145_v50 = vmul.f32 %v3894_v25, %v3894_v25  ;;  %v3912_v46 = vadd.f32 %v6785_v63, %v3650_v9  ;;  %v7244_v1 = vld [vmem:[#allocation45_spill] sm:$0xff] }
 0x3c5   : > { %v4825_v32 = vpop.f32.mrf.mxu0  ;;  %v6850_v48 = vpop.f32.mrf.mxu1  ;;  %v4083_v36 = vadd.f32 %v4082_v56, %v4081_v19  ;;  %v4183_v31 = vadd.f32 %v4182_v4, %v4181_v41  ;;  %v3109_v33 = vadd.f32 %v7244_v1, %v7243_v13  ;;  %v4084_v61 = vsel %vm236_vm0, %v3900_v43, 0.0  ;;  %v7248_v4 = vld [vmem:[#allocation31_spill] sm:$0xff] }
 0x3c6   : > { %v3906_v15 = vadd.f32 %v3905_v51, %v3644_v21  ;;  %v3662_v3 = vadd.f32 %v4825_v32, %v6753_v27  ;;  %v4184_v55 = vsel %vm236_vm0, %v4145_v50, 0.0  ;;  %4046 = vst.msk [vmem:[%s6721_s29 + $0x58] sm:$0xff] %vm236_vm0, %v3912_v46  ;;  %v4186_v28 = vsel %vm236_vm0, %v4146_v14, 0.0  ;;  %v7249_v19 = vld [vmem:[#allocation7_spill] sm:$0xff] }
 0x3c7   : > { %v3655_v63 = vpop.f32.mrf.mxu0  ;;  %v3941_v26 = vpop.f32.mrf.mxu1  ;;  %v4185_v30 = vadd.f32 %v4184_v55, %v4183_v31  ;;  %v4085_v51 = vadd.f32 %v4084_v61, %v4083_v36  ;;  %v4148_v58 = vmul.f32 %v3912_v46, %v3912_v46  ;;  %v4088_v22 = vsel %vm236_vm0, %v3912_v46, 0.0 }
 0x3c8   : > { %4045 = vst.msk [vmem:[%s6721_s29 + $0x50] sm:$0xff] %vm236_vm0, %v3906_v15  ;;  %v4086_v27 = vsel %vm236_vm0, %v3906_v15, 0.0  ;;  %v4147_v35 = vmul.f32 %v3906_v15, %v3906_v15  ;;  %v3924_v45 = vadd.f32 %v6811_v62, %v3662_v3  ;;  %v3656_v17 = vadd.f32 %v3655_v63, %v6756_v12  ;;  %v7247_v12 = vld [vmem:[#allocation30_spill] sm:$0xff] }
 0x3c9   : > { %v4828_v40 = vpop.f32.mrf.mxu0  ;;  %v6867_v43 = vpop.f32.mrf.mxu1  ;;  %v4087_v42 = vadd.f32 %v4086_v27, %v4085_v51  ;;  %v4187_v2 = vadd.f32 %v4186_v28, %v4185_v30  ;;  %v6878_v53 = vadd.f32 %v7247_v12, %v3116_v6  ;;  %v6886_v41 = vadd.f32 %v7248_v4, %v3109_v33  ;;  %v7250_v6 = vld [vmem:[#allocation49_spill] sm:$0xff]  ;;  %v7252_v27 = vld [vmem:[#allocation10_spill] sm:$0xff]  ;;  %v7254_v28 = vld [vmem:[#allocation11_spill] sm:$0xff] }
 0x3ca   : > { %v4188_v34 = vsel %vm236_vm0, %v4147_v35, 0.0  ;;  %v3674_v29 = vadd.f32 %v4828_v40, %v6777_v60  ;;  %4048 = vst.msk [vmem:[%s6721_s29 + $0x68] sm:$0xff] %vm236_vm0, %v3924_v45  ;;  %v4150_v49 = vmul.f32 %v3924_v45, %v3924_v45  ;;  %v3918_v5 = vadd.f32 %v6821_v39, %v3656_v17 }
 0x3cb   : > { %v3667_v62 = vpop.f32.mrf.mxu0  ;;  %v6875_v52 = vpop.f32.mrf.mxu1  ;;  %v4189_v11 = vadd.f32 %v4188_v34, %v4187_v2  ;;  %v4089_v38 = vadd.f32 %v4088_v22, %v4087_v42  ;;  %v4190_v60 = vsel %vm236_vm0, %v4148_v58, 0.0  ;;  %v3123_v21 = vadd.f32 %v7250_v6, %v7249_v19  ;;  %v7255_v58 = vld [vmem:[#allocation53_spill] sm:$0xff] }
 0x3cc   : > { %v3936_v57 = vadd.f32 %v4886_v8, %v3674_v29  ;;  %v3668_v59 = vadd.f32 %v3667_v62, %v6780_v7  ;;  %4047 = vst.msk [vmem:[%s6721_s29 + $0x60] sm:$0xff] %vm236_vm0, %v3918_v5  ;;  %v4090_v25 = vsel %vm236_vm0, %v3918_v5, 0.0  ;;  %v4149_v9 = vmul.f32 %v3918_v5, %v3918_v5  ;;  %v7251_v7 = vld [vmem:[#allocation35_spill] sm:$0xff] }
 0x3cd   : > { %v4831_v39 = vpop.f32.mrf.mxu0  ;;  %v4895_v10 = vpop.f32.mrf.mxu1  ;;  %v4091_v14 = vadd.f32 %v4090_v25, %v4089_v38  ;;  %v4191_v8 = vadd.f32 %v4190_v60, %v4189_v11  ;;  %v6893_v56 = vadd.f32 %v7251_v7, %v3130_v23  ;;  %v4092_v50 = vsel %vm236_vm0, %v3924_v45, 0.0 }
 0x3ce   : > { %4050 = vst.msk [vmem:[%s6721_s29 + $0x78] sm:$0xff] %vm236_vm0, %v3936_v57  ;;  %v4192_v46 = vsel %vm236_vm0, %v4149_v9, 0.0  ;;  %v3930_v32 = vadd.f32 %v6842_v44, %v3668_v59  ;;  %v3686_v36 = vadd.f32 %v4831_v39, %v6788_v37  ;;  %v4194_v3 = vsel %vm236_vm0, %v4150_v49, 0.0 }
 0x3cf   : > { %v3679_v31 = vpop.f32.mrf.mxu0  ;;  %v6899_v15 = vpop.f32.mrf.mxu1  ;;  %v4193_v13 = vadd.f32 %v4192_v46, %v4191_v8  ;;  %v4093_v1 = vadd.f32 %v4092_v50, %v4091_v14  ;;  %v4152_v18 = vmul.f32 %v3936_v57, %v3936_v57  ;;  %v3137_v45 = vadd.f32 %v7255_v58, %v7254_v28 }
 0x3d0   : > { %v3680_v33 = vadd.f32 %v3679_v31, %v6791_v54  ;;  %4049 = vst.msk [vmem:[%s6721_s29 + $0x70] sm:$0xff] %vm236_vm0, %v3930_v32  ;;  %v4094_v24 = vsel %vm236_vm0, %v3930_v32, 0.0  ;;  %v4151_v23 = vmul.f32 %v3930_v32, %v3930_v32  ;;  %v3948_v44 = vadd.f32 %v6850_v48, %v3686_v36  ;;  %v7253_v54 = vld [vmem:[#allocation51_spill] sm:$0xff]  ;;  %v7257_v32 = vld [vmem:[#allocation44_spill] sm:$0xff]  ;;  %v7258_v36 = vld [vmem:[#allocation14_spill] sm:$0xff] }
 0x3d1   : > { %v4834_v37 = vpop.f32.mrf.mxu0  ;;  %v6907_v61 = vpop.f32.mrf.mxu1  ;;  %v4095_v55 = vadd.f32 %v4094_v24, %v4093_v1  ;;  %v4195_v63 = vadd.f32 %v4194_v3, %v4193_v13  ;;  %v3144_v35 = vadd.f32 %v7253_v54, %v7252_v27  ;;  %v4096_v17 = vsel %vm236_vm0, %v3936_v57, 0.0  ;;  %v7259_v31 = vld [vmem:[#allocation55_spill] sm:$0xff] }
 0x3d2   : > { %v3942_v30 = vadd.f32 %v3941_v26, %v3680_v33  ;;  %v3698_v51 = vadd.f32 %v4834_v37, %v6798_v47  ;;  %v4196_v40 = vsel %vm236_vm0, %v4151_v23, 0.0  ;;  %4052 = vst.msk [vmem:[%s6721_s29 + $0x88] sm:$0xff] %vm236_vm0, %v3948_v44  ;;  %v4198_v29 = vsel %vm236_vm0, %v4152_v18, 0.0 }
 0x3d3   : > { %v3691_v48 = vpop.f32.mrf.mxu0  ;;  %v3977_v42 = vpop.f32.mrf.mxu1  ;;  %v4197_v2 = vadd.f32 %v4196_v40, %v4195_v63  ;;  %v4097_v26 = vadd.f32 %v4096_v17, %v4095_v55  ;;  %v4154_v22 = vmul.f32 %v3948_v44, %v3948_v44  ;;  %v4100_v60 = vsel %vm236_vm0, %v3948_v44, 0.0  ;;  %v7261_v40 = vld [vmem:[#allocation15_spill] sm:$0xff] }
 0x3d4   : > { %4051 = vst.msk [vmem:[%s6721_s29 + $0x80] sm:$0xff] %vm236_vm0, %v3942_v30  ;;  %v4098_v47 = vsel %vm236_vm0, %v3942_v30, 0.0  ;;  %v4153_v34 = vmul.f32 %v3942_v30, %v3942_v30  ;;  %v3960_v49 = vadd.f32 %v6867_v43, %v3698_v51  ;;  %v3692_v5 = vadd.f32 %v3691_v48, %v6803_v20  ;;  %v7256_v20 = vld [vmem:[#allocation39_spill] sm:$0xff]  ;;  %v7262_v48 = vld [vmem:[#allocation56_spill] sm:$0xff] }
 0x3d5   : > { %v4837_v62 = vpop.f32.mrf.mxu0  ;;  %v4901_v12 = vpop.f32.mrf.mxu1  ;;  %v4099_v11 = vadd.f32 %v4098_v47, %v4097_v26  ;;  %v4199_v38 = vadd.f32 %v4198_v29, %v4197_v2  ;;  %v3442_v4 = vadd.f32 %v7256_v20, %v3123_v21  ;;  %v4202_v7 = vsel %vm236_vm0, %v4154_v22, 0.0  ;;  %v7263_v2 = vld [vmem:[#allocation18_spill] sm:$0xff]  ;;  %v7264_v26 = vld [vmem:[#allocation8_spill] sm:$0xff] }
 0x3d6   : > { %v4200_v57 = vsel %vm236_vm0, %v4153_v34, 0.0  ;;  %v3710_v59 = vadd.f32 %v4837_v62, %v6829_v16  ;;  %4054 = vst.msk [vmem:[%s6721_s29 + $0x98] sm:$0xff] %vm236_vm0, %v3960_v49  ;;  %v4156_v25 = vmul.f32 %v3960_v49, %v3960_v49  ;;  %v3954_v9 = vadd.f32 %v6875_v52, %v3692_v5 }
 0x3d7   : > { %v3703_v39 = vpop.f32.mrf.mxu0  ;;  %v3989_v43 = vpop.f32.mrf.mxu1  ;;  %v4201_v19 = vadd.f32 %v4200_v57, %v4199_v38  ;;  %v4101_v6 = vadd.f32 %v4100_v60, %v4099_v11  ;;  %v3466_v52 = vadd.f32 %v7257_v32, %v3144_v35  ;;  %v3158_v3 = vadd.f32 %v7259_v31, %v7258_v36  ;;  %v7266_v31 = vld [vmem:[#allocation50_spill] sm:$0xff] }
 0x3d8   : > { %v3972_v14 = vadd.f32 %v4895_v10, %v3710_v59  ;;  %v3704_v8 = vadd.f32 %v3703_v39, %v6836_v0  ;;  %4053 = vst.msk [vmem:[%s6721_s29 + $0x90] sm:$0xff] %vm236_vm0, %v3954_v9  ;;  %v4102_v16 = vsel %vm236_vm0, %v3954_v9, 0.0  ;;  %v4155_v50 = vmul.f32 %v3954_v9, %v3954_v9  ;;  %v7260_v0 = vld [vmem:[#allocation46_spill] sm:$0xff] }
 0x3d9   : > { %v4840_v46 = vpop.f32.mrf.mxu0  ;;  %v4103_v21 = vadd.f32 %v4102_v16, %v4101_v6  ;;  %v4203_v13 = vadd.f32 %v4202_v7, %v4201_v19  ;;  %v4904_v10 = vpop.f32.mrf.mxu1  ;;  %v3458_v1 = vadd.f32 %v7260_v0, %v3137_v45  ;;  %v4104_v33 = vsel %vm236_vm0, %v3960_v49, 0.0 }
 0x3da   : > { %4056 = vst.msk [vmem:[%s6721_s29 + $0xa8] sm:$0xff] %vm236_vm0, %v3972_v14  ;;  %v4204_v18 = vsel %vm236_vm0, %v4155_v50, 0.0  ;;  %v3966_v24 = vadd.f32 %v6899_v15, %v3704_v8  ;;  %v3722_v23 = vadd.f32 %v4840_v46, %v6878_v53  ;;  %v4206_v37 = vsel %vm236_vm0, %v4156_v25, 0.0  ;;  %v7265_v8 = vld [vmem:[#allocation48_spill] sm:$0xff] }
 0x3db   : > { %v3715_v44 = vpop.f32.mrf.mxu0  ;;  %v4205_v55 = vadd.f32 %v4204_v18, %v4203_v13  ;;  %v4105_v63 = vadd.f32 %v4104_v33, %v4103_v21  ;;  %v4158_v51 = vmul.f32 %v3972_v14, %v3972_v14  ;;  %v4001_v45 = vpop.f32.mrf.mxu1  ;;  %v3172_v47 = vadd.f32 %v7264_v26, %v7263_v2  ;;  %v7267_v13 = vld [vmem:[#allocation19_spill] sm:$0xff]  ;;  %v7270_v26 = vld [vmem:[#allocation54_spill] sm:$0xff] }
 0x3dc   : > { %v3716_v30 = vadd.f32 %v3715_v44, %v6886_v41  ;;  %4055 = vst.msk [vmem:[%s6721_s29 + $0xa0] sm:$0xff] %vm236_vm0, %v3966_v24  ;;  %v4106_v27 = vsel %vm236_vm0, %v3966_v24, 0.0  ;;  %v4157_v54 = vmul.f32 %v3966_v24, %v3966_v24  ;;  %v3984_v35 = vadd.f32 %v6907_v61, %v3722_v23 }
 0x3dd   : > { %v4843_v15 = vpop.f32.mrf.mxu0  ;;  %v4107_v28 = vadd.f32 %v4106_v27, %v4105_v63  ;;  %v4207_v53 = vadd.f32 %v4206_v37, %v4205_v55  ;;  %v3151_v41 = vadd.f32 %v7262_v48, %v7261_v40  ;;  %v4108_v34 = vsel %vm236_vm0, %v3972_v14, 0.0  ;;  %v4907_v9 = vpop.f32.mrf.mxu1 }
 0x3de   : > { %v3978_v58 = vadd.f32 %v3977_v42, %v3716_v30  ;;  %v3734_v17 = vadd.f32 %v4843_v15, %v6893_v56  ;;  %v4208_v29 = vsel %vm236_vm0, %v4157_v54, 0.0  ;;  %4058 = vst.msk [vmem:[%s6721_s29 + $0xb8] sm:$0xff] %vm236_vm0, %v3984_v35  ;;  %v4210_v5 = vsel %vm236_vm0, %v4158_v51, 0.0 }
 0x3df   : > { %v3727_v61 = vpop.f32.mrf.mxu0  ;;  %v4209_v22 = vadd.f32 %v4208_v29, %v4207_v53  ;;  %v4109_v42 = vadd.f32 %v4108_v34, %v4107_v28  ;;  %v4160_v62 = vmul.f32 %v3984_v35, %v3984_v35  ;;  %v4112_v20 = vsel %vm236_vm0, %v3984_v35, 0.0  ;;  %v4013_v18 = vpop.f32.mrf.mxu1 }
 0x3e0   : > { %4057 = vst.msk [vmem:[%s6721_s29 + $0xb0] sm:$0xff] %vm236_vm0, %v3978_v58  ;;  %v4110_v56 = vsel %vm236_vm0, %v3978_v58, 0.0  ;;  %v4159_v49 = vmul.f32 %v3978_v58, %v3978_v58  ;;  %v3996_v11 = vadd.f32 %v4901_v12, %v3734_v17  ;;  %v3728_v38 = vadd.f32 %v3727_v61, %v3442_v4 }
 0x3e1   : > { %v4846_v57 = vpop.f32.mrf.mxu0  ;;  %v4111_v59 = vadd.f32 %v4110_v56, %v4109_v42  ;;  %v4211_v60 = vadd.f32 %v4210_v5, %v4209_v22  ;;  %v3482_v7 = vadd.f32 %v7265_v8, %v3158_v3  ;;  %v4214_v46 = vsel %vm236_vm0, %v4160_v62, 0.0  ;;  %v4910_v58 = vpop.f32.mrf.mxu1 }
 0x3e2   : > { %v4212_v25 = vsel %vm236_vm0, %v4159_v49, 0.0  ;;  %v3746_v39 = vadd.f32 %v4846_v57, %v3466_v52  ;;  %4060 = vst.msk [vmem:[%s6721_s29 + $0xc8] sm:$0xff] %vm236_vm0, %v3996_v11  ;;  %v4162_v19 = vmul.f32 %v3996_v11, %v3996_v11  ;;  %v3990_v6 = vadd.f32 %v3989_v43, %v3728_v38  ;;  %v7268_v43 = vld [vmem:[#allocation9_spill] sm:$0xff] }
 0x3e3   : > { %v3739_v14 = vpop.f32.mrf.mxu0  ;;  %v4213_v12 = vadd.f32 %v4212_v25, %v4211_v60  ;;  %v4113_v4 = vadd.f32 %v4112_v20, %v4111_v59  ;;  %v3474_v21 = vadd.f32 %v7266_v31, %v3151_v41  ;;  %v3165_v0 = vadd.f32 %v7268_v43, %v7267_v13 }
 0x3e4   : > { %v4008_v16 = vadd.f32 %v4904_v10, %v3746_v39  ;;  %v3740_v50 = vadd.f32 %v3739_v14, %v3458_v1  ;;  %4059 = vst.msk [vmem:[%s6721_s29 + $0xc0] sm:$0xff] %vm236_vm0, %v3990_v6  ;;  %v4114_v32 = vsel %vm236_vm0, %v3990_v6, 0.0  ;;  %v4161_v52 = vmul.f32 %v3990_v6, %v3990_v6  ;;  %v7269_v10 = vld [vmem:[#allocation52_spill] sm:$0xff] }
 0x3e5   : > { %v4849_v36 = vpop.f32.mrf.mxu0  ;;  %v4115_v33 = vadd.f32 %v4114_v32, %v4113_v4  ;;  %v4215_v3 = vadd.f32 %v4214_v46, %v4213_v12  ;;  %v3498_v1 = vadd.f32 %v7269_v10, %v3172_v47  ;;  %v4116_v24 = vsel %vm236_vm0, %v3996_v11, 0.0  ;;  %v4025_v11 = vpop.f32.mrf.mxu1 }
 0x3e6   : > { %4062 = vst.msk [vmem:[%s6721_s29 + $0xd8] sm:$0xff] %vm236_vm0, %v4008_v16  ;;  %v4216_v23 = vsel %vm236_vm0, %v4161_v52, 0.0  ;;  %v4002_v44 = vadd.f32 %v4001_v45, %v3740_v50  ;;  %v3758_v37 = vadd.f32 %v4849_v36, %v3482_v7  ;;  %v4218_v63 = vsel %vm236_vm0, %v4162_v19, 0.0 }
 0x3e7   : > { %v3751_v55 = vpop.f32.mrf.mxu0  ;;  %v4217_v30 = vadd.f32 %v4216_v23, %v4215_v3  ;;  %v4117_v51 = vadd.f32 %v4116_v24, %v4115_v33  ;;  %v4164_v54 = vmul.f32 %v4008_v16, %v4008_v16  ;;  %v4120_v41 = vsel %vm236_vm0, %v4008_v16, 0.0 }
 0x3e8   : > { %v3752_v27 = vadd.f32 %v3751_v55, %v3474_v21  ;;  %4061 = vst.msk [vmem:[%s6721_s29 + $0xd0] sm:$0xff] %vm236_vm0, %v4002_v44  ;;  %v4118_v35 = vsel %vm236_vm0, %v4002_v44, 0.0  ;;  %v4163_v15 = vmul.f32 %v4002_v44, %v4002_v44  ;;  %v4020_v28 = vadd.f32 %v4907_v9, %v3758_v37 }
 0x3e9   : > { %v4852_v53 = vpop.f32.mrf.mxu0  ;;  %v4119_v17 = vadd.f32 %v4118_v35, %v4117_v51  ;;  %v4219_v45 = vadd.f32 %v4218_v63, %v4217_v30  ;;  %v3490_v47 = vadd.f32 %v7270_v26, %v3165_v0  ;;  %v4222_v56 = vsel %vm236_vm0, %v4164_v54, 0.0 }
 0x3ea   : > { %v4014_v40 = vadd.f32 %v4013_v18, %v3752_v27  ;;  %v3770_v48 = vadd.f32 %v4852_v53, %v3498_v1  ;;  %v4220_v2 = vsel %vm236_vm0, %v4163_v15, 0.0  ;;  %4064 = vst.msk [vmem:[%s6721_s29 + $0xe8] sm:$0xff] %vm236_vm0, %v4020_v28  ;;  %v4166_v49 = vmul.f32 %v4020_v28, %v4020_v28 }
 0x3eb   : > { %v3763_v34 = vpop.f32.mrf.mxu0  ;;  %v4221_v29 = vadd.f32 %v4220_v2, %v4219_v45  ;;  %v4121_v61 = vadd.f32 %v4120_v41, %v4119_v17  ;;  %v4124_v60 = vsel %vm236_vm0, %v4020_v28, 0.0 }
 0x3ec   : > { %4063 = vst.msk [vmem:[%s6721_s29 + $0xe0] sm:$0xff] %vm236_vm0, %v4014_v40  ;;  %v4122_v22 = vsel %vm236_vm0, %v4014_v40, 0.0  ;;  %v4165_v42 = vmul.f32 %v4014_v40, %v4014_v40  ;;  %v4032_v5 = vadd.f32 %v4910_v58, %v3770_v48  ;;  %v3764_v62 = vadd.f32 %v3763_v34, %v3490_v47 }
 0x3ed   : > { %v4123_v38 = vadd.f32 %v4122_v22, %v4121_v61  ;;  %v4223_v57 = vadd.f32 %v4222_v56, %v4221_v29  ;;  %v4226_v20 = vsel %vm236_vm0, %v4166_v49, 0.0 }
 0x3ee   : > { %v4224_v59 = vsel %vm236_vm0, %v4165_v42, 0.0  ;;  %4066 = vst.msk [vmem:[%s6721_s29 + $0xf8] sm:$0xff] %vm236_vm0, %v4032_v5  ;;  %v4026_v25 = vadd.f32 %v4025_v11, %v3764_v62  ;;  %v4168_v19 = vmul.f32 %v4032_v5, %v4032_v5  ;;  %v4128_v12 = vsel %vm236_vm0, %v4032_v5, 0.0 }
 0x3ef   : > { %v4225_v9 = vadd.f32 %v4224_v59, %v4223_v57  ;;  %v4125_v39 = vadd.f32 %v4124_v60, %v4123_v38 }
 0x3f0   : > { %4065 = vst.msk [vmem:[%s6721_s29 + $0xf0] sm:$0xff] %vm236_vm0, %v4026_v25  ;;  %v4126_v6 = vsel %vm236_vm0, %v4026_v25, 0.0  ;;  %v4167_v14 = vmul.f32 %v4026_v25, %v4026_v25  ;;  %v4230_v46 = vsel %vm236_vm0, %v4168_v19, 0.0 }
 0x3f1   : > { %v4127_v8 = vadd.f32 %v4126_v6, %v4125_v39  ;;  %v4227_v7 = vadd.f32 %v4226_v20, %v4225_v9 }
 0x3f2   : > { %v4228_v4 = vsel %vm236_vm0, %v4167_v14, 0.0 }
 0x3f3   : > { %v4129_v16 = vadd.f32 %v4128_v12, %v4127_v8  ;;  %v4229_v50 = vadd.f32 %v4228_v4, %v4227_v7 }
 0x3f5   : > { %v4130_v32 = vrot.slane %v4129_v16, 4  ;;  %v4231_v52 = vadd.f32 %v4230_v46, %v4229_v50 }
 0x3f7   : > { %v4131_v36 = vadd.f32 %v4130_v32, %v4129_v16  ;;  %v4232_v31 = vrot.slane %v4231_v52, 4 }
 0x3f9   : > { %v4132_v21 = vrot.slane %v4131_v36, 2  ;;  %v4233_v13 = vadd.f32 %v4232_v31, %v4231_v52 }
 0x3fb   : > { %v4133_v43 = vadd.f32 %v4132_v21, %v4131_v36  ;;  %v4234_v0 = vrot.slane %v4233_v13, 2 }
 0x3fd   : > { %v4134_v33 = vrot.slane %v4133_v43, 1  ;;  %v4235_v3 = vadd.f32 %v4234_v0, %v4233_v13 }
 0x3ff   : > { %v4135_v18 = vadd.f32 %v4134_v33, %v4133_v43  ;;  %v4236_v10 = vrot.slane %v4235_v3, 1 }
 0x401   : > { %4136 = vst.msk [vmem:[%s235_s7] sm:$0x1] %vm245_vm1, %v4135_v18  ;;  %v4237_v1 = vadd.f32 %v4236_v10, %v4235_v3 }
 0x403   : > { %4238 = vst.msk [vmem:[%s235_s7 + $0x1] sm:$0x1] %vm245_vm1, %v4237_v1 }
 0x404 PF: > { %s16_s18 = sadd.s32 1, %s4936_s18  }
 0x405   : > { %p13_p4 = scmp.ge.s32.totalorder %s16_s18, 4  }
 0x407   :  { %15 = sbr.rel (!%p13_p4) target bundleno = 1 (0x1), region = 81 }

</bundles_post_ra>
